<compile_context>
chip_gen: v6e
topology: v6e:2x2x1
jax: 0.10.0
libtpu: 0.0.40
codegen_flags: <defaults>
</compile_context>

<pallas_src>
import functools

import numpy as np
import jax
import jax.numpy as jnp
from jax.experimental import pallas as pl
from jax.experimental.pallas import tpu as pltpu


# ------------------------------------------------------------------ #
# Padded flat-row layout helpers (host-side, numpy)
# ------------------------------------------------------------------ #
def _round_up(x, m):
    return (x + m - 1) // m * m


def _wpad(W):
    """Padded row width: >= W + 2 and == 7 (mod 8) so the in-kernel interior
    store offset (Wp + 1) is sublane aligned."""
    Wp = W + 2
    return Wp + ((7 - Wp) % 8)


def _lrows(H, W):
    """Number of flat conv-output rows computed in-kernel (8-aligned)."""
    return _round_up(H * _wpad(W), 8)


def _rrows(H, W):
    """Padded flat-row buffer length for an (H, W) image."""
    return _lrows(H, W) + 2 * _wpad(W) + 2


@functools.lru_cache(maxsize=None)
def _sel_valid(H, W):
    """(1, H*W, L): select the valid rows of the in-kernel flat conv output,
    producing a dense row-major (h*W + w, C) map."""
    Wp, L = _wpad(W), _lrows(H, W)
    S = np.zeros((1, H * W, L), np.float32)
    for h in range(H):
        for w in range(W):
            S[0, h * W + w, h * Wp + w] = 1.0
    return S


@functools.lru_cache(maxsize=None)
def _sel_pool_to_next(H, W):
    """(4, Rnext, L): 2x2 max-pool selection matrices that also place the
    pooled (H//2, W//2) map directly into the NEXT residual block's
    zero-padded flat-row input layout."""
    Wp, L = _wpad(W), _lrows(H, W)
    Hn, Wn = H // 2, W // 2
    Wnp, Rn = _wpad(Wn), _rrows(Hn, Wn)
    S = np.zeros((4, Rn, L), np.float32)
    for ho in range(Hn):
        for wo in range(Wn):
            dst = (ho + 1) * Wnp + (wo + 1)
            for k, (di, dj) in enumerate(((0, 0), (0, 1), (1, 0), (1, 1))):
                S[k, dst, (2 * ho + di) * Wp + (2 * wo + dj)] = 1.0
    return S


@functools.lru_cache(maxsize=None)
def _repad_dense(H, W):
    """(Rpad, H*W): place a dense row-major (H*W, C) map into the padded
    flat-row layout expected by a following residual block."""
    Wp, R = _wpad(W), _rrows(H, W)
    S = np.zeros((R, H * W), np.float32)
    for h in range(H):
        for w in range(W):
            S[(h + 1) * Wp + (w + 1), h * W + w] = 1.0
    return S


@functools.lru_cache(maxsize=None)
def _convT_scatter(H, W):
    """(4, Rnext, H*W): scatter the 4 output quadrants of a 2x2 / stride-2
    transposed conv into the next residual block's padded flat-row layout."""
    Hn, Wn = 2 * H, 2 * W
    Wnp, Rn = _wpad(Wn), _rrows(Hn, Wn)
    T = np.zeros((4, Rn, H * W), np.float32)
    for h in range(H):
        for w in range(W):
            src = h * W + w
            for k, (di, dj) in enumerate(((0, 0), (0, 1), (1, 0), (1, 1))):
                T[k, (2 * h + di + 1) * Wnp + (2 * w + dj + 1), src] = 1.0
    return T


@functools.lru_cache(maxsize=None)
def _col_mask(H, W):
    """(L, 1): 1.0 on valid columns (w < W), 0.0 on wrap/pad columns."""
    Wp, L = _wpad(W), _lrows(H, W)
    m = np.zeros((L, 1), np.float32)
    for h in range(H):
        m[h * Wp:h * Wp + W, 0] = 1.0
    return m


def _to_flat_padded(x_nhwc):
    """(B, H, W, C) -> (B, R, C) zero-padded flat-row layout."""
    B, H, W, C = x_nhwc.shape
    Wp, R = _wpad(W), _rrows(H, W)
    xp = jnp.pad(x_nhwc, ((0, 0), (1, 1), (1, Wp - W - 1), (0, 0)))
    xp = xp.reshape(B, (H + 2) * Wp, C)
    return jnp.pad(xp, ((0, 0), (0, R - (H + 2) * Wp), (0, 0)))


# ------------------------------------------------------------------ #
# Fused ResidualBlock kernel
#   conv1+bn1+relu -> conv2+bn2 -> (+ skip 1x1 | identity) -> relu
#   -> {valid-crop | 2x2 maxpool + re-pad for next block} [-> final 1x1]
# ------------------------------------------------------------------ #
def _make_resblock_kernel(H, W, Cin, Cout, nsel, has_skip, has_final):
    Wp = _wpad(W)
    L = _lrows(H, W)

    def kernel(*refs):
        it = iter(refs)
        xf_ref = next(it)                      # (R, Cin)   padded flat input
        w1_ref = next(it)                      # (9*Cin, Cout)  bn1-folded
        b1_ref = next(it)                      # (1, Cout)
        w2_ref = next(it)                      # (9*Cout, Cout) bn2-folded
        b2_ref = next(it)                      # (1, Cout)
        wsk_ref = bsk_ref = None
        if has_skip:
            wsk_ref = next(it)                 # (Cin, Cout)  1x1 skip conv
            bsk_ref = next(it)                 # (1, Cout)
        msk_ref = next(it)                     # (L, 1) valid-column mask
        s_ref = next(it)                       # (nsel, Nout, L) selection mats
        wf_ref = bf_ref = None
        if has_final:
            wf_ref = next(it)                  # (Cout, 1)  fused final 1x1
            bf_ref = next(it)                  # (1, 1)
        o_ref = next(it)                       # (Nout, Cout or 1)
        hpad_ref = next(it)                    # VMEM scratch (R, Cout)

        # conv1 + folded bn1 + relu: nine shifted MXU matmuls (no im2col).
        acc = jnp.zeros((L, Cout), jnp.float32)
        for t in range(9):
            off = (t // 3) * Wp + (t % 3)
            acc = acc + jnp.dot(xf_ref[off:off + L, :],
                                w1_ref[t * Cin:(t + 1) * Cin, :],
                                preferred_element_type=jnp.float32)
        h1 = jnp.maximum(acc + b1_ref[...], 0.0) * msk_ref[...]

        # Re-pad the hidden activation for conv2, entirely inside VMEM.
        hpad_ref[...] = jnp.zeros_like(hpad_ref)
        hpad_ref[Wp + 1:Wp + 1 + L, :] = h1

        # conv2 + folded bn2 (Dropout2d is identity in eval mode).
        acc = jnp.zeros((L, Cout), jnp.float32)
        for t in range(9):
            off = (t // 3) * Wp + (t % 3)
            acc = acc + jnp.dot(hpad_ref[off:off + L, :],
                                w2_ref[t * Cout:(t + 1) * Cout, :],
                                preferred_element_type=jnp.float32)
        out = acc + b2_ref[...]

        # Fused residual path (identity or 1x1 skip conv) + relu.
        xres = xf_ref[Wp + 1:Wp + 1 + L, :]
        if has_skip:
            res = jnp.dot(xres, wsk_ref[...],
                          preferred_element_type=jnp.float32) + bsk_ref[...]
        else:
            res = xres
        out = jnp.maximum(out + res, 0.0)

        # Epilogue: valid-crop / 2x2 max-pool / re-pad for the next block,
        # expressed as one-hot selection matmuls (MXU gather/scatter).
        sel = jnp.dot(s_ref[0], out, preferred_element_type=jnp.float32)
        for k in range(1, nsel):
            sel = jnp.maximum(
                sel, jnp.dot(s_ref[k], out, preferred_element_type=jnp.float32))

        if has_final:                          # fused final 1x1 conv (16 -> 1)
            sel = jnp.dot(sel, wf_ref[...],
                          preferred_element_type=jnp.float32) + bf_ref[...]
        o_ref[...] = sel

    return kernel


def residual_block(xf, p, H, W, *, pool, final=None):
    """xf: (B, R, Cin) padded flat input.  Returns
    pool=True : (B, Rnext, Cout)  -- pooled + re-padded for the next block
    pool=False: (B, H*W, Cout)    -- dense row-major map
    final     : (B, H*W, 1)       -- with the 1x1 output conv fused in."""
    B, Rin, Cin = xf.shape
    Cout = p["w1"].shape[1]
    has_skip = "wsk" in p
    Wp, L, R = _wpad(W), _lrows(H, W), _rrows(H, W)
    assert Rin == R, (Rin, R)

    S = jnp.asarray(_sel_pool_to_next(H, W) if pool else _sel_valid(H, W))
    nsel, Nout, _ = S.shape
    msk = jnp.asarray(_col_mask(H, W))

    in_specs = [
        pl.BlockSpec((None, Rin, Cin), lambda b: (b, 0, 0)),
        pl.BlockSpec((9 * Cin, Cout), lambda b: (0, 0)),
        pl.BlockSpec((1, Cout), lambda b: (0, 0)),
        pl.BlockSpec((9 * Cout, Cout), lambda b: (0, 0)),
        pl.BlockSpec((1, Cout), lambda b: (0, 0)),
    ]
    args = [xf, p["w1"], p["b1"], p["w2"], p["b2"]]
    if has_skip:
        in_specs += [pl.BlockSpec((Cin, Cout), lambda b: (0, 0)),
                     pl.BlockSpec((1, Cout), lambda b: (0, 0))]
        args += [p["wsk"], p["bsk"]]
    in_specs += [pl.BlockSpec((L, 1), lambda b: (0, 0)),
                 pl.BlockSpec((nsel, Nout, L), lambda b: (0, 0, 0))]
    args += [msk, S]
    co = Cout
    if final is not None:
        wf, bf = final
        in_specs += [pl.BlockSpec((Cout, 1), lambda b: (0, 0)),
                     pl.BlockSpec((1, 1), lambda b: (0, 0))]
        args += [wf, bf]
        co = 1

    kernel = _make_resblock_kernel(H, W, Cin, Cout, nsel, has_skip,
                                   final is not None)
    return pl.pallas_call(
        kernel,
        out_shape=jax.ShapeDtypeStruct((B, Nout, co), jnp.float32),
        grid=(B,),
        in_specs=in_specs,
        out_specs=pl.BlockSpec((None, Nout, co), lambda b: (b, 0, 0)),
        scratch_shapes=[pltpu.VMEM((R, Cout), jnp.float32)],
        compiler_params=pltpu.CompilerParams(
            dimension_semantics=("parallel",)),
    )(*args)


# ------------------------------------------------------------------ #
# Self-attention kernel (one batch element per grid step, (N, C) layout)
# ------------------------------------------------------------------ #
def _attention_kernel(x_ref, wq_ref, bq_ref, wk_ref, bk_ref, wv_ref, bv_ref,
                      p_ref, gamma_ref, o_ref, *, scale):
    x = x_ref[...]                                         # (N, C)
    q = jnp.dot(x, wq_ref[...], preferred_element_type=jnp.float32) + bq_ref[...]
    k = jnp.dot(x, wk_ref[...], preferred_element_type=jnp.float32) + bk_ref[...]
    v = jnp.dot(x, wv_ref[...], preferred_element_type=jnp.float32) + bv_ref[...]
    s = jax.lax.dot_general(q, k, (((1,), (1,)), ((), ())),
                            preferred_element_type=jnp.float32) * scale
    s = s - jnp.max(s, axis=-1, keepdims=True)
    e = jnp.exp(s)
    attn = e * pl.reciprocal(jnp.sum(e, axis=-1, keepdims=True), approx=True)
    y = x + gamma_ref[0] * jnp.dot(attn, v, preferred_element_type=jnp.float32)
    # Re-pad directly into the next residual block's flat-row layout.
    o_ref[...] = jnp.dot(p_ref[...], y, preferred_element_type=jnp.float32)


def self_attention(x, p, H, W):
    """x: (B, N, C) dense row-major.  Returns (B, Rnext, C) padded flat."""
    B, N, C = x.shape
    Ck = C // 8
    P = jnp.asarray(_repad_dense(H, W))
    R = P.shape[0]
    kernel = functools.partial(_attention_kernel, scale=1.0 / float(np.sqrt(C)))
    return pl.pallas_call(
        kernel,
        out_shape=jax.ShapeDtypeStruct((B, R, C), jnp.float32),
        grid=(B,),
        in_specs=[
            pl.BlockSpec((None, N, C), lambda b: (b, 0, 0)),
            pl.BlockSpec((C, Ck), lambda b: (0, 0)),
            pl.BlockSpec((1, Ck), lambda b: (0, 0)),
            pl.BlockSpec((C, Ck), lambda b: (0, 0)),
            pl.BlockSpec((1, Ck), lambda b: (0, 0)),
            pl.BlockSpec((C, C), lambda b: (0, 0)),
            pl.BlockSpec((1, C), lambda b: (0, 0)),
            pl.BlockSpec((R, N), lambda b: (0, 0)),
            pl.BlockSpec(memory_space=pltpu.MemorySpace.SMEM),
        ],
        out_specs=pl.BlockSpec((None, R, C), lambda b: (b, 0, 0)),
        compiler_params=pltpu.CompilerParams(
            dimension_semantics=("parallel",)),
    )(x, p["wq"], p["bq"], p["wk"], p["bk"], p["wv"], p["bv"], P, p["gamma"])


# ------------------------------------------------------------------ #
# ConvTranspose2d(k=2, s=2) kernel: 4 quadrant matmuls + one-hot scatter
# into the next residual block's padded flat-row layout.
# ------------------------------------------------------------------ #
def _convT_kernel(x_ref, w_ref, b_ref, t_ref, o_ref):
    x = x_ref[...]                                         # (N, Cin)
    acc = None
    for k in range(4):
        y = jnp.dot(x, w_ref[k], preferred_element_type=jnp.float32) + b_ref[...]
        c = jnp.dot(t_ref[k], y, preferred_element_type=jnp.float32)
        acc = c if acc is None else acc + c
    o_ref[...] = acc


def conv_transpose2x2(x, p, H, W):
    """x: (B, H*W, Cin) dense row-major.  Returns (B, Rnext, Cout) flat."""
    B, N, Cin = x.shape
    Cout = p["w"].shape[2]
    T = jnp.asarray(_convT_scatter(H, W))
    R = T.shape[1]
    return pl.pallas_call(
        _convT_kernel,
        out_shape=jax.ShapeDtypeStruct((B, R, Cout), jnp.float32),
        grid=(B,),
        in_specs=[
            pl.BlockSpec((None, N, Cin), lambda b: (b, 0, 0)),
            pl.BlockSpec((4, Cin, Cout), lambda b: (0, 0, 0)),
            pl.BlockSpec((1, Cout), lambda b: (0, 0)),
            pl.BlockSpec((4, R, N), lambda b: (0, 0, 0)),
        ],
        out_specs=pl.BlockSpec((None, R, Cout), lambda b: (b, 0, 0)),
        compiler_params=pltpu.CompilerParams(
            dimension_semantics=("parallel",)),
    )(x, p["w"], p["b"], T)


# ------------------------------------------------------------------ #
# Parameter init (synthetic, deterministic) with BN folded at prep time
# ------------------------------------------------------------------ #
def _conv3x3_to_mat(w):        # (Cout, Cin, 3, 3) -> (9*Cin, Cout), tap-major
    cout, cin = w.shape[0], w.shape[1]
    return jnp.transpose(w, (2, 3, 1, 0)).reshape(9 * cin, cout)


def _init_bn(key, c):
    ks = jax.random.split(key, 4)
    return {"gamma": 1.0 + 0.1 * jax.random.normal(ks[0], (c,)),
            "beta": 0.1 * jax.random.normal(ks[1], (c,)),
            "mean": 0.1 * jax.random.normal(ks[2], (c,)),
            "var": 1.0 + 0.1 * jnp.abs(jax.random.normal(ks[3], (c,)))}


def _fold_bn(w_mat, conv_b, bn, eps=1e-5):
    s = bn["gamma"] / jnp.sqrt(bn["var"] + eps)
    return w_mat * s[None, :], ((conv_b - bn["mean"]) * s + bn["beta"]).reshape(1, -1)


def _init_residual_block(key, cin, cout):
    ks = jax.random.split(key, 8)
    w1 = 0.1 * jax.random.normal(ks[0], (cout, cin, 3, 3))
    b1 = 0.05 * jax.random.normal(ks[1], (cout,))
    w2 = 0.1 * jax.random.normal(ks[3], (cout, cout, 3, 3))
    b2 = 0.05 * jax.random.normal(ks[4], (cout,))
    w1m, b1f = _fold_bn(_conv3x3_to_mat(w1), b1, _init_bn(ks[2], cout))
    w2m, b2f = _fold_bn(_conv3x3_to_mat(w2), b2, _init_bn(ks[5], cout))
    p = {"w1": w1m, "b1": b1f, "w2": w2m, "b2": b2f}
    if cin != cout:
        p["wsk"] = 0.1 * jax.random.normal(ks[6], (cin, cout))   # 1x1 skip conv
        p["bsk"] = 0.05 * jax.random.normal(ks[7], (1, cout))
    return p


def _init_attention(key, c):
    ks = jax.random.split(key, 6)
    ck = c // 8
    return {"wq": 0.1 * jax.random.normal(ks[0], (c, ck)),
            "bq": 0.05 * jax.random.normal(ks[1], (1, ck)),
            "wk": 0.1 * jax.random.normal(ks[2], (c, ck)),
            "bk": 0.05 * jax.random.normal(ks[3], (1, ck)),
            "wv": 0.1 * jax.random.normal(ks[4], (c, c)),
            "bv": 0.05 * jax.random.normal(ks[5], (1, c)),
            # nn.Parameter(torch.zeros(1)) at init; nonzero here so the
            # attention path contributes numerically to the synthetic output.
            "gamma": jnp.array([0.1], jnp.float32)}


def _init_conv_transpose(key, cin, cout):
    k1, k2 = jax.random.split(key)
    w = 0.1 * jax.random.normal(k1, (cin, cout, 2, 2))       # PyTorch layout
    # (Cin, Cout, 2, 2) -> (4, Cin, Cout), quadrant-major (di, dj)
    wq = jnp.transpose(w, (2, 3, 0, 1)).reshape(4, cin, cout)
    return {"w": wq, "b": 0.05 * jax.random.normal(k2, (1, cout))}


def init_params(key):
    ks = jax.random.split(key, 11)
    return {
        "enc1": _init_residual_block(ks[0], 2, 32),
        "enc2": _init_residual_block(ks[1], 32, 64),
        "mid1": _init_residual_block(ks[2], 64, 128),
        "attn": _init_attention(ks[3], 128),
        "mid2": _init_residual_block(ks[4], 128, 128),
        "dec_ct1": _init_conv_transpose(ks[5], 128, 64),
        "dec_rb1": _init_residual_block(ks[6], 64, 64),
        "dec_ct2": _init_conv_transpose(ks[7], 64, 32),
        "dec_rb2": _init_residual_block(ks[8], 32, 16),
        "final_w": 0.1 * jax.random.normal(ks[9], (16, 1)),
        "final_b": 0.05 * jax.random.normal(ks[10], (1, 1)),
    }


# ------------------------------------------------------------------ #
# Full model forward (NCHW in, NCHW out -- matches the PyTorch module)
# ------------------------------------------------------------------ #
def rainfall_cnn(x_nchw, params):
    B, _, H, W = x_nchw.shape
    x = jnp.transpose(x_nchw, (0, 2, 3, 1)).astype(jnp.float32)   # NHWC
    x = _to_flat_padded(x)                                        # (B, R, 2)

    # encoder: ResidualBlock with fused MaxPool2d(2); outputs are already
    # re-padded into the next block's flat-row layout.
    x = residual_block(x, params["enc1"], H, W, pool=True)
    H, W = H // 2, W // 2
    x = residual_block(x, params["enc2"], H, W, pool=True)
    H, W = H // 2, W // 2

    # middle: ResidualBlock -> SelfAttention -> ResidualBlock
    x = residual_block(x, params["mid1"], H, W, pool=False)       # (B, N, 128)
    x = self_attention(x, params["attn"], H, W)                   # flat-padded
    x = residual_block(x, params["mid2"], H, W, pool=False)       # (B, N, 128)

    # decoder: ConvT -> RB -> ConvT -> RB(+fused final 1x1 conv)
    x = conv_transpose2x2(x, params["dec_ct1"], H, W)              # flat, 2x up
    H, W = 2 * H, 2 * W
    x = residual_block(x, params["dec_rb1"], H, W, pool=False)     # (B, N, 64)
    x = conv_transpose2x2(x, params["dec_ct2"], H, W)              # flat, 2x up
    H, W = 2 * H, 2 * W
    y = residual_block(x, params["dec_rb2"], H, W, pool=False,
                       final=(params["final_w"], params["final_b"]))
    y = y.reshape(B, H, W, 1)
    return jnp.transpose(y, (0, 3, 1, 2))                          # NCHW


if __name__ == "__main__":
    key = jax.random.PRNGKey(0)
    kx, kp = jax.random.split(key)
    # NCHW, 2 input channels, spatial divisible by 4 (2x MaxPool2d + 2x ConvT).
    x = jax.random.normal(kx, (2, 2, 16, 16), jnp.float32)
    params = init_params(kp)
    y = rainfall_cnn(x, params)
    jax.block_until_ready(y)
    assert y.shape == (2, 1, 16, 16), y.shape
    assert bool(jnp.all(jnp.isfinite(y)))
    print("KERNEL_OK")
</pallas_src>

<mosaic_0001>
module attributes {stable_mosaic.version = 11 : i64} {
  func.func @kernel(%arg0: i32, %arg1: memref<1x416x2xf32, #tpu.memory_space<vmem>>, %arg2: memref<18x32xf32, #tpu.memory_space<vmem>>, %arg3: memref<1x32xf32, #tpu.memory_space<vmem>>, %arg4: memref<288x32xf32, #tpu.memory_space<vmem>>, %arg5: memref<1x32xf32, #tpu.memory_space<vmem>>, %arg6: memref<2x32xf32, #tpu.memory_space<vmem>>, %arg7: memref<1x32xf32, #tpu.memory_space<vmem>>, %arg8: memref<368x1xf32, #tpu.memory_space<vmem>>, %arg9: memref<4x152x368xf32, #tpu.memory_space<vmem>>, %arg10: memref<1x152x32xf32, #tpu.memory_space<vmem>>, %arg11: memref<416x32xf32, #tpu.memory_space<vmem>>) attributes {dimension_semantics = [#tpu.dimension_semantics<parallel>], iteration_bounds = array<i64: 2>, scalar_prefetch = 0 : i64, scratch_operands = 1 : i64, tpu.core_type = #tpu.core_type<tc>, window_params = [{transform_indices = @transform_0, window_bounds = array<i64: 1, 416, 2>}, {pipeline_mode = #tpu.pipeline_mode<synchronous>, transform_indices = @transform_1, window_bounds = array<i64: 18, 32>}, {pipeline_mode = #tpu.pipeline_mode<synchronous>, transform_indices = @transform_2, window_bounds = array<i64: 1, 32>}, {pipeline_mode = #tpu.pipeline_mode<synchronous>, transform_indices = @transform_3, window_bounds = array<i64: 288, 32>}, {pipeline_mode = #tpu.pipeline_mode<synchronous>, transform_indices = @transform_4, window_bounds = array<i64: 1, 32>}, {pipeline_mode = #tpu.pipeline_mode<synchronous>, transform_indices = @transform_5, window_bounds = array<i64: 2, 32>}, {pipeline_mode = #tpu.pipeline_mode<synchronous>, transform_indices = @transform_6, window_bounds = array<i64: 1, 32>}, {pipeline_mode = #tpu.pipeline_mode<synchronous>, transform_indices = @transform_7, window_bounds = array<i64: 368, 1>}, {pipeline_mode = #tpu.pipeline_mode<synchronous>, transform_indices = @transform_8, window_bounds = array<i64: 4, 152, 368>}, {transform_indices = @transform_9, window_bounds = array<i64: 1, 152, 32>}]} {
    %cst = arith.constant 0.000000e+00 : f32
    %0 = vector.broadcast %cst : f32 to vector<368x32xf32>
    %c0 = arith.constant 0 : index
    %c0_0 = arith.constant 0 : index
    %c0_1 = arith.constant 0 : index
    %1 = vector.load %arg1[%c0, %c0_0, %c0_1] : memref<1x416x2xf32, #tpu.memory_space<vmem>>, vector<1x368x2xf32>
    %2 = vector.shape_cast %1 : vector<1x368x2xf32> to vector<368x2xf32>
    %c0_2 = arith.constant 0 : index
    %c0_3 = arith.constant 0 : index
    %3 = vector.load %arg2[%c0_2, %c0_3] : memref<18x32xf32, #tpu.memory_space<vmem>>, vector<2x32xf32>
    %cst_4 = arith.constant dense<0.000000e+00> : vector<368x32xf32>
    %4 = tpu.matmul %2, %3, %cst_4 {dimension_numbers = #tpu.dot_dimension_numbers<[1], [0], [0], [1], [0, 0, 1, 1], [], []>} : vector<368x2xf32>, vector<2x32xf32>, vector<368x32xf32> -> vector<368x32xf32>
    %5 = arith.addf %0, %4 : vector<368x32xf32>
    %c0_5 = arith.constant 0 : index
    %c1 = arith.constant 1 : index
    %c0_6 = arith.constant 0 : index
    %6 = vector.load %arg1[%c0_5, %c1, %c0_6] : memref<1x416x2xf32, #tpu.memory_space<vmem>>, vector<1x368x2xf32>
    %7 = vector.shape_cast %6 : vector<1x368x2xf32> to vector<368x2xf32>
    %c2 = arith.constant 2 : index
    %c0_7 = arith.constant 0 : index
    %8 = vector.load %arg2[%c2, %c0_7] : memref<18x32xf32, #tpu.memory_space<vmem>>, vector<2x32xf32>
    %cst_8 = arith.constant dense<0.000000e+00> : vector<368x32xf32>
    %9 = tpu.matmul %7, %8, %cst_8 {dimension_numbers = #tpu.dot_dimension_numbers<[1], [0], [0], [1], [0, 0, 1, 1], [], []>} : vector<368x2xf32>, vector<2x32xf32>, vector<368x32xf32> -> vector<368x32xf32>
    %10 = arith.addf %5, %9 : vector<368x32xf32>
    %c0_9 = arith.constant 0 : index
    %c2_10 = arith.constant 2 : index
    %c0_11 = arith.constant 0 : index
    %11 = vector.load %arg1[%c0_9, %c2_10, %c0_11] : memref<1x416x2xf32, #tpu.memory_space<vmem>>, vector<1x368x2xf32>
    %12 = vector.shape_cast %11 : vector<1x368x2xf32> to vector<368x2xf32>
    %c4 = arith.constant 4 : index
    %c0_12 = arith.constant 0 : index
    %13 = vector.load %arg2[%c4, %c0_12] : memref<18x32xf32, #tpu.memory_space<vmem>>, vector<2x32xf32>
    %cst_13 = arith.constant dense<0.000000e+00> : vector<368x32xf32>
    %14 = tpu.matmul %12, %13, %cst_13 {dimension_numbers = #tpu.dot_dimension_numbers<[1], [0], [0], [1], [0, 0, 1, 1], [], []>} : vector<368x2xf32>, vector<2x32xf32>, vector<368x32xf32> -> vector<368x32xf32>
    %15 = arith.addf %10, %14 : vector<368x32xf32>
    %c0_14 = arith.constant 0 : index
    %c23 = arith.constant 23 : index
    %c0_15 = arith.constant 0 : index
    %16 = vector.load %arg1[%c0_14, %c23, %c0_15] : memref<1x416x2xf32, #tpu.memory_space<vmem>>, vector<1x368x2xf32>
    %17 = vector.shape_cast %16 : vector<1x368x2xf32> to vector<368x2xf32>
    %c6 = arith.constant 6 : index
    %c0_16 = arith.constant 0 : index
    %18 = vector.load %arg2[%c6, %c0_16] : memref<18x32xf32, #tpu.memory_space<vmem>>, vector<2x32xf32>
    %cst_17 = arith.constant dense<0.000000e+00> : vector<368x32xf32>
    %19 = tpu.matmul %17, %18, %cst_17 {dimension_numbers = #tpu.dot_dimension_numbers<[1], [0], [0], [1], [0, 0, 1, 1], [], []>} : vector<368x2xf32>, vector<2x32xf32>, vector<368x32xf32> -> vector<368x32xf32>
    %20 = arith.addf %15, %19 : vector<368x32xf32>
    %c0_18 = arith.constant 0 : index
    %c24 = arith.constant 24 : index
    %c0_19 = arith.constant 0 : index
    %21 = vector.load %arg1[%c0_18, %c24, %c0_19] : memref<1x416x2xf32, #tpu.memory_space<vmem>>, vector<1x368x2xf32>
    %22 = vector.shape_cast %21 : vector<1x368x2xf32> to vector<368x2xf32>
    %c8 = arith.constant 8 : index
    %c0_20 = arith.constant 0 : index
    %23 = vector.load %arg2[%c8, %c0_20] : memref<18x32xf32, #tpu.memory_space<vmem>>, vector<2x32xf32>
    %cst_21 = arith.constant dense<0.000000e+00> : vector<368x32xf32>
    %24 = tpu.matmul %22, %23, %cst_21 {dimension_numbers = #tpu.dot_dimension_numbers<[1], [0], [0], [1], [0, 0, 1, 1], [], []>} : vector<368x2xf32>, vector<2x32xf32>, vector<368x32xf32> -> vector<368x32xf32>
    %25 = arith.addf %20, %24 : vector<368x32xf32>
    %c0_22 = arith.constant 0 : index
    %c25 = arith.constant 25 : index
    %c0_23 = arith.constant 0 : index
    %26 = vector.load %arg1[%c0_22, %c25, %c0_23] : memref<1x416x2xf32, #tpu.memory_space<vmem>>, vector<1x368x2xf32>
    %27 = vector.shape_cast %26 : vector<1x368x2xf32> to vector<368x2xf32>
    %c10 = arith.constant 10 : index
    %c0_24 = arith.constant 0 : index
    %28 = vector.load %arg2[%c10, %c0_24] : memref<18x32xf32, #tpu.memory_space<vmem>>, vector<2x32xf32>
    %cst_25 = arith.constant dense<0.000000e+00> : vector<368x32xf32>
    %29 = tpu.matmul %27, %28, %cst_25 {dimension_numbers = #tpu.dot_dimension_numbers<[1], [0], [0], [1], [0, 0, 1, 1], [], []>} : vector<368x2xf32>, vector<2x32xf32>, vector<368x32xf32> -> vector<368x32xf32>
    %30 = arith.addf %25, %29 : vector<368x32xf32>
    %c0_26 = arith.constant 0 : index
    %c46 = arith.constant 46 : index
    %c0_27 = arith.constant 0 : index
    %31 = vector.load %arg1[%c0_26, %c46, %c0_27] : memref<1x416x2xf32, #tpu.memory_space<vmem>>, vector<1x368x2xf32>
    %32 = vector.shape_cast %31 : vector<1x368x2xf32> to vector<368x2xf32>
    %c12 = arith.constant 12 : index
    %c0_28 = arith.constant 0 : index
    %33 = vector.load %arg2[%c12, %c0_28] : memref<18x32xf32, #tpu.memory_space<vmem>>, vector<2x32xf32>
    %cst_29 = arith.constant dense<0.000000e+00> : vector<368x32xf32>
    %34 = tpu.matmul %32, %33, %cst_29 {dimension_numbers = #tpu.dot_dimension_numbers<[1], [0], [0], [1], [0, 0, 1, 1], [], []>} : vector<368x2xf32>, vector<2x32xf32>, vector<368x32xf32> -> vector<368x32xf32>
    %35 = arith.addf %30, %34 : vector<368x32xf32>
    %c0_30 = arith.constant 0 : index
    %c47 = arith.constant 47 : index
    %c0_31 = arith.constant 0 : index
    %36 = vector.load %arg1[%c0_30, %c47, %c0_31] : memref<1x416x2xf32, #tpu.memory_space<vmem>>, vector<1x368x2xf32>
    %37 = vector.shape_cast %36 : vector<1x368x2xf32> to vector<368x2xf32>
    %c14 = arith.constant 14 : index
    %c0_32 = arith.constant 0 : index
    %38 = vector.load %arg2[%c14, %c0_32] : memref<18x32xf32, #tpu.memory_space<vmem>>, vector<2x32xf32>
    %cst_33 = arith.constant dense<0.000000e+00> : vector<368x32xf32>
    %39 = tpu.matmul %37, %38, %cst_33 {dimension_numbers = #tpu.dot_dimension_numbers<[1], [0], [0], [1], [0, 0, 1, 1], [], []>} : vector<368x2xf32>, vector<2x32xf32>, vector<368x32xf32> -> vector<368x32xf32>
    %40 = arith.addf %35, %39 : vector<368x32xf32>
    %c0_34 = arith.constant 0 : index
    %c48 = arith.constant 48 : index
    %c0_35 = arith.constant 0 : index
    %41 = vector.load %arg1[%c0_34, %c48, %c0_35] : memref<1x416x2xf32, #tpu.memory_space<vmem>>, vector<1x368x2xf32>
    %42 = vector.shape_cast %41 : vector<1x368x2xf32> to vector<368x2xf32>
    %c16 = arith.constant 16 : index
    %c0_36 = arith.constant 0 : index
    %43 = vector.load %arg2[%c16, %c0_36] : memref<18x32xf32, #tpu.memory_space<vmem>>, vector<2x32xf32>
    %cst_37 = arith.constant dense<0.000000e+00> : vector<368x32xf32>
    %44 = tpu.matmul %42, %43, %cst_37 {dimension_numbers = #tpu.dot_dimension_numbers<[1], [0], [0], [1], [0, 0, 1, 1], [], []>} : vector<368x2xf32>, vector<2x32xf32>, vector<368x32xf32> -> vector<368x32xf32>
    %45 = arith.addf %40, %44 : vector<368x32xf32>
    %c0_38 = arith.constant 0 : index
    %c0_39 = arith.constant 0 : index
    %46 = vector.load %arg3[%c0_38, %c0_39] : memref<1x32xf32, #tpu.memory_space<vmem>>, vector<1x32xf32>
    %47 = vector.broadcast %46 : vector<1x32xf32> to vector<368x32xf32>
    %48 = arith.addf %45, %47 : vector<368x32xf32>
    %cst_40 = arith.constant 0.000000e+00 : f32
    %49 = vector.broadcast %cst_40 : f32 to vector<368x32xf32>
    %50 = arith.maximumf %48, %49 : vector<368x32xf32>
    %c0_41 = arith.constant 0 : index
    %c0_42 = arith.constant 0 : index
    %51 = vector.load %arg8[%c0_41, %c0_42] : memref<368x1xf32, #tpu.memory_space<vmem>>, vector<368x1xf32>
    %52 = vector.broadcast %51 : vector<368x1xf32> to vector<368x32xf32>
    %53 = arith.mulf %50, %52 : vector<368x32xf32>
    %cst_43 = arith.constant 0.000000e+00 : f32
    %54 = vector.broadcast %cst_43 : f32 to vector<416x32xf32>
    %c0_44 = arith.constant 0 : index
    %c0_45 = arith.constant 0 : index
    %55 = vector.load %arg11[%c0_44, %c0_45] : memref<416x32xf32, #tpu.memory_space<vmem>>, vector<416x32xf32>
    tpu.vector_store %arg11[%c0_44, %c0_45], %54 {strides = array<i32>} : memref<416x32xf32, #tpu.memory_space<vmem>>, vector<416x32xf32>,
    %c24_46 = arith.constant 24 : index
    %c0_47 = arith.constant 0 : index
    %56 = vector.load %arg11[%c24_46, %c0_47] : memref<416x32xf32, #tpu.memory_space<vmem>>, vector<368x32xf32>
    tpu.vector_store %arg11[%c24_46, %c0_47], %53 {strides = array<i32>} : memref<416x32xf32, #tpu.memory_space<vmem>>, vector<368x32xf32>,
    %cst_48 = arith.constant 0.000000e+00 : f32
    %57 = vector.broadcast %cst_48 : f32 to vector<368x32xf32>
    %c0_49 = arith.constant 0 : index
    %c0_50 = arith.constant 0 : index
    %58 = vector.load %arg11[%c0_49, %c0_50] : memref<416x32xf32, #tpu.memory_space<vmem>>, vector<368x32xf32>
    %c0_51 = arith.constant 0 : index
    %c0_52 = arith.constant 0 : index
    %59 = vector.load %arg4[%c0_51, %c0_52] : memref<288x32xf32, #tpu.memory_space<vmem>>, vector<32x32xf32>
    %cst_53 = arith.constant dense<0.000000e+00> : vector<368x32xf32>
    %60 = tpu.matmul %58, %59, %cst_53 {dimension_numbers = #tpu.dot_dimension_numbers<[1], [0], [0], [1], [0, 0, 1, 1], [], []>} : vector<368x32xf32>, vector<32x32xf32>, vector<368x32xf32> -> vector<368x32xf32>
    %61 = arith.addf %57, %60 : vector<368x32xf32>
    %c1_54 = arith.constant 1 : index
    %c0_55 = arith.constant 0 : index
    %62 = vector.load %arg11[%c1_54, %c0_55] : memref<416x32xf32, #tpu.memory_space<vmem>>, vector<368x32xf32>
    %c32 = arith.constant 32 : index
    %c0_56 = arith.constant 0 : index
    %63 = vector.load %arg4[%c32, %c0_56] : memref<288x32xf32, #tpu.memory_space<vmem>>, vector<32x32xf32>
    %cst_57 = arith.constant dense<0.000000e+00> : vector<368x32xf32>
    %64 = tpu.matmul %62, %63, %cst_57 {dimension_numbers = #tpu.dot_dimension_numbers<[1], [0], [0], [1], [0, 0, 1, 1], [], []>} : vector<368x32xf32>, vector<32x32xf32>, vector<368x32xf32> -> vector<368x32xf32>
    %65 = arith.addf %61, %64 : vector<368x32xf32>
    %c2_58 = arith.constant 2 : index
    %c0_59 = arith.constant 0 : index
    %66 = vector.load %arg11[%c2_58, %c0_59] : memref<416x32xf32, #tpu.memory_space<vmem>>, vector<368x32xf32>
    %c64 = arith.constant 64 : index
    %c0_60 = arith.constant 0 : index
    %67 = vector.load %arg4[%c64, %c0_60] : memref<288x32xf32, #tpu.memory_space<vmem>>, vector<32x32xf32>
    %cst_61 = arith.constant dense<0.000000e+00> : vector<368x32xf32>
    %68 = tpu.matmul %66, %67, %cst_61 {dimension_numbers = #tpu.dot_dimension_numbers<[1], [0], [0], [1], [0, 0, 1, 1], [], []>} : vector<368x32xf32>, vector<32x32xf32>, vector<368x32xf32> -> vector<368x32xf32>
    %69 = arith.addf %65, %68 : vector<368x32xf32>
    %c23_62 = arith.constant 23 : index
    %c0_63 = arith.constant 0 : index
    %70 = vector.load %arg11[%c23_62, %c0_63] : memref<416x32xf32, #tpu.memory_space<vmem>>, vector<368x32xf32>
    %c96 = arith.constant 96 : index
    %c0_64 = arith.constant 0 : index
    %71 = vector.load %arg4[%c96, %c0_64] : memref<288x32xf32, #tpu.memory_space<vmem>>, vector<32x32xf32>
    %cst_65 = arith.constant dense<0.000000e+00> : vector<368x32xf32>
    %72 = tpu.matmul %70, %71, %cst_65 {dimension_numbers = #tpu.dot_dimension_numbers<[1], [0], [0], [1], [0, 0, 1, 1], [], []>} : vector<368x32xf32>, vector<32x32xf32>, vector<368x32xf32> -> vector<368x32xf32>
    %73 = arith.addf %69, %72 : vector<368x32xf32>
    %c24_66 = arith.constant 24 : index
    %c0_67 = arith.constant 0 : index
    %74 = vector.load %arg11[%c24_66, %c0_67] : memref<416x32xf32, #tpu.memory_space<vmem>>, vector<368x32xf32>
    %c128 = arith.constant 128 : index
    %c0_68 = arith.constant 0 : index
    %75 = vector.load %arg4[%c128, %c0_68] : memref<288x32xf32, #tpu.memory_space<vmem>>, vector<32x32xf32>
    %cst_69 = arith.constant dense<0.000000e+00> : vector<368x32xf32>
    %76 = tpu.matmul %74, %75, %cst_69 {dimension_numbers = #tpu.dot_dimension_numbers<[1], [0], [0], [1], [0, 0, 1, 1], [], []>} : vector<368x32xf32>, vector<32x32xf32>, vector<368x32xf32> -> vector<368x32xf32>
    %77 = arith.addf %73, %76 : vector<368x32xf32>
    %c25_70 = arith.constant 25 : index
    %c0_71 = arith.constant 0 : index
    %78 = vector.load %arg11[%c25_70, %c0_71] : memref<416x32xf32, #tpu.memory_space<vmem>>, vector<368x32xf32>
    %c160 = arith.constant 160 : index
    %c0_72 = arith.constant 0 : index
    %79 = vector.load %arg4[%c160, %c0_72] : memref<288x32xf32, #tpu.memory_space<vmem>>, vector<32x32xf32>
    %cst_73 = arith.constant dense<0.000000e+00> : vector<368x32xf32>
    %80 = tpu.matmul %78, %79, %cst_73 {dimension_numbers = #tpu.dot_dimension_numbers<[1], [0], [0], [1], [0, 0, 1, 1], [], []>} : vector<368x32xf32>, vector<32x32xf32>, vector<368x32xf32> -> vector<368x32xf32>
    %81 = arith.addf %77, %80 : vector<368x32xf32>
    %c46_74 = arith.constant 46 : index
    %c0_75 = arith.constant 0 : index
    %82 = vector.load %arg11[%c46_74, %c0_75] : memref<416x32xf32, #tpu.memory_space<vmem>>, vector<368x32xf32>
    %c192 = arith.constant 192 : index
    %c0_76 = arith.constant 0 : index
    %83 = vector.load %arg4[%c192, %c0_76] : memref<288x32xf32, #tpu.memory_space<vmem>>, vector<32x32xf32>
    %cst_77 = arith.constant dense<0.000000e+00> : vector<368x32xf32>
    %84 = tpu.matmul %82, %83, %cst_77 {dimension_numbers = #tpu.dot_dimension_numbers<[1], [0], [0], [1], [0, 0, 1, 1], [], []>} : vector<368x32xf32>, vector<32x32xf32>, vector<368x32xf32> -> vector<368x32xf32>
    %85 = arith.addf %81, %84 : vector<368x32xf32>
    %c47_78 = arith.constant 47 : index
    %c0_79 = arith.constant 0 : index
    %86 = vector.load %arg11[%c47_78, %c0_79] : memref<416x32xf32, #tpu.memory_space<vmem>>, vector<368x32xf32>
    %c224 = arith.constant 224 : index
    %c0_80 = arith.constant 0 : index
    %87 = vector.load %arg4[%c224, %c0_80] : memref<288x32xf32, #tpu.memory_space<vmem>>, vector<32x32xf32>
    %cst_81 = arith.constant dense<0.000000e+00> : vector<368x32xf32>
    %88 = tpu.matmul %86, %87, %cst_81 {dimension_numbers = #tpu.dot_dimension_numbers<[1], [0], [0], [1], [0, 0, 1, 1], [], []>} : vector<368x32xf32>, vector<32x32xf32>, vector<368x32xf32> -> vector<368x32xf32>
    %89 = arith.addf %85, %88 : vector<368x32xf32>
    %c48_82 = arith.constant 48 : index
    %c0_83 = arith.constant 0 : index
    %90 = vector.load %arg11[%c48_82, %c0_83] : memref<416x32xf32, #tpu.memory_space<vmem>>, vector<368x32xf32>
    %c256 = arith.constant 256 : index
    %c0_84 = arith.constant 0 : index
    %91 = vector.load %arg4[%c256, %c0_84] : memref<288x32xf32, #tpu.memory_space<vmem>>, vector<32x32xf32>
    %cst_85 = arith.constant dense<0.000000e+00> : vector<368x32xf32>
    %92 = tpu.matmul %90, %91, %cst_85 {dimension_numbers = #tpu.dot_dimension_numbers<[1], [0], [0], [1], [0, 0, 1, 1], [], []>} : vector<368x32xf32>, vector<32x32xf32>, vector<368x32xf32> -> vector<368x32xf32>
    %93 = arith.addf %89, %92 : vector<368x32xf32>
    %c0_86 = arith.constant 0 : index
    %c0_87 = arith.constant 0 : index
    %94 = vector.load %arg5[%c0_86, %c0_87] : memref<1x32xf32, #tpu.memory_space<vmem>>, vector<1x32xf32>
    %95 = vector.broadcast %94 : vector<1x32xf32> to vector<368x32xf32>
    %96 = arith.addf %93, %95 : vector<368x32xf32>
    %c0_88 = arith.constant 0 : index
    %c24_89 = arith.constant 24 : index
    %c0_90 = arith.constant 0 : index
    %97 = vector.load %arg1[%c0_88, %c24_89, %c0_90] : memref<1x416x2xf32, #tpu.memory_space<vmem>>, vector<1x368x2xf32>
    %98 = vector.shape_cast %97 : vector<1x368x2xf32> to vector<368x2xf32>
    %c0_91 = arith.constant 0 : index
    %c0_92 = arith.constant 0 : index
    %99 = vector.load %arg6[%c0_91, %c0_92] : memref<2x32xf32, #tpu.memory_space<vmem>>, vector<2x32xf32>
    %cst_93 = arith.constant dense<0.000000e+00> : vector<368x32xf32>
    %100 = tpu.matmul %98, %99, %cst_93 {dimension_numbers = #tpu.dot_dimension_numbers<[1], [0], [0], [1], [0, 0, 1, 1], [], []>} : vector<368x2xf32>, vector<2x32xf32>, vector<368x32xf32> -> vector<368x32xf32>
    %c0_94 = arith.constant 0 : index
    %c0_95 = arith.constant 0 : index
    %101 = vector.load %arg7[%c0_94, %c0_95] : memref<1x32xf32, #tpu.memory_space<vmem>>, vector<1x32xf32>
    %102 = vector.broadcast %101 : vector<1x32xf32> to vector<368x32xf32>
    %103 = arith.addf %100, %102 : vector<368x32xf32>
    %104 = arith.addf %96, %103 : vector<368x32xf32>
    %cst_96 = arith.constant 0.000000e+00 : f32
    %105 = vector.broadcast %cst_96 : f32 to vector<368x32xf32>
    %106 = arith.maximumf %104, %105 : vector<368x32xf32>
    %c0_97 = arith.constant 0 : index
    %c0_98 = arith.constant 0 : index
    %c0_99 = arith.constant 0 : index
    %107 = vector.load %arg9[%c0_97, %c0_98, %c0_99] : memref<4x152x368xf32, #tpu.memory_space<vmem>>, vector<1x152x368xf32>
    %108 = vector.shape_cast %107 : vector<1x152x368xf32> to vector<152x368xf32>
    %cst_100 = arith.constant dense<0.000000e+00> : vector<152x32xf32>
    %109 = tpu.matmul %108, %106, %cst_100 {dimension_numbers = #tpu.dot_dimension_numbers<[1], [0], [0], [1], [0, 0, 1, 1], [], []>} : vector<152x368xf32>, vector<368x32xf32>, vector<152x32xf32> -> vector<152x32xf32>
    %c1_101 = arith.constant 1 : index
    %c0_102 = arith.constant 0 : index
    %c0_103 = arith.constant 0 : index
    %110 = vector.load %arg9[%c1_101, %c0_102, %c0_103] : memref<4x152x368xf32, #tpu.memory_space<vmem>>, vector<1x152x368xf32>
    %111 = vector.shape_cast %110 : vector<1x152x368xf32> to vector<152x368xf32>
    %cst_104 = arith.constant dense<0.000000e+00> : vector<152x32xf32>
    %112 = tpu.matmul %111, %106, %cst_104 {dimension_numbers = #tpu.dot_dimension_numbers<[1], [0], [0], [1], [0, 0, 1, 1], [], []>} : vector<152x368xf32>, vector<368x32xf32>, vector<152x32xf32> -> vector<152x32xf32>
    %113 = arith.maximumf %109, %112 : vector<152x32xf32>
    %c2_105 = arith.constant 2 : index
    %c0_106 = arith.constant 0 : index
    %c0_107 = arith.constant 0 : index
    %114 = vector.load %arg9[%c2_105, %c0_106, %c0_107] : memref<4x152x368xf32, #tpu.memory_space<vmem>>, vector<1x152x368xf32>
    %115 = vector.shape_cast %114 : vector<1x152x368xf32> to vector<152x368xf32>
    %cst_108 = arith.constant dense<0.000000e+00> : vector<152x32xf32>
    %116 = tpu.matmul %115, %106, %cst_108 {dimension_numbers = #tpu.dot_dimension_numbers<[1], [0], [0], [1], [0, 0, 1, 1], [], []>} : vector<152x368xf32>, vector<368x32xf32>, vector<152x32xf32> -> vector<152x32xf32>
    %117 = arith.maximumf %113, %116 : vector<152x32xf32>
    %c3 = arith.constant 3 : index
    %c0_109 = arith.constant 0 : index
    %c0_110 = arith.constant 0 : index
    %118 = vector.load %arg9[%c3, %c0_109, %c0_110] : memref<4x152x368xf32, #tpu.memory_space<vmem>>, vector<1x152x368xf32>
    %119 = vector.shape_cast %118 : vector<1x152x368xf32> to vector<152x368xf32>
    %cst_111 = arith.constant dense<0.000000e+00> : vector<152x32xf32>
    %120 = tpu.matmul %119, %106, %cst_111 {dimension_numbers = #tpu.dot_dimension_numbers<[1], [0], [0], [1], [0, 0, 1, 1], [], []>} : vector<152x368xf32>, vector<368x32xf32>, vector<152x32xf32> -> vector<152x32xf32>
    %121 = arith.maximumf %117, %120 : vector<152x32xf32>
    %c0_112 = arith.constant 0 : index
    %c0_113 = arith.constant 0 : index
    %c0_114 = arith.constant 0 : index
    %122 = vector.load %arg10[%c0_112, %c0_113, %c0_114] : memref<1x152x32xf32, #tpu.memory_space<vmem>>, vector<1x152x32xf32>
    %123 = vector.shape_cast %122 : vector<1x152x32xf32> to vector<152x32xf32>
    %124 = vector.shape_cast %121 : vector<152x32xf32> to vector<1x152x32xf32>
    tpu.vector_store %arg10[%c0_112, %c0_113, %c0_114], %124 {strides = array<i32>} : memref<1x152x32xf32, #tpu.memory_space<vmem>>, vector<1x152x32xf32>,
    return
  }
  func.func @transform_0(%arg0: i32) -> (i32, i32, i32) {
    %c0_i32 = arith.constant 0 : i32
    %c0_i32_0 = arith.constant 0 : i32
    %c0_i32_1 = arith.constant 0 : i32
    return %arg0, %c0_i32, %c0_i32_0 : i32, i32, i32
  }
  func.func @transform_1(%arg0: i32) -> (i32, i32) {
    %c0_i32 = arith.constant 0 : i32
    %c0_i32_0 = arith.constant 0 : i32
    %c0_i32_1 = arith.constant 0 : i32
    return %c0_i32, %c0_i32_0 : i32, i32
  }
  func.func @transform_2(%arg0: i32) -> (i32, i32) {
    %c0_i32 = arith.constant 0 : i32
    %c0_i32_0 = arith.constant 0 : i32
    %c0_i32_1 = arith.constant 0 : i32
    return %c0_i32, %c0_i32_0 : i32, i32
  }
  func.func @transform_3(%arg0: i32) -> (i32, i32) {
    %c0_i32 = arith.constant 0 : i32
    %c0_i32_0 = arith.constant 0 : i32
    %c0_i32_1 = arith.constant 0 : i32
    return %c0_i32, %c0_i32_0 : i32, i32
  }
  func.func @transform_4(%arg0: i32) -> (i32, i32) {
    %c0_i32 = arith.constant 0 : i32
    %c0_i32_0 = arith.constant 0 : i32
    %c0_i32_1 = arith.constant 0 : i32
    return %c0_i32, %c0_i32_0 : i32, i32
  }
  func.func @transform_5(%arg0: i32) -> (i32, i32) {
    %c0_i32 = arith.constant 0 : i32
    %c0_i32_0 = arith.constant 0 : i32
    %c0_i32_1 = arith.constant 0 : i32
    return %c0_i32, %c0_i32_0 : i32, i32
  }
  func.func @transform_6(%arg0: i32) -> (i32, i32) {
    %c0_i32 = arith.constant 0 : i32
    %c0_i32_0 = arith.constant 0 : i32
    %c0_i32_1 = arith.constant 0 : i32
    return %c0_i32, %c0_i32_0 : i32, i32
  }
  func.func @transform_7(%arg0: i32) -> (i32, i32) {
    %c0_i32 = arith.constant 0 : i32
    %c0_i32_0 = arith.constant 0 : i32
    %c0_i32_1 = arith.constant 0 : i32
    return %c0_i32, %c0_i32_0 : i32, i32
  }
  func.func @transform_8(%arg0: i32) -> (i32, i32, i32) {
    %c0_i32 = arith.constant 0 : i32
    %c0_i32_0 = arith.constant 0 : i32
    %c0_i32_1 = arith.constant 0 : i32
    %c0_i32_2 = arith.constant 0 : i32
    return %c0_i32, %c0_i32_0, %c0_i32_1 : i32, i32, i32
  }
  func.func @transform_9(%arg0: i32) -> (i32, i32, i32) {
    %c0_i32 = arith.constant 0 : i32
    %c0_i32_0 = arith.constant 0 : i32
    %c0_i32_1 = arith.constant 0 : i32
    return %arg0, %c0_i32, %c0_i32_0 : i32, i32, i32
  }
}

</mosaic_0001>

<bundles_post_ra>
// kernel: tpu_custom_call.1
= control target key start
LH: loop header
LB: loop body
LE: loop exit
PB: predicated region body
PF: predicated region fallthrough
CT: control target
= control target key end

     0   :  { %14 = vsyncpa [#allocation4], 0  ;;  %s16647_s30 = smov 0   ;;  %s22176_s0 = inlined_call_operand.vmem [shape: f32[2,416,2], index: 0, kind: input, shape index: {}]   ;;  %s22177_s1 = inlined_call_operand.vmem [shape: f32[18,32], index: 1, kind: input, shape index: {}]   ;;  %s22178_s2 = inlined_call_operand.vmem [shape: f32[1,32], index: 2, kind: input, shape index: {}]   ;;  %s22179_s3 = inlined_call_operand.vmem [shape: f32[288,32], index: 3, kind: input, shape index: {}]   ;;  %s22180_s4 = inlined_call_operand.vmem [shape: f32[1,32], index: 4, kind: input, shape index: {}]   ;;  %s22181_s5 = inlined_call_operand.vmem [shape: f32[2,32], index: 5, kind: input, shape index: {}]   ;;  %s22182_s6 = inlined_call_operand.vmem [shape: f32[1,32], index: 6, kind: input, shape index: {}]   ;;  %s22183_s7 = inlined_call_operand.vmem [shape: f32[368,1], index: 7, kind: input, shape index: {}]   ;;  %s22184_s8 = inlined_call_operand.hbm [shape: f32[4,152,368], index: 8, kind: input, shape index: {}]   ;;  %s22185_s9 = inlined_call_operand.vmem [shape: f32[2,152,32], index: 9, kind: output, shape index: {}]  }
   0x1 LB: > { %s12726_s10 = sadd.s32 4294967295, %s16589_s30   ;;  %p12728_p0 = scmp.ge.s32.totalorder %s16589_s30, 1  ;;  %s16589_s30 = sphi %s16647_s30, %s20_s30  }
   0x2   : > { %p245_p1 = scmp.lt.s32.totalorder %s16589_s30, 3  ;;  %s16591_s11 = smov [#allocation3]  }
   0x3   : > { %s278_s12 = sshll.u32 %s16591_s11, 4  ;;  %p16507_p3 = scmp.eq.s32.totalorder %s12726_s10, 0  ;;  %s279_s12 = int_to_ptr.vmem [resolvable:$true] %s278_s12 }
   0x4   : > { %p16655_p2 = pnand %p12728_p0, %p245_p1  ;;  %s16564_s14 = scalar_lea.vmem %s279_s12, 29184 }
   0x5   : > { %p16565_p7 = scmp.ne.s32.totalorder %s279_s12, %s16564_s14  ;;  %p16572_p10 = scmp.lt.s32.totalorder %s279_s12, %s279_s12 }
   0x6   : > { %p16503_p4 = pneg %p16655_p2  ;;  %p16573_p11 = scmp.lt.s32.totalorder %s16564_s14, %s16564_s14 }
   0x8   : > { %p16504_p5 = pnand %p16507_p3, %p16503_p4  ;;  %p16574_p12 = por %p16573_p11, %p16572_p10 }
   0xa   : > { %p16555_p6 = pneg %p16504_p5 }
   0xc   : > { %p16567_p8 = pnand %p16565_p7, %p16555_p6 }
   0xe   : > { %p16568_p9 = pneg %p16567_p8 }
  0x10   : > { %p16575_p13 = pnand %p16574_p12, %p16568_p9 }
  0x12   : > { %16578 = shalt.err (!%p16575_p13)
}
  0x13   : > { %s16592_s15 = smov 384   ;;  %s16593_s16 = smov 24  }
  0x14   : > { %16506 = dma.hbm_to_vmem [thread:$0]  (!%p16504_p5), %s22184_s8, 29184, %s279_s12, [#allocation4], %s16592_s15, %s16592_s15, %s16593_s16  }
  0x15   : > { %302 = sbr.rel (%p16655_p2) target bundleno = 1908 (0x774), region = 56 }
  0x1a   : > { %16584 = dma.done.wait (%p16507_p3), [#allocation4], 29184  }
  0x1b   : > { %16586 = vsyncadd (%p16507_p3), [#allocation4], 4294938112  ;;  %p338_p0 = scmp.lt.s32.totalorder %s12726_s10, 1  ;;  %vm581_vm0 = vcmask 1041408   ;;  %vm442_vm1 = vcmask 15360   ;;  %vm5440_vm2 = vcmask 261120  }
  0x1c   : > { %v441_v0 = vld [vmem:[%s22177_s1 + $0x2] sm:$0x3]  ;;  %v394_v6 = vld [vmem:[%s22177_s1] sm:$0x3]  ;;  %v16837_v34 = vld [vmem:[%s22177_s1 + $0x4] sm:$0x3] }
  0x1d   : > { %s22798_s10 = smov (!%p338_p0, %s12726_s10), 1  ;;  %14752 = vmatprep.subr.msk.mxu0 %vm581_vm0, %v441_v0  ;;  %16495 = vmatprep.subr.msk.mxu1 %vm581_vm0, %v394_v6  ;;  %v1891_v36 = vld [vmem:[%s22177_s1 + $0x6] sm:$0x3]  ;;  %vm16596_vm3 = vmmov 0   ;;  %vm10900_vm4 = vcmask 916480  }
  0x1e   : > { %s16497_s19 = smul.u32 416, %s22798_s10  ;;  %14753 = vmatpush3.msk.msra.mxu0 %vm581_vm0, %v441_v0  ;;  %16496 = vmatpush3.msk.msra.mxu1 %vm581_vm0, %v394_v6 }
  0x1f   : > { %14823 = vmatprep.subr.msk.mxu0 %vm581_vm0, %v394_v6  ;;  %14965 = vmatprep.subr.msk.mxu1 %vm581_vm0, %v1891_v36  ;;  %s16498_s24 = smul.u32 152, %s22798_s10 }
  0x20   : > { %s16675_s22 = scalar_lea.vmem %s22176_s0, %s16497_s19 }
  0x21   : > { %v395_v1 = vld [vmem:[%s16675_s22 + $0x1] sm:$0xff]  ;;  %v396_v2 = vld [vmem:[%s16675_s22 + $0x9] sm:$0xff]  ;;  %v397_v3 = vld [vmem:[%s16675_s22 + $0x11] sm:$0xff]  ;;  %s22096_s27 = scalar_lea.vmem %s22185_s9, %s16498_s24 }
  0x22   : > { %14754 = vmatprep.mubr.msk.f32.mxu0 %vm442_vm1, %v395_v1  ;;  %v16689_v4 = vld [vmem:[%s16675_s22 + $0x19] sm:$0xff]  ;;  %v16692_v5 = vld [vmem:[%s16675_s22 + $0x21] sm:$0xff]  ;;  %v16698_v7 = vld [vmem:[%s16675_s22 + $0x70] sm:$0xff] }
  0x23   : > { %14755 = vmatmul.mubr.msk.f32.vlgmr.msra.gmra.mxu0 %vm442_vm1, %v396_v2  ;;  %14846 = vmatprep.mubr.msk.f32.mxu1 %vm442_vm1, %v16698_v7  ;;  %v16704_v8 = vld [vmem:[%s16675_s22 + $0x78] sm:$0xff]  ;;  %v16710_v9 = vld [vmem:[%s16675_s22 + $0x80] sm:$0xff]  ;;  %v16715_v10 = vld [vmem:[%s16675_s22 + $0x29] sm:$0xff] }
  0x24   : > { %14757 = vmatprep.mubr.msk.f32.mxu0 %vm442_vm1, %v397_v3  ;;  %v16719_v11 = vld [vmem:[%s16675_s22 + $0x31] sm:$0xff]  ;;  %14847 = vmatmul.mubr.msk.f32.vlgmr.msra.gmra.mxu1 %vm442_vm1, %v16704_v8  ;;  %v16727_v12 = vld [vmem:[%s16675_s22 + $0x88] sm:$0xff]  ;;  %v16737_v14 = vld [vmem:[%s16675_s22 + $0x39] sm:$0xff] }
  0x25   : > { %14824 = vmatpush3.msk.msra.mxu0 %vm581_vm0, %v394_v6  ;;  %14849 = vmatprep.mubr.msk.f32.mxu1 %vm442_vm1, %v16710_v9  ;;  %v16732_v13 = vld [vmem:[%s16675_s22 + $0x90] sm:$0xff]  ;;  %v16740_v15 = vld [vmem:[%s16675_s22 + $0x41] sm:$0xff]  ;;  %v16747_v16 = vld [vmem:[%s16675_s22 + $0x98] sm:$0xff] }
  0x26   : > { %v16752_v17 = vld [vmem:[%s16675_s22 + $0xa0] sm:$0xff]  ;;  %v16757_v18 = vld [vmem:[%s16675_s22 + $0x49] sm:$0xff]  ;;  %v16760_v19 = vld [vmem:[%s16675_s22 + $0x51] sm:$0xff]  ;;  %14894 = vmatprep.subr.msk.mxu0 %vm581_vm0, %v16837_v34  ;;  %14966 = vmatpush3.msk.msra.mxu1 %vm581_vm0, %v1891_v36 }
  0x27   : > { %14758 = vmatmul.mubr.msk.f32.gmra.mxu0 %vm442_vm1, %v16689_v4  ;;  %v16767_v20 = vld [vmem:[%s16675_s22 + $0xa8] sm:$0xff]  ;;  %v16772_v21 = vld [vmem:[%s16675_s22 + $0xb0] sm:$0xff]  ;;  %v16777_v22 = vld [vmem:[%s16675_s22 + $0x59] sm:$0xff] }
  0x28   : > { %14760 = vmatprep.mubr.msk.f32.mxu0 %vm442_vm1, %v16692_v5  ;;  %14850 = vmatmul.mubr.msk.f32.gmra.mxu1 %vm442_vm1, %v16727_v12  ;;  %22233 = vst [vmem:[#allocation6_spill] sm:$0xff] %v16767_v20  ;;  %22234 = vst [vmem:[#allocation7_spill] sm:$0xff] %v16772_v21  ;;  %v16780_v23 = vld [vmem:[%s16675_s22 + $0x61] sm:$0xff]  ;;  %v16787_v24 = vld [vmem:[%s16675_s22 + $0xb8] sm:$0xff] }
  0x29   : > { %14852 = vmatprep.mubr.msk.f32.mxu1 %vm442_vm1, %v16732_v13  ;;  %22235 = vst [vmem:[#allocation8_spill] sm:$0xff] %v16787_v24  ;;  %v16792_v25 = vld [vmem:[%s16675_s22 + $0xc0] sm:$0xff]  ;;  %v16797_v26 = vld [vmem:[%s16675_s22 + $0x69] sm:$0xff]  ;;  %v16800_v27 = vld [vmem:[%s16675_s22 + $0x71] sm:$0xff] }
  0x2a   : > { %22236 = vst [vmem:[#allocation9_spill] sm:$0xff] %v16792_v25  ;;  %v16807_v28 = vld [vmem:[%s16675_s22 + $0xc8] sm:$0xff]  ;;  %v16812_v29 = vld [vmem:[%s16675_s22 + $0xd0] sm:$0xff]  ;;  %v16817_v30 = vld [vmem:[%s16675_s22 + $0x79] sm:$0xff] }
  0x2b   : > { %14761 = vmatmul.mubr.msk.f32.gmra.mxu0 %vm442_vm1, %v16715_v10  ;;  %22237 = vst [vmem:[#allocation10_spill] sm:$0xff] %v16807_v28  ;;  %22238 = vst [vmem:[#allocation11_spill] sm:$0xff] %v16812_v29  ;;  %v16820_v31 = vld [vmem:[%s16675_s22 + $0x81] sm:$0xff]  ;;  %v16827_v32 = vld [vmem:[%s16675_s22 + $0xd8] sm:$0xff] }
  0x2c   : > { %14763 = vmatprep.mubr.msk.f32.mxu0 %vm442_vm1, %v16719_v11  ;;  %14853 = vmatmul.mubr.msk.f32.gmra.mxu1 %vm442_vm1, %v16747_v16  ;;  %22239 = vst [vmem:[#allocation12_spill] sm:$0xff] %v16827_v32  ;;  %v16832_v33 = vld [vmem:[%s16675_s22 + $0xe0] sm:$0xff]  ;;  %v16842_v35 = vld [vmem:[%s16675_s22 + $0x89] sm:$0xff]  ;;  %v16850_v37 = vld [vmem:[%s16675_s22 + $0x91] sm:$0xff] }
  0x2d   : > { %14855 = vmatprep.mubr.msk.f32.mxu1 %vm442_vm1, %v16752_v17  ;;  %22240 = vst [vmem:[#allocation13_spill] sm:$0xff] %v16832_v33  ;;  %v16858_v38 = vld [vmem:[%s16675_s22 + $0xe8] sm:$0xff]  ;;  %v378_v39 = vld [vmem:[%s16675_s22 + $0xf0] sm:$0xff]  ;;  %v16867_v40 = vld [vmem:[%s16675_s22 + $0x99] sm:$0xff] }
  0x2e   : > { %22241 = vst [vmem:[#allocation14_spill] sm:$0xff] %v16858_v38  ;;  %v16870_v41 = vld [vmem:[%s16675_s22 + $0xa1] sm:$0xff]  ;;  %v16876_v42 = vld [vmem:[%s16675_s22 + $0xf8] sm:$0xff]  ;;  %v16884_v44 = vld [vmem:[%s16675_s22 + $0xa9] sm:$0xff] }
  0x2f   : > { %14764 = vmatmul.mubr.msk.f32.gmra.mxu0 %vm442_vm1, %v16737_v14  ;;  %22242 = vst [vmem:[#allocation15_spill] sm:$0xff] %v16876_v42  ;;  %v380_v43 = vld [vmem:[%s16675_s22 + $0x100] sm:$0xff]  ;;  %v16887_v45 = vld [vmem:[%s16675_s22 + $0xb1] sm:$0xff]  ;;  %v381_v46 = vld [vmem:[%s16675_s22 + $0x108] sm:$0xff] }
  0x30   : > { %14766 = vmatprep.mubr.msk.f32.mxu0 %vm442_vm1, %v16740_v15  ;;  %14856 = vmatmul.mubr.msk.f32.gmra.mxu1 %vm442_vm1, %v16767_v20  ;;  %v382_v47 = vld [vmem:[%s16675_s22 + $0x110] sm:$0xff]  ;;  %v16899_v48 = vld [vmem:[%s16675_s22 + $0xb9] sm:$0xff]  ;;  %v16902_v49 = vld [vmem:[%s16675_s22 + $0xc1] sm:$0xff] }
  0x31   : > { %14858 = vmatprep.mubr.msk.f32.mxu1 %vm442_vm1, %v16772_v21  ;;  %v383_v50 = vld [vmem:[%s16675_s22 + $0x118] sm:$0xff]  ;;  %v384_v51 = vld [vmem:[%s16675_s22 + $0x120] sm:$0xff]  ;;  %v16913_v52 = vld [vmem:[%s16675_s22 + $0xc9] sm:$0xff] }
  0x32   : > { %v16916_v53 = vld [vmem:[%s16675_s22 + $0xd1] sm:$0xff]  ;;  %v385_v54 = vld [vmem:[%s16675_s22 + $0x128] sm:$0xff]  ;;  %v16927_v56 = vld [vmem:[%s16675_s22 + $0xd9] sm:$0xff] }
  0x33   : > { %14767 = vmatmul.mubr.msk.f32.gmra.mxu0 %vm442_vm1, %v16757_v18  ;;  %v386_v55 = vld [vmem:[%s16675_s22 + $0x130] sm:$0xff]  ;;  %v16930_v57 = vld [vmem:[%s16675_s22 + $0xe1] sm:$0xff]  ;;  %v387_v58 = vld [vmem:[%s16675_s22 + $0x138] sm:$0xff] }
  0x34   : > { %14769 = vmatprep.mubr.msk.f32.mxu0 %vm442_vm1, %v16760_v19  ;;  %14859 = vmatmul.mubr.msk.f32.gmra.mxu1 %vm442_vm1, %v16787_v24  ;;  %v388_v59 = vld [vmem:[%s16675_s22 + $0x140] sm:$0xff]  ;;  %v16941_v60 = vld [vmem:[%s16675_s22 + $0xe9] sm:$0xff]  ;;  %v16944_v61 = vld [vmem:[%s16675_s22 + $0xf1] sm:$0xff] }
  0x35   : > { %14861 = vmatprep.mubr.msk.f32.mxu1 %vm442_vm1, %v16792_v25  ;;  %v389_v62 = vld [vmem:[%s16675_s22 + $0x148] sm:$0xff]  ;;  %v390_v63 = vld [vmem:[%s16675_s22 + $0x150] sm:$0xff]  ;;  %v16955_v0 = vld [vmem:[%s16675_s22 + $0xf9] sm:$0xff] }
  0x36   : > { %v16958_v1 = vld [vmem:[%s16675_s22 + $0x101] sm:$0xff]  ;;  %v391_v2 = vld [vmem:[%s16675_s22 + $0x158] sm:$0xff]  ;;  %v16969_v6 = vld [vmem:[%s16675_s22 + $0x109] sm:$0xff] }
  0x37   : > { %14770 = vmatmul.mubr.msk.f32.gmra.mxu0 %vm442_vm1, %v16777_v22  ;;  %v392_v3 = vld [vmem:[%s16675_s22 + $0x160] sm:$0xff]  ;;  %v16972_v36 = vld [vmem:[%s16675_s22 + $0x111] sm:$0xff] }
  0x38   : > { %14772 = vmatprep.mubr.msk.f32.mxu0 %vm442_vm1, %v16780_v23  ;;  %14862 = vmatmul.mubr.msk.f32.gmra.mxu1 %vm442_vm1, %v16807_v28  ;;  %v17153_v28 = vld [vmem:[%s16675_s22 + $0x68] sm:$0xff]  ;;  %v1318_v24 = vld [vmem:[%s16675_s22 + $0x12] sm:$0xff] }
  0x39   : > { %14864 = vmatprep.mubr.msk.f32.mxu1 %vm442_vm1, %v16812_v29  ;;  %v17128_v29 = vld [vmem:[%s16675_s22 + $0x50] sm:$0xff]  ;;  %v1316_v25 = vld [vmem:[%s16675_s22 + $0x2] sm:$0xff] }
  0x3a   : > { %v1873_v21 = vld [vmem:[%s16675_s22 + $0xf7] sm:$0xff]  ;;  %v1324_v20 = vld [vmem:[%s16675_s22 + $0x42] sm:$0xff] }
  0x3b   : > { %14773 = vmatmul.mubr.msk.f32.gmra.mxu0 %vm442_vm1, %v16797_v26 }
  0x3c   : > { %14775 = vmatprep.mubr.msk.f32.mxu0 %vm442_vm1, %v16800_v27  ;;  %14865 = vmatmul.mubr.msk.f32.gmra.mxu1 %vm442_vm1, %v16827_v32  ;;  %v17125_v32 = vld [vmem:[%s16675_s22 + $0x48] sm:$0xff] }
  0x3d   : > { %14867 = vmatprep.mubr.msk.f32.mxu1 %vm442_vm1, %v16832_v33  ;;  %v1856_v33 = vld [vmem:[%s16675_s22 + $0x6f] sm:$0xff] }
  0x3f   : > { %14776 = vmatmul.mubr.msk.f32.gmra.mxu0 %vm442_vm1, %v16817_v30 }
  0x40   : > { %14778 = vmatprep.mubr.msk.f32.mxu0 %vm442_vm1, %v16820_v31  ;;  %14868 = vmatmul.mubr.msk.f32.gmra.mxu1 %vm442_vm1, %v16858_v38  ;;  %v440_v38 = vld [vmem:[%s16675_s22 + $0x169] sm:$0xff] }
  0x41   : > { %14870 = vmatprep.mubr.msk.f32.mxu1 %vm442_vm1, %v378_v39  ;;  %v393_v39 = vld [vmem:[%s16675_s22 + $0x168] sm:$0xff] }
  0x43   : > { %14779 = vmatmul.mubr.msk.f32.gmra.mxu0 %vm442_vm1, %v16842_v35 }
  0x44   : > { %14781 = vmatprep.mubr.msk.f32.mxu0 %vm442_vm1, %v16850_v37  ;;  %14871 = vmatmul.mubr.msk.f32.gmra.mxu1 %vm442_vm1, %v16876_v42  ;;  %v1854_v42 = vld [vmem:[%s16675_s22 + $0x5f] sm:$0xff] }
  0x45   : > { %14873 = vmatprep.mubr.msk.f32.mxu1 %vm442_vm1, %v380_v43  ;;  %v1845_v43 = vld [vmem:[%s16675_s22 + $0x17] sm:$0xff] }
  0x47   : > { %14782 = vmatmul.mubr.msk.f32.gmra.mxu0 %vm442_vm1, %v16867_v40 }
  0x48   : > { %14784 = vmatprep.mubr.msk.f32.mxu0 %vm442_vm1, %v16870_v41  ;;  %14874 = vmatmul.mubr.msk.f32.gmra.mxu1 %vm442_vm1, %v381_v46  ;;  %v16983_v46 = vld [vmem:[%s16675_s22 + $0x119] sm:$0xff] }
  0x49   : > { %14876 = vmatprep.mubr.msk.f32.mxu1 %vm442_vm1, %v382_v47  ;;  %v16986_v47 = vld [vmem:[%s16675_s22 + $0x121] sm:$0xff] }
  0x4b   : > { %14785 = vmatmul.mubr.msk.f32.gmra.mxu0 %vm442_vm1, %v16884_v44 }
  0x4c   : > { %14787 = vmatprep.mubr.msk.f32.mxu0 %vm442_vm1, %v16887_v45  ;;  %14877 = vmatmul.mubr.msk.f32.gmra.mxu1 %vm442_vm1, %v383_v50  ;;  %v1846_v50 = vld [vmem:[%s16675_s22 + $0x1f] sm:$0xff] }
  0x4d   : > { %14879 = vmatprep.mubr.msk.f32.mxu1 %vm442_vm1, %v384_v51  ;;  %v1847_v51 = vld [vmem:[%s16675_s22 + $0x27] sm:$0xff] }
  0x4f   : > { %14788 = vmatmul.mubr.msk.f32.gmra.mxu0 %vm442_vm1, %v16899_v48 }
  0x50   : > { %14790 = vmatprep.mubr.msk.f32.mxu0 %vm442_vm1, %v16902_v49  ;;  %14880 = vmatmul.mubr.msk.f32.gmra.mxu1 %vm442_vm1, %v385_v54  ;;  %v16997_v54 = vld [vmem:[%s16675_s22 + $0x129] sm:$0xff] }
  0x51   : > { %14882 = vmatprep.mubr.msk.f32.mxu1 %vm442_vm1, %v386_v55  ;;  %v17000_v55 = vld [vmem:[%s16675_s22 + $0x131] sm:$0xff] }
  0x53   : > { %14791 = vmatmul.mubr.msk.f32.gmra.mxu0 %vm442_vm1, %v16913_v52 }
  0x54   : > { %14793 = vmatprep.mubr.msk.f32.mxu0 %vm442_vm1, %v16916_v53  ;;  %14883 = vmatmul.mubr.msk.f32.gmra.mxu1 %vm442_vm1, %v387_v58  ;;  %v17005_v58 = vld [vmem:[%s16675_s22 + $0x2f] sm:$0xff] }
  0x55   : > { %14885 = vmatprep.mubr.msk.f32.mxu1 %vm442_vm1, %v388_v59  ;;  %22243 = vst [vmem:[#allocation16_spill] sm:$0xff] %v17005_v58  ;;  %v17010_v59 = vld [vmem:[%s16675_s22 + $0x37] sm:$0xff] }
  0x56   : > { %22244 = vst [vmem:[#allocation17_spill] sm:$0xff] %v17010_v59 }
  0x57   : > { %14794 = vmatmul.mubr.msk.f32.gmra.mxu0 %vm442_vm1, %v16927_v56 }
  0x58   : > { %14796 = vmatprep.mubr.msk.f32.mxu0 %vm442_vm1, %v16930_v57  ;;  %14886 = vmatmul.mubr.msk.f32.gmra.mxu1 %vm442_vm1, %v389_v62  ;;  %v434_v62 = vld [vmem:[%s16675_s22 + $0x139] sm:$0xff] }
  0x59   : > { %14888 = vmatprep.mubr.msk.f32.mxu1 %vm442_vm1, %v390_v63  ;;  %v435_v63 = vld [vmem:[%s16675_s22 + $0x141] sm:$0xff] }
  0x5b   : > { %14797 = vmatmul.mubr.msk.f32.gmra.mxu0 %vm442_vm1, %v16941_v60 }
  0x5c   : > { %14799 = vmatprep.mubr.msk.f32.mxu0 %vm442_vm1, %v16944_v61  ;;  %14889 = vmatmul.mubr.msk.f32.gmra.mxu1 %vm442_vm1, %v391_v2  ;;  %v17021_v2 = vld [vmem:[%s16675_s22 + $0x3f] sm:$0xff] }
  0x5d   : > { %14891 = vmatprep.mubr.msk.f32.mxu1 %vm442_vm1, %v392_v3  ;;  %22245 = vst [vmem:[#allocation18_spill] sm:$0xff] %v17021_v2  ;;  %v17025_v3 = vld [vmem:[%s16675_s22 + $0x47] sm:$0xff] }
  0x5e   : > { %22246 = vst [vmem:[#allocation19_spill] sm:$0xff] %v17025_v3 }
  0x5f   : > { %14800 = vmatmul.mubr.msk.f32.gmra.mxu0 %vm442_vm1, %v16955_v0 }
  0x60   : > { %14802 = vmatprep.mubr.msk.f32.mxu0 %vm442_vm1, %v16958_v1  ;;  %14892 = vmatmul.mubr.msk.f32.gmra.mxu1 %vm442_vm1, %v393_v39  ;;  %v436_v39 = vld [vmem:[%s16675_s22 + $0x149] sm:$0xff] }
  0x61   : > { %14967 = vmatprep.mubr.msk.f32.mxu1 %vm442_vm1, %v1845_v43  ;;  %v437_v43 = vld [vmem:[%s16675_s22 + $0x151] sm:$0xff] }
  0x63   : > { %14803 = vmatmul.mubr.msk.f32.gmra.mxu0 %vm442_vm1, %v16969_v6 }
  0x64   : > { %14805 = vmatprep.mubr.msk.f32.mxu0 %vm442_vm1, %v16972_v36  ;;  %14968 = vmatmul.mubr.msk.f32.vlgmr.msra.gmra.mxu1 %vm442_vm1, %v1846_v50  ;;  %v17035_v50 = vld [vmem:[%s16675_s22 + $0x4f] sm:$0xff] }
  0x65   : > { %14970 = vmatprep.mubr.msk.f32.mxu1 %vm442_vm1, %v1847_v51  ;;  %22247 = vst [vmem:[#allocation20_spill] sm:$0xff] %v17035_v50  ;;  %v17039_v51 = vld [vmem:[%s16675_s22 + $0x57] sm:$0xff] }
  0x66   : > { %22248 = vst [vmem:[#allocation21_spill] sm:$0xff] %v17039_v51 }
  0x67   : > { %14806 = vmatmul.mubr.msk.f32.gmra.mxu0 %vm442_vm1, %v16983_v46 }
  0x68   : > { %14808 = vmatprep.mubr.msk.f32.mxu0 %vm442_vm1, %v16986_v47  ;;  %14971 = vmatmul.mubr.msk.f32.gmra.mxu1 %vm442_vm1, %v17005_v58  ;;  %v1317_v58 = vld [vmem:[%s16675_s22 + $0xa] sm:$0xff] }
  0x69   : > { %14973 = vmatprep.mubr.msk.f32.mxu1 %vm442_vm1, %v17010_v59  ;;  %v17142_v59 = vld [vmem:[%s16675_s22 + $0x60] sm:$0xff] }
  0x6b   : > { %14809 = vmatmul.mubr.msk.f32.gmra.mxu0 %vm442_vm1, %v16997_v54 }
  0x6c   : > { %14811 = vmatprep.mubr.msk.f32.mxu0 %vm442_vm1, %v17000_v55  ;;  %14974 = vmatmul.mubr.msk.f32.gmra.mxu1 %vm442_vm1, %v17021_v2  ;;  %v17139_v2 = vld [vmem:[%s16675_s22 + $0x58] sm:$0xff] }
  0x6d   : > { %14976 = vmatprep.mubr.msk.f32.mxu1 %vm442_vm1, %v17025_v3  ;;  %v17114_v3 = vld [vmem:[%s16675_s22 + $0x40] sm:$0xff] }
  0x6f   : > { %14812 = vmatmul.mubr.msk.f32.gmra.mxu0 %vm442_vm1, %v434_v62  ;;  %v438_v62 = vld [vmem:[%s16675_s22 + $0x159] sm:$0xff] }
  0x70   : > { %14814 = vmatprep.mubr.msk.f32.mxu0 %vm442_vm1, %v435_v63  ;;  %v439_v63 = vld [vmem:[%s16675_s22 + $0x161] sm:$0xff]  ;;  %14977 = vmatmul.mubr.msk.f32.gmra.mxu1 %vm442_vm1, %v17035_v50 }
  0x71   : > { %14979 = vmatprep.mubr.msk.f32.mxu1 %vm442_vm1, %v17039_v51  ;;  %v348_v51 = vld [vmem:[%s16675_s22] sm:$0xff]  ;;  %v349_v50 = vld [vmem:[%s16675_s22 + $0x8] sm:$0xff] }
  0x73   : > { %14815 = vmatmul.mubr.msk.f32.gmra.mxu0 %vm442_vm1, %v436_v39  ;;  %v2949_v39 = vld [vmem:[%s22177_s1 + $0xa] sm:$0x3] }
  0x74   : > { %14817 = vmatprep.mubr.msk.f32.mxu0 %vm442_vm1, %v437_v43  ;;  %v1855_v43 = vld [vmem:[%s16675_s22 + $0x67] sm:$0xff]  ;;  %15107 = vmatprep.subr.msk.mxu1 %vm581_vm0, %v2949_v39 }
  0x75   : > { %15108 = vmatpush3.msk.msra.mxu1 %vm581_vm0, %v2949_v39  ;;  %v1858_v39 = vld [vmem:[%s16675_s22 + $0x7f] sm:$0xff] }
  0x76   : > { %14980 = vmatmul.mubr.msk.f32.gmra.mxu1 %vm442_vm1, %v1854_v42  ;;  %v17073_v42 = vld [vmem:[%s22177_s1 + $0x8] sm:$0x3] }
  0x77   : > { %14818 = vmatmul.mubr.msk.f32.gmra.mxu0 %vm442_vm1, %v438_v62  ;;  %14982 = vmatprep.mubr.msk.f32.mxu1 %vm442_vm1, %v1855_v43  ;;  %v1857_v62 = vld [vmem:[%s16675_s22 + $0x77] sm:$0xff] }
  0x78   : > { %14820 = vmatprep.mubr.msk.f32.mxu0 %vm442_vm1, %v439_v63  ;;  %v350_v63 = vld [vmem:[%s16675_s22 + $0x10] sm:$0xff] }
  0x79   : > { %v1861_v43 = vld [vmem:[%s16675_s22 + $0x97] sm:$0xff] }
  0x7a   : > { %14983 = vmatmul.mubr.msk.f32.gmra.mxu1 %vm442_vm1, %v1856_v33  ;;  %v17084_v33 = vld [vmem:[%s16675_s22 + $0x20] sm:$0xff] }
  0x7b   : > { %14821 = vmatmul.mubr.msk.f32.gmra.mxu0 %vm442_vm1, %v440_v38  ;;  %14985 = vmatprep.mubr.msk.f32.mxu1 %vm442_vm1, %v1857_v62  ;;  %v1859_v38 = vld [vmem:[%s16675_s22 + $0x87] sm:$0xff]  ;;  %v17100_v62 = vld [vmem:[%s16675_s22 + $0x30] sm:$0xff] }
  0x7c   : > { %14825 = vmatprep.mubr.msk.f32.mxu0 %vm442_vm1, %v348_v51  ;;  %v17079_v51 = vld [vmem:[%s16675_s22 + $0x18] sm:$0xff] }
  0x7e   : > { %14986 = vmatmul.mubr.msk.f32.gmra.mxu1 %vm442_vm1, %v1858_v39  ;;  %v1863_v39 = vld [vmem:[%s16675_s22 + $0xa7] sm:$0xff] }
  0x7f   : > { %14826 = vmatmul.mubr.msk.f32.vlgmr.msra.gmra.mxu0 %vm442_vm1, %v349_v50  ;;  %14988 = vmatprep.mubr.msk.f32.mxu1 %vm442_vm1, %v1859_v38  ;;  %v1860_v50 = vld [vmem:[%s16675_s22 + $0x8f] sm:$0xff]  ;;  %v17111_v38 = vld [vmem:[%s16675_s22 + $0x38] sm:$0xff] }
  0x80   : > { %14828 = vmatprep.mubr.msk.f32.mxu0 %vm442_vm1, %v350_v63  ;;  %14895 = vmatpush3.msk.msra.mxu0 %vm581_vm0, %v16837_v34  ;;  %v17097_v34 = vld [vmem:[%s16675_s22 + $0x28] sm:$0xff]  ;;  %v1862_v63 = vld [vmem:[%s16675_s22 + $0x9f] sm:$0xff] }
  0x81   : > { %15036 = vmatprep.subr.msk.mxu0 %vm581_vm0, %v17073_v42 }
  0x82   : > { %14989 = vmatmul.mubr.msk.f32.gmra.mxu1 %vm442_vm1, %v1860_v50  ;;  %v1864_v50 = vld [vmem:[%s16675_s22 + $0xaf] sm:$0xff] }
  0x83   : > { %14829 = vmatmul.mubr.msk.f32.gmra.mxu0 %vm442_vm1, %v17079_v51  ;;  %14991 = vmatprep.mubr.msk.f32.mxu1 %vm442_vm1, %v1861_v43  ;;  %v1865_v43 = vld [vmem:[%s16675_s22 + $0xb7] sm:$0xff] }
  0x84   : > { %14831 = vmatprep.mubr.msk.f32.mxu0 %vm442_vm1, %v17084_v33 }
  0x86   : > { %14992 = vmatmul.mubr.msk.f32.gmra.mxu1 %vm442_vm1, %v1862_v63  ;;  %v1866_v63 = vld [vmem:[%s16675_s22 + $0xbf] sm:$0xff] }
  0x87   : > { %14832 = vmatmul.mubr.msk.f32.gmra.mxu0 %vm442_vm1, %v17097_v34  ;;  %14994 = vmatprep.mubr.msk.f32.mxu1 %vm442_vm1, %v1863_v39  ;;  %v1867_v39 = vld [vmem:[%s16675_s22 + $0xc7] sm:$0xff] }
  0x88   : > { %14834 = vmatprep.mubr.msk.f32.mxu0 %vm442_vm1, %v17100_v62 }
  0x8a   : > { %14995 = vmatmul.mubr.msk.f32.gmra.mxu1 %vm442_vm1, %v1864_v50  ;;  %v1868_v50 = vld [vmem:[%s16675_s22 + $0xcf] sm:$0xff] }
  0x8b   : > { %14835 = vmatmul.mubr.msk.f32.gmra.mxu0 %vm442_vm1, %v17111_v38  ;;  %14997 = vmatprep.mubr.msk.f32.mxu1 %vm442_vm1, %v1865_v43  ;;  %v1869_v43 = vld [vmem:[%s16675_s22 + $0xd7] sm:$0xff] }
  0x8c   : > { %14837 = vmatprep.mubr.msk.f32.mxu0 %vm442_vm1, %v17114_v3 }
  0x8e   : > { %14998 = vmatmul.mubr.msk.f32.gmra.mxu1 %vm442_vm1, %v1866_v63  ;;  %v1870_v63 = vld [vmem:[%s16675_s22 + $0xdf] sm:$0xff] }
  0x8f   : > { %14838 = vmatmul.mubr.msk.f32.gmra.mxu0 %vm442_vm1, %v17125_v32  ;;  %15000 = vmatprep.mubr.msk.f32.mxu1 %vm442_vm1, %v1867_v39  ;;  %v1871_v39 = vld [vmem:[%s16675_s22 + $0xe7] sm:$0xff] }
  0x90   : > { %14840 = vmatprep.mubr.msk.f32.mxu0 %vm442_vm1, %v17128_v29 }
  0x92   : > { %15001 = vmatmul.mubr.msk.f32.gmra.mxu1 %vm442_vm1, %v1868_v50  ;;  %v1872_v50 = vld [vmem:[%s16675_s22 + $0xef] sm:$0xff] }
  0x93   : > { %14841 = vmatmul.mubr.msk.f32.gmra.mxu0 %vm442_vm1, %v17139_v2  ;;  %15003 = vmatprep.mubr.msk.f32.mxu1 %vm442_vm1, %v1869_v43  ;;  %v17171_v43 = vld [vmem:[%s22177_s1 + $0xc] sm:$0x3] }
  0x94   : > { %14843 = vmatprep.mubr.msk.f32.mxu0 %vm442_vm1, %v17142_v59 }
  0x96   : > { %15004 = vmatmul.mubr.msk.f32.gmra.mxu1 %vm442_vm1, %v1870_v63  ;;  %v1320_v63 = vld [vmem:[%s16675_s22 + $0x22] sm:$0xff] }
  0x97   : > { %14844 = vmatmul.mubr.msk.f32.gmra.mxu0 %vm442_vm1, %v17153_v28  ;;  %15006 = vmatprep.mubr.msk.f32.mxu1 %vm442_vm1, %v1871_v39  ;;  %v1321_v39 = vld [vmem:[%s16675_s22 + $0x2a] sm:$0xff] }
  0x98   : > { %14896 = vmatprep.mubr.msk.f32.mxu0 %vm442_vm1, %v1316_v25  ;;  %v1319_v25 = vld [vmem:[%s16675_s22 + $0x1a] sm:$0xff] }
  0x9a   : > { %15007 = vmatmul.mubr.msk.f32.gmra.mxu1 %vm442_vm1, %v1872_v50  ;;  %v1876_v50 = vld [vmem:[%s16675_s22 + $0x10f] sm:$0xff] }
  0x9b   : > { %14897 = vmatmul.mubr.msk.f32.vlgmr.msra.gmra.mxu0 %vm442_vm1, %v1317_v58  ;;  %15009 = vmatprep.mubr.msk.f32.mxu1 %vm442_vm1, %v1873_v21  ;;  %v1874_v58 = vld [vmem:[%s16675_s22 + $0xff] sm:$0xff]  ;;  %v1877_v21 = vld [vmem:[%s16675_s22 + $0x117] sm:$0xff] }
  0x9c   : > { %14899 = vmatprep.mubr.msk.f32.mxu0 %vm442_vm1, %v1318_v24  ;;  %15037 = vmatpush3.msk.msra.mxu0 %vm581_vm0, %v17073_v42  ;;  %v1875_v24 = vld [vmem:[%s16675_s22 + $0x107] sm:$0xff]  ;;  %v1322_v42 = vld [vmem:[%s16675_s22 + $0x32] sm:$0xff] }
  0x9d   : > { %15178 = vmatprep.subr.msk.mxu0 %vm581_vm0, %v17171_v43 }
  0x9e   : > { %15010 = vmatmul.mubr.msk.f32.gmra.mxu1 %vm442_vm1, %v1874_v58  ;;  %v1879_v58 = vld [vmem:[%s16675_s22 + $0x127] sm:$0xff] }
  0x9f   : > { %14900 = vmatmul.mubr.msk.f32.gmra.mxu0 %vm442_vm1, %v1319_v25  ;;  %15012 = vmatprep.mubr.msk.f32.mxu1 %vm442_vm1, %v1875_v24  ;;  %v1323_v25 = vld [vmem:[%s16675_s22 + $0x3a] sm:$0xff]  ;;  %v1325_v24 = vld [vmem:[%s16675_s22 + $0x4a] sm:$0xff] }
  0xa0   : > { %14902 = vmatprep.mubr.msk.f32.mxu0 %vm442_vm1, %v1320_v63  ;;  %v1878_v63 = vld [vmem:[%s16675_s22 + $0x11f] sm:$0xff] }
  0xa2   : > { %15013 = vmatmul.mubr.msk.f32.gmra.mxu1 %vm442_vm1, %v1876_v50  ;;  %v1881_v50 = vld [vmem:[%s16675_s22 + $0x137] sm:$0xff] }
  0xa3   : > { %14903 = vmatmul.mubr.msk.f32.gmra.mxu0 %vm442_vm1, %v1321_v39  ;;  %15015 = vmatprep.mubr.msk.f32.mxu1 %vm442_vm1, %v1877_v21  ;;  %v1326_v39 = vld [vmem:[%s16675_s22 + $0x52] sm:$0xff]  ;;  %v1327_v21 = vld [vmem:[%s16675_s22 + $0x5a] sm:$0xff] }
  0xa4   : > { %14905 = vmatprep.mubr.msk.f32.mxu0 %vm442_vm1, %v1322_v42  ;;  %v1880_v42 = vld [vmem:[%s16675_s22 + $0x12f] sm:$0xff] }
  0xa6   : > { %15016 = vmatmul.mubr.msk.f32.gmra.mxu1 %vm442_vm1, %v1878_v63  ;;  %v1883_v63 = vld [vmem:[%s16675_s22 + $0x147] sm:$0xff] }
  0xa7   : > { %14906 = vmatmul.mubr.msk.f32.gmra.mxu0 %vm442_vm1, %v1323_v25  ;;  %15018 = vmatprep.mubr.msk.f32.mxu1 %vm442_vm1, %v1879_v58  ;;  %v1328_v25 = vld [vmem:[%s16675_s22 + $0x62] sm:$0xff]  ;;  %v1329_v58 = vld [vmem:[%s16675_s22 + $0x6a] sm:$0xff] }
  0xa8   : > { %14908 = vmatprep.mubr.msk.f32.mxu0 %vm442_vm1, %v1324_v20  ;;  %v1882_v20 = vld [vmem:[%s16675_s22 + $0x13f] sm:$0xff] }
  0xaa   : > { %15019 = vmatmul.mubr.msk.f32.gmra.mxu1 %vm442_vm1, %v1880_v42  ;;  %v1885_v42 = vld [vmem:[%s16675_s22 + $0x157] sm:$0xff] }
  0xab   : > { %14909 = vmatmul.mubr.msk.f32.gmra.mxu0 %vm442_vm1, %v1325_v24  ;;  %15021 = vmatprep.mubr.msk.f32.mxu1 %vm442_vm1, %v1881_v50  ;;  %v1330_v24 = vld [vmem:[%s16675_s22 + $0x72] sm:$0xff]  ;;  %v1331_v50 = vld [vmem:[%s16675_s22 + $0x7a] sm:$0xff] }
  0xac   : > { %14911 = vmatprep.mubr.msk.f32.mxu0 %vm442_vm1, %v1326_v39  ;;  %v1884_v39 = vld [vmem:[%s16675_s22 + $0x14f] sm:$0xff] }
  0xae   : > { %15022 = vmatmul.mubr.msk.f32.gmra.mxu1 %vm442_vm1, %v1882_v20  ;;  %v1887_v20 = vld [vmem:[%s16675_s22 + $0x167] sm:$0xff] }
  0xaf   : > { %14912 = vmatmul.mubr.msk.f32.gmra.mxu0 %vm442_vm1, %v1327_v21  ;;  %15024 = vmatprep.mubr.msk.f32.mxu1 %vm442_vm1, %v1883_v63  ;;  %v1332_v21 = vld [vmem:[%s16675_s22 + $0x82] sm:$0xff]  ;;  %v1333_v63 = vld [vmem:[%s16675_s22 + $0x8a] sm:$0xff] }
  0xb0   : > { %14914 = vmatprep.mubr.msk.f32.mxu0 %vm442_vm1, %v1328_v25  ;;  %v1886_v25 = vld [vmem:[%s16675_s22 + $0x15f] sm:$0xff] }
  0xb2   : > { %15025 = vmatmul.mubr.msk.f32.gmra.mxu1 %vm442_vm1, %v1884_v39  ;;  %v1889_v39 = vld [vmem:[%s16675_s22 + $0x177] sm:$0xff] }
  0xb3   : > { %14915 = vmatmul.mubr.msk.f32.gmra.mxu0 %vm442_vm1, %v1329_v58  ;;  %15027 = vmatprep.mubr.msk.f32.mxu1 %vm442_vm1, %v1885_v42  ;;  %v1334_v58 = vld [vmem:[%s16675_s22 + $0x92] sm:$0xff]  ;;  %v1335_v42 = vld [vmem:[%s16675_s22 + $0x9a] sm:$0xff] }
  0xb4   : > { %14917 = vmatprep.mubr.msk.f32.mxu0 %vm442_vm1, %v1330_v24  ;;  %v1888_v24 = vld [vmem:[%s16675_s22 + $0x16f] sm:$0xff] }
  0xb6   : > { %15028 = vmatmul.mubr.msk.f32.gmra.mxu1 %vm442_vm1, %v1886_v25  ;;  %v1337_v25 = vld [vmem:[%s16675_s22 + $0xaa] sm:$0xff] }
  0xb7   : > { %14918 = vmatmul.mubr.msk.f32.gmra.mxu0 %vm442_vm1, %v1331_v50  ;;  %15030 = vmatprep.mubr.msk.f32.mxu1 %vm442_vm1, %v1887_v20  ;;  %v1336_v50 = vld [vmem:[%s16675_s22 + $0xa2] sm:$0xff]  ;;  %v1338_v20 = vld [vmem:[%s16675_s22 + $0xb2] sm:$0xff] }
  0xb8   : > { %14920 = vmatprep.mubr.msk.f32.mxu0 %vm442_vm1, %v1332_v21  ;;  %v1890_v21 = vld [vmem:[%s16675_s22 + $0x17f] sm:$0xff] }
  0xba   : > { %15031 = vmatmul.mubr.msk.f32.gmra.mxu1 %vm442_vm1, %v1888_v24  ;;  %v1342_v24 = vld [vmem:[%s16675_s22 + $0xd2] sm:$0xff] }
  0xbb   : > { %14921 = vmatmul.mubr.msk.f32.gmra.mxu0 %vm442_vm1, %v1333_v63  ;;  %15033 = vmatprep.mubr.msk.f32.mxu1 %vm442_vm1, %v1889_v39  ;;  %v1339_v63 = vld [vmem:[%s16675_s22 + $0xba] sm:$0xff]  ;;  %v1348_v39 = vld [vmem:[%s16675_s22 + $0x102] sm:$0xff] }
  0xbc   : > { %14923 = vmatprep.mubr.msk.f32.mxu0 %vm442_vm1, %v1334_v58  ;;  %v1340_v58 = vld [vmem:[%s16675_s22 + $0xc2] sm:$0xff] }
  0xbe   : > { %15034 = vmatmul.mubr.msk.f32.gmra.mxu1 %vm442_vm1, %v1890_v21 }
  0xbf   : > { %14924 = vmatmul.mubr.msk.f32.gmra.mxu0 %vm442_vm1, %v1335_v42  ;;  %15109 = vmatprep.mubr.msk.f32.mxu1 %vm442_vm1, %v16689_v4  ;;  %v1341_v4 = vld [vmem:[%s16675_s22 + $0xca] sm:$0xff] }
  0xc0   : > { %14926 = vmatprep.mubr.msk.f32.mxu0 %vm442_vm1, %v1336_v50  ;;  %v1356_v50 = vld [vmem:[%s16675_s22 + $0x142] sm:$0xff] }
  0xc2   : > { %15110 = vmatmul.mubr.msk.f32.vlgmr.msra.gmra.mxu1 %vm442_vm1, %v16692_v5  ;;  %v1343_v5 = vld [vmem:[%s16675_s22 + $0xda] sm:$0xff] }
  0xc3   : > { %14927 = vmatmul.mubr.msk.f32.gmra.mxu0 %vm442_vm1, %v1337_v25  ;;  %15112 = vmatprep.mubr.msk.f32.mxu1 %vm442_vm1, %v16715_v10  ;;  %v1344_v10 = vld [vmem:[%s16675_s22 + $0xe2] sm:$0xff]  ;;  %v1358_v25 = vld [vmem:[%s16675_s22 + $0x152] sm:$0xff] }
  0xc4   : > { %14929 = vmatprep.mubr.msk.f32.mxu0 %vm442_vm1, %v1338_v20 }
  0xc6   : > { %15113 = vmatmul.mubr.msk.f32.gmra.mxu1 %vm442_vm1, %v16719_v11  ;;  %v1345_v11 = vld [vmem:[%s16675_s22 + $0xea] sm:$0xff] }
  0xc7   : > { %14930 = vmatmul.mubr.msk.f32.gmra.mxu0 %vm442_vm1, %v1339_v63  ;;  %15115 = vmatprep.mubr.msk.f32.mxu1 %vm442_vm1, %v16737_v14  ;;  %v1346_v14 = vld [vmem:[%s16675_s22 + $0xf2] sm:$0xff]  ;;  %v1359_v63 = vld [vmem:[%s16675_s22 + $0x15a] sm:$0xff] }
  0xc8   : > { %14932 = vmatprep.mubr.msk.f32.mxu0 %vm442_vm1, %v1340_v58 }
  0xca   : > { %15116 = vmatmul.mubr.msk.f32.gmra.mxu1 %vm442_vm1, %v16740_v15  ;;  %v4007_v15 = vld [vmem:[%s22177_s1 + $0xe] sm:$0x3] }
  0xcb   : > { %14933 = vmatmul.mubr.msk.f32.gmra.mxu0 %vm442_vm1, %v1341_v4  ;;  %15118 = vmatprep.mubr.msk.f32.mxu1 %vm442_vm1, %v16757_v18  ;;  %v1347_v18 = vld [vmem:[%s16675_s22 + $0xfa] sm:$0xff]  ;;  %v1360_v4 = vld [vmem:[%s16675_s22 + $0x162] sm:$0xff] }
  0xcc   : > { %14935 = vmatprep.mubr.msk.f32.mxu0 %vm442_vm1, %v1342_v24  ;;  %15249 = vmatprep.subr.msk.mxu1 %vm581_vm0, %v4007_v15 }
  0xcd   : > { %15250 = vmatpush3.msk.msra.mxu1 %vm581_vm0, %v4007_v15 }
  0xce   : > { %15119 = vmatmul.mubr.msk.f32.gmra.mxu1 %vm442_vm1, %v16760_v19  ;;  %v1349_v19 = vld [vmem:[%s16675_s22 + $0x10a] sm:$0xff] }
  0xcf   : > { %14936 = vmatmul.mubr.msk.f32.gmra.mxu0 %vm442_vm1, %v1343_v5  ;;  %15121 = vmatprep.mubr.msk.f32.mxu1 %vm442_vm1, %v16777_v22  ;;  %v1350_v22 = vld [vmem:[%s16675_s22 + $0x112] sm:$0xff]  ;;  %v1361_v5 = vld [vmem:[%s16675_s22 + $0x16a] sm:$0xff] }
  0xd0   : > { %14938 = vmatprep.mubr.msk.f32.mxu0 %vm442_vm1, %v1344_v10 }
  0xd2   : > { %15122 = vmatmul.mubr.msk.f32.gmra.mxu1 %vm442_vm1, %v16780_v23  ;;  %v1351_v23 = vld [vmem:[%s16675_s22 + $0x11a] sm:$0xff] }
  0xd3   : > { %14939 = vmatmul.mubr.msk.f32.gmra.mxu0 %vm442_vm1, %v1345_v11  ;;  %15124 = vmatprep.mubr.msk.f32.mxu1 %vm442_vm1, %v16797_v26  ;;  %v1352_v26 = vld [vmem:[%s16675_s22 + $0x122] sm:$0xff] }
  0xd4   : > { %14941 = vmatprep.mubr.msk.f32.mxu0 %vm442_vm1, %v1346_v14 }
  0xd6   : > { %15125 = vmatmul.mubr.msk.f32.gmra.mxu1 %vm442_vm1, %v16800_v27  ;;  %v1353_v27 = vld [vmem:[%s16675_s22 + $0x12a] sm:$0xff] }
  0xd7   : > { %14942 = vmatmul.mubr.msk.f32.gmra.mxu0 %vm442_vm1, %v1347_v18  ;;  %15127 = vmatprep.mubr.msk.f32.mxu1 %vm442_vm1, %v16817_v30  ;;  %v1354_v30 = vld [vmem:[%s16675_s22 + $0x132] sm:$0xff] }
  0xd8   : > { %14944 = vmatprep.mubr.msk.f32.mxu0 %vm442_vm1, %v1348_v39 }
  0xda   : > { %15128 = vmatmul.mubr.msk.f32.gmra.mxu1 %vm442_vm1, %v16820_v31  ;;  %v1355_v31 = vld [vmem:[%s16675_s22 + $0x13a] sm:$0xff] }
  0xdb   : > { %14945 = vmatmul.mubr.msk.f32.gmra.mxu0 %vm442_vm1, %v1349_v19  ;;  %15130 = vmatprep.mubr.msk.f32.mxu1 %vm442_vm1, %v16842_v35 }
  0xdc   : > { %14947 = vmatprep.mubr.msk.f32.mxu0 %vm442_vm1, %v1350_v22 }
  0xde   : > { %15131 = vmatmul.mubr.msk.f32.gmra.mxu1 %vm442_vm1, %v16850_v37 }
  0xdf   : > { %14948 = vmatmul.mubr.msk.f32.gmra.mxu0 %vm442_vm1, %v1351_v23  ;;  %15133 = vmatprep.mubr.msk.f32.mxu1 %vm442_vm1, %v16867_v40  ;;  %v1357_v40 = vld [vmem:[%s16675_s22 + $0x14a] sm:$0xff] }
  0xe0   : > { %14950 = vmatprep.mubr.msk.f32.mxu0 %vm442_vm1, %v1352_v26 }
  0xe2   : > { %15134 = vmatmul.mubr.msk.f32.gmra.mxu1 %vm442_vm1, %v16870_v41 }
  0xe3   : > { %v17325_v42 = vpop.f32.mrf.mxu0  ;;  %14951 = vmatmul.mubr.msk.f32.gmra.mxu0 %vm442_vm1, %v1353_v27  ;;  %15136 = vmatprep.mubr.msk.f32.mxu1 %vm442_vm1, %v16884_v44 }
  0xe4   : > { %14953 = vmatprep.mubr.msk.f32.mxu0 %vm442_vm1, %v1354_v30  ;;  %v14848_v20 = vpop.f32.mrf.mxu1 }
  0xe5   : > { %v17330_v35 = vpop.f32.mrf.mxu0 }
  0xe6   : > { %15137 = vmatmul.mubr.msk.f32.gmra.mxu1 %vm442_vm1, %v16887_v45  ;;  %v1157_v44 = vpop.f32.mrf.mxu1 }
  0xe7   : > { %v17337_v37 = vpop.f32.mrf.mxu0  ;;  %14954 = vmatmul.mubr.msk.f32.gmra.mxu0 %vm442_vm1, %v1355_v31  ;;  %15139 = vmatprep.mubr.msk.f32.mxu1 %vm442_vm1, %v16899_v48 }
  0xe8   : > { %14956 = vmatprep.mubr.msk.f32.mxu0 %vm442_vm1, %v1356_v50  ;;  %v14851_v24 = vpop.f32.mrf.mxu1 }
  0xe9   : > { %v17342_v21 = vpop.f32.mrf.mxu0 }
  0xea   : > { %15140 = vmatmul.mubr.msk.f32.gmra.mxu1 %vm442_vm1, %v16902_v49  ;;  %v1167_v48 = vpop.f32.mrf.mxu1 }
  0xeb   : > { %v17349_v41 = vpop.f32.mrf.mxu0  ;;  %14957 = vmatmul.mubr.msk.f32.gmra.mxu0 %vm442_vm1, %v1357_v40  ;;  %15142 = vmatprep.mubr.msk.f32.mxu1 %vm442_vm1, %v16913_v52 }
  0xec   : > { %14959 = vmatprep.mubr.msk.f32.mxu0 %vm442_vm1, %v1358_v25  ;;  %v14854_v11 = vpop.f32.mrf.mxu1  ;;  %v2942_v25 = vld [vmem:[%s16675_s22 + $0x151] sm:$0xff] }
  0xed   : > { %v17354_v58 = vpop.f32.mrf.mxu0 }
  0xee   : > { %15143 = vmatmul.mubr.msk.f32.gmra.mxu1 %vm442_vm1, %v16916_v53  ;;  %v1177_v52 = vpop.f32.mrf.mxu1  ;;  %v17386_v53 = vld [vmem:[%s22177_s1 + $0x10] sm:$0x3] }
  0xef   : > { %v17361_v45 = vpop.f32.mrf.mxu0  ;;  %14960 = vmatmul.mubr.msk.f32.gmra.mxu0 %vm442_vm1, %v1359_v63  ;;  %15145 = vmatprep.mubr.msk.f32.mxu1 %vm442_vm1, %v16927_v56 }
  0xf0   : > { %14962 = vmatprep.mubr.msk.f32.mxu0 %vm442_vm1, %v1360_v4  ;;  %v14857_v15 = vpop.f32.mrf.mxu1 }
  0xf1   : > { %v17366_v10 = vpop.f32.mrf.mxu0 }
  0xf2   : > { %15146 = vmatmul.mubr.msk.f32.gmra.mxu1 %vm442_vm1, %v16930_v57 }
  0xf3   : > { %v17372_v49 = vpop.f32.mrf.mxu0  ;;  %14963 = vmatmul.mubr.msk.f32.gmra.mxu0 %vm442_vm1, %v1361_v5  ;;  %15148 = vmatprep.mubr.msk.f32.mxu1 %vm442_vm1, %v16941_v60 }
  0xf4   : > { %15038 = vmatprep.mubr.msk.f32.mxu0 %vm442_vm1, %v17079_v51  ;;  %v1187_v51 = vpop.f32.mrf.mxu1 }
  0xf5   : > { %v17377_v14 = vpop.f32.mrf.mxu0 }
  0xf6   : > { %v14860_v60 = vpop.f32.mrf.mxu1  ;;  %15149 = vmatmul.mubr.msk.f32.gmra.mxu1 %vm442_vm1, %v16944_v61 }
  0xf7   : > { %v17388_v56 = vpop.f32.mrf.mxu0  ;;  %15039 = vmatmul.mubr.msk.f32.vlgmr.msra.gmra.mxu0 %vm442_vm1, %v17084_v33  ;;  %15151 = vmatprep.mubr.msk.f32.mxu1 %vm442_vm1, %v16955_v0 }
  0xf8   : > { %15041 = vmatprep.mubr.msk.f32.mxu0 %vm442_vm1, %v17097_v34  ;;  %15179 = vmatpush3.msk.msra.mxu0 %vm581_vm0, %v17171_v43  ;;  %v1197_v34 = vpop.f32.mrf.mxu1 }
  0xf9   : > { %v17396_v57 = vpop.f32.mrf.mxu0  ;;  %15320 = vmatprep.subr.msk.mxu0 %vm581_vm0, %v17386_v53 }
  0xfa   : > { %v17412_v18 = vpop.f32.mrf.mxu1  ;;  %15152 = vmatmul.mubr.msk.f32.gmra.mxu1 %vm442_vm1, %v16958_v1 }
  0xfb   : > { %v17404_v33 = vpop.f32.mrf.mxu0  ;;  %15042 = vmatmul.mubr.msk.f32.gmra.mxu0 %vm442_vm1, %v17100_v62  ;;  %15154 = vmatprep.mubr.msk.f32.mxu1 %vm442_vm1, %v16969_v6 }
  0xfc   : > { %15044 = vmatprep.mubr.msk.f32.mxu0 %vm442_vm1, %v17111_v38  ;;  %v17420_v0 = vpop.f32.mrf.mxu1 }
  0xfd   : > { %v17410_v43 = vpop.f32.mrf.mxu0 }
  0xfe   : > { %v17426_v39 = vpop.f32.mrf.mxu1  ;;  %15155 = vmatmul.mubr.msk.f32.gmra.mxu1 %vm442_vm1, %v16972_v36 }
  0xff   : > { %v14777_v61 = vpop.f32.mrf.mxu0  ;;  %15045 = vmatmul.mubr.msk.f32.gmra.mxu0 %vm442_vm1, %v17114_v3  ;;  %15157 = vmatprep.mubr.msk.f32.mxu1 %vm442_vm1, %v16983_v46 }
 0x100   : > { %v17422_v62 = vadd.f32 %v14848_v20, %v14777_v61  ;;  %15047 = vmatprep.mubr.msk.f32.mxu0 %vm442_vm1, %v17125_v32  ;;  %v17436_v3 = vpop.f32.mrf.mxu1  ;;  %v22256_v61 = vld [vmem:[#allocation6_spill] sm:$0xff] }
 0x101   : > { %v721_v38 = vpop.f32.mrf.mxu0 }
 0x102   : > { %v17430_v1 = vadd.f32 %v1157_v44, %v721_v38  ;;  %v17442_v36 = vpop.f32.mrf.mxu1  ;;  %15158 = vmatmul.mubr.msk.f32.gmra.mxu1 %vm442_vm1, %v16986_v47  ;;  %v2943_v44 = vld [vmem:[%s16675_s22 + $0x159] sm:$0xff] }
 0x103   : > { %v14780_v6 = vpop.f32.mrf.mxu0  ;;  %15048 = vmatmul.mubr.msk.f32.gmra.mxu0 %vm442_vm1, %v17128_v29  ;;  %15160 = vmatprep.mubr.msk.f32.mxu1 %vm442_vm1, %v16997_v54 }
 0x104   : > { %v17438_v19 = vadd.f32 %v14851_v24, %v14780_v6  ;;  %15050 = vmatprep.mubr.msk.f32.mxu0 %vm442_vm1, %v17139_v2  ;;  %v17452_v46 = vpop.f32.mrf.mxu1  ;;  %v2939_v2 = vld [vmem:[%s16675_s22 + $0x139] sm:$0xff] }
 0x105   : > { %v731_v32 = vpop.f32.mrf.mxu0 }
 0x106   : > { %v17446_v22 = vadd.f32 %v1167_v48, %v731_v32  ;;  %v17459_v47 = vpop.f32.mrf.mxu1  ;;  %15161 = vmatmul.mubr.msk.f32.gmra.mxu1 %vm442_vm1, %v17000_v55  ;;  %v2944_v48 = vld [vmem:[%s16675_s22 + $0x161] sm:$0xff] }
 0x107   : > { %v14783_v29 = vpop.f32.mrf.mxu0  ;;  %15051 = vmatmul.mubr.msk.f32.gmra.mxu0 %vm442_vm1, %v17142_v59  ;;  %15163 = vmatprep.mubr.msk.f32.mxu1 %vm442_vm1, %v2939_v2  ;;  %v2940_v59 = vld [vmem:[%s16675_s22 + $0x141] sm:$0xff] }
 0x108   : > { %v17455_v23 = vadd.f32 %v14854_v11, %v14783_v29  ;;  %15053 = vmatprep.mubr.msk.f32.mxu0 %vm442_vm1, %v17153_v28  ;;  %v17469_v30 = vpop.f32.mrf.mxu1  ;;  %v2941_v28 = vld [vmem:[%s16675_s22 + $0x149] sm:$0xff] }
 0x109   : > { %v741_v26 = vpop.f32.mrf.mxu0  ;;  %v2945_v11 = vld [vmem:[%s16675_s22 + $0x169] sm:$0xff] }
 0x10a   : > { %v17463_v54 = vadd.f32 %v1177_v52, %v741_v26  ;;  %v17476_v55 = vpop.f32.mrf.mxu1  ;;  %15164 = vmatmul.mubr.msk.f32.gmra.mxu1 %vm442_vm1, %v2940_v59  ;;  %v22258_v29 = vld [vmem:[#allocation7_spill] sm:$0xff]  ;;  %v22260_v26 = vld [vmem:[#allocation8_spill] sm:$0xff] }
 0x10b   : > { %v14786_v27 = vpop.f32.mrf.mxu0  ;;  %15054 = vmatmul.mubr.msk.f32.gmra.mxu0 %vm442_vm1, %v16698_v7  ;;  %15166 = vmatprep.mubr.msk.f32.mxu1 %vm442_vm1, %v2941_v28  ;;  %v22262_v28 = vld [vmem:[#allocation16_spill] sm:$0xff] }
 0x10c   : > { %v17472_v31 = vadd.f32 %v14857_v15, %v14786_v27  ;;  %15056 = vmatprep.mubr.msk.f32.mxu0 %vm442_vm1, %v16704_v8  ;;  %v17485_v20 = vpop.f32.mrf.mxu1 }
 0x10d   : > { %v751_v50 = vpop.f32.mrf.mxu0 }
 0x10e   : > { %22249 = vst [vmem:[#allocation22_spill] sm:$0xff] %v17472_v31  ;;  %v17479_v40 = vadd.f32 %v1187_v51, %v751_v50  ;;  %v17492_v4 = vpop.f32.mrf.mxu1  ;;  %15167 = vmatmul.mubr.msk.f32.gmra.mxu1 %vm442_vm1, %v2942_v25  ;;  %v22263_v25 = vld [vmem:[#allocation9_spill] sm:$0xff] }
 0x10f   : > { %v14789_v7 = vpop.f32.mrf.mxu0  ;;  %15057 = vmatmul.mubr.msk.f32.gmra.mxu0 %vm442_vm1, %v16710_v9  ;;  %15169 = vmatprep.mubr.msk.f32.mxu1 %vm442_vm1, %v2943_v44  ;;  %v22265_v44 = vld [vmem:[#allocation10_spill] sm:$0xff] }
 0x110   : > { %22250 = vst [vmem:[#allocation23_spill] sm:$0xff] %v17479_v40  ;;  %v17488_v8 = vadd.f32 %v14860_v60, %v14789_v7  ;;  %15059 = vmatprep.mubr.msk.f32.mxu0 %vm442_vm1, %v16727_v12  ;;  %v17501_v5 = vpop.f32.mrf.mxu1  ;;  %v3991_v40 = vld [vmem:[%s16675_s22 + $0x11f] sm:$0xff] }
 0x111   : > { %v761_v63 = vpop.f32.mrf.mxu0 }
 0x112   : > { %22251 = vst [vmem:[#allocation24_spill] sm:$0xff] %v17488_v8  ;;  %v17495_v24 = vadd.f32 %v1197_v34, %v761_v63  ;;  %v17509_v15 = vpop.f32.mrf.mxu1  ;;  %15170 = vmatmul.mubr.msk.f32.gmra.mxu1 %vm442_vm1, %v2944_v48  ;;  %v16594_v63 = vmov 0   ;;  %v3989_v8 = vld [vmem:[%s16675_s22 + $0x10f] sm:$0xff] }
 0x113   : > { %v14792_v9 = vpop.f32.mrf.mxu0  ;;  %15060 = vmatmul.mubr.msk.f32.gmra.mxu0 %vm442_vm1, %v16732_v13  ;;  %15172 = vmatprep.mubr.msk.f32.mxu1 %vm442_vm1, %v2945_v11  ;;  %v2946_v13 = vld [vmem:[%s16675_s22 + $0x171] sm:$0xff] }
 0x114   : > { %22252 = vst [vmem:[#allocation25_spill] sm:$0xff] %v17495_v24  ;;  %v17505_v12 = vadd.f32 %v17412_v18, %v14792_v9  ;;  %15062 = vmatprep.mubr.msk.f32.mxu0 %vm442_vm1, %v16747_v16  ;;  %v17519_v34 = vpop.f32.mrf.mxu1  ;;  %v2947_v18 = vld [vmem:[%s16675_s22 + $0x179] sm:$0xff]  ;;  %16523 = vset.pattern.permute.xlu0 %v16594_v63 }
 0x115   : > { %v771_v52 = vpop.f32.mrf.mxu0  ;;  %v22266_v11 = vld [vmem:[#allocation17_spill] sm:$0xff]  ;;  %16524 = vset.pattern.permute.xlu1 %v16594_v63 }
 0x116   : > { %22253 = vst [vmem:[#allocation26_spill] sm:$0xff] %v17505_v12  ;;  %v17513_v51 = vadd.f32 %v17420_v0, %v771_v52  ;;  %v17527_v6 = vpop.f32.mrf.mxu1  ;;  %15173 = vmatmul.mubr.msk.f32.gmra.mxu1 %vm442_vm1, %v2946_v13 }
 0x117   : > { %v14795_v60 = vpop.f32.mrf.mxu0  ;;  %15063 = vmatmul.mubr.msk.f32.gmra.mxu0 %vm442_vm1, %v16752_v17  ;;  %15175 = vmatprep.mubr.msk.f32.mxu1 %vm442_vm1, %v2947_v18  ;;  %v2948_v17 = vld [vmem:[%s16675_s22 + $0x181] sm:$0xff] }
 0x118   : > { %22254 = vst [vmem:[#allocation27_spill] sm:$0xff] %v17513_v51  ;;  %v17523_v16 = vadd.f32 %v17426_v39, %v14795_v60  ;;  %15065 = vmatprep.mubr.msk.f32.mxu0 %vm442_vm1, %v22256_v61  ;;  %v17537_v39 = vpop.f32.mrf.mxu1  ;;  %v22269_v60 = vld [vmem:[#allocation11_spill] sm:$0xff]  ;;  %v3433_v51 = vld [vmem:[%s16675_s22 + $0x36] sm:$0xff] }
 0x119   : > { %v781_v38 = vpop.f32.mrf.mxu0 }
 0x11a   : > { %22255 = vst [vmem:[#allocation28_spill] sm:$0xff] %v17523_v16  ;;  %v17531_v0 = vadd.f32 %v17436_v3, %v781_v38  ;;  %v17544_v27 = vpop.f32.mrf.mxu1  ;;  %15176 = vmatmul.mubr.msk.f32.gmra.mxu1 %vm442_vm1, %v2948_v17  ;;  %v22271_v38 = vld [vmem:[#allocation12_spill] sm:$0xff]  ;;  %v5119_v17 = vld [vmem:[%s22183_s7 + $0x8] sm:$0xff]  ;;  %v3987_v16 = vld [vmem:[%s16675_s22 + $0xff] sm:$0xff] }
 0x11b   : > { %v14798_v32 = vpop.f32.mrf.mxu0  ;;  %15066 = vmatmul.mubr.msk.f32.gmra.mxu0 %vm442_vm1, %v22258_v29  ;;  %15251 = vmatprep.mubr.msk.f32.mxu1 %vm442_vm1, %v22262_v28 }
 0x11c   : > { %22257 = vst [vmem:[#allocation6_spill] sm:$0xff] %v17531_v0  ;;  %v17540_v2 = vadd.f32 %v17442_v36, %v14798_v32  ;;  %15068 = vmatprep.mubr.msk.f32.mxu0 %vm442_vm1, %v22260_v26  ;;  %v17554_v36 = vpop.f32.mrf.mxu1  ;;  %v22272_v26 = vld [vmem:[#allocation19_spill] sm:$0xff] }
 0x11d   : > { %v791_v59 = vpop.f32.mrf.mxu0 }
 0x11e   : > { %22259 = vst [vmem:[#allocation7_spill] sm:$0xff] %v17540_v2  ;;  %v17548_v3 = vadd.f32 %v17452_v46, %v791_v59  ;;  %v5118_v46 = vld [vmem:[%s22183_s7] sm:$0xff]  ;;  %v17564_v9 = vpop.f32.mrf.mxu1  ;;  %15252 = vmatmul.mubr.msk.f32.vlgmr.msra.gmra.mxu1 %vm442_vm1, %v22266_v11  ;;  %v22274_v59 = vld [vmem:[#allocation20_spill] sm:$0xff] }
 0x11f   : > { %v14801_v50 = vpop.f32.mrf.mxu0  ;;  %15069 = vmatmul.mubr.msk.f32.gmra.mxu0 %vm442_vm1, %v22263_v25  ;;  %5166 = vperm.xlu0 %16523, %v5118_v46   ;;  %v22277_v46 = vld [vmem:[#allocation14_spill] sm:$0xff] }
 0x120   : > { %22261 = vst [vmem:[#allocation8_spill] sm:$0xff] %v17548_v3  ;;  %v17557_v7 = vadd.f32 %v17459_v47, %v14801_v50  ;;  %15071 = vmatprep.mubr.msk.f32.mxu0 %vm442_vm1, %v22265_v44  ;;  %v22268_v47 = vld [vmem:[#allocation18_spill] sm:$0xff]  ;;  %v17575_v18 = vpop.f32.mrf.mxu1  ;;  %v22275_v50 = vld [vmem:[#allocation13_spill] sm:$0xff] }
 0x121   : > { %v801_v48 = vpop.f32.mrf.mxu0  ;;  %15254 = vmatprep.mubr.msk.f32.mxu1 %vm442_vm1, %v22268_v47  ;;  %v3967_v44 = vld [vmem:[%s16675_s22 + $0x5f] sm:$0xff] }
 0x122   : > { %22264 = vst [vmem:[#allocation16_spill] sm:$0xff] %v17557_v7  ;;  %v17569_v52 = vadd.f32 %v17469_v30, %v801_v48  ;;  %v5120_v30 = vld [vmem:[%s22183_s7 + $0x10] sm:$0xff]  ;;  %v17588_v29 = vpop.f32.mrf.mxu1  ;;  %15255 = vmatmul.mubr.msk.f32.gmra.mxu1 %vm442_vm1, %v22272_v26  ;;  %v5122_v48 = vld [vmem:[%s22183_s7 + $0x20] sm:$0xff] }
 0x123   : > { %v14804_v13 = vpop.f32.mrf.mxu0  ;;  %15072 = vmatmul.mubr.msk.f32.gmra.mxu0 %vm442_vm1, %v22269_v60  ;;  %5176 = vperm.xlu1 %16524, %v5120_v30   ;;  %v3968_v60 = vld [vmem:[%s16675_s22 + $0x67] sm:$0xff]  ;;  %v16525_v30 = vld [vmem:[%s16675_s22 + $0xf0] sm:$0xff] }
 0x124   : > { %22267 = vst [vmem:[#allocation9_spill] sm:$0xff] %v17569_v52  ;;  %v17578_v61 = vadd.f32 %v17476_v55, %v14804_v13  ;;  %15074 = vmatprep.mubr.msk.f32.mxu0 %vm442_vm1, %v22271_v38  ;;  %15257 = vmatprep.mubr.msk.f32.mxu1 %vm442_vm1, %v22274_v59  ;;  %v17599_v25 = vpop.f32.mrf.mxu1  ;;  %v22278_v13 = vld [vmem:[#allocation21_spill] sm:$0xff]  ;;  %v22281_v59 = vld [vmem:[#allocation15_spill] sm:$0xff]  ;;  %v2419_v3 = vld [vmem:[%s16675_s22 + $0x180] sm:$0xff] }
 0x125   : > { %v811_v32 = vpop.f32.mrf.mxu0  ;;  %5171 = vperm.xlu0 %16523, %v5119_v17   ;;  %v3985_v7 = vld [vmem:[%s16675_s22 + $0xef] sm:$0xff] }
 0x126   : > { %22270 = vst [vmem:[#allocation10_spill] sm:$0xff] %v17578_v61  ;;  %v17593_v55 = vadd.f32 %v17485_v20, %v811_v32  ;;  %v5121_v20 = vld [vmem:[%s22183_s7 + $0x18] sm:$0xff]  ;;  %v17613_v47 = vpop.f32.mrf.mxu1  ;;  %15258 = vmatmul.mubr.msk.f32.gmra.mxu1 %vm442_vm1, %v22278_v13  ;;  %v3969_v32 = vld [vmem:[%s16675_s22 + $0x6f] sm:$0xff] }
 0x127   : > { %v14807_v28 = vpop.f32.mrf.mxu0  ;;  %15075 = vmatmul.mubr.msk.f32.gmra.mxu0 %vm442_vm1, %v22275_v50  ;;  %5181 = vperm.xlu1 %16524, %v5121_v20   ;;  %v3971_v13 = vld [vmem:[%s16675_s22 + $0x7f] sm:$0xff] }
 0x128   : > { %22273 = vst [vmem:[#allocation17_spill] sm:$0xff] %v17593_v55  ;;  %v17603_v63 = vadd.f32 %v17492_v4, %v14807_v28  ;;  %15077 = vmatprep.mubr.msk.f32.mxu0 %vm442_vm1, %v22277_v46  ;;  %15260 = vmatprep.mubr.msk.f32.mxu1 %vm442_vm1, %v3967_v44  ;;  %v17624_v17 = vpop.f32.mrf.mxu1  ;;  %v5124_v28 = vld [vmem:[%s22183_s7 + $0x30] sm:$0xff] }
 0x129   : > { %v821_v11 = vpop.f32.mrf.mxu0  ;;  %5186 = vperm.xlu0 %16523, %v5122_v48   ;;  %v3970_v46 = vld [vmem:[%s16675_s22 + $0x77] sm:$0xff]  ;;  %v16526_v48 = vld [vmem:[%s16675_s22 + $0x100] sm:$0xff] }
 0x12a   : > { %22276 = vst [vmem:[#allocation18_spill] sm:$0xff] %v17603_v63  ;;  %v17618_v4 = vadd.f32 %v17501_v5, %v821_v11  ;;  %v5123_v5 = vld [vmem:[%s22183_s7 + $0x28] sm:$0xff]  ;;  %v17638_v44 = vpop.f32.mrf.mxu1  ;;  %15261 = vmatmul.mubr.msk.f32.gmra.mxu1 %vm442_vm1, %v3968_v60  ;;  %v3983_v63 = vld [vmem:[%s16675_s22 + $0xdf] sm:$0xff]  ;;  %v2417_v55 = vld [vmem:[%s16675_s22 + $0x170] sm:$0xff] }
 0x12b   : > { %v14810_v38 = vpop.f32.mrf.mxu0  ;;  %15078 = vmatmul.mubr.msk.f32.gmra.mxu0 %vm442_vm1, %v16525_v30  ;;  %5191 = vperm.xlu1 %16524, %v5123_v5   ;;  %v16527_v60 = vld [vmem:[%s16675_s22 + $0x108] sm:$0xff]  ;;  %v5126_v30 = vld [vmem:[%s22183_s7 + $0x40] sm:$0xff] }
 0x12c   : > { %22279 = vst [vmem:[#allocation11_spill] sm:$0xff] %v17618_v4  ;;  %v17628_v26 = vadd.f32 %v17509_v15, %v14810_v38  ;;  %15080 = vmatprep.mubr.msk.f32.mxu0 %vm442_vm1, %v22281_v59  ;;  %15263 = vmatprep.mubr.msk.f32.mxu1 %vm442_vm1, %v3969_v32  ;;  %v17648_v11 = vpop.f32.mrf.mxu1  ;;  %v3972_v5 = vld [vmem:[%s16675_s22 + $0x87] sm:$0xff] }
 0x12d   : > { %v831_v50 = vpop.f32.mrf.mxu0  ;;  %5196 = vperm.xlu0 %16523, %v5124_v28  }
 0x12e   : > { %22280 = vst [vmem:[#allocation12_spill] sm:$0xff] %v17628_v26  ;;  %v17642_v15 = vadd.f32 %v17519_v34, %v831_v50  ;;  %v5125_v34 = vld [vmem:[%s22183_s7 + $0x38] sm:$0xff]  ;;  %v17662_v59 = vpop.f32.mrf.mxu1  ;;  %15264 = vmatmul.mubr.msk.f32.gmra.mxu1 %vm442_vm1, %v3970_v46  ;;  %v16528_v50 = vld [vmem:[%s16675_s22 + $0x110] sm:$0xff] }
 0x12f   : > { %v14813_v20 = vpop.f32.mrf.mxu0  ;;  %15081 = vmatmul.mubr.msk.f32.gmra.mxu0 %vm442_vm1, %v16526_v48  ;;  %5201 = vperm.xlu1 %16524, %v5125_v34   ;;  %v3973_v48 = vld [vmem:[%s16675_s22 + $0x8f] sm:$0xff]  ;;  %v16529_v46 = vld [vmem:[%s16675_s22 + $0x118] sm:$0xff] }
 0x130   : > { %22282 = vst [vmem:[#allocation19_spill] sm:$0xff] %v17642_v15  ;;  %v17652_v38 = vadd.f32 %v17527_v6, %v14813_v20  ;;  %15083 = vmatprep.mubr.msk.f32.mxu0 %vm442_vm1, %v16527_v60  ;;  %15266 = vmatprep.mubr.msk.f32.mxu1 %vm442_vm1, %v3971_v13  ;;  %v17672_v20 = vpop.f32.mrf.mxu1  ;;  %v5128_v13 = vld [vmem:[%s22183_s7 + $0x50] sm:$0xff]  ;;  %v2415_v15 = vld [vmem:[%s16675_s22 + $0x160] sm:$0xff] }
 0x131   : > { %v841_v32 = vpop.f32.mrf.mxu0  ;;  %5206 = vperm.xlu0 %16523, %v5126_v30  }
 0x132   : > { %22283 = vst [vmem:[#allocation20_spill] sm:$0xff] %v17652_v38  ;;  %v17666_v6 = vadd.f32 %v17537_v39, %v841_v32  ;;  %v5127_v39 = vld [vmem:[%s22183_s7 + $0x48] sm:$0xff]  ;;  %v17686_v30 = vpop.f32.mrf.mxu1  ;;  %15267 = vmatmul.mubr.msk.f32.gmra.mxu1 %vm442_vm1, %v3972_v5  ;;  %v3974_v32 = vld [vmem:[%s16675_s22 + $0x97] sm:$0xff] }
 0x133   : > { %v14816_v28 = vpop.f32.mrf.mxu0  ;;  %15084 = vmatmul.mubr.msk.f32.gmra.mxu0 %vm442_vm1, %v16528_v50  ;;  %5211 = vperm.xlu1 %16524, %v5127_v39   ;;  %v16530_v50 = vld [vmem:[%s16675_s22 + $0x120] sm:$0xff]  ;;  %v16531_v5 = vld [vmem:[%s16675_s22 + $0x128] sm:$0xff] }
 0x134   : > { %22284 = vst [vmem:[#allocation13_spill] sm:$0xff] %v17666_v6  ;;  %v17676_v60 = vadd.f32 %v17544_v27, %v14816_v28  ;;  %15086 = vmatprep.mubr.msk.f32.mxu0 %vm442_vm1, %v16529_v46  ;;  %15269 = vmatprep.mubr.msk.f32.mxu1 %vm442_vm1, %v3973_v48  ;;  %v17696_v46 = vpop.f32.mrf.mxu1  ;;  %v5130_v48 = vld [vmem:[%s22183_s7 + $0x60] sm:$0xff]  ;;  %v3981_v38 = vld [vmem:[%s16675_s22 + $0xcf] sm:$0xff] }
 0x135   : > { %v851_v34 = vpop.f32.mrf.mxu0  ;;  %5216 = vperm.xlu0 %16523, %v5128_v13  }
 0x136   : > { %22285 = vst [vmem:[#allocation14_spill] sm:$0xff] %v17676_v60  ;;  %v17690_v27 = vadd.f32 %v17554_v36, %v851_v34  ;;  %v3975_v60 = vld [vmem:[%s16675_s22 + $0x9f] sm:$0xff]  ;;  %v17710_v13 = vpop.f32.mrf.mxu1  ;;  %15270 = vmatmul.mubr.msk.f32.gmra.mxu1 %vm442_vm1, %v3974_v32  ;;  %v3976_v34 = vld [vmem:[%s16675_s22 + $0xa7] sm:$0xff] }
 0x137   : > { %v14819_v28 = vpop.f32.mrf.mxu0  ;;  %15087 = vmatmul.mubr.msk.f32.gmra.mxu0 %vm442_vm1, %v16530_v50  ;;  %v5129_v36 = vld [vmem:[%s22183_s7 + $0x58] sm:$0xff]  ;;  %15272 = vmatprep.mubr.msk.f32.mxu1 %vm442_vm1, %v3975_v60  ;;  %v16532_v50 = vld [vmem:[%s16675_s22 + $0x130] sm:$0xff] }
 0x138   : > { %22286 = vst [vmem:[#allocation21_spill] sm:$0xff] %v17690_v27  ;;  %v17700_v6 = vadd.f32 %v17564_v9, %v14819_v28  ;;  %15089 = vmatprep.mubr.msk.f32.mxu0 %vm442_vm1, %v16531_v5  ;;  %5221 = vperm.xlu1 %16524, %v5129_v36   ;;  %v17720_v5 = vpop.f32.mrf.mxu1  ;;  %v16533_v32 = vld [vmem:[%s16675_s22 + $0x138] sm:$0xff]  ;;  %v5132_v60 = vld [vmem:[%s22183_s7 + $0x70] sm:$0xff] }
 0x139   : > { %v861_v39 = vpop.f32.mrf.mxu0  ;;  %5226 = vperm.xlu0 %16523, %v5130_v48  }
 0x13a   : > { %22287 = vst [vmem:[#allocation15_spill] sm:$0xff] %v17700_v6  ;;  %v17714_v9 = vadd.f32 %v17575_v18, %v861_v39  ;;  %v3977_v6 = vld [vmem:[%s16675_s22 + $0xaf] sm:$0xff]  ;;  %v17734_v48 = vpop.f32.mrf.mxu1  ;;  %15273 = vmatmul.mubr.msk.f32.gmra.mxu1 %vm442_vm1, %v3976_v34  ;;  %v3978_v39 = vld [vmem:[%s16675_s22 + $0xb7] sm:$0xff] }
 0x13b   : > { %v14822_v28 = vpop.f32.mrf.mxu0  ;;  %15090 = vmatmul.mubr.msk.f32.gmra.mxu0 %vm442_vm1, %v16532_v50  ;;  %v5131_v18 = vld [vmem:[%s22183_s7 + $0x68] sm:$0xff]  ;;  %15275 = vmatprep.mubr.msk.f32.mxu1 %vm442_vm1, %v3977_v6  ;;  %v16534_v50 = vld [vmem:[%s16675_s22 + $0x140] sm:$0xff] }
 0x13c   : > { %22288 = vst [vmem:[#allocation29_spill] sm:$0xff] %v17714_v9  ;;  %v17724_v27 = vadd.f32 %v17588_v29, %v14822_v28  ;;  %15092 = vmatprep.mubr.msk.f32.mxu0 %vm442_vm1, %v16533_v32  ;;  %5231 = vperm.xlu1 %16524, %v5131_v18   ;;  %v17746_v32 = vpop.f32.mrf.mxu1  ;;  %v16535_v34 = vld [vmem:[%s16675_s22 + $0x148] sm:$0xff]  ;;  %v5134_v6 = vld [vmem:[%s22183_s7 + $0x80] sm:$0xff] }
 0x13d   : > { %v871_v36 = vpop.f32.mrf.mxu0  ;;  %5236 = vperm.xlu0 %16523, %v5132_v60   ;;  %v2414_v60 = vld [vmem:[%s16675_s22 + $0x158] sm:$0xff] }
 0x13e   : > { %22289 = vst [vmem:[#allocation30_spill] sm:$0xff] %v17724_v27  ;;  %v17738_v29 = vadd.f32 %v17599_v25, %v871_v36  ;;  %v3979_v27 = vld [vmem:[%s16675_s22 + $0xbf] sm:$0xff]  ;;  %v17760_v36 = vpop.f32.mrf.mxu1  ;;  %15276 = vmatmul.mubr.msk.f32.gmra.mxu1 %vm442_vm1, %v3978_v39  ;;  %v5136_v39 = vld [vmem:[%s22183_s7 + $0x90] sm:$0xff] }
 0x13f   : > { %v17742_v28 = vpop.f32.mrf.mxu0  ;;  %15093 = vmatmul.mubr.msk.f32.gmra.mxu0 %vm442_vm1, %v16534_v50  ;;  %v5133_v25 = vld [vmem:[%s22183_s7 + $0x78] sm:$0xff]  ;;  %15278 = vmatprep.mubr.msk.f32.mxu1 %vm442_vm1, %v3979_v27  ;;  %v3980_v50 = vld [vmem:[%s16675_s22 + $0xc7] sm:$0xff] }
 0x140   : > { %22290 = vst [vmem:[#allocation31_spill] sm:$0xff] %v17738_v29  ;;  %15095 = vmatprep.mubr.msk.f32.mxu0 %vm442_vm1, %v16535_v34  ;;  %5241 = vperm.xlu1 %16524, %v5133_v25   ;;  %v16536_v29 = vld [vmem:[%s16675_s22 + $0x150] sm:$0xff]  ;;  %v17769_v9 = vpop.f32.mrf.mxu1  ;;  %v5135_v27 = vld [vmem:[%s22183_s7 + $0x88] sm:$0xff] }
 0x141   : > { %v17757_v18 = vpop.f32.mrf.mxu0  ;;  %5246 = vperm.xlu0 %16523, %v5134_v6   ;;  %v2416_v6 = vld [vmem:[%s16675_s22 + $0x168] sm:$0xff] }
 0x142   : > { %15279 = vmatmul.mubr.msk.f32.gmra.mxu1 %vm442_vm1, %v3980_v50  ;;  %v5137_v50 = vld [vmem:[%s22183_s7 + $0x98] sm:$0xff] }
 0x143   : > { %v17765_v34 = vpop.f32.mrf.mxu0  ;;  %15096 = vmatmul.mubr.msk.f32.gmra.mxu0 %vm442_vm1, %v16536_v29  ;;  %v17783_v29 = vpop.f32.mrf.mxu1  ;;  %15281 = vmatprep.mubr.msk.f32.mxu1 %vm442_vm1, %v3981_v38  ;;  %v5138_v38 = vld [vmem:[%s22183_s7 + $0xa0] sm:$0xff] }
 0x144   : > { %15098 = vmatprep.mubr.msk.f32.mxu0 %vm442_vm1, %v2414_v60  ;;  %5251 = vperm.xlu1 %16524, %v5135_v27   ;;  %v3982_v60 = vld [vmem:[%s16675_s22 + $0xd7] sm:$0xff] }
 0x145   : > { %v17780_v25 = vpop.f32.mrf.mxu0  ;;  %5256 = vperm.xlu0 %16523, %v5136_v39   ;;  %v17791_v4 = vpop.f32.mrf.mxu1  ;;  %v2418_v39 = vld [vmem:[%s16675_s22 + $0x178] sm:$0xff] }
 0x146   : > { %15282 = vmatmul.mubr.msk.f32.gmra.mxu1 %vm442_vm1, %v3982_v60  ;;  %v5139_v60 = vld [vmem:[%s22183_s7 + $0xa8] sm:$0xff] }
 0x147   : > { %v17788_v26 = vpop.f32.mrf.mxu0  ;;  %15099 = vmatmul.mubr.msk.f32.gmra.mxu0 %vm442_vm1, %v2415_v15  ;;  %v17805_v15 = vpop.f32.mrf.mxu1  ;;  %15284 = vmatprep.mubr.msk.f32.mxu1 %vm442_vm1, %v3983_v63  ;;  %v5140_v63 = vld [vmem:[%s22183_s7 + $0xb0] sm:$0xff] }
 0x148   : > { %15101 = vmatprep.mubr.msk.f32.mxu0 %vm442_vm1, %v2416_v6  ;;  %5261 = vperm.xlu1 %16524, %v5137_v50   ;;  %v3984_v6 = vld [vmem:[%s16675_s22 + $0xe7] sm:$0xff] }
 0x149   : > { %v17802_v27 = vpop.f32.mrf.mxu0  ;;  %5266 = vperm.xlu0 %16523, %v5138_v38   ;;  %v17813_v52 = vpop.f32.mrf.mxu1  ;;  %v3432_v38 = vld [vmem:[%s16675_s22 + $0x2e] sm:$0xff] }
 0x14a   : > { %15285 = vmatmul.mubr.msk.f32.gmra.mxu1 %vm442_vm1, %v3984_v6  ;;  %v5141_v6 = vld [vmem:[%s22183_s7 + $0xb8] sm:$0xff] }
 0x14b   : > { %v17810_v61 = vpop.f32.mrf.mxu0  ;;  %15102 = vmatmul.mubr.msk.f32.gmra.mxu0 %vm442_vm1, %v2417_v55  ;;  %v17827_v55 = vpop.f32.mrf.mxu1  ;;  %15287 = vmatprep.mubr.msk.f32.mxu1 %vm442_vm1, %v3985_v7  ;;  %v5142_v7 = vld [vmem:[%s22183_s7 + $0xc0] sm:$0xff] }
 0x14c   : > { %15104 = vmatprep.mubr.msk.f32.mxu0 %vm442_vm1, %v2418_v39  ;;  %22291 = vst [vmem:[#allocation32_spill] sm:$0xff] %v17827_v55  ;;  %5271 = vperm.xlu1 %16524, %v5139_v60   ;;  %v3986_v39 = vld [vmem:[%s16675_s22 + $0xf7] sm:$0xff]  ;;  %v3993_v55 = vld [vmem:[%s16675_s22 + $0x12f] sm:$0xff] }
 0x14d   : > { %v17824_v50 = vpop.f32.mrf.mxu0  ;;  %5276 = vperm.xlu0 %16523, %v5140_v63   ;;  %v17835_v0 = vpop.f32.mrf.mxu1  ;;  %v3434_v63 = vld [vmem:[%s16675_s22 + $0x3e] sm:$0xff] }
 0x14e   : > { %22292 = vst [vmem:[#allocation33_spill] sm:$0xff] %v17835_v0  ;;  %15288 = vmatmul.mubr.msk.f32.gmra.mxu1 %vm442_vm1, %v3986_v39  ;;  %v5144_v39 = vld [vmem:[%s22183_s7 + $0xd0] sm:$0xff] }
 0x14f   : > { %v17832_v2 = vpop.f32.mrf.mxu0  ;;  %15105 = vmatmul.mubr.msk.f32.gmra.mxu0 %vm442_vm1, %v2419_v3  ;;  %v17849_v3 = vpop.f32.mrf.mxu1  ;;  %15290 = vmatprep.mubr.msk.f32.mxu1 %vm442_vm1, %v3987_v16  ;;  %v5143_v16 = vld [vmem:[%s22183_s7 + $0xc8] sm:$0xff]  ;;  %v3437_v0 = vld [vmem:[%s16675_s22 + $0x56] sm:$0xff] }
 0x150   : > { %15180 = vmatprep.mubr.msk.f32.mxu0 %vm442_vm1, %v3432_v38  ;;  %22293 = vst [vmem:[#allocation34_spill] sm:$0xff] %v17849_v3  ;;  %5281 = vperm.xlu1 %16524, %v5141_v6   ;;  %v3988_v38 = vld [vmem:[%s16675_s22 + $0x107] sm:$0xff] }
 0x151   : > { %v17846_v60 = vpop.f32.mrf.mxu0  ;;  %5286 = vperm.xlu0 %16523, %v5142_v7   ;;  %v17857_v24 = vpop.f32.mrf.mxu1  ;;  %v3435_v3 = vld [vmem:[%s16675_s22 + $0x46] sm:$0xff]  ;;  %v3436_v6 = vld [vmem:[%s16675_s22 + $0x4e] sm:$0xff] }
 0x152   : > { %22294 = vst [vmem:[#allocation35_spill] sm:$0xff] %v17857_v24  ;;  %15291 = vmatmul.mubr.msk.f32.gmra.mxu1 %vm442_vm1, %v3988_v38  ;;  %v5145_v38 = vld [vmem:[%s22183_s7 + $0xd8] sm:$0xff] }
 0x153   : > { %v17854_v12 = vpop.f32.mrf.mxu0  ;;  %15181 = vmatmul.mubr.msk.f32.vlgmr.msra.gmra.mxu0 %vm442_vm1, %v3433_v51  ;;  %v17873_v7 = vpop.f32.mrf.mxu1  ;;  %15293 = vmatprep.mubr.msk.f32.mxu1 %vm442_vm1, %v3989_v8  ;;  %v5146_v8 = vld [vmem:[%s22183_s7 + $0xe0] sm:$0xff] }
 0x154   : > { %15183 = vmatprep.mubr.msk.f32.mxu0 %vm442_vm1, %v3434_v63  ;;  %15321 = vmatpush3.msk.msra.mxu0 %vm581_vm0, %v17386_v53  ;;  %22295 = vst [vmem:[#allocation36_spill] sm:$0xff] %v17873_v7  ;;  %v3990_v53 = vld [vmem:[%s16675_s22 + $0x117] sm:$0xff] }
 0x155   : > { %v17870_v51 = vpop.f32.mrf.mxu0  ;;  %5291 = vperm.xlu1 %16524, %v5143_v16   ;;  %5296 = vperm.xlu0 %16523, %v5144_v39   ;;  %v17881_v24 = vpop.f32.mrf.mxu1  ;;  %v3438_v39 = vld [vmem:[%s16675_s22 + $0x5e] sm:$0xff] }
 0x156   : > { %22296 = vst [vmem:[#allocation37_spill] sm:$0xff] %v17881_v24  ;;  %15294 = vmatmul.mubr.msk.f32.gmra.mxu1 %vm442_vm1, %v3990_v53  ;;  %v3992_v24 = vld [vmem:[%s16675_s22 + $0x127] sm:$0xff] }
 0x157   : > { %v17878_v63 = vpop.f32.mrf.mxu0  ;;  %15184 = vmatmul.mubr.msk.f32.gmra.mxu0 %vm442_vm1, %v3435_v3  ;;  %v17895_v3 = vpop.f32.mrf.mxu1  ;;  %15296 = vmatprep.mubr.msk.f32.mxu1 %vm442_vm1, %v3991_v40  ;;  %v5148_v40 = vld [vmem:[%s22183_s7 + $0xf0] sm:$0xff] }
 0x158   : > { %15186 = vmatprep.mubr.msk.f32.mxu0 %vm442_vm1, %v3436_v6  ;;  %22297 = vst [vmem:[#allocation38_spill] sm:$0xff] %v17895_v3  ;;  %v1093_v6 = vadd.f32 %v17742_v28, %v17325_v42  ;;  %v1088_v3 = vadd.f32 %v17757_v18, %v17330_v35  ;;  %v5147_v42 = vld [vmem:[%s22183_s7 + $0xe8] sm:$0xff]  ;;  %v1103_v35 = vadd.f32 %v17765_v34, %v17337_v37 }
 0x159   : > { %v17892_v16 = vpop.f32.mrf.mxu0  ;;  %5301 = vperm.xlu1 %16524, %v5145_v38   ;;  %5306 = vperm.xlu0 %16523, %v5146_v8   ;;  %v17903_v31 = vpop.f32.mrf.mxu1  ;;  %v3439_v38 = vld [vmem:[%s16675_s22 + $0x66] sm:$0xff]  ;;  %v3440_v28 = vld [vmem:[%s16675_s22 + $0x6e] sm:$0xff] }
 0x15a   : > { %15297 = vmatmul.mubr.msk.f32.gmra.mxu1 %vm442_vm1, %v3992_v24  ;;  %v3995_v24 = vld [vmem:[%s16675_s22 + $0x13f] sm:$0xff] }
 0x15b   : > { %v14898_v7 = vpop.f32.mrf.mxu0  ;;  %15187 = vmatmul.mubr.msk.f32.gmra.mxu0 %vm442_vm1, %v3437_v0  ;;  %v17917_v8 = vpop.f32.mrf.mxu1  ;;  %15299 = vmatprep.mubr.msk.f32.mxu1 %vm442_vm1, %v3993_v55  ;;  %v5149_v55 = vld [vmem:[%s22183_s7 + $0xf8] sm:$0xff] }
 0x15c   : > { %v1800_v53 = vadd.f32 %v14898_v7, %v1093_v6  ;;  %15189 = vmatprep.mubr.msk.f32.mxu0 %vm442_vm1, %v3438_v39  ;;  %22298 = vst [vmem:[#allocation39_spill] sm:$0xff] %v17917_v8  ;;  %v3994_v39 = vld [vmem:[%s16675_s22 + $0x137] sm:$0xff] }
 0x15d   : > { %v1570_v0 = vpop.f32.mrf.mxu0  ;;  %5311 = vperm.xlu1 %16524, %v5147_v42   ;;  %5316 = vperm.xlu0 %16523, %v5148_v40   ;;  %v17928_v8 = vpop.f32.mrf.mxu1  ;;  %v1098_v42 = vadd.f32 %v17780_v25, %v17342_v21 }
 0x15e   : > { %v1799_v18 = vadd.f32 %v1570_v0, %v1088_v3  ;;  %v17923_v7 = vadd.f32 %v17613_v47, %v1800_v53  ;;  %v3441_v47 = vld [vmem:[%s16675_s22 + $0x76] sm:$0xff]  ;;  %v5150_v3 = vld [vmem:[%s22183_s7 + $0x100] sm:$0xff]  ;;  %15300 = vmatmul.mubr.msk.f32.gmra.mxu1 %vm442_vm1, %v3994_v39  ;;  %v1108_v39 = vadd.f32 %v17802_v27, %v17354_v58 }
 0x15f   : > { %v14901_v6 = vpop.f32.mrf.mxu0  ;;  %15190 = vmatmul.mubr.msk.f32.gmra.mxu0 %vm442_vm1, %v3439_v38  ;;  %v3442_v38 = vld [vmem:[%s16675_s22 + $0x7e] sm:$0xff]  ;;  %v17945_v21 = vpop.f32.mrf.mxu1  ;;  %15302 = vmatprep.mubr.msk.f32.mxu1 %vm442_vm1, %v3995_v24  ;;  %v3996_v0 = vld [vmem:[%s16675_s22 + $0x147] sm:$0xff]  ;;  %v5152_v24 = vld [vmem:[%s22183_s7 + $0x110] sm:$0xff] }
 0x160   : > { %v1802_v37 = vadd.f32 %v14901_v6, %v1103_v35  ;;  %v17934_v34 = vadd.f32 %v17624_v17, %v1799_v18  ;;  %15192 = vmatprep.mubr.msk.f32.mxu0 %vm442_vm1, %v3440_v28  ;;  %v1113_v17 = vadd.f32 %v17788_v26, %v17349_v41  ;;  %v3997_v18 = vld [vmem:[%s16675_s22 + $0x14f] sm:$0xff] }
 0x161   : > { %v1580_v53 = vpop.f32.mrf.mxu0  ;;  %5321 = vperm.xlu1 %16524, %v5149_v55   ;;  %5326 = vperm.xlu0 %16523, %v5150_v3   ;;  %v17956_v35 = vpop.f32.mrf.mxu1  ;;  %v5151_v6 = vld [vmem:[%s22183_s7 + $0x108] sm:$0xff]  ;;  %v3998_v55 = vld [vmem:[%s16675_s22 + $0x157] sm:$0xff] }
 0x162   : > { %v1801_v25 = vadd.f32 %v1580_v53, %v1098_v42  ;;  %v17951_v40 = vadd.f32 %v17638_v44, %v1802_v37  ;;  %22299 = vst [vmem:[#allocation40_spill] sm:$0xff] %v17956_v35  ;;  %v3443_v44 = vld [vmem:[%s16675_s22 + $0x86] sm:$0xff]  ;;  %v3444_v37 = vld [vmem:[%s16675_s22 + $0x8e] sm:$0xff]  ;;  %15303 = vmatmul.mubr.msk.f32.gmra.mxu1 %vm442_vm1, %v3996_v0 }
 0x163   : > { %v14904_v28 = vpop.f32.mrf.mxu0  ;;  %15193 = vmatmul.mubr.msk.f32.gmra.mxu0 %vm442_vm1, %v3441_v47  ;;  %v17973_v58 = vpop.f32.mrf.mxu1  ;;  %15305 = vmatprep.mubr.msk.f32.mxu1 %vm442_vm1, %v3997_v18  ;;  %v5154_v0 = vld [vmem:[%s22183_s7 + $0x120] sm:$0xff]  ;;  %v3472_v35 = vld [vmem:[%s16675_s22 + $0x16e] sm:$0xff] }
 0x164   : > { %v1804_v41 = vadd.f32 %v14904_v28, %v1113_v17  ;;  %v17962_v26 = vadd.f32 %v17648_v11, %v1801_v25  ;;  %15195 = vmatprep.mubr.msk.f32.mxu0 %vm442_vm1, %v3442_v38  ;;  %v1123_v11 = vadd.f32 %v17810_v61, %v17361_v45  ;;  %v3999_v38 = vld [vmem:[%s16675_s22 + $0x15f] sm:$0xff]  ;;  %v1118_v17 = vadd.f32 %v17824_v50, %v17366_v10 }
 0x165   : > { %v1590_v42 = vpop.f32.mrf.mxu0  ;;  %5331 = vperm.xlu1 %16524, %v5151_v6   ;;  %5336 = vperm.xlu0 %16523, %v5152_v24   ;;  %v17984_v53 = vpop.f32.mrf.mxu1  ;;  %v5153_v25 = vld [vmem:[%s22183_s7 + $0x118] sm:$0xff]  ;;  %v4001_v24 = vld [vmem:[%s16675_s22 + $0x16f] sm:$0xff] }
 0x166   : > { %v1803_v27 = vadd.f32 %v1590_v42, %v1108_v39  ;;  %v17979_v47 = vadd.f32 %v17662_v59, %v1804_v41  ;;  %22300 = vst [vmem:[#allocation41_spill] sm:$0xff] %v17984_v53  ;;  %v3445_v59 = vld [vmem:[%s16675_s22 + $0x96] sm:$0xff]  ;;  %v3446_v18 = vld [vmem:[%s16675_s22 + $0x9e] sm:$0xff]  ;;  %15306 = vmatmul.mubr.msk.f32.gmra.mxu1 %vm442_vm1, %v3998_v55  ;;  %v4000_v41 = vld [vmem:[%s16675_s22 + $0x167] sm:$0xff]  ;;  %v1128_v42 = vadd.f32 %v17846_v60, %v17377_v14 }
 0x167   : > { %v14907_v3 = vpop.f32.mrf.mxu0  ;;  %15196 = vmatmul.mubr.msk.f32.gmra.mxu0 %vm442_vm1, %v3443_v44  ;;  %v18001_v10 = vpop.f32.mrf.mxu1  ;;  %15308 = vmatprep.mubr.msk.f32.mxu1 %vm442_vm1, %v3999_v38  ;;  %v3448_v55 = vld [vmem:[%s16675_s22 + $0xae] sm:$0xff]  ;;  %v4002_v38 = vld [vmem:[%s16675_s22 + $0x177] sm:$0xff] }
 0x168   : > { %v1806_v45 = vadd.f32 %v14907_v3, %v1123_v11  ;;  %v17990_v61 = vadd.f32 %v17672_v20, %v1803_v27  ;;  %15198 = vmatprep.mubr.msk.f32.mxu0 %vm442_vm1, %v3444_v37  ;;  %v1133_v20 = vadd.f32 %v17832_v2, %v17372_v49  ;;  %v5155_v37 = vld [vmem:[%s22183_s7 + $0x128] sm:$0xff]  ;;  %v5156_v11 = vld [vmem:[%s22183_s7 + $0x130] sm:$0xff] }
 0x169   : > { %v1600_v28 = vpop.f32.mrf.mxu0  ;;  %5341 = vperm.xlu1 %16524, %v5153_v25   ;;  %5346 = vperm.xlu0 %16523, %v5154_v0   ;;  %v18012_v6 = vpop.f32.mrf.mxu1  ;;  %v1138_v25 = vadd.f32 %v17870_v51, %v17396_v57  ;;  %v5157_v0 = vld [vmem:[%s22183_s7 + $0x138] sm:$0xff] }
 0x16a   : > { %v1805_v50 = vadd.f32 %v1600_v28, %v1118_v17  ;;  %v18007_v39 = vadd.f32 %v17686_v30, %v1806_v45  ;;  %22301 = vst [vmem:[#allocation42_spill] sm:$0xff] %v18012_v6  ;;  %v3447_v30 = vld [vmem:[%s16675_s22 + $0xa6] sm:$0xff]  ;;  %15309 = vmatmul.mubr.msk.f32.gmra.mxu1 %vm442_vm1, %v4000_v41 }
 0x16b   : > { %v14910_v44 = vpop.f32.mrf.mxu0  ;;  %15199 = vmatmul.mubr.msk.f32.gmra.mxu0 %vm442_vm1, %v3445_v59  ;;  %v18029_v14 = vpop.f32.mrf.mxu1  ;;  %15311 = vmatprep.mubr.msk.f32.mxu1 %vm442_vm1, %v4001_v24  ;;  %v4003_v59 = vld [vmem:[%s16675_s22 + $0x17f] sm:$0xff]  ;;  %v4004_v41 = vld [vmem:[%s16675_s22 + $0x187] sm:$0xff] }
 0x16c   : > { %v1808_v49 = vadd.f32 %v14910_v44, %v1133_v20  ;;  %v18018_v2 = vadd.f32 %v17696_v46, %v1805_v50  ;;  %15201 = vmatprep.mubr.msk.f32.mxu0 %vm442_vm1, %v3446_v18  ;;  %v1143_v46 = vadd.f32 %v17854_v12, %v17388_v56  ;;  %v5158_v28 = vld [vmem:[%s22183_s7 + $0x140] sm:$0xff] }
 0x16d   : > { %v1610_v27 = vpop.f32.mrf.mxu0  ;;  %5351 = vperm.xlu1 %16524, %v5155_v37   ;;  %5356 = vperm.xlu0 %16523, %v5156_v11   ;;  %v18040_v45 = vpop.f32.mrf.mxu1  ;;  %v3450_v20 = vld [vmem:[%s16675_s22 + $0xbe] sm:$0xff]  ;;  %v5160_v37 = vld [vmem:[%s22183_s7 + $0x150] sm:$0xff] }
 0x16e   : > { %v1807_v60 = vadd.f32 %v1610_v27, %v1128_v42  ;;  %v18035_v3 = vadd.f32 %v17710_v13, %v1808_v49  ;;  %22302 = vst [vmem:[#allocation43_spill] sm:$0xff] %v18040_v45  ;;  %v3449_v13 = vld [vmem:[%s16675_s22 + $0xb6] sm:$0xff]  ;;  %15312 = vmatmul.mubr.msk.f32.gmra.mxu1 %vm442_vm1, %v4002_v38  ;;  %v1148_v49 = vadd.f32 %v17892_v16, %v17410_v43  ;;  %v3452_v27 = vld [vmem:[%s16675_s22 + $0xce] sm:$0xff]  ;;  %v3470_v45 = vld [vmem:[%s16675_s22 + $0x15e] sm:$0xff] }
 0x16f   : > { %v14913_v17 = vpop.f32.mrf.mxu0  ;;  %15202 = vmatmul.mubr.msk.f32.gmra.mxu0 %vm442_vm1, %v3447_v30  ;;  %v18057_v57 = vpop.f32.mrf.mxu1  ;;  %15314 = vmatprep.mubr.msk.f32.mxu1 %vm442_vm1, %v4003_v59  ;;  %v4005_v42 = vld [vmem:[%s16675_s22 + $0x18f] sm:$0xff]  ;;  %v4006_v16 = vld [vmem:[%s16675_s22 + $0x197] sm:$0xff] }
 0x170   : > { %v1810_v56 = vadd.f32 %v14913_v17, %v1143_v46  ;;  %v18046_v12 = vadd.f32 %v17720_v5, %v1807_v60  ;;  %15204 = vmatprep.mubr.msk.f32.mxu0 %vm442_vm1, %v3448_v55  ;;  %v1153_v5 = vadd.f32 %v17878_v63, %v17404_v33  ;;  %v5159_v30 = vld [vmem:[%s22183_s7 + $0x148] sm:$0xff]  ;;  %v3453_v59 = vld [vmem:[%s16675_s22 + $0xd6] sm:$0xff] }
 0x171   : > { %v1620_v18 = vpop.f32.mrf.mxu0  ;;  %5361 = vperm.xlu1 %16524, %v5157_v0   ;;  %5366 = vperm.xlu0 %16523, %v5158_v28   ;;  %v18068_v24 = vpop.f32.mrf.mxu1 }
 0x172   : > { %v1809_v51 = vadd.f32 %v1620_v18, %v1138_v25  ;;  %v18063_v50 = vadd.f32 %v17734_v48, %v1810_v56  ;;  %22303 = vst [vmem:[#allocation44_spill] sm:$0xff] %v18068_v24  ;;  %v3451_v48 = vld [vmem:[%s16675_s22 + $0xc6] sm:$0xff]  ;;  %15315 = vmatmul.mubr.msk.f32.gmra.mxu1 %vm442_vm1, %v4004_v41  ;;  %v3456_v41 = vld [vmem:[%s16675_s22 + $0xee] sm:$0xff] }
 0x173   : > { %v14916_v44 = vpop.f32.mrf.mxu0  ;;  %15205 = vmatmul.mubr.msk.f32.gmra.mxu0 %vm442_vm1, %v3449_v13  ;;  %v18085_v55 = vpop.f32.mrf.mxu1  ;;  %15317 = vmatprep.mubr.msk.f32.mxu1 %vm442_vm1, %v4005_v42  ;;  %v5162_v25 = vld [vmem:[%s22183_s7 + $0x160] sm:$0xff] }
 0x174   : > { %v1812_v33 = vadd.f32 %v14916_v44, %v1153_v5  ;;  %v18074_v63 = vadd.f32 %v17746_v32, %v1809_v51  ;;  %15207 = vmatprep.mubr.msk.f32.mxu0 %vm442_vm1, %v3450_v20  ;;  %v3454_v13 = vld [vmem:[%s16675_s22 + $0xde] sm:$0xff]  ;;  %v3455_v51 = vld [vmem:[%s16675_s22 + $0xe6] sm:$0xff] }
 0x175   : > { %v1630_v11 = vpop.f32.mrf.mxu0  ;;  %5371 = vperm.xlu1 %16524, %v5159_v30   ;;  %5376 = vperm.xlu0 %16523, %v5160_v37   ;;  %v18094_v60 = vpop.f32.mrf.mxu1  ;;  %v3457_v30 = vld [vmem:[%s16675_s22 + $0xf6] sm:$0xff] }
 0x176   : > { %v1811_v43 = vadd.f32 %v1630_v11, %v1148_v49  ;;  %v18089_v32 = vadd.f32 %v17760_v36, %v1812_v33  ;;  %22304 = vst [vmem:[#allocation45_spill] sm:$0xff] %v18094_v60  ;;  %v5161_v36 = vld [vmem:[%s22183_s7 + $0x158] sm:$0xff]  ;;  %15318 = vmatmul.mubr.msk.f32.gmra.mxu1 %vm442_vm1, %v4006_v16 }
 0x177   : > { %v14919_v46 = vpop.f32.mrf.mxu0  ;;  %15208 = vmatmul.mubr.msk.f32.gmra.mxu0 %vm442_vm1, %v3451_v48  ;;  %v18109_v0 = vpop.f32.mrf.mxu1 }
 0x178   : > { %v1814_v38 = vadd.f32 %v14919_v46, %v17422_v62  ;;  %v18098_v17 = vadd.f32 %v17769_v9, %v1811_v43  ;;  %15210 = vmatprep.mubr.msk.f32.mxu0 %vm442_vm1, %v3452_v27  ;;  %v22307_v27 = vld [vmem:[#allocation32_spill] sm:$0xff] }
 0x179   : > { %v1640_v56 = vpop.f32.mrf.mxu0  ;;  %5381 = vperm.xlu1 %16524, %v5161_v36   ;;  %5386 = vperm.xlu0 %16523, %v5162_v25   ;;  %v18117_v18 = vpop.f32.mrf.mxu1  ;;  %v3459_v36 = vld [vmem:[%s16675_s22 + $0x106] sm:$0xff] }
 0x17a   : > { %v1813_v62 = vadd.f32 %v1640_v56, %v17430_v1  ;;  %v18114_v9 = vadd.f32 %v17783_v29, %v1814_v38  ;;  %22305 = vst [vmem:[#allocation46_spill] sm:$0xff] %v18117_v18  ;;  %v5163_v1 = vld [vmem:[%s22183_s7 + $0x168] sm:$0xff]  ;;  %v22310_v38 = vld [vmem:[#allocation33_spill] sm:$0xff] }
 0x17b   : > { %v14922_v28 = vpop.f32.mrf.mxu0  ;;  %15211 = vmatmul.mubr.msk.f32.gmra.mxu0 %vm442_vm1, %v3453_v59  ;;  %v18129_v44 = vpop.f32.mrf.mxu1  ;;  %v3468_v18 = vld [vmem:[%s16675_s22 + $0x14e] sm:$0xff] }
 0x17c   : > { %v1816_v20 = vadd.f32 %v14922_v28, %v17438_v19  ;;  %v18121_v5 = vadd.f32 %v17791_v4, %v1813_v62  ;;  %15213 = vmatprep.mubr.msk.f32.mxu0 %vm442_vm1, %v3454_v13  ;;  %v22311_v13 = vld [vmem:[#allocation23_spill] sm:$0xff]  ;;  %v22312_v28 = vld [vmem:[#allocation34_spill] sm:$0xff] }
 0x17d   : > { %v1650_v29 = vpop.f32.mrf.mxu0  ;;  %5391 = vperm.xlu1 %16524, %v5163_v1   ;;  %v18136_v49 = vpop.f32.mrf.mxu1 }
 0x17e   : > { %v1815_v42 = vadd.f32 %v1650_v29, %v17446_v22  ;;  %v18133_v19 = vadd.f32 %v17805_v15, %v1816_v20  ;;  %22306 = vst [vmem:[#allocation47_spill] sm:$0xff] %v18136_v49  ;;  %v3458_v22 = vld [vmem:[%s16675_s22 + $0xfe] sm:$0xff]  ;;  %v22314_v29 = vld [vmem:[#allocation24_spill] sm:$0xff] }
 0x17f   : > { %v14925_v4 = vpop.f32.mrf.mxu0  ;;  %15214 = vmatmul.mubr.msk.f32.gmra.mxu0 %vm442_vm1, %v3455_v51  ;;  %v18145_v11 = vpop.f32.mrf.mxu1 }
 0x180   : > { %v1818_v33 = vadd.f32 %v14925_v4, %v17455_v23  ;;  %v18140_v48 = vadd.f32 %v17813_v52, %v1815_v42  ;;  %15216 = vmatprep.mubr.msk.f32.mxu0 %vm442_vm1, %v3456_v41  ;;  %v22309_v52 = vld [vmem:[#allocation22_spill] sm:$0xff]  ;;  %v22315_v42 = vld [vmem:[#allocation35_spill] sm:$0xff] }
 0x181   : > { %v1660_v37 = vpop.f32.mrf.mxu0  ;;  %v18152_v23 = vpop.f32.mrf.mxu1 }
 0x182   : > { %v1817_v15 = vadd.f32 %v1660_v37, %v17463_v54  ;;  %v18149_v43 = vadd.f32 %v22307_v27, %v1818_v33  ;;  %22308 = vst [vmem:[#allocation32_spill] sm:$0xff] %v18152_v23  ;;  %v3460_v54 = vld [vmem:[%s16675_s22 + $0x10e] sm:$0xff]  ;;  %v3461_v33 = vld [vmem:[%s16675_s22 + $0x116] sm:$0xff]  ;;  %v3462_v37 = vld [vmem:[%s16675_s22 + $0x11e] sm:$0xff] }
 0x183   : > { %v14928_v16 = vpop.f32.mrf.mxu0  ;;  %15217 = vmatmul.mubr.msk.f32.gmra.mxu0 %vm442_vm1, %v3457_v30  ;;  %v18161_v56 = vpop.f32.mrf.mxu1 }
 0x184   : > { %v1820_v46 = vadd.f32 %v14928_v16, %v22309_v52  ;;  %v18156_v59 = vadd.f32 %v22310_v38, %v1817_v15  ;;  %15219 = vmatprep.mubr.msk.f32.mxu0 %vm442_vm1, %v3458_v22  ;;  %v22316_v15 = vld [vmem:[#allocation25_spill] sm:$0xff]  ;;  %v22317_v16 = vld [vmem:[#allocation36_spill] sm:$0xff] }
 0x185   : > { %v1670_v25 = vpop.f32.mrf.mxu0  ;;  %v18168_v1 = vpop.f32.mrf.mxu1 }
 0x186   : > { %v1819_v62 = vadd.f32 %v1670_v25, %v22311_v13  ;;  %v18165_v20 = vadd.f32 %v22312_v28, %v1820_v46  ;;  %22313 = vst [vmem:[#allocation22_spill] sm:$0xff] %v18168_v1  ;;  %v22320_v13 = vld [vmem:[#allocation37_spill] sm:$0xff] }
 0x187   : > { %v14931_v51 = vpop.f32.mrf.mxu0  ;;  %15220 = vmatmul.mubr.msk.f32.gmra.mxu0 %vm442_vm1, %v3459_v36  ;;  %v18177_v22 = vpop.f32.mrf.mxu1  ;;  %v22319_v36 = vld [vmem:[#allocation26_spill] sm:$0xff] }
 0x188   : > { %v1822_v41 = vadd.f32 %v14931_v51, %v22314_v29  ;;  %v18172_v4 = vadd.f32 %v22315_v42, %v1819_v62  ;;  %15222 = vmatprep.mubr.msk.f32.mxu0 %vm442_vm1, %v3460_v54  ;;  %v3463_v62 = vld [vmem:[%s16675_s22 + $0x126] sm:$0xff]  ;;  %v3464_v51 = vld [vmem:[%s16675_s22 + $0x12e] sm:$0xff] }
 0x189   : > { %v1680_v30 = vpop.f32.mrf.mxu0  ;;  %v18184_v38 = vpop.f32.mrf.mxu1 }
 0x18a   : > { %v1821_v27 = vadd.f32 %v1680_v30, %v22316_v15  ;;  %v18181_v52 = vadd.f32 %v22317_v16, %v1822_v41  ;;  %22318 = vst [vmem:[#allocation33_spill] sm:$0xff] %v18184_v38  ;;  %v22321_v41 = vld [vmem:[#allocation27_spill] sm:$0xff]  ;;  %v22322_v30 = vld [vmem:[#allocation38_spill] sm:$0xff] }
 0x18b   : > { %v14934_v46 = vpop.f32.mrf.mxu0  ;;  %15223 = vmatmul.mubr.msk.f32.gmra.mxu0 %vm442_vm1, %v3461_v33  ;;  %v18193_v29 = vpop.f32.mrf.mxu1 }
 0x18c   : > { %v1824_v25 = vadd.f32 %v14934_v46, %v22319_v36  ;;  %v18188_v54 = vadd.f32 %v22320_v13, %v1821_v27  ;;  %15225 = vmatprep.mubr.msk.f32.mxu0 %vm442_vm1, %v3462_v37  ;;  %v22324_v27 = vld [vmem:[#allocation28_spill] sm:$0xff] }
 0x18d   : > { %v1690_v28 = vpop.f32.mrf.mxu0  ;;  %v18200_v16 = vpop.f32.mrf.mxu1  ;;  %v3465_v36 = vld [vmem:[%s16675_s22 + $0x136] sm:$0xff] }
 0x18e   : > { %v1823_v42 = vadd.f32 %v1690_v28, %v22321_v41  ;;  %v18197_v33 = vadd.f32 %v22322_v30, %v1824_v25  ;;  %22323 = vst [vmem:[#allocation23_spill] sm:$0xff] %v18200_v16  ;;  %v3466_v28 = vld [vmem:[%s16675_s22 + $0x13e] sm:$0xff] }
 0x18f   : > { %v14937_v15 = vpop.f32.mrf.mxu0  ;;  %15226 = vmatmul.mubr.msk.f32.gmra.mxu0 %vm442_vm1, %v3463_v62  ;;  %v18209_v41 = vpop.f32.mrf.mxu1  ;;  %v22325_v25 = vld [vmem:[#allocation6_spill] sm:$0xff]  ;;  %v22326_v62 = vld [vmem:[#allocation39_spill] sm:$0xff] }
 0x190   : > { %v1826_v46 = vadd.f32 %v14937_v15, %v22324_v27  ;;  %v18204_v37 = vadd.f32 %v17903_v31, %v1823_v42  ;;  %15228 = vmatprep.mubr.msk.f32.mxu0 %vm442_vm1, %v3464_v51  ;;  %v22328_v31 = vld [vmem:[#allocation7_spill] sm:$0xff] }
 0x191   : > { %v1700_v13 = vpop.f32.mrf.mxu0  ;;  %v18218_v15 = vpop.f32.mrf.mxu1  ;;  %v3467_v42 = vld [vmem:[%s16675_s22 + $0x146] sm:$0xff] }
 0x192   : > { %v18212_v30 = vadd.f32 %v1700_v13, %v22325_v25  ;;  %v18215_v23 = vadd.f32 %v22326_v62, %v1826_v46  ;;  %22327 = vst [vmem:[#allocation34_spill] sm:$0xff] %v18218_v15  ;;  %v22329_v13 = vld [vmem:[#allocation8_spill] sm:$0xff] }
 0x193   : > { %v14940_v49 = vpop.f32.mrf.mxu0  ;;  %15229 = vmatmul.mubr.msk.f32.gmra.mxu0 %vm442_vm1, %v3465_v36  ;;  %v18224_v60 = vpop.f32.mrf.mxu1 }
 0x194   : > { %v1828_v51 = vadd.f32 %v14940_v49, %v22328_v31  ;;  %15231 = vmatprep.mubr.msk.f32.mxu0 %vm442_vm1, %v3466_v28  ;;  %v22332_v49 = vld [vmem:[#allocation16_spill] sm:$0xff] }
 0x195   : > { %v1710_v27 = vpop.f32.mrf.mxu0  ;;  %v18233_v36 = vpop.f32.mrf.mxu1  ;;  %v3469_v31 = vld [vmem:[%s16675_s22 + $0x156] sm:$0xff] }
 0x196   : > { %v18227_v25 = vadd.f32 %v1710_v27, %v22329_v13  ;;  %v18230_v46 = vadd.f32 %v17945_v21, %v1828_v51  ;;  %22331 = vst [vmem:[#allocation35_spill] sm:$0xff] %v18233_v36  ;;  %v22333_v27 = vld [vmem:[#allocation9_spill] sm:$0xff] }
 0x197   : > { %v14943_v62 = vpop.f32.mrf.mxu0  ;;  %15232 = vmatmul.mubr.msk.f32.gmra.mxu0 %vm442_vm1, %v3467_v42  ;;  %v18239_v6 = vpop.f32.mrf.mxu1 }
 0x198   : > { %22330 = vst [vmem:[#allocation24_spill] sm:$0xff] %v18227_v25  ;;  %v1830_v28 = vadd.f32 %v14943_v62, %v22332_v49  ;;  %15234 = vmatprep.mubr.msk.f32.mxu0 %vm442_vm1, %v3468_v18  ;;  %v22336_v62 = vld [vmem:[#allocation10_spill] sm:$0xff] }
 0x199   : > { %v1720_v24 = vpop.f32.mrf.mxu0  ;;  %v18248_v42 = vpop.f32.mrf.mxu1  ;;  %v3471_v49 = vld [vmem:[%s16675_s22 + $0x166] sm:$0xff] }
 0x19a   : > { %v18242_v13 = vadd.f32 %v1720_v24, %v22333_v27  ;;  %v18245_v21 = vadd.f32 %v17973_v58, %v1830_v28  ;;  %22335 = vst [vmem:[#allocation36_spill] sm:$0xff] %v18248_v42  ;;  %v22337_v24 = vld [vmem:[#allocation17_spill] sm:$0xff] }
 0x19b   : > { %v14946_v51 = vpop.f32.mrf.mxu0  ;;  %15235 = vmatmul.mubr.msk.f32.gmra.mxu0 %vm442_vm1, %v3469_v31  ;;  %v18254_v25 = vpop.f32.mrf.mxu1  ;;  %v3474_v42 = vld [vmem:[%s16675_s22 + $0x17e] sm:$0xff] }
 0x19c   : > { %22334 = vst [vmem:[#allocation25_spill] sm:$0xff] %v18242_v13  ;;  %v1832_v18 = vadd.f32 %v14946_v51, %v22336_v62  ;;  %15237 = vmatprep.mubr.msk.f32.mxu0 %vm442_vm1, %v3470_v45  ;;  %v22340_v51 = vld [vmem:[#allocation18_spill] sm:$0xff]  ;;  %v3473_v62 = vld [vmem:[%s16675_s22 + $0x176] sm:$0xff] }
 0x19d   : > { %v1730_v53 = vpop.f32.mrf.mxu0  ;;  %v18263_v31 = vpop.f32.mrf.mxu1 }
 0x19e   : > { %v18257_v27 = vadd.f32 %v1730_v53, %v22337_v24  ;;  %v18260_v58 = vadd.f32 %v18001_v10, %v1832_v18  ;;  %22339 = vst [vmem:[#allocation37_spill] sm:$0xff] %v18263_v31  ;;  %v22341_v53 = vld [vmem:[#allocation11_spill] sm:$0xff] }
 0x19f   : > { %v14949_v28 = vpop.f32.mrf.mxu0  ;;  %15238 = vmatmul.mubr.msk.f32.gmra.mxu0 %vm442_vm1, %v3471_v49  ;;  %v18269_v36 = vpop.f32.mrf.mxu1  ;;  %v3476_v31 = vld [vmem:[%s16675_s22 + $0x18e] sm:$0xff] }
 0x1a0   : > { %22338 = vst [vmem:[#allocation26_spill] sm:$0xff] %v18257_v27  ;;  %v1834_v45 = vadd.f32 %v14949_v28, %v22340_v51  ;;  %15240 = vmatprep.mubr.msk.f32.mxu0 %vm442_vm1, %v3472_v35  ;;  %v22344_v28 = vld [vmem:[#allocation12_spill] sm:$0xff]  ;;  %v3475_v51 = vld [vmem:[%s16675_s22 + $0x186] sm:$0xff] }
 0x1a1   : > { %v1740_v13 = vpop.f32.mrf.mxu0  ;;  %v18278_v49 = vpop.f32.mrf.mxu1 }
 0x1a2   : > { %v18272_v24 = vadd.f32 %v1740_v13, %v22341_v53  ;;  %v18275_v10 = vadd.f32 %v18029_v14, %v1834_v45  ;;  %22343 = vst [vmem:[#allocation38_spill] sm:$0xff] %v18278_v49  ;;  %v22345_v13 = vld [vmem:[#allocation19_spill] sm:$0xff]  ;;  %v4490_v49 = vld [vmem:[%s16675_s22 + $0x30] sm:$0xff] }
 0x1a3   : > { %v14952_v18 = vpop.f32.mrf.mxu0  ;;  %15241 = vmatmul.mubr.msk.f32.gmra.mxu0 %vm442_vm1, %v3473_v62  ;;  %v18284_v15 = vpop.f32.mrf.mxu1 }
 0x1a4   : > { %22342 = vst [vmem:[#allocation27_spill] sm:$0xff] %v18272_v24  ;;  %v1836_v35 = vadd.f32 %v14952_v18, %v22344_v28  ;;  %15243 = vmatprep.mubr.msk.f32.mxu0 %vm442_vm1, %v3474_v42  ;;  %v22348_v18 = vld [vmem:[#allocation20_spill] sm:$0xff] }
 0x1a5   : > { %v1750_v27 = vpop.f32.mrf.mxu0  ;;  %v18293_v62 = vpop.f32.mrf.mxu1  ;;  %v3477_v28 = vld [vmem:[%s16675_s22 + $0x196] sm:$0xff] }
 0x1a6   : > { %v18287_v53 = vadd.f32 %v1750_v27, %v22345_v13  ;;  %v18290_v14 = vadd.f32 %v18057_v57, %v1836_v35  ;;  %22347 = vst [vmem:[#allocation6_spill] sm:$0xff] %v18293_v62  ;;  %v22349_v27 = vld [vmem:[#allocation13_spill] sm:$0xff]  ;;  %v4492_v62 = vld [vmem:[%s16675_s22 + $0x40] sm:$0xff] }
 0x1a7   : > { %v14955_v45 = vpop.f32.mrf.mxu0  ;;  %15244 = vmatmul.mubr.msk.f32.gmra.mxu0 %vm442_vm1, %v3475_v51  ;;  %v18299_v16 = vpop.f32.mrf.mxu1 }
 0x1a8   : > { %22346 = vst [vmem:[#allocation28_spill] sm:$0xff] %v18287_v53  ;;  %v1838_v42 = vadd.f32 %v14955_v45, %v22348_v18  ;;  %15246 = vmatprep.mubr.msk.f32.mxu0 %vm442_vm1, %v3476_v31  ;;  %v22352_v45 = vld [vmem:[#allocation14_spill] sm:$0xff]  ;;  %v4491_v18 = vld [vmem:[%s16675_s22 + $0x38] sm:$0xff] }
 0x1a9   : > { %v1760_v24 = vpop.f32.mrf.mxu0  ;;  %v18308_v51 = vpop.f32.mrf.mxu1 }
 0x1aa   : > { %v18302_v13 = vadd.f32 %v1760_v24, %v22349_v27  ;;  %v18305_v57 = vadd.f32 %v18085_v55, %v1838_v42  ;;  %22351 = vst [vmem:[#allocation7_spill] sm:$0xff] %v18308_v51  ;;  %v22353_v24 = vld [vmem:[#allocation21_spill] sm:$0xff]  ;;  %v4494_v51 = vld [vmem:[%s16675_s22 + $0x50] sm:$0xff] }
 0x1ab   : > { %v14958_v35 = vpop.f32.mrf.mxu0  ;;  %15247 = vmatmul.mubr.msk.f32.gmra.mxu0 %vm442_vm1, %v3477_v28  ;;  %v18314_v38 = vpop.f32.mrf.mxu1 }
 0x1ac   : > { %22350 = vst [vmem:[#allocation39_spill] sm:$0xff] %v18302_v13  ;;  %v1840_v31 = vadd.f32 %v14958_v35, %v22352_v45  ;;  %15322 = vmatprep.mubr.msk.f32.mxu0 %vm442_vm1, %v4490_v49  ;;  %v22357_v35 = vld [vmem:[#allocation15_spill] sm:$0xff] }
 0x1ad   : > { %v1770_v53 = vpop.f32.mrf.mxu0  ;;  %v18323_v28 = vpop.f32.mrf.mxu1  ;;  %v4493_v45 = vld [vmem:[%s16675_s22 + $0x48] sm:$0xff] }
 0x1ae   : > { %v18317_v27 = vadd.f32 %v1770_v53, %v22353_v24  ;;  %v18320_v55 = vadd.f32 %v18109_v0, %v1840_v31  ;;  %22356 = vst [vmem:[#allocation9_spill] sm:$0xff] %v18323_v28  ;;  %v22358_v53 = vld [vmem:[#allocation29_spill] sm:$0xff]  ;;  %v4496_v28 = vld [vmem:[%s16675_s22 + $0x60] sm:$0xff] }
 0x1af   : > { %v14961_v42 = vpop.f32.mrf.mxu0  ;;  %15323 = vmatmul.mubr.msk.f32.vlgmr.msra.gmra.mxu0 %vm442_vm1, %v4491_v18  ;;  %v18329_v1 = vpop.f32.mrf.mxu1  ;;  %v22360_v18 = vld [vmem:[#allocation30_spill] sm:$0xff] }
 0x1b0   : > { %22354 = vst [vmem:[#allocation8_spill] sm:$0xff] %v18317_v27  ;;  %22355 = vst [vmem:[#allocation16_spill] sm:$0xff] %v18320_v55  ;;  %v1842_v49 = vadd.f32 %v14961_v42, %v22357_v35  ;;  %15325 = vmatprep.mubr.msk.f32.mxu0 %vm442_vm1, %v4492_v62  ;;  %v4495_v62 = vld [vmem:[%s16675_s22 + $0x58] sm:$0xff]  ;;  %v22362_v55 = vld [vmem:[#allocation31_spill] sm:$0xff] }
 0x1b1   : > { %v1780_v13 = vpop.f32.mrf.mxu0  ;;  %v18341_v35 = vpop.f32.mrf.mxu1 }
 0x1b2   : > { %v18332_v24 = vadd.f32 %v1780_v13, %v22358_v53  ;;  %v18335_v0 = vadd.f32 %v18129_v44, %v1842_v49  ;;  %22361 = vst [vmem:[#allocation17_spill] sm:$0xff] %v18341_v35 }
 0x1b3   : > { %v14964_v31 = vpop.f32.mrf.mxu0  ;;  %15326 = vmatmul.mubr.msk.f32.gmra.mxu0 %vm442_vm1, %v4493_v45  ;;  %v18354_v53 = vpop.f32.mrf.mxu1 }
 0x1b4   : > { %22359 = vst [vmem:[#allocation10_spill] sm:$0xff] %v18332_v24  ;;  %v1844_v42 = vadd.f32 %v14964_v31, %v22360_v18  ;;  %15328 = vmatprep.mubr.msk.f32.mxu0 %vm442_vm1, %v4494_v51  ;;  %v4497_v51 = vld [vmem:[%s16675_s22 + $0x68] sm:$0xff]  ;;  %v4498_v18 = vld [vmem:[%s16675_s22 + $0x70] sm:$0xff]  ;;  %v4532_v24 = vld [vmem:[%s16675_s22 + $0x180] sm:$0xff] }
 0x1b5   : > { %v1790_v27 = vpop.f32.mrf.mxu0 }
 0x1b6   : > { %v18345_v13 = vadd.f32 %v1790_v27, %v22362_v55  ;;  %v18348_v44 = vadd.f32 %v18145_v11, %v1844_v42 }
 0x1b7   : > { %v15040_v49 = vpop.f32.mrf.mxu0  ;;  %15329 = vmatmul.mubr.msk.f32.gmra.mxu0 %vm442_vm1, %v4495_v62 }
 0x1b8   : > { %22363 = vst [vmem:[#allocation18_spill] sm:$0xff] %v18345_v13  ;;  %v2858_v45 = vadd.f32 %v15040_v49, %v17923_v7  ;;  %15331 = vmatprep.mubr.msk.f32.mxu0 %vm442_vm1, %v4496_v28  ;;  %v4499_v7 = vld [vmem:[%s16675_s22 + $0x78] sm:$0xff]  ;;  %v18367_v28 = vpop.f32.mrf.mxu1  ;;  %v4500_v49 = vld [vmem:[%s16675_s22 + $0x80] sm:$0xff] }
 0x1b9   : > { %v2628_v31 = vpop.f32.mrf.mxu0  ;;  %22364 = vst [vmem:[#allocation11_spill] sm:$0xff] %v18367_v28  ;;  %v4516_v13 = vld [vmem:[%s16675_s22 + $0x100] sm:$0xff] }
 0x1ba   : > { %v18358_v27 = vadd.f32 %v2628_v31, %v17934_v34  ;;  %v18361_v11 = vadd.f32 %v18161_v56, %v2858_v45 }
 0x1bb   : > { %v15043_v55 = vpop.f32.mrf.mxu0  ;;  %15332 = vmatmul.mubr.msk.f32.gmra.mxu0 %vm442_vm1, %v4497_v51  ;;  %v18380_v51 = vpop.f32.mrf.mxu1 }
 0x1bc   : > { %v2860_v42 = vadd.f32 %v15043_v55, %v17951_v40  ;;  %15334 = vmatprep.mubr.msk.f32.mxu0 %vm442_vm1, %v4498_v18  ;;  %v4501_v40 = vld [vmem:[%s16675_s22 + $0x88] sm:$0xff]  ;;  %v5638_v18 = vld [vmem:[%s22179_s3 + $0x38] sm:$0xff]  ;;  %v4502_v55 = vld [vmem:[%s16675_s22 + $0x90] sm:$0xff] }
 0x1bd   : > { %v2638_v62 = vpop.f32.mrf.mxu0  ;;  %15391 = vmatprep.subr.mxu1 %v5638_v18 }
 0x1be   : > { %v18371_v34 = vadd.f32 %v2638_v62, %v17962_v26  ;;  %v18374_v31 = vadd.f32 %v18177_v22, %v2860_v42  ;;  %15392 = vmatpush3.msra.mxu1 %v5638_v18 }
 0x1bf   : > { %v15046_v56 = vpop.f32.mrf.mxu0  ;;  %15335 = vmatmul.mubr.msk.f32.gmra.mxu0 %vm442_vm1, %v4499_v7 }
 0x1c0   : > { %v2862_v45 = vadd.f32 %v15046_v56, %v17979_v47  ;;  %15337 = vmatprep.mubr.msk.f32.mxu0 %vm442_vm1, %v4500_v49  ;;  %v5588_v47 = vld [vmem:[%s22179_s3 + $0x18] sm:$0xff]  ;;  %v18399_v49 = vpop.f32.mrf.mxu1  ;;  %v4504_v56 = vld [vmem:[%s16675_s22 + $0xa0] sm:$0xff] }
 0x1c1   : > { %v2648_v26 = vpop.f32.mrf.mxu0  ;;  %15468 = vmatprep.subr.mxu0 %v5588_v47  ;;  %22365 = vst [vmem:[#allocation12_spill] sm:$0xff] %v18399_v49 }
 0x1c2   : > { %v18387_v22 = vadd.f32 %v2648_v26, %v17990_v61  ;;  %v18390_v42 = vadd.f32 %v18193_v29, %v2862_v45  ;;  %v4503_v61 = vld [vmem:[%s16675_s22 + $0x98] sm:$0xff]  ;;  %15469 = vmatpush3.msra.mxu0 %v5588_v47  ;;  %v4505_v26 = vld [vmem:[%s16675_s22 + $0xa8] sm:$0xff] }
 0x1c3   : > { %v15049_v7 = vpop.f32.mrf.mxu0  ;;  %15338 = vmatmul.mubr.msk.f32.gmra.mxu0 %vm442_vm1, %v4501_v40 }
 0x1c4   : > { %v2864_v62 = vadd.f32 %v15049_v7, %v18007_v39  ;;  %15340 = vmatprep.mubr.msk.f32.mxu0 %vm442_vm1, %v4502_v55  ;;  %v18412_v55 = vpop.f32.mrf.mxu1  ;;  %v4506_v7 = vld [vmem:[%s16675_s22 + $0xb0] sm:$0xff] }
 0x1c5   : > { %v2658_v29 = vpop.f32.mrf.mxu0 }
 0x1c6   : > { %v18403_v45 = vadd.f32 %v2658_v29, %v18018_v2  ;;  %v18406_v18 = vadd.f32 %v18209_v41, %v2864_v62  ;;  %v18425_v29 = vpop.f32.mrf.mxu1 }
 0x1c7   : > { %v15052_v40 = vpop.f32.mrf.mxu0  ;;  %15341 = vmatmul.mubr.msk.f32.gmra.mxu0 %vm442_vm1, %v4503_v61  ;;  %v4507_v61 = vld [vmem:[%s16675_s22 + $0xb8] sm:$0xff]  ;;  %22366 = vst [vmem:[#allocation19_spill] sm:$0xff] %v18425_v29 }
 0x1c8   : > { %v2866_v39 = vadd.f32 %v15052_v40, %v18035_v3  ;;  %15343 = vmatprep.mubr.msk.f32.mxu0 %vm442_vm1, %v4504_v56  ;;  %v4508_v40 = vld [vmem:[%s16675_s22 + $0xc0] sm:$0xff] }
 0x1c9   : > { %v2668_v47 = vpop.f32.mrf.mxu0 }
 0x1ca   : > { %v18416_v2 = vadd.f32 %v2668_v47, %v18046_v12  ;;  %v18419_v41 = vadd.f32 %v18224_v60, %v2866_v39  ;;  %v18438_v47 = vpop.f32.mrf.mxu1 }
 0x1cb   : > { %v15055_v62 = vpop.f32.mrf.mxu0  ;;  %15344 = vmatmul.mubr.msk.f32.gmra.mxu0 %vm442_vm1, %v4505_v26  ;;  %v4509_v26 = vld [vmem:[%s16675_s22 + $0xc8] sm:$0xff] }
 0x1cc   : > { %v2868_v3 = vadd.f32 %v15055_v62, %v18063_v50  ;;  %15346 = vmatprep.mubr.msk.f32.mxu0 %vm442_vm1, %v4506_v7  ;;  %v4510_v62 = vld [vmem:[%s16675_s22 + $0xd0] sm:$0xff] }
 0x1cd   : > { %v2678_v56 = vpop.f32.mrf.mxu0 }
 0x1ce   : > { %v18429_v12 = vadd.f32 %v2678_v56, %v18074_v63  ;;  %v18432_v60 = vadd.f32 %v18239_v6, %v2868_v3 }
 0x1cf   : > { %v15058_v39 = vpop.f32.mrf.mxu0  ;;  %15347 = vmatmul.mubr.msk.f32.gmra.mxu0 %vm442_vm1, %v4507_v61  ;;  %v18451_v61 = vpop.f32.mrf.mxu1 }
 0x1d0   : > { %v2870_v50 = vadd.f32 %v15058_v39, %v18089_v32  ;;  %15349 = vmatprep.mubr.msk.f32.mxu0 %vm442_vm1, %v4508_v40  ;;  %v4511_v32 = vld [vmem:[%s16675_s22 + $0xd8] sm:$0xff]  ;;  %22367 = vst [vmem:[#allocation20_spill] sm:$0xff] %v18451_v61  ;;  %v4512_v39 = vld [vmem:[%s16675_s22 + $0xe0] sm:$0xff] }
 0x1d1   : > { %v2688_v7 = vpop.f32.mrf.mxu0 }
 0x1d2   : > { %v18442_v63 = vadd.f32 %v2688_v7, %v18098_v17  ;;  %v18445_v56 = vadd.f32 %v18254_v25, %v2870_v50  ;;  %v5637_v50 = vld [vmem:[%s22179_s3 + $0x30] sm:$0xff]  ;;  %v4513_v7 = vld [vmem:[%s16675_s22 + $0xe8] sm:$0xff] }
 0x1d3   : > { %v15061_v6 = vpop.f32.mrf.mxu0  ;;  %15350 = vmatmul.mubr.msk.f32.gmra.mxu0 %vm442_vm1, %v4509_v26  ;;  %15393 = vmatprep.subr.mxu1 %v5637_v50 }
 0x1d4   : > { %v2872_v3 = vadd.f32 %v15061_v6, %v18114_v9  ;;  %15352 = vmatprep.mubr.msk.f32.mxu0 %vm442_vm1, %v4510_v62  ;;  %v18467_v62 = vpop.f32.mrf.mxu1  ;;  %15394 = vmatpush3.msra.mxu1 %v5637_v50  ;;  %v4514_v6 = vld [vmem:[%s16675_s22 + $0xf0] sm:$0xff] }
 0x1d5   : > { %v2698_v40 = vpop.f32.mrf.mxu0 }
 0x1d6   : > { %v18455_v17 = vadd.f32 %v2698_v40, %v18121_v5  ;;  %v18458_v25 = vadd.f32 %v18269_v36, %v2872_v3  ;;  %v5587_v5 = vld [vmem:[%s22179_s3 + $0x10] sm:$0xff]  ;;  %v18483_v50 = vpop.f32.mrf.mxu1 }
 0x1d7   : > { %v15064_v26 = vpop.f32.mrf.mxu0  ;;  %15353 = vmatmul.mubr.msk.f32.gmra.mxu0 %vm442_vm1, %v4511_v32  ;;  %15470 = vmatprep.subr.mxu0 %v5587_v5  ;;  %22368 = vst [vmem:[#allocation13_spill] sm:$0xff] %v18483_v50 }
 0x1d8   : > { %v2874_v9 = vadd.f32 %v15064_v26, %v18133_v19  ;;  %15355 = vmatprep.mubr.msk.f32.mxu0 %vm442_vm1, %v4512_v39  ;;  %15471 = vmatpush3.msra.mxu0 %v5587_v5  ;;  %v4515_v39 = vld [vmem:[%s16675_s22 + $0xf8] sm:$0xff]  ;;  %v18496_v5 = vpop.f32.mrf.mxu1 }
 0x1d9   : > { %v2708_v36 = vpop.f32.mrf.mxu0 }
 0x1da   : > { %v18474_v3 = vadd.f32 %v2708_v36, %v18140_v48  ;;  %v18477_v19 = vadd.f32 %v18284_v15, %v2874_v9 }
 0x1db   : > { %v15067_v32 = vpop.f32.mrf.mxu0  ;;  %15356 = vmatmul.mubr.msk.f32.gmra.mxu0 %vm442_vm1, %v4513_v7  ;;  %v4517_v7 = vld [vmem:[%s16675_s22 + $0x108] sm:$0xff] }
 0x1dc   : > { %v2876_v40 = vadd.f32 %v15067_v32, %v18149_v43  ;;  %15358 = vmatprep.mubr.msk.f32.mxu0 %vm442_vm1, %v4514_v6  ;;  %v4518_v6 = vld [vmem:[%s16675_s22 + $0x110] sm:$0xff] }
 0x1dd   : > { %v2718_v26 = vpop.f32.mrf.mxu0 }
 0x1de   : > { %v18487_v48 = vadd.f32 %v2718_v26, %v18156_v59  ;;  %v18490_v15 = vadd.f32 %v18299_v16, %v2876_v40  ;;  %v18509_v40 = vpop.f32.mrf.mxu1  ;;  %v4520_v26 = vld [vmem:[%s16675_s22 + $0x120] sm:$0xff] }
 0x1df   : > { %v15070_v9 = vpop.f32.mrf.mxu0  ;;  %15359 = vmatmul.mubr.msk.f32.gmra.mxu0 %vm442_vm1, %v4515_v39  ;;  %22371 = vst [vmem:[#allocation15_spill] sm:$0xff] %v18509_v40 }
 0x1e0   : > { %22369 = vst [vmem:[#allocation14_spill] sm:$0xff] %v18487_v48  ;;  %v2878_v43 = vadd.f32 %v15070_v9, %v18165_v20  ;;  %15361 = vmatprep.mubr.msk.f32.mxu0 %vm442_vm1, %v4516_v13  ;;  %v4519_v13 = vld [vmem:[%s16675_s22 + $0x118] sm:$0xff] }
 0x1e1   : > { %v2728_v36 = vpop.f32.mrf.mxu0 }
 0x1e2   : > { %v18500_v59 = vadd.f32 %v2728_v36, %v18172_v4  ;;  %v18503_v16 = vadd.f32 %v18314_v38, %v2878_v43 }
 0x1e3   : > { %v15073_v32 = vpop.f32.mrf.mxu0  ;;  %15362 = vmatmul.mubr.msk.f32.gmra.mxu0 %vm442_vm1, %v4517_v7  ;;  %v18522_v7 = vpop.f32.mrf.mxu1 }
 0x1e4   : > { %22370 = vst [vmem:[#allocation21_spill] sm:$0xff] %v18500_v59  ;;  %v2880_v20 = vadd.f32 %v15073_v32, %v18181_v52  ;;  %15364 = vmatprep.mubr.msk.f32.mxu0 %vm442_vm1, %v4518_v6  ;;  %v4521_v52 = vld [vmem:[%s16675_s22 + $0x128] sm:$0xff]  ;;  %v4522_v6 = vld [vmem:[%s16675_s22 + $0x130] sm:$0xff] }
 0x1e5   : > { %v2738_v39 = vpop.f32.mrf.mxu0 }
 0x1e6   : > { %v18513_v4 = vadd.f32 %v2738_v39, %v18188_v54  ;;  %v18516_v9 = vadd.f32 %v18329_v1, %v2880_v20  ;;  %v18537_v39 = vpop.f32.mrf.mxu1 }
 0x1e7   : > { %v15076_v38 = vpop.f32.mrf.mxu0  ;;  %15365 = vmatmul.mubr.msk.f32.gmra.mxu0 %vm442_vm1, %v4519_v13  ;;  %v4523_v13 = vld [vmem:[%s16675_s22 + $0x138] sm:$0xff]  ;;  %22374 = vst [vmem:[#allocation31_spill] sm:$0xff] %v18537_v39 }
 0x1e8   : > { %22372 = vst [vmem:[#allocation29_spill] sm:$0xff] %v18513_v4  ;;  %v2882_v43 = vadd.f32 %v15076_v38, %v18197_v33  ;;  %15367 = vmatprep.mubr.msk.f32.mxu0 %vm442_vm1, %v4520_v26  ;;  %v2354_v33 = vadd.f32 %v17928_v8, %v18212_v30  ;;  %v4524_v26 = vld [vmem:[%s16675_s22 + $0x140] sm:$0xff]  ;;  %v4525_v30 = vld [vmem:[%s16675_s22 + $0x148] sm:$0xff] }
 0x1e9   : > { %v2748_v36 = vpop.f32.mrf.mxu0 }
 0x1ea   : > { %v18526_v54 = vadd.f32 %v2748_v36, %v18204_v37  ;;  %v18529_v1 = vadd.f32 %v18354_v53, %v2882_v43  ;;  %v5636_v43 = vld [vmem:[%s22179_s3 + $0x28] sm:$0xff] }
 0x1eb   : > { %v15079_v32 = vpop.f32.mrf.mxu0  ;;  %15368 = vmatmul.mubr.msk.f32.gmra.mxu0 %vm442_vm1, %v4521_v52  ;;  %15395 = vmatprep.subr.mxu1 %v5636_v43  ;;  %v18552_v52 = vpop.f32.mrf.mxu1 }
 0x1ec   : > { %22373 = vst [vmem:[#allocation30_spill] sm:$0xff] %v18526_v54  ;;  %v2884_v20 = vadd.f32 %v15079_v32, %v18215_v23  ;;  %15370 = vmatprep.mubr.msk.f32.mxu0 %vm442_vm1, %v4522_v6  ;;  %15396 = vmatpush3.msra.mxu1 %v5636_v43 }
 0x1ed   : > { %v2758_v37 = vpop.f32.mrf.mxu0 }
 0x1ee   : > { %v18540_v38 = vadd.f32 %v2758_v37, %v2354_v33  ;;  %v18543_v53 = vadd.f32 %v18380_v51, %v2884_v20  ;;  %v4526_v51 = vld [vmem:[%s16675_s22 + $0x150] sm:$0xff]  ;;  %v18564_v20 = vpop.f32.mrf.mxu1 }
 0x1ef   : > { %v15082_v8 = vpop.f32.mrf.mxu0  ;;  %15371 = vmatmul.mubr.msk.f32.gmra.mxu0 %vm442_vm1, %v4523_v13  ;;  %22377 = vst [vmem:[#allocation50_spill] sm:$0xff] %v18564_v20  ;;  %v22202_v13 = vmov 0.0  }
 0x1f0   : > { %22375 = vst [vmem:[#allocation48_spill] sm:$0xff] %v18540_v38  ;;  %v2886_v23 = vadd.f32 %v15082_v8, %v18230_v46  ;;  %15373 = vmatprep.mubr.msk.f32.mxu0 %vm442_vm1, %v4524_v26  ;;  %v4527_v46 = vld [vmem:[%s16675_s22 + $0x158] sm:$0xff]  ;;  %5445 = vst.msk [vmem:[#allocation2 + $0x20] sm:$0xff] %vm5440_vm2, %v22202_v13  ;;  %v4529_v8 = vld [vmem:[%s16675_s22 + $0x168] sm:$0xff] }
 0x1f1   : > { %v18554_v36 = vpop.f32.mrf.mxu0  ;;  %5441 = vst.msk [vmem:[#allocation2] sm:$0xff] %vm5440_vm2, %v22202_v13  ;;  %5442 = vst.msk [vmem:[#allocation2 + $0x8] sm:$0xff] %vm5440_vm2, %v22202_v13 }
 0x1f2   : > { %22376 = vst [vmem:[#allocation49_spill] sm:$0xff] %v18554_v36  ;;  %v18558_v6 = vadd.f32 %v18412_v55, %v2886_v23  ;;  %5443 = vst.msk [vmem:[#allocation2 + $0x10] sm:$0xff] %vm5440_vm2, %v22202_v13  ;;  %v4528_v55 = vld [vmem:[%s16675_s22 + $0x160] sm:$0xff]  ;;  %v15171_v23 = vpop.f32.mrf.mxu1 }
 0x1f3   : > { %v15085_v32 = vpop.f32.mrf.mxu0  ;;  %15374 = vmatmul.mubr.msk.f32.gmra.mxu0 %vm442_vm1, %v4525_v30  ;;  %5444 = vst.msk [vmem:[#allocation2 + $0x18] sm:$0xff] %vm5440_vm2, %v22202_v13  ;;  %5446 = vst.msk [vmem:[#allocation2 + $0x28] sm:$0xff] %vm5440_vm2, %v22202_v13  ;;  %v5586_v30 = vld [vmem:[%s22179_s3 + $0x8] sm:$0xff] }
 0x1f4   : > { %v2888_v33 = vadd.f32 %v15085_v32, %v18245_v21  ;;  %15376 = vmatprep.mubr.msk.f32.mxu0 %vm442_vm1, %v4526_v51  ;;  %5447 = vst.msk [vmem:[#allocation2 + $0x30] sm:$0xff] %vm5440_vm2, %v22202_v13  ;;  %5448 = vst.msk [vmem:[#allocation2 + $0x38] sm:$0xff] %vm5440_vm2, %v22202_v13  ;;  %v4530_v32 = vld [vmem:[%s16675_s22 + $0x170] sm:$0xff]  ;;  %15472 = vmatprep.subr.mxu0 %v5586_v30 }
 0x1f5   : > { %5449 = vst.msk [vmem:[#allocation2 + $0x40] sm:$0xff] %vm5440_vm2, %v22202_v13  ;;  %5450 = vst.msk [vmem:[#allocation2 + $0x48] sm:$0xff] %vm5440_vm2, %v22202_v13  ;;  %v18670_v21 = vpop.f32.mrf.mxu0  ;;  %15473 = vmatpush3.msra.mxu0 %v5586_v30 }
 0x1f6   : > { %5451 = vst.msk [vmem:[#allocation2 + $0x50] sm:$0xff] %vm5440_vm2, %v22202_v13  ;;  %5452 = vst.msk [vmem:[#allocation2 + $0x58] sm:$0xff] %vm5440_vm2, %v22202_v13  ;;  %v18674_v37 = vadd.f32 %v18438_v47, %v2888_v33  ;;  %v5585_v33 = vld [vmem:[%s22179_s3] sm:$0xff] }
 0x1f7   : > { %5453 = vst.msk [vmem:[#allocation2 + $0x60] sm:$0xff] %vm5440_vm2, %v22202_v13  ;;  %5454 = vst.msk [vmem:[#allocation2 + $0x68] sm:$0xff] %vm5440_vm2, %v22202_v13  ;;  %v15088_v26 = vpop.f32.mrf.mxu0  ;;  %15377 = vmatmul.mubr.msk.f32.gmra.mxu0 %vm442_vm1, %v4527_v46  ;;  %15474 = vmatprep.subr.mxu0 %v5585_v33 }
 0x1f8   : > { %5455 = vst.msk [vmem:[#allocation2 + $0x70] sm:$0xff] %vm5440_vm2, %v22202_v13  ;;  %5456 = vst.msk [vmem:[#allocation2 + $0x78] sm:$0xff] %vm5440_vm2, %v22202_v13  ;;  %v2890_v43 = vadd.f32 %v15088_v26, %v18260_v58  ;;  %15379 = vmatprep.mubr.msk.f32.mxu0 %vm442_vm1, %v4528_v55  ;;  %v5635_v58 = vld [vmem:[%s22179_s3 + $0x20] sm:$0xff]  ;;  %15475 = vmatpush3.msra.mxu0 %v5585_v33 }
 0x1f9   : > { %5457 = vst.msk [vmem:[#allocation2 + $0x80] sm:$0xff] %vm5440_vm2, %v22202_v13  ;;  %5458 = vst.msk [vmem:[#allocation2 + $0x88] sm:$0xff] %vm5440_vm2, %v22202_v13  ;;  %v18683_v51 = vpop.f32.mrf.mxu0  ;;  %15397 = vmatprep.subr.mxu1 %v5635_v58  ;;  %v5589_v55 = vld [vmem:[#allocation2 + $0x1] sm:$0xff]  ;;  %v5590_v30 = vld [vmem:[#allocation2 + $0x9] sm:$0xff] }
 0x1fa   : > { %5459 = vst.msk [vmem:[#allocation2 + $0x90] sm:$0xff] %vm5440_vm2, %v22202_v13  ;;  %5460 = vst.msk [vmem:[#allocation2 + $0x98] sm:$0xff] %vm5440_vm2, %v22202_v13  ;;  %v18687_v47 = vadd.f32 %v18467_v62, %v2890_v43  ;;  %v4531_v62 = vld [vmem:[%s16675_s22 + $0x178] sm:$0xff]  ;;  %v18699_v43 = vpop.f32.mrf.mxu1  ;;  %15398 = vmatpush3.msra.mxu1 %v5635_v58  ;;  %15399 = vmatprep.mubr.msk.f32.mxu1 %vm5440_vm2, %v5589_v55  ;;  %v4534_v58 = vld [vmem:[%s16675_s22 + $0x190] sm:$0xff] }
 0x1fb   : > { %5461 = vst.msk [vmem:[#allocation2 + $0xa0] sm:$0xff] %vm5440_vm2, %v22202_v13  ;;  %5462 = vst.msk [vmem:[#allocation2 + $0xa8] sm:$0xff] %vm5440_vm2, %v22202_v13  ;;  %v15091_v46 = vpop.f32.mrf.mxu0  ;;  %15380 = vmatmul.mubr.msk.f32.gmra.mxu0 %vm442_vm1, %v4529_v8  ;;  %15400 = vmatmul.mubr.msk.f32.vlgmr.msra.gmra.mxu1 %vm5440_vm2, %v5590_v30 }
 0x1fc   : > { %5463 = vst.msk [vmem:[#allocation2 + $0xb0] sm:$0xff] %vm5440_vm2, %v22202_v13  ;;  %5464 = vst.msk [vmem:[#allocation2 + $0xb8] sm:$0xff] %vm5440_vm2, %v22202_v13  ;;  %v2892_v26 = vadd.f32 %v15091_v46, %v18275_v10  ;;  %15382 = vmatprep.mubr.msk.f32.mxu0 %vm442_vm1, %v4530_v32  ;;  %v4533_v46 = vld [vmem:[%s16675_s22 + $0x188] sm:$0xff] }
 0x1fd   : > { %5465 = vst.msk [vmem:[#allocation2 + $0xc0] sm:$0xff] %vm5440_vm2, %v22202_v13  ;;  %5466 = vst.msk [vmem:[#allocation2 + $0xc8] sm:$0xff] %vm5440_vm2, %v22202_v13 }
 0x1fe   : > { %5467 = vst.msk [vmem:[#allocation2 + $0xd0] sm:$0xff] %vm5440_vm2, %v22202_v13  ;;  %5468 = vst.msk [vmem:[#allocation2 + $0xd8] sm:$0xff] %vm5440_vm2, %v22202_v13  ;;  %v18706_v8 = vadd.f32 %v18496_v5, %v2892_v26  ;;  %v4535_v26 = vld [vmem:[%s16675_s22 + $0x198] sm:$0xff] }
 0x1ff   : > { %5469 = vst.msk [vmem:[#allocation2 + $0xe0] sm:$0xff] %vm5440_vm2, %v22202_v13  ;;  %5470 = vst.msk [vmem:[#allocation2 + $0xe8] sm:$0xff] %vm5440_vm2, %v22202_v13  ;;  %15383 = vmatmul.mubr.msk.f32.gmra.mxu0 %vm442_vm1, %v4531_v62 }
 0x200   : > { %5471 = vst.msk [vmem:[#allocation2 + $0xf0] sm:$0xff] %vm5440_vm2, %v22202_v13  ;;  %5472 = vst.msk [vmem:[#allocation2 + $0xf8] sm:$0xff] %vm5440_vm2, %v22202_v13  ;;  %15385 = vmatprep.mubr.msk.f32.mxu0 %vm442_vm1, %v4532_v24  ;;  %v5539_v24 = vld [vmem:[#allocation2] sm:$0xff] }
 0x201   : > { %5473 = vst.msk [vmem:[#allocation2 + $0x100] sm:$0xff] %vm5440_vm2, %v22202_v13  ;;  %5474 = vst.msk [vmem:[#allocation2 + $0x108] sm:$0xff] %vm5440_vm2, %v22202_v13 }
 0x202   : > { %5475 = vst.msk [vmem:[#allocation2 + $0x110] sm:$0xff] %vm5440_vm2, %v22202_v13  ;;  %5476 = vst.msk [vmem:[#allocation2 + $0x118] sm:$0xff] %vm5440_vm2, %v22202_v13 }
 0x203   : > { %5477 = vst.msk [vmem:[#allocation2 + $0x120] sm:$0xff] %vm5440_vm2, %v22202_v13  ;;  %5478 = vst.msk [vmem:[#allocation2 + $0x128] sm:$0xff] %vm5440_vm2, %v22202_v13  ;;  %15386 = vmatmul.mubr.msk.f32.gmra.mxu0 %vm442_vm1, %v4533_v46 }
 0x204   : > { %5479 = vst.msk [vmem:[#allocation2 + $0x130] sm:$0xff] %vm5440_vm2, %v22202_v13  ;;  %5480 = vst.msk [vmem:[#allocation2 + $0x138] sm:$0xff] %vm5440_vm2, %v22202_v13  ;;  %15388 = vmatprep.mubr.msk.f32.mxu0 %vm442_vm1, %v4534_v58  ;;  %v5541_v58 = vld [vmem:[#allocation2 + $0x10] sm:$0xff] }
 0x205   : > { %5481 = vst.msk [vmem:[#allocation2 + $0x140] sm:$0xff] %vm5440_vm2, %v22202_v13  ;;  %5482 = vst.msk [vmem:[#allocation2 + $0x148] sm:$0xff] %vm5440_vm2, %v22202_v13 }
 0x206   : > { %5483 = vst.msk [vmem:[#allocation2 + $0x150] sm:$0xff] %vm5440_vm2, %v22202_v13  ;;  %5484 = vst.msk [vmem:[#allocation2 + $0x158] sm:$0xff] %vm5440_vm2, %v22202_v13 }
 0x207   : > { %5485 = vst.msk [vmem:[#allocation2 + $0x160] sm:$0xff] %vm5440_vm2, %v22202_v13  ;;  %5486 = vst.msk [vmem:[#allocation2 + $0x168] sm:$0xff] %vm5440_vm2, %v22202_v13  ;;  %15389 = vmatmul.mubr.msk.f32.gmra.mxu0 %vm442_vm1, %v4535_v26 }
 0x208   : > { %5487 = vst.msk [vmem:[#allocation2 + $0x170] sm:$0xff] %vm5440_vm2, %v22202_v13  ;;  %5488 = vst.msk [vmem:[#allocation2 + $0x178] sm:$0xff] %vm5440_vm2, %v22202_v13  ;;  %15476 = vmatprep.mubr.msk.f32.mxu0 %vm5440_vm2, %v5539_v24 }
 0x209   : > { %5489 = vst.msk [vmem:[#allocation2 + $0x180] sm:$0xff] %vm5440_vm2, %v22202_v13  ;;  %5490 = vst.msk [vmem:[#allocation2 + $0x188] sm:$0xff] %vm5440_vm2, %v22202_v13 }
 0x20a   : > { %5491 = vst.msk [vmem:[#allocation2 + $0x190] sm:$0xff] %vm5440_vm2, %v22202_v13  ;;  %5492 = vst.msk [vmem:[#allocation2 + $0x198] sm:$0xff] %vm5440_vm2, %v22202_v13  ;;  %v18701_v13 = vpop.f32.mrf.mxu0 }
 0x20b   : > { %22378 = vst [vmem:[#allocation51_spill] sm:$0xff] %v18670_v21  ;;  %22379 = vst [vmem:[#allocation52_spill] sm:$0xff] %v18683_v51 }
 0x20c   : > { %22380 = vst [vmem:[#allocation53_spill] sm:$0xff] %v18699_v43  ;;  %22381 = vst [vmem:[#allocation54_spill] sm:$0xff] %v18701_v13  ;;  %v15094_v10 = vpop.f32.mrf.mxu0  ;;  %v15174_v43 = vpop.f32.mrf.mxu1 }
 0x20d   : > { %v2894_v32 = vadd.f32 %v15094_v10, %v18290_v14 }
 0x20e   : > { %v18713_v20 = vpop.f32.mrf.mxu0  ;;  %v18723_v62 = vpop.f32.mrf.mxu1 }
 0x20f   : > { %22382 = vst [vmem:[#allocation55_spill] sm:$0xff] %v18713_v20  ;;  %v18717_v55 = vadd.f32 %v18522_v7, %v2894_v32  ;;  %22383 = vst [vmem:[#allocation56_spill] sm:$0xff] %v18723_v62  ;;  %v22385_v7 = vld [vmem:[#allocation16_spill] sm:$0xff] }
 0x210   : > { %v15097_v5 = vpop.f32.mrf.mxu0  ;;  %v15177_v39 = vpop.f32.mrf.mxu1 }
 0x211   : > { %v2896_v33 = vadd.f32 %v15097_v5, %v18305_v57  ;;  %v5540_v57 = vld [vmem:[#allocation2 + $0x8] sm:$0xff] }
 0x212   : > { %v18725_v14 = vpop.f32.mrf.mxu0  ;;  %15477 = vmatmul.mubr.msk.f32.vlgmr.msra.gmra.mxu0 %vm5440_vm2, %v5540_v57 }
 0x213   : > { %22384 = vst [vmem:[#allocation57_spill] sm:$0xff] %v18725_v14  ;;  %v18728_v30 = vadd.f32 %v18552_v52, %v2896_v33  ;;  %v18739_v33 = vpop.f32.mrf.mxu1  ;;  %15479 = vmatprep.mubr.msk.f32.mxu0 %vm5440_vm2, %v5541_v58 }
 0x214   : > { %v15100_v10 = vpop.f32.mrf.mxu0  ;;  %22387 = vst [vmem:[#allocation58_spill] sm:$0xff] %v18739_v33 }
 0x215   : > { %v2898_v32 = vadd.f32 %v15100_v10, %v22385_v7 }
 0x216   : > { %v18733_v46 = vpop.f32.mrf.mxu0 }
 0x217   : > { %22386 = vst [vmem:[#allocation16_spill] sm:$0xff] %v18733_v46  ;;  %v18735_v5 = vadd.f32 %v15171_v23, %v2898_v32  ;;  %v18747_v46 = vpop.f32.mrf.mxu1 }
 0x218   : > { %v15103_v62 = vpop.f32.mrf.mxu0 }
 0x219   : > { %v2900_v52 = vadd.f32 %v15103_v62, %v18335_v0  ;;  %v18756_v62 = vpop.f32.mrf.mxu1 }
 0x21a   : > { %v18742_v26 = vpop.f32.mrf.mxu0 }
 0x21b   : > { %22388 = vst [vmem:[#allocation59_spill] sm:$0xff] %v18742_v26  ;;  %v18744_v10 = vadd.f32 %v15174_v43, %v2900_v52  ;;  %v18763_v52 = vpop.f32.mrf.mxu1 }
 0x21c   : > { %v15106_v24 = vpop.f32.mrf.mxu0 }
 0x21d   : > { %v2902_v7 = vadd.f32 %v15106_v24, %v18348_v44 }
 0x21e   : > { %v18749_v23 = vpop.f32.mrf.mxu0 }
 0x21f   : > { %22389 = vst [vmem:[#allocation60_spill] sm:$0xff] %v18749_v23  ;;  %v18751_v32 = vadd.f32 %v15177_v39, %v2902_v7  ;;  %v18770_v7 = vpop.f32.mrf.mxu1 }
 0x220   : > { %v15182_v57 = vpop.f32.mrf.mxu0 }
 0x221   : > { %v18754_v0 = vadd.f32 %v15182_v57, %v18361_v11  ;;  %v18774_v23 = vpop.f32.mrf.mxu1 }
 0x222   : > { %v18758_v58 = vpop.f32.mrf.mxu0 }
 0x223   : > { %v18781_v14 = vpop.f32.mrf.mxu1 }
 0x224   : > { %v15185_v33 = vpop.f32.mrf.mxu0 }
 0x225   : > { %v18761_v43 = vadd.f32 %v15185_v33, %v18374_v31  ;;  %v18794_v40 = vpop.f32.mrf.mxu1 }
 0x226   : > { %v18765_v44 = vpop.f32.mrf.mxu0 }
 0x227   : > { %v18801_v50 = vpop.f32.mrf.mxu1 }
 0x228   : > { %v15188_v24 = vpop.f32.mrf.mxu0 }
 0x229   : > { %v18768_v39 = vadd.f32 %v15188_v24, %v18390_v42  ;;  %v6554_v42 = vld [vmem:[%s22179_s3 + $0x58] sm:$0xff]  ;;  %v18808_v21 = vpop.f32.mrf.mxu1 }
 0x22a   : > { %v18772_v11 = vpop.f32.mrf.mxu0  ;;  %15545 = vmatprep.subr.mxu1 %v6554_v42 }
 0x22b   : > { %15546 = vmatpush3.msra.mxu1 %v6554_v42 }
 0x22c   : > { %v15191_v57 = vpop.f32.mrf.mxu0 }
 0x22d   : > { %v18777_v26 = vadd.f32 %v15191_v57, %v18406_v18  ;;  %v7083_v18 = vld [vmem:[%s22179_s3 + $0x78] sm:$0xff] }
 0x22e   : > { %v18779_v31 = vpop.f32.mrf.mxu0  ;;  %15622 = vmatprep.subr.mxu0 %v7083_v18 }
 0x22f   : > { %15623 = vmatpush3.msra.mxu0 %v7083_v18  ;;  %v18815_v18 = vpop.f32.mrf.mxu1 }
 0x230   : > { %v15194_v33 = vpop.f32.mrf.mxu0 }
 0x231   : > { %v18784_v20 = vadd.f32 %v15194_v33, %v18419_v41 }
 0x232   : > { %v18789_v24 = vpop.f32.mrf.mxu0 }
 0x234   : > { %v15197_v57 = vpop.f32.mrf.mxu0 }
 0x235   : > { %v18797_v13 = vadd.f32 %v15197_v57, %v18432_v60 }
 0x236   : > { %v18799_v41 = vpop.f32.mrf.mxu0 }
 0x238   : > { %v15200_v33 = vpop.f32.mrf.mxu0 }
 0x239   : > { %v18804_v51 = vadd.f32 %v15200_v33, %v18445_v56  ;;  %v18822_v33 = vpop.f32.mrf.mxu1 }
 0x23a   : > { %v18806_v42 = vpop.f32.mrf.mxu0 }
 0x23b   : > { %v18832_v54 = vpop.f32.mrf.mxu1 }
 0x23c   : > { %v15203_v61 = vpop.f32.mrf.mxu0 }
 0x23d   : > { %v18811_v29 = vadd.f32 %v15203_v61, %v18458_v25  ;;  %v6553_v61 = vld [vmem:[%s22179_s3 + $0x50] sm:$0xff]  ;;  %v18842_v35 = vpop.f32.mrf.mxu1 }
 0x23e   : > { %v18813_v36 = vpop.f32.mrf.mxu0  ;;  %15547 = vmatprep.subr.mxu1 %v6553_v61 }
 0x23f   : > { %15548 = vmatpush3.msra.mxu1 %v6553_v61 }
 0x240   : > { %v15206_v60 = vpop.f32.mrf.mxu0 }
 0x241   : > { %v18818_v57 = vadd.f32 %v15206_v60, %v18477_v19  ;;  %v7082_v60 = vld [vmem:[%s22179_s3 + $0x70] sm:$0xff] }
 0x242   : > { %v18820_v49 = vpop.f32.mrf.mxu0  ;;  %15624 = vmatprep.subr.mxu0 %v7082_v60 }
 0x243   : > { %22390 = vst [vmem:[#allocation61_spill] sm:$0xff] %v18818_v57  ;;  %22391 = vst [vmem:[#allocation62_spill] sm:$0xff] %v18820_v49  ;;  %15625 = vmatpush3.msra.mxu0 %v7082_v60 }
 0x244   : > { %v15209_v56 = vpop.f32.mrf.mxu0 }
 0x245   : > { %v18825_v38 = vadd.f32 %v15209_v56, %v18490_v15 }
 0x246   : > { %v18827_v28 = vpop.f32.mrf.mxu0 }
 0x247   : > { %22392 = vst [vmem:[#allocation63_spill] sm:$0xff] %v18825_v38  ;;  %22393 = vst [vmem:[#allocation64_spill] sm:$0xff] %v18827_v28  ;;  %v18861_v28 = vpop.permute.xlu1 %5176 }
 0x248   : > { %v15212_v25 = vpop.f32.mrf.mxu0 }
 0x249   : > { %v18835_v19 = vadd.f32 %v15212_v25, %v18503_v16  ;;  %v18849_v16 = vpop.f32.mrf.mxu1 }
 0x24a   : > { %v18840_v15 = vpop.f32.mrf.mxu0 }
 0x24b   : > { %22394 = vst [vmem:[#allocation65_spill] sm:$0xff] %v18835_v19  ;;  %22395 = vst [vmem:[#allocation66_spill] sm:$0xff] %v18840_v15  ;;  %v18856_v15 = vpop.f32.mrf.mxu1 }
 0x24c   : > { %v15215_v56 = vpop.f32.mrf.mxu0  ;;  %22400 = vst [vmem:[#allocation71_spill] sm:$0xff] %v18856_v15 }
 0x24d   : > { %v18845_v4 = vadd.f32 %v15215_v56, %v18516_v9  ;;  %v18865_v56 = vpop.permute.xlu0 %5166 }
 0x24e   : > { %v18847_v38 = vpop.f32.mrf.mxu0 }
 0x24f   : > { %22396 = vst [vmem:[#allocation67_spill] sm:$0xff] %v18845_v4  ;;  %22397 = vst [vmem:[#allocation68_spill] sm:$0xff] %v18847_v38  ;;  %v18867_v38 = vpop.f32.mrf.mxu1 }
 0x250   : > { %v15218_v59 = vpop.f32.mrf.mxu0  ;;  %22403 = vst [vmem:[#allocation74_spill] sm:$0xff] %v18867_v38 }
 0x251   : > { %v18852_v61 = vadd.f32 %v15218_v59, %v18529_v1  ;;  %v18876_v57 = vpop.f32.mrf.mxu1 }
 0x252   : > { %v18854_v25 = vpop.f32.mrf.mxu0  ;;  %22406 = vst [vmem:[#allocation77_spill] sm:$0xff] %v18876_v57  ;;  %v7080_v57 = vld [vmem:[%s22179_s3 + $0x60] sm:$0xff] }
 0x253   : > { %22398 = vst [vmem:[#allocation69_spill] sm:$0xff] %v18852_v61  ;;  %22399 = vst [vmem:[#allocation70_spill] sm:$0xff] %v18854_v25  ;;  %v18874_v61 = vpop.permute.xlu1 %5181 }
 0x254   : > { %v15221_v19 = vpop.f32.mrf.mxu0 }
 0x255   : > { %v18859_v60 = vadd.f32 %v15221_v19, %v18543_v53  ;;  %v18881_v19 = vpop.permute.xlu0 %5171 }
 0x256   : > { %v18863_v9 = vpop.f32.mrf.mxu0 }
 0x257   : > { %22401 = vst [vmem:[#allocation72_spill] sm:$0xff] %v18859_v60  ;;  %22402 = vst [vmem:[#allocation73_spill] sm:$0xff] %v18863_v9  ;;  %v6552_v9 = vld [vmem:[%s22179_s3 + $0x48] sm:$0xff] }
 0x258   : > { %v15224_v4 = vpop.f32.mrf.mxu0  ;;  %15549 = vmatprep.subr.mxu1 %v6552_v9 }
 0x259   : > { %v18870_v59 = vadd.f32 %v15224_v4, %v18558_v6  ;;  %v7081_v4 = vld [vmem:[%s22179_s3 + $0x68] sm:$0xff]  ;;  %15550 = vmatpush3.msra.mxu1 %v6552_v9 }
 0x25a   : > { %v18872_v1 = vpop.f32.mrf.mxu0  ;;  %15626 = vmatprep.subr.mxu0 %v7081_v4 }
 0x25b   : > { %22404 = vst [vmem:[#allocation75_spill] sm:$0xff] %v18870_v59  ;;  %22405 = vst [vmem:[#allocation76_spill] sm:$0xff] %v18872_v1  ;;  %v18891_v59 = vpop.f32.mrf.mxu1  ;;  %15627 = vmatpush3.msra.mxu0 %v7081_v4 }
 0x25c   : > { %v15227_v25 = vpop.f32.mrf.mxu0  ;;  %22409 = vst [vmem:[#allocation80_spill] sm:$0xff] %v18891_v59  ;;  %v6551_v59 = vld [vmem:[%s22179_s3 + $0x40] sm:$0xff]  ;;  %15628 = vmatprep.subr.mxu0 %v7080_v57 }
 0x25d   : > { %v18879_v53 = vadd.f32 %v15227_v25, %v18674_v37  ;;  %v18896_v25 = vpop.permute.xlu1 %5191  ;;  %v18908_v48 = vpop.f32.mrf.mxu1  ;;  %15551 = vmatprep.subr.mxu1 %v6551_v59  ;;  %15629 = vmatpush3.msra.mxu0 %v7080_v57 }
 0x25e   : > { %v18883_v60 = vpop.f32.mrf.mxu0  ;;  %22412 = vst [vmem:[#allocation83_spill] sm:$0xff] %v18908_v48  ;;  %15552 = vmatpush3.msra.mxu1 %v6551_v59 }
 0x25f   : > { %22407 = vst [vmem:[#allocation78_spill] sm:$0xff] %v18879_v53  ;;  %22408 = vst [vmem:[#allocation79_spill] sm:$0xff] %v18883_v60  ;;  %v18900_v60 = vpop.permute.xlu0 %5186 }
 0x260   : > { %v15230_v6 = vpop.f32.mrf.mxu0 }
 0x261   : > { %v18894_v37 = vadd.f32 %v15230_v6, %v18687_v47  ;;  %v18915_v4 = vpop.permute.xlu1 %5201 }
 0x262   : > { %v18898_v53 = vpop.f32.mrf.mxu0 }
 0x263   : > { %22410 = vst [vmem:[#allocation81_spill] sm:$0xff] %v18894_v37  ;;  %22411 = vst [vmem:[#allocation82_spill] sm:$0xff] %v18898_v53  ;;  %v18917_v37 = vpop.f32.mrf.mxu1  ;;  %v18922_v49 = vpop.permute.xlu0 %5196 }
 0x264   : > { %v15233_v1 = vpop.f32.mrf.mxu0  ;;  %22415 = vst [vmem:[#allocation86_spill] sm:$0xff] %v18917_v37 }
 0x265   : > { %v18911_v47 = vadd.f32 %v15233_v1, %v18706_v8  ;;  %v18926_v1 = vpop.f32.mrf.mxu1  ;;  %v18931_v57 = vpop.permute.xlu1 %5211 }
 0x266   : > { %v18913_v9 = vpop.f32.mrf.mxu0  ;;  %22418 = vst [vmem:[#allocation89_spill] sm:$0xff] %v18926_v1 }
 0x267   : > { %22413 = vst [vmem:[#allocation84_spill] sm:$0xff] %v18911_v47  ;;  %22414 = vst [vmem:[#allocation85_spill] sm:$0xff] %v18913_v9  ;;  %v18935_v9 = vpop.permute.xlu0 %5206  ;;  %v18937_v38 = vpop.f32.mrf.mxu1 }
 0x268   : > { %v15236_v6 = vpop.f32.mrf.mxu0  ;;  %22421 = vst [vmem:[#allocation92_spill] sm:$0xff] %v18937_v38 }
 0x269   : > { %v18920_v53 = vadd.f32 %v15236_v6, %v18717_v55  ;;  %v18946_v1 = vpop.f32.mrf.mxu1 }
 0x26a   : > { %v18924_v48 = vpop.f32.mrf.mxu0  ;;  %22424 = vst [vmem:[#allocation95_spill] sm:$0xff] %v18946_v1 }
 0x26b   : > { %22416 = vst [vmem:[#allocation87_spill] sm:$0xff] %v18920_v53  ;;  %22417 = vst [vmem:[#allocation88_spill] sm:$0xff] %v18924_v48  ;;  %v18944_v53 = vpop.permute.xlu1 %5221 }
 0x26c   : > { %v15239_v8 = vpop.f32.mrf.mxu0 }
 0x26d   : > { %v18929_v47 = vadd.f32 %v15239_v8, %v18728_v30  ;;  %v18951_v8 = vpop.permute.xlu0 %5216 }
 0x26e   : > { %v18933_v59 = vpop.f32.mrf.mxu0 }
 0x26f   : > { %22419 = vst [vmem:[#allocation90_spill] sm:$0xff] %v18929_v47  ;;  %22420 = vst [vmem:[#allocation91_spill] sm:$0xff] %v18933_v59  ;;  %v22427_v59 = vld [vmem:[#allocation22_spill] sm:$0xff] }
 0x270   : > { %v15242_v37 = vpop.f32.mrf.mxu0  ;;  %v3386_v38 = vadd.f32 %v22427_v59, %v18358_v27 }
 0x271   : > { %v18940_v55 = vadd.f32 %v15242_v37, %v18735_v5  ;;  %v18958_v37 = vpop.f32.mrf.mxu1 }
 0x272   : > { %v18942_v6 = vpop.f32.mrf.mxu0  ;;  %v3915_v5 = vadd.f32 %v18758_v58, %v3386_v38  ;;  %22428 = vst [vmem:[#allocation22_spill] sm:$0xff] %v18958_v37  ;;  %v18976_v38 = vld [vmem:[%s22178_s2] ss:$0 sm:$0xff] }
 0x273   : > { %22422 = vst [vmem:[#allocation93_spill] sm:$0xff] %v18940_v55  ;;  %22423 = vst [vmem:[#allocation94_spill] sm:$0xff] %v18942_v6  ;;  %v18963_v6 = vpop.permute.xlu1 %5231 }
 0x274   : > { %v15245_v48 = vpop.f32.mrf.mxu0 }
 0x275   : > { %v18949_v30 = vadd.f32 %v15245_v48, %v18744_v10  ;;  %v22431_v48 = vld [vmem:[#allocation33_spill] sm:$0xff] }
 0x276   : > { %v18953_v47 = vpop.f32.mrf.mxu0  ;;  %v3388_v10 = vadd.f32 %v22431_v48, %v18371_v34  ;;  %v22433_v34 = vld [vmem:[#allocation23_spill] sm:$0xff] }
 0x277   : > { %22425 = vst [vmem:[#allocation96_spill] sm:$0xff] %v18949_v30  ;;  %22426 = vst [vmem:[#allocation97_spill] sm:$0xff] %v18953_v47  ;;  %v4445_v30 = vadd.f32 %v18747_v46, %v18754_v0  ;;  %v18971_v47 = vpop.permute.xlu0 %5226  ;;  %v3390_v48 = vadd.f32 %v22433_v34, %v18387_v22  ;;  %v4447_v46 = vadd.f32 %v18763_v52, %v18761_v43 }
 0x278   : > { %v15248_v15 = vpop.f32.mrf.mxu0  ;;  %22432 = vst [vmem:[#allocation33_spill] sm:$0xff] %v18971_v47  ;;  %v3917_v58 = vadd.f32 %v18765_v44, %v3388_v10  ;;  %v18988_v47 = vpop.permute.xlu1 %5241  ;;  %v4449_v43 = vadd.f32 %v18774_v23, %v18768_v39 }
 0x279   : > { %v18961_v55 = vadd.f32 %v15248_v15, %v18751_v32  ;;  %v4444_v32 = vadd.f32 %v18756_v62, %v3915_v5  ;;  %v18980_v15 = vpop.f32.mrf.mxu1  ;;  %v3919_v37 = vadd.f32 %v18772_v11, %v3390_v48 }
 0x27a   : > { %v18965_v1 = vpop.f32.mrf.mxu0  ;;  %v4446_v44 = vadd.f32 %v18770_v7, %v3917_v58 }
 0x27b   : > { %22429 = vst [vmem:[#allocation98_spill] sm:$0xff] %v18961_v55  ;;  %22430 = vst [vmem:[#allocation99_spill] sm:$0xff] %v18965_v1  ;;  %v18991_v5 = vpop.f32.mrf.mxu1  ;;  %v18998_v52 = vpop.permute.xlu0 %5236 }
 0x27c   : > { %v15324_v27 = vpop.f32.mrf.mxu0 }
 0x27d   : > { %v4974_v59 = vadd.f32 %v15324_v27, %v4445_v30  ;;  %v22434_v27 = vld [vmem:[#allocation34_spill] sm:$0xff] }
 0x27e   : > { %v4744_v55 = vpop.f32.mrf.mxu0  ;;  %v3392_v34 = vadd.f32 %v22434_v27, %v18403_v45  ;;  %v7612_v45 = vld [vmem:[%s22179_s3 + $0x98] sm:$0xff] }
 0x27f   : > { %v5027_v0 = vadd.f32 %v18976_v38, %v4974_v59  ;;  %v4973_v1 = vadd.f32 %v4744_v55, %v4444_v32  ;;  %v4448_v59 = vadd.f32 %v18781_v14, %v3919_v37  ;;  %15699 = vmatprep.subr.mxu1 %v7612_v45  ;;  %v8141_v14 = vld [vmem:[%s22179_s3 + $0xb8] sm:$0xff] }
 0x280   : > { %v15327_v62 = vpop.f32.mrf.mxu0  ;;  %15776 = vmatprep.subr.mxu0 %v8141_v14  ;;  %v22437_v14 = vld [vmem:[#allocation37_spill] sm:$0xff] }
 0x281   : > { %v5073_v30 = vmax.f32 %v5027_v0, 0.0  ;;  %v5026_v10 = vadd.f32 %v18976_v38, %v4973_v1  ;;  %v4976_v22 = vadd.f32 %v15327_v62, %v4447_v46  ;;  %v3921_v1 = vadd.f32 %v18779_v31, %v3392_v34  ;;  %v19007_v46 = vpop.f32.mrf.mxu1  ;;  %v22435_v31 = vld [vmem:[#allocation35_spill] sm:$0xff] }
 0x282   : > { %v4754_v11 = vpop.f32.mrf.mxu0  ;;  %v3394_v37 = vadd.f32 %v22435_v31, %v18416_v2  ;;  %v4451_v62 = vadd.f32 %v18794_v40, %v18777_v26  ;;  %v19026_v2 = vpop.permute.xlu0 %5246  ;;  %v3398_v31 = vadd.f32 %v22437_v14, %v18442_v63 }
 0x283   : > { %v5395_v55 = vmul.f32 %v18881_v19, %v5073_v30  ;;  %v5072_v32 = vmax.f32 %v5026_v10, 0.0  ;;  %v5029_v7 = vadd.f32 %v18976_v38, %v4976_v22  ;;  %v4975_v58 = vadd.f32 %v4754_v11, %v4446_v44  ;;  %v19019_v44 = vpop.permute.xlu1 %5251  ;;  %v19028_v40 = vpop.f32.mrf.mxu1 }
 0x284   : > { %v15330_v48 = vpop.f32.mrf.mxu0  ;;  %v4450_v34 = vadd.f32 %v18801_v50, %v3921_v1  ;;  %v4453_v50 = vadd.f32 %v18808_v21, %v18784_v20 }
 0x285   : > { %5494 = vst.msk [vmem:[#allocation2 + $0x20] sm:$0xff] %vm5440_vm2, %v5395_v55  ;;  %v5394_v23 = vmul.f32 %v18865_v56, %v5072_v32  ;;  %v5075_v39 = vmax.f32 %v5029_v7, 0.0  ;;  %v5028_v19 = vadd.f32 %v18976_v38, %v4975_v58  ;;  %v4978_v0 = vadd.f32 %v15330_v48, %v4449_v43  ;;  %v22436_v7 = vld [vmem:[#allocation36_spill] sm:$0xff] }
 0x286   : > { %v4764_v30 = vpop.f32.mrf.mxu0  ;;  %v3923_v43 = vadd.f32 %v18789_v24, %v3394_v37  ;;  %v3396_v58 = vadd.f32 %v22436_v7, %v18429_v12  ;;  %v19044_v12 = vpop.f32.mrf.mxu1 }
 0x287   : > { %5493 = vst.msk [vmem:[#allocation2 + $0x18] sm:$0xff] %vm5440_vm2, %v5394_v23  ;;  %v5397_v56 = vmul.f32 %v18874_v61, %v5075_v39  ;;  %v5074_v10 = vmax.f32 %v5028_v19, 0.0  ;;  %v5031_v22 = vadd.f32 %v18976_v38, %v4978_v0  ;;  %v4977_v27 = vadd.f32 %v4764_v30, %v4448_v59  ;;  %v19042_v39 = vpop.permute.xlu1 %5261 }
 0x288   : > { %v15333_v11 = vpop.f32.mrf.mxu0  ;;  %v3925_v23 = vadd.f32 %v18799_v41, %v3396_v58  ;;  %v19053_v41 = vpop.permute.xlu0 %5256 }
 0x289   : > { %5496 = vst.msk [vmem:[#allocation2 + $0x30] sm:$0xff] %vm5440_vm2, %v5397_v56  ;;  %v5396_v26 = vmul.f32 %v18861_v28, %v5074_v10  ;;  %v5077_v55 = vmax.f32 %v5031_v22, 0.0  ;;  %v5030_v61 = vadd.f32 %v18976_v38, %v4977_v27  ;;  %v4980_v32 = vadd.f32 %v15333_v11, %v4451_v62 }
 0x28a   : > { %v4774_v24 = vpop.f32.mrf.mxu0  ;;  %v4452_v28 = vadd.f32 %v18815_v18, %v3923_v43  ;;  %v4455_v18 = vadd.f32 %v18822_v33, %v18797_v13  ;;  %v4454_v13 = vadd.f32 %v18832_v54, %v3925_v23  ;;  %v3927_v33 = vadd.f32 %v18806_v42, %v3398_v31  ;;  %v19064_v43 = vpop.f32.mrf.mxu1 }
 0x28b   : > { %5495 = vst.msk [vmem:[#allocation2 + $0x28] sm:$0xff] %vm5440_vm2, %v5396_v26  ;;  %v5399_v59 = vmul.f32 %v18896_v25, %v5077_v55  ;;  %v5076_v1 = vmax.f32 %v5030_v61, 0.0  ;;  %v5033_v48 = vadd.f32 %v18976_v38, %v4980_v32  ;;  %v4979_v45 = vadd.f32 %v4774_v24, %v4450_v34  ;;  %v22438_v61 = vld [vmem:[#allocation38_spill] sm:$0xff]  ;;  %v19073_v32 = vpop.permute.xlu1 %5271 }
 0x28c   : > { %v15336_v19 = vpop.f32.mrf.mxu0  ;;  %v5543_v63 = vld [vmem:[#allocation2 + $0x20] sm:$0xff]  ;;  %v3400_v54 = vadd.f32 %v22438_v61, %v18455_v17  ;;  %v4457_v42 = vadd.f32 %v18842_v35, %v18804_v51  ;;  %v4456_v35 = vadd.f32 %v18849_v16, %v3927_v33  ;;  %v22445_v61 = vld [vmem:[#allocation61_spill] sm:$0xff] }
 0x28d   : > { %5498 = vst.msk [vmem:[#allocation2 + $0x40] sm:$0xff] %vm5440_vm2, %v5399_v59  ;;  %v5398_v20 = vmul.f32 %v18900_v60, %v5076_v1  ;;  %v5079_v21 = vmax.f32 %v5033_v48, 0.0  ;;  %v5032_v25 = vadd.f32 %v18976_v38, %v4979_v45  ;;  %v4982_v0 = vadd.f32 %v15336_v19, %v4453_v50  ;;  %v19082_v45 = vpop.permute.xlu0 %5266  ;;  %v22439_v16 = vld [vmem:[#allocation6_spill] sm:$0xff] }
 0x28e   : > { %v4784_v37 = vpop.f32.mrf.mxu0  ;;  %v5591_v62 = vld [vmem:[#allocation2 + $0x11] sm:$0xff]  ;;  %v5592_v56 = vld [vmem:[#allocation2 + $0x19] sm:$0xff]  ;;  %v3929_v51 = vadd.f32 %v18813_v36, %v3400_v54  ;;  %v3402_v36 = vadd.f32 %v22439_v16, %v18474_v3 }
 0x28f   : > { %v5542_v30 = vld [vmem:[#allocation2 + $0x18] sm:$0xff]  ;;  %5497 = vst.msk [vmem:[#allocation2 + $0x38] sm:$0xff] %vm5440_vm2, %v5398_v20  ;;  %v5401_v60 = vmul.f32 %v18915_v4, %v5079_v21  ;;  %v5078_v10 = vmax.f32 %v5032_v25, 0.0  ;;  %v5035_v22 = vadd.f32 %v18976_v38, %v4982_v0  ;;  %v4981_v27 = vadd.f32 %v4784_v37, %v4452_v28  ;;  %15402 = vmatprep.mubr.msk.f32.mxu1 %vm5440_vm2, %v5591_v62  ;;  %v22440_v25 = vld [vmem:[#allocation71_spill] sm:$0xff] }
 0x290   : > { %15480 = vmatmul.mubr.msk.f32.gmra.mxu0 %vm5440_vm2, %v5542_v30  ;;  %v15339_v34 = vpop.f32.mrf.mxu0  ;;  %15403 = vmatmul.mubr.msk.f32.gmra.mxu1 %vm5440_vm2, %v5592_v56  ;;  %v5545_v17 = vld [vmem:[#allocation2 + $0x30] sm:$0xff]  ;;  %v4459_v0 = vadd.f32 %v22440_v25, %v18811_v29  ;;  %v22442_v29 = vld [vmem:[#allocation62_spill] sm:$0xff]  ;;  %v22446_v54 = vld [vmem:[#allocation77_spill] sm:$0xff] }
 0x291   : > { %15482 = vmatprep.mubr.msk.f32.mxu0 %vm5440_vm2, %v5543_v63  ;;  %5500 = vst.msk [vmem:[#allocation2 + $0x50] sm:$0xff] %vm5440_vm2, %v5401_v60  ;;  %v5400_v4 = vmul.f32 %v18922_v49, %v5078_v10  ;;  %v5081_v11 = vmax.f32 %v5035_v22, 0.0  ;;  %v5034_v26 = vadd.f32 %v18976_v38, %v4981_v27  ;;  %v4984_v55 = vadd.f32 %v15339_v34, %v4455_v18  ;;  %v22441_v60 = vld [vmem:[#allocation74_spill] sm:$0xff]  ;;  %v19102_v27 = vpop.permute.xlu1 %5281 }
 0x292   : > { %v4794_v7 = vpop.f32.mrf.mxu0  ;;  %v5593_v58 = vld [vmem:[#allocation2 + $0x21] sm:$0xff]  ;;  %v5594_v24 = vld [vmem:[#allocation2 + $0x29] sm:$0xff]  ;;  %v4458_v10 = vadd.f32 %v22441_v60, %v3929_v51  ;;  %v3931_v22 = vadd.f32 %v22442_v29, %v3402_v36 }
 0x293   : > { %v5544_v50 = vld [vmem:[#allocation2 + $0x28] sm:$0xff]  ;;  %5499 = vst.msk [vmem:[#allocation2 + $0x48] sm:$0xff] %vm5440_vm2, %v5400_v4  ;;  %v5403_v49 = vmul.f32 %v18931_v57, %v5081_v11  ;;  %v5080_v59 = vmax.f32 %v5034_v26, 0.0  ;;  %v5037_v1 = vadd.f32 %v18976_v38, %v4984_v55  ;;  %v4983_v48 = vadd.f32 %v4794_v7, %v4454_v13  ;;  %15405 = vmatprep.mubr.msk.f32.mxu1 %vm5440_vm2, %v5593_v58  ;;  %v19086_v57 = vpop.f32.mrf.mxu1  ;;  %v22443_v11 = vld [vmem:[#allocation14_spill] sm:$0xff]  ;;  %v19115_v7 = vpop.permute.xlu0 %5276 }
 0x294   : > { %15483 = vmatmul.mubr.msk.f32.gmra.mxu0 %vm5440_vm2, %v5544_v50  ;;  %v15342_v28 = vpop.f32.mrf.mxu0  ;;  %15406 = vmatmul.mubr.msk.f32.gmra.mxu1 %vm5440_vm2, %v5594_v24  ;;  %v5547_v3 = vld [vmem:[#allocation2 + $0x40] sm:$0xff]  ;;  %v22444_v26 = vld [vmem:[#allocation7_spill] sm:$0xff] }
 0x295   : > { %15485 = vmatprep.mubr.msk.f32.mxu0 %vm5440_vm2, %v5545_v17  ;;  %5502 = vst.msk [vmem:[#allocation2 + $0x60] sm:$0xff] %vm5440_vm2, %v5403_v49  ;;  %v5402_v23 = vmul.f32 %v18935_v9, %v5080_v59  ;;  %v5083_v19 = vmax.f32 %v5037_v1, 0.0  ;;  %v5036_v20 = vadd.f32 %v18976_v38, %v4983_v48  ;;  %v4986_v21 = vadd.f32 %v15342_v28, %v4457_v42  ;;  %v22448_v28 = vld [vmem:[#allocation64_spill] sm:$0xff] }
 0x296   : > { %v4804_v14 = vpop.f32.mrf.mxu0  ;;  %v5595_v31 = vld [vmem:[#allocation2 + $0x31] sm:$0xff]  ;;  %v5596_v37 = vld [vmem:[#allocation2 + $0x39] sm:$0xff]  ;;  %v3404_v55 = vadd.f32 %v22444_v26, %v22443_v11  ;;  %v4461_v42 = vadd.f32 %v22446_v54, %v22445_v61 }
 0x297   : > { %v5546_v18 = vld [vmem:[#allocation2 + $0x38] sm:$0xff]  ;;  %5501 = vst.msk [vmem:[#allocation2 + $0x58] sm:$0xff] %vm5440_vm2, %v5402_v23  ;;  %v5405_v62 = vmul.f32 %v18944_v53, %v5083_v19  ;;  %v5082_v30 = vmax.f32 %v5036_v20, 0.0  ;;  %v5039_v9 = vadd.f32 %v18976_v38, %v4986_v21  ;;  %v4985_v56 = vadd.f32 %v4804_v14, %v4456_v35  ;;  %15408 = vmatprep.mubr.msk.f32.mxu1 %vm5440_vm2, %v5595_v31  ;;  %v19106_v53 = vpop.f32.mrf.mxu1  ;;  %v22447_v35 = vld [vmem:[#allocation80_spill] sm:$0xff]  ;;  %v19144_v26 = vpop.permute.xlu0 %5286 }
 0x298   : > { %15486 = vmatmul.mubr.msk.f32.gmra.mxu0 %vm5440_vm2, %v5546_v18  ;;  %v15345_v63 = vpop.f32.mrf.mxu0  ;;  %15409 = vmatmul.mubr.msk.f32.gmra.mxu1 %vm5440_vm2, %v5596_v37  ;;  %v5549_v17 = vld [vmem:[#allocation2 + $0x50] sm:$0xff]  ;;  %v4460_v51 = vadd.f32 %v22447_v35, %v3931_v22  ;;  %v3933_v23 = vadd.f32 %v22448_v28, %v3404_v55  ;;  %v22451_v14 = vld [vmem:[#allocation9_spill] sm:$0xff]  ;;  %v22452_v18 = vld [vmem:[#allocation63_spill] sm:$0xff] }
 0x299   : > { %15488 = vmatprep.mubr.msk.f32.mxu0 %vm5440_vm2, %v5547_v3  ;;  %5504 = vst.msk [vmem:[#allocation2 + $0x70] sm:$0xff] %vm5440_vm2, %v5405_v62  ;;  %v5404_v13 = vmul.f32 %v18951_v8, %v5082_v30  ;;  %v5085_v33 = vmax.f32 %v5039_v9, 0.0  ;;  %v5038_v34 = vadd.f32 %v18976_v38, %v4985_v56  ;;  %v4988_v4 = vadd.f32 %v15345_v63, %v4459_v0  ;;  %v19126_v20 = vpop.f32.mrf.mxu1  ;;  %v22450_v0 = vld [vmem:[#allocation21_spill] sm:$0xff]  ;;  %v22453_v37 = vld [vmem:[#allocation83_spill] sm:$0xff]  ;;  %v19135_v30 = vpop.permute.xlu1 %5291 }
 0x29a   : > { %v4814_v58 = vpop.f32.mrf.mxu0  ;;  %v5597_v50 = vld [vmem:[#allocation2 + $0x41] sm:$0xff]  ;;  %v5598_v49 = vld [vmem:[#allocation2 + $0x49] sm:$0xff]  ;;  %v3406_v31 = vadd.f32 %v22451_v14, %v22450_v0  ;;  %v4463_v62 = vadd.f32 %v22453_v37, %v22452_v18 }
 0x29b   : > { %v5548_v24 = vld [vmem:[#allocation2 + $0x48] sm:$0xff]  ;;  %5503 = vst.msk [vmem:[#allocation2 + $0x68] sm:$0xff] %vm5440_vm2, %v5404_v13  ;;  %v5407_v8 = vmul.f32 %v18963_v6, %v5085_v33  ;;  %v5084_v59 = vmax.f32 %v5038_v34, 0.0  ;;  %v5041_v1 = vadd.f32 %v18976_v38, %v4988_v4  ;;  %v4987_v48 = vadd.f32 %v4814_v58, %v4458_v10  ;;  %15411 = vmatprep.mubr.msk.f32.mxu1 %vm5440_vm2, %v5597_v50  ;;  %v22449_v6 = vld [vmem:[#allocation33_spill] sm:$0xff]  ;;  %v22454_v33 = vld [vmem:[#allocation86_spill] sm:$0xff] }
 0x29c   : > { %15489 = vmatmul.mubr.msk.f32.gmra.mxu0 %vm5440_vm2, %v5548_v24  ;;  %v15348_v19 = vpop.f32.mrf.mxu0  ;;  %15412 = vmatmul.mubr.msk.f32.gmra.mxu1 %vm5440_vm2, %v5598_v49  ;;  %v5551_v13 = vld [vmem:[#allocation2 + $0x60] sm:$0xff]  ;;  %v4462_v34 = vadd.f32 %v22454_v33, %v3933_v23  ;;  %v22456_v50 = vld [vmem:[#allocation29_spill] sm:$0xff] }
 0x29d   : > { %15491 = vmatprep.mubr.msk.f32.mxu0 %vm5440_vm2, %v5549_v17  ;;  %5506 = vst.msk [vmem:[#allocation2 + $0x80] sm:$0xff] %vm5440_vm2, %v5407_v8  ;;  %v5406_v21 = vmul.f32 %v22449_v6, %v5084_v59  ;;  %v5087_v16 = vmax.f32 %v5041_v1, 0.0  ;;  %v5040_v36 = vadd.f32 %v18976_v38, %v4987_v48  ;;  %v4990_v25 = vadd.f32 %v15348_v19, %v4461_v42  ;;  %v22455_v4 = vld [vmem:[#allocation66_spill] sm:$0xff]  ;;  %v22457_v24 = vld [vmem:[#allocation17_spill] sm:$0xff]  ;;  %v19164_v0 = vpop.permute.xlu1 %5301 }
 0x29e   : > { %v4824_v9 = vpop.f32.mrf.mxu0  ;;  %v5599_v56 = vld [vmem:[#allocation2 + $0x51] sm:$0xff]  ;;  %v5600_v60 = vld [vmem:[#allocation2 + $0x59] sm:$0xff]  ;;  %v3935_v11 = vadd.f32 %v22455_v4, %v3406_v31  ;;  %v3408_v49 = vadd.f32 %v22457_v24, %v22456_v50 }
 0x29f   : > { %v5550_v3 = vld [vmem:[#allocation2 + $0x58] sm:$0xff]  ;;  %5505 = vst.msk [vmem:[#allocation2 + $0x78] sm:$0xff] %vm5440_vm2, %v5406_v21  ;;  %v5409_v10 = vmul.f32 %v18988_v47, %v5087_v16  ;;  %v5086_v29 = vmax.f32 %v5040_v36, 0.0  ;;  %v5043_v22 = vadd.f32 %v18976_v38, %v4990_v25  ;;  %v4989_v63 = vadd.f32 %v4824_v9, %v4460_v51  ;;  %15414 = vmatprep.mubr.msk.f32.mxu1 %vm5440_vm2, %v5599_v56  ;;  %v19148_v47 = vpop.f32.mrf.mxu1  ;;  %v22460_v21 = vld [vmem:[#allocation92_spill] sm:$0xff]  ;;  %v22462_v9 = vld [vmem:[#allocation30_spill] sm:$0xff] }
 0x2a0   : > { %15492 = vmatmul.mubr.msk.f32.gmra.mxu0 %vm5440_vm2, %v5550_v3  ;;  %v15351_v55 = vpop.f32.mrf.mxu0  ;;  %15415 = vmatmul.mubr.msk.f32.gmra.mxu1 %vm5440_vm2, %v5600_v60  ;;  %v22458_v8 = vld [vmem:[#allocation65_spill] sm:$0xff]  ;;  %v5553_v6 = vld [vmem:[#allocation2 + $0x70] sm:$0xff]  ;;  %v4464_v16 = vadd.f32 %v22460_v21, %v3935_v11  ;;  %v22463_v56 = vld [vmem:[#allocation11_spill] sm:$0xff] }
 0x2a1   : > { %15494 = vmatprep.mubr.msk.f32.mxu0 %vm5440_vm2, %v5551_v13  ;;  %5508 = vst.msk [vmem:[#allocation2 + $0x90] sm:$0xff] %vm5440_vm2, %v5409_v10  ;;  %v5408_v61 = vmul.f32 %v18998_v52, %v5086_v29  ;;  %v5089_v54 = vmax.f32 %v5043_v22, 0.0  ;;  %v5042_v42 = vadd.f32 %v18976_v38, %v4989_v63  ;;  %v4992_v58 = vadd.f32 %v15351_v55, %v4463_v62  ;;  %v22459_v59 = vld [vmem:[#allocation89_spill] sm:$0xff]  ;;  %v22461_v36 = vld [vmem:[#allocation68_spill] sm:$0xff]  ;;  %v22464_v60 = vld [vmem:[#allocation67_spill] sm:$0xff]  ;;  %v19177_v22 = vpop.permute.xlu0 %5296 }
 0x2a2   : > { %v4465_v1 = vadd.f32 %v22459_v59, %v22458_v8  ;;  %v4834_v48 = vpop.f32.mrf.mxu0  ;;  %v5601_v17 = vld [vmem:[#allocation2 + $0x61] sm:$0xff]  ;;  %v5602_v51 = vld [vmem:[#allocation2 + $0x69] sm:$0xff]  ;;  %v3937_v25 = vadd.f32 %v22461_v36, %v3408_v49  ;;  %v3410_v3 = vadd.f32 %v22463_v56, %v22462_v9  ;;  %v22475_v56 = vld [vmem:[#allocation41_spill] sm:$0xff] }
 0x2a3   : > { %v5552_v35 = vld [vmem:[#allocation2 + $0x68] sm:$0xff]  ;;  %5507 = vst.msk [vmem:[#allocation2 + $0x88] sm:$0xff] %vm5440_vm2, %v5408_v61  ;;  %v5411_v28 = vmul.f32 %v19019_v44, %v5089_v54  ;;  %v5088_v23 = vmax.f32 %v5042_v42, 0.0  ;;  %v5045_v52 = vadd.f32 %v18976_v38, %v4992_v58  ;;  %v4991_v19 = vadd.f32 %v4834_v48, %v4462_v34  ;;  %15417 = vmatprep.mubr.msk.f32.mxu1 %vm5440_vm2, %v5601_v17  ;;  %v19168_v44 = vpop.f32.mrf.mxu1  ;;  %v22466_v54 = vld [vmem:[#allocation24_spill] sm:$0xff]  ;;  %v22468_v50 = vld [vmem:[#allocation22_spill] sm:$0xff] }
 0x2a4   : > { %15495 = vmatmul.mubr.msk.f32.gmra.mxu0 %vm5440_vm2, %v5552_v35  ;;  %v15354_v14 = vpop.f32.mrf.mxu0  ;;  %15418 = vmatmul.mubr.msk.f32.gmra.mxu1 %vm5440_vm2, %v5602_v51  ;;  %v22465_v10 = vld [vmem:[#allocation95_spill] sm:$0xff]  ;;  %v5555_v61 = vld [vmem:[#allocation2 + $0x80] sm:$0xff]  ;;  %v22467_v42 = vld [vmem:[#allocation40_spill] sm:$0xff]  ;;  %v4466_v24 = vadd.f32 %v22468_v50, %v3937_v25 }
 0x2a5   : > { %15497 = vmatprep.mubr.msk.f32.mxu0 %vm5440_vm2, %v5553_v6  ;;  %5510 = vst.msk [vmem:[#allocation2 + $0xa0] sm:$0xff] %vm5440_vm2, %v5411_v28  ;;  %v5410_v31 = vmul.f32 %v19026_v2, %v5088_v23  ;;  %v5091_v18 = vmax.f32 %v5045_v52, 0.0  ;;  %v5044_v37 = vadd.f32 %v18976_v38, %v4991_v19  ;;  %v4994_v62 = vadd.f32 %v15354_v14, %v4465_v1  ;;  %v22469_v49 = vld [vmem:[#allocation70_spill] sm:$0xff]  ;;  %v22470_v51 = vld [vmem:[#allocation48_spill] sm:$0xff]  ;;  %v22472_v52 = vld [vmem:[#allocation49_spill] sm:$0xff] }
 0x2a6   : > { %v4467_v29 = vadd.f32 %v22465_v10, %v22464_v60  ;;  %v4844_v63 = vpop.f32.mrf.mxu0  ;;  %v5603_v13 = vld [vmem:[#allocation2 + $0x71] sm:$0xff]  ;;  %v5604_v34 = vld [vmem:[#allocation2 + $0x79] sm:$0xff]  ;;  %v2356_v58 = vadd.f32 %v22467_v42, %v22466_v54  ;;  %v3939_v8 = vadd.f32 %v22469_v49, %v3410_v3 }
 0x2a7   : > { %v5554_v33 = vld [vmem:[#allocation2 + $0x78] sm:$0xff]  ;;  %5509 = vst.msk [vmem:[#allocation2 + $0x98] sm:$0xff] %vm5440_vm2, %v5410_v31  ;;  %v5413_v2 = vmul.f32 %v19042_v39, %v5091_v18  ;;  %v5090_v4 = vmax.f32 %v5044_v37, 0.0  ;;  %v5047_v11 = vadd.f32 %v18976_v38, %v4994_v62  ;;  %v4993_v55 = vadd.f32 %v4844_v63, %v4464_v16  ;;  %15420 = vmatprep.mubr.msk.f32.mxu1 %vm5440_vm2, %v5603_v13  ;;  %v19190_v39 = vpop.f32.mrf.mxu1  ;;  %v22471_v28 = vld [vmem:[#allocation12_spill] sm:$0xff]  ;;  %v19200_v16 = vpop.permute.xlu1 %5311 }
 0x2a8   : > { %15498 = vmatmul.mubr.msk.f32.gmra.mxu0 %vm5440_vm2, %v5554_v33  ;;  %v15357_v59 = vpop.f32.mrf.mxu0  ;;  %15421 = vmatmul.mubr.msk.f32.gmra.mxu1 %vm5440_vm2, %v5604_v34  ;;  %v3412_v23 = vadd.f32 %v22471_v28, %v22470_v51  ;;  %v2885_v19 = vadd.f32 %v22472_v52, %v2356_v58  ;;  %v22473_v6 = vld [vmem:[#allocation69_spill] sm:$0xff]  ;;  %v5557_v9 = vld [vmem:[#allocation2 + $0x90] sm:$0xff]  ;;  %v4468_v60 = vadd.f32 %v18991_v5, %v3939_v8  ;;  %v19211_v63 = vpop.permute.xlu0 %5306  ;;  %v22477_v5 = vld [vmem:[#allocation19_spill] sm:$0xff] }
 0x2a9   : > { %15500 = vmatprep.mubr.msk.f32.mxu0 %vm5440_vm2, %v5555_v61  ;;  %5512 = vst.msk [vmem:[#allocation2 + $0xb0] sm:$0xff] %vm5440_vm2, %v5413_v2  ;;  %v5412_v1 = vmul.f32 %v19053_v41, %v5090_v4  ;;  %v5093_v48 = vmax.f32 %v5047_v11, 0.0  ;;  %v5046_v17 = vadd.f32 %v18976_v38, %v4993_v55  ;;  %v4996_v35 = vadd.f32 %v15357_v59, %v4467_v29  ;;  %v22476_v10 = vld [vmem:[#allocation73_spill] sm:$0xff]  ;;  %v22478_v55 = vld [vmem:[#allocation51_spill] sm:$0xff]  ;;  %v22479_v54 = vld [vmem:[#allocation72_spill] sm:$0xff] }
 0x2aa   : > { %v4469_v21 = vadd.f32 %v18980_v15, %v22473_v6  ;;  %v4854_v36 = vpop.f32.mrf.mxu0  ;;  %v5605_v25 = vld [vmem:[#allocation2 + $0x81] sm:$0xff]  ;;  %v5606_v31 = vld [vmem:[#allocation2 + $0x89] sm:$0xff]  ;;  %v22474_v15 = vld [vmem:[#allocation25_spill] sm:$0xff]  ;;  %v3941_v29 = vadd.f32 %v22476_v10, %v3412_v23  ;;  %v3414_v11 = vadd.f32 %v22477_v5, %v2885_v19  ;;  %v4471_v42 = vadd.f32 %v19007_v46, %v22479_v54 }
 0x2ab   : > { %v5556_v14 = vld [vmem:[#allocation2 + $0x88] sm:$0xff]  ;;  %5511 = vst.msk [vmem:[#allocation2 + $0xa8] sm:$0xff] %vm5440_vm2, %v5412_v1  ;;  %v5415_v41 = vmul.f32 %v19073_v32, %v5093_v48  ;;  %v5092_v18 = vmax.f32 %v5046_v17, 0.0  ;;  %v5049_v37 = vadd.f32 %v18976_v38, %v4996_v35  ;;  %v4995_v62 = vadd.f32 %v4854_v36, %v4466_v24  ;;  %15423 = vmatprep.mubr.msk.f32.mxu1 %vm5440_vm2, %v5605_v25  ;;  %v19215_v32 = vpop.f32.mrf.mxu1  ;;  %v22480_v17 = vld [vmem:[#allocation26_spill] sm:$0xff]  ;;  %v22482_v28 = vld [vmem:[#allocation76_spill] sm:$0xff]  ;;  %v19233_v52 = vpop.permute.xlu1 %5321 }
 0x2ac   : > { %15501 = vmatmul.mubr.msk.f32.gmra.mxu0 %vm5440_vm2, %v5556_v14  ;;  %v2358_v3 = vadd.f32 %v22475_v56, %v22474_v15  ;;  %v15360_v13 = vpop.f32.mrf.mxu0  ;;  %15424 = vmatmul.mubr.msk.f32.gmra.mxu1 %vm5440_vm2, %v5606_v31  ;;  %v5559_v48 = vld [vmem:[#allocation2 + $0xa0] sm:$0xff]  ;;  %v4470_v51 = vadd.f32 %v19028_v40, %v3941_v29  ;;  %v3943_v23 = vadd.f32 %v22482_v28, %v3414_v11  ;;  %v22483_v40 = vld [vmem:[#allocation20_spill] sm:$0xff] }
 0x2ad   : > { %15503 = vmatprep.mubr.msk.f32.mxu0 %vm5440_vm2, %v5557_v9  ;;  %5514 = vst.msk [vmem:[#allocation2 + $0xc0] sm:$0xff] %vm5440_vm2, %v5415_v41  ;;  %v5414_v33 = vmul.f32 %v19082_v45, %v5092_v18  ;;  %v5095_v34 = vmax.f32 %v5049_v37, 0.0  ;;  %v5048_v2 = vadd.f32 %v18976_v38, %v4995_v62  ;;  %v4998_v4 = vadd.f32 %v15360_v13, %v4469_v21  ;;  %v22481_v35 = vld [vmem:[#allocation42_spill] sm:$0xff]  ;;  %v22484_v31 = vld [vmem:[#allocation52_spill] sm:$0xff]  ;;  %v22485_v18 = vld [vmem:[#allocation75_spill] sm:$0xff]  ;;  %v19246_v62 = vpop.permute.xlu0 %5316 }
 0x2ae   : > { %v2887_v61 = vadd.f32 %v22478_v55, %v2358_v3  ;;  %v4864_v58 = vpop.f32.mrf.mxu0  ;;  %v5607_v50 = vld [vmem:[#allocation2 + $0x91] sm:$0xff]  ;;  %v5608_v49 = vld [vmem:[#allocation2 + $0x99] sm:$0xff]  ;;  %v2360_v46 = vadd.f32 %v22481_v35, %v22480_v17  ;;  %v4473_v37 = vadd.f32 %v19044_v12, %v22485_v18  ;;  %v22486_v12 = vld [vmem:[#allocation27_spill] sm:$0xff] }
 0x2af   : > { %v5558_v24 = vld [vmem:[#allocation2 + $0x98] sm:$0xff]  ;;  %5513 = vst.msk [vmem:[#allocation2 + $0xb8] sm:$0xff] %vm5440_vm2, %v5414_v33  ;;  %v5417_v8 = vmul.f32 %v19102_v27, %v5095_v34  ;;  %v5094_v45 = vmax.f32 %v5048_v2, 0.0  ;;  %v5051_v59 = vadd.f32 %v18976_v38, %v4998_v4  ;;  %v4997_v1 = vadd.f32 %v4864_v58, %v4468_v60  ;;  %15426 = vmatprep.mubr.msk.f32.mxu1 %vm5440_vm2, %v5607_v50  ;;  %v19237_v27 = vpop.f32.mrf.mxu1  ;;  %v22487_v33 = vld [vmem:[#allocation43_spill] sm:$0xff] }
 0x2b0   : > { %15504 = vmatmul.mubr.msk.f32.gmra.mxu0 %vm5440_vm2, %v5558_v24  ;;  %v15363_v19 = vpop.f32.mrf.mxu0  ;;  %15427 = vmatmul.mubr.msk.f32.gmra.mxu1 %vm5440_vm2, %v5608_v49  ;;  %v3416_v14 = vadd.f32 %v22483_v40, %v2887_v61  ;;  %v2889_v41 = vadd.f32 %v22484_v31, %v2360_v46  ;;  %v5561_v13 = vld [vmem:[#allocation2 + $0xb0] sm:$0xff]  ;;  %v2362_v34 = vadd.f32 %v22487_v33, %v22486_v12  ;;  %v22488_v4 = vld [vmem:[#allocation79_spill] sm:$0xff]  ;;  %v22489_v58 = vld [vmem:[#allocation13_spill] sm:$0xff] }
 0x2b1   : > { %15506 = vmatprep.mubr.msk.f32.mxu0 %vm5440_vm2, %v5559_v48  ;;  %5516 = vst.msk [vmem:[#allocation2 + $0xd0] sm:$0xff] %vm5440_vm2, %v5417_v8  ;;  %v5416_v6 = vmul.f32 %v19115_v7, %v5094_v45  ;;  %v5097_v21 = vmax.f32 %v5051_v59, 0.0  ;;  %v5050_v36 = vadd.f32 %v18976_v38, %v4997_v1  ;;  %v5000_v25 = vadd.f32 %v15363_v19, %v4471_v42  ;;  %v22491_v49 = vld [vmem:[#allocation78_spill] sm:$0xff]  ;;  %v19268_v45 = vpop.permute.xlu1 %5331 }
 0x2b2   : > { %v4874_v9 = vpop.f32.mrf.mxu0  ;;  %v5609_v15 = vld [vmem:[#allocation2 + $0xa1] sm:$0xff]  ;;  %v5610_v3 = vld [vmem:[#allocation2 + $0xa9] sm:$0xff]  ;;  %v4472_v2 = vadd.f32 %v19064_v43, %v3943_v23  ;;  %v3945_v5 = vadd.f32 %v22488_v4, %v3416_v14  ;;  %v3418_v50 = vadd.f32 %v22489_v58, %v2889_v41  ;;  %v4475_v8 = vadd.f32 %v19086_v57, %v22491_v49  ;;  %v22499_v4 = vld [vmem:[#allocation45_spill] sm:$0xff] }
 0x2b3   : > { %v5560_v56 = vld [vmem:[#allocation2 + $0xa8] sm:$0xff]  ;;  %5515 = vst.msk [vmem:[#allocation2 + $0xc8] sm:$0xff] %vm5440_vm2, %v5416_v6  ;;  %v5419_v7 = vmul.f32 %v19135_v30, %v5097_v21  ;;  %v5096_v60 = vmax.f32 %v5050_v36, 0.0  ;;  %v5053_v10 = vadd.f32 %v18976_v38, %v5000_v25  ;;  %v4999_v29 = vadd.f32 %v4874_v9, %v4470_v51  ;;  %15429 = vmatprep.mubr.msk.f32.mxu1 %vm5440_vm2, %v5609_v15  ;;  %v19259_v30 = vpop.f32.mrf.mxu1  ;;  %v22490_v43 = vld [vmem:[#allocation54_spill] sm:$0xff]  ;;  %v22492_v57 = vld [vmem:[#allocation28_spill] sm:$0xff]  ;;  %v19279_v25 = vpop.permute.xlu0 %5326 }
 0x2b4   : > { %15507 = vmatmul.mubr.msk.f32.gmra.mxu0 %vm5440_vm2, %v5560_v56  ;;  %v15366_v11 = vpop.f32.mrf.mxu0  ;;  %15430 = vmatmul.mubr.msk.f32.gmra.mxu1 %vm5440_vm2, %v5610_v3  ;;  %v2891_v24 = vadd.f32 %v22490_v43, %v2362_v34  ;;  %v5563_v28 = vld [vmem:[#allocation2 + $0xc0] sm:$0xff]  ;;  %v22493_v23 = vld [vmem:[#allocation44_spill] sm:$0xff]  ;;  %v4474_v6 = vadd.f32 %v19106_v53, %v3945_v5  ;;  %v22495_v53 = vld [vmem:[#allocation15_spill] sm:$0xff] }
 0x2b5   : > { %15509 = vmatprep.mubr.msk.f32.mxu0 %vm5440_vm2, %v5561_v13  ;;  %5518 = vst.msk [vmem:[#allocation2 + $0xe0] sm:$0xff] %vm5440_vm2, %v5419_v7  ;;  %v5418_v55 = vmul.f32 %v19144_v26, %v5096_v60  ;;  %v5099_v61 = vmax.f32 %v5053_v10, 0.0  ;;  %v5052_v54 = vadd.f32 %v18976_v38, %v4999_v29  ;;  %v5002_v42 = vadd.f32 %v15366_v11, %v4473_v37  ;;  %v22494_v21 = vld [vmem:[#allocation82_spill] sm:$0xff]  ;;  %v22496_v9 = vld [vmem:[#allocation55_spill] sm:$0xff]  ;;  %v22497_v56 = vld [vmem:[#allocation81_spill] sm:$0xff] }
 0x2b6   : > { %v4884_v59 = vpop.f32.mrf.mxu0  ;;  %v5611_v1 = vld [vmem:[#allocation2 + $0xb1] sm:$0xff]  ;;  %v5612_v17 = vld [vmem:[#allocation2 + $0xb9] sm:$0xff]  ;;  %v2364_v19 = vadd.f32 %v22493_v23, %v22492_v57  ;;  %v3947_v36 = vadd.f32 %v22494_v21, %v3418_v50  ;;  %v3420_v37 = vadd.f32 %v22495_v53, %v2891_v24  ;;  %v4477_v3 = vadd.f32 %v19126_v20, %v22497_v56  ;;  %v22509_v56 = vld [vmem:[#allocation87_spill] sm:$0xff] }
 0x2b7   : > { %v5562_v48 = vld [vmem:[#allocation2 + $0xb8] sm:$0xff]  ;;  %5517 = vst.msk [vmem:[#allocation2 + $0xd8] sm:$0xff] %vm5440_vm2, %v5418_v55  ;;  %v5421_v26 = vmul.f32 %v19164_v0, %v5099_v61  ;;  %v5098_v35 = vmax.f32 %v5052_v54, 0.0  ;;  %v5055_v46 = vadd.f32 %v18976_v38, %v5002_v42  ;;  %v5001_v51 = vadd.f32 %v4884_v59, %v4472_v2  ;;  %15432 = vmatprep.mubr.msk.f32.mxu1 %vm5440_vm2, %v5611_v1  ;;  %v19283_v0 = vpop.f32.mrf.mxu1  ;;  %v22498_v2 = vld [vmem:[#allocation39_spill] sm:$0xff]  ;;  %v19301_v61 = vpop.permute.xlu1 %5341  ;;  %v22503_v59 = vld [vmem:[#allocation84_spill] sm:$0xff] }
 0x2b8   : > { %15510 = vmatmul.mubr.msk.f32.gmra.mxu0 %vm5440_vm2, %v5562_v48  ;;  %v15369_v40 = vpop.f32.mrf.mxu0  ;;  %15433 = vmatmul.mubr.msk.f32.gmra.mxu1 %vm5440_vm2, %v5612_v17  ;;  %v2893_v15 = vadd.f32 %v22496_v9, %v2364_v19  ;;  %v5565_v34 = vld [vmem:[#allocation2 + $0xd0] sm:$0xff]  ;;  %v2366_v20 = vadd.f32 %v22499_v4, %v22498_v2  ;;  %v4476_v5 = vadd.f32 %v19148_v47, %v3947_v36  ;;  %v22500_v11 = vld [vmem:[#allocation85_spill] sm:$0xff]  ;;  %v22501_v47 = vld [vmem:[#allocation31_spill] sm:$0xff]  ;;  %v19314_v48 = vpop.permute.xlu0 %5336 }
 0x2b9   : > { %15512 = vmatprep.mubr.msk.f32.mxu0 %vm5440_vm2, %v5563_v28  ;;  %5520 = vst.msk [vmem:[#allocation2 + $0xf0] sm:$0xff] %vm5440_vm2, %v5421_v26  ;;  %v5420_v14 = vmul.f32 %v19177_v22, %v5098_v35  ;;  %v5101_v31 = vmax.f32 %v5055_v46, 0.0  ;;  %v5054_v41 = vadd.f32 %v18976_v38, %v5001_v51  ;;  %v5004_v18 = vadd.f32 %v15369_v40, %v4475_v8  ;;  %v22502_v49 = vld [vmem:[#allocation57_spill] sm:$0xff]  ;;  %v22505_v19 = vld [vmem:[#allocation46_spill] sm:$0xff]  ;;  %v22506_v36 = vld [vmem:[#allocation88_spill] sm:$0xff] }
 0x2ba   : > { %v4894_v7 = vpop.f32.mrf.mxu0  ;;  %v5613_v60 = vld [vmem:[#allocation2 + $0xc1] sm:$0xff]  ;;  %v5614_v29 = vld [vmem:[#allocation2 + $0xc9] sm:$0xff]  ;;  %v3949_v55 = vadd.f32 %v22500_v11, %v3420_v37  ;;  %v3422_v24 = vadd.f32 %v22501_v47, %v2893_v15  ;;  %v2895_v8 = vadd.f32 %v22502_v49, %v2366_v20  ;;  %v4479_v1 = vadd.f32 %v19168_v44, %v22503_v59  ;;  %v22513_v47 = vld [vmem:[#allocation53_spill] sm:$0xff] }
 0x2bb   : > { %v5564_v10 = vld [vmem:[#allocation2 + $0xc8] sm:$0xff]  ;;  %5519 = vst.msk [vmem:[#allocation2 + $0xe8] sm:$0xff] %vm5440_vm2, %v5420_v14  ;;  %v5423_v13 = vmul.f32 %v19200_v16, %v5101_v31  ;;  %v5100_v22 = vmax.f32 %v5054_v41, 0.0  ;;  %v5057_v12 = vadd.f32 %v18976_v38, %v5004_v18  ;;  %v5003_v33 = vadd.f32 %v4894_v7, %v4474_v6  ;;  %15435 = vmatprep.mubr.msk.f32.mxu1 %vm5440_vm2, %v5613_v60  ;;  %v19305_v16 = vpop.f32.mrf.mxu1  ;;  %v22504_v44 = vld [vmem:[#allocation8_spill] sm:$0xff]  ;;  %v22507_v37 = vld [vmem:[#allocation50_spill] sm:$0xff]  ;;  %v19336_v7 = vpop.permute.xlu1 %5351 }
 0x2bc   : > { %15513 = vmatmul.mubr.msk.f32.gmra.mxu0 %vm5440_vm2, %v5564_v10  ;;  %v15372_v54 = vpop.f32.mrf.mxu0  ;;  %15436 = vmatmul.mubr.msk.f32.gmra.mxu1 %vm5440_vm2, %v5614_v29  ;;  %v5567_v23 = vld [vmem:[#allocation2 + $0xe0] sm:$0xff]  ;;  %v2368_v6 = vadd.f32 %v22505_v19, %v22504_v44  ;;  %v4478_v21 = vadd.f32 %v19190_v39, %v3949_v55  ;;  %v3951_v40 = vadd.f32 %v22506_v36, %v3422_v24  ;;  %v22508_v39 = vld [vmem:[#allocation16_spill] sm:$0xff]  ;;  %v22511_v2 = vld [vmem:[#allocation47_spill] sm:$0xff]  ;;  %v5347_v55 = vpop.permute.xlu0 %5346 }
 0x2bd   : > { %15515 = vmatprep.mubr.msk.f32.mxu0 %vm5440_vm2, %v5565_v34  ;;  %5522 = vst.msk [vmem:[#allocation2 + $0x100] sm:$0xff] %vm5440_vm2, %v5423_v13  ;;  %v5422_v42 = vmul.f32 %v19211_v63, %v5100_v22  ;;  %v5103_v58 = vmax.f32 %v5057_v12, 0.0  ;;  %v5056_v50 = vadd.f32 %v18976_v38, %v5003_v33  ;;  %v5006_v43 = vadd.f32 %v15372_v54, %v4477_v3  ;;  %v22514_v24 = vld [vmem:[#allocation59_spill] sm:$0xff]  ;;  %v22518_v19 = vld [vmem:[#allocation94_spill] sm:$0xff] }
 0x2be   : > { %v4904_v17 = vpop.f32.mrf.mxu0  ;;  %v5615_v26 = vld [vmem:[#allocation2 + $0xd1] sm:$0xff]  ;;  %v5616_v46 = vld [vmem:[#allocation2 + $0xd9] sm:$0xff]  ;;  %v3424_v9 = vadd.f32 %v22507_v37, %v2895_v8  ;;  %v2897_v15 = vadd.f32 %v22508_v39, %v2368_v6  ;;  %v4481_v3 = vadd.f32 %v19215_v32, %v22509_v56  ;;  %v4480_v20 = vadd.f32 %v19237_v27, %v3951_v40 }
 0x2bf   : > { %v5566_v35 = vld [vmem:[#allocation2 + $0xd8] sm:$0xff]  ;;  %5521 = vst.msk [vmem:[#allocation2 + $0xf8] sm:$0xff] %vm5440_vm2, %v5422_v42  ;;  %v5425_v63 = vmul.f32 %v19233_v52, %v5103_v58  ;;  %v5102_v51 = vmax.f32 %v5056_v50, 0.0  ;;  %v5059_v28 = vadd.f32 %v18976_v38, %v5006_v43  ;;  %v5005_v57 = vadd.f32 %v4904_v17, %v4476_v5  ;;  %15438 = vmatprep.mubr.msk.f32.mxu1 %vm5440_vm2, %v5615_v26  ;;  %v19327_v52 = vpop.f32.mrf.mxu1  ;;  %v22510_v32 = vld [vmem:[#allocation10_spill] sm:$0xff]  ;;  %v22512_v5 = vld [vmem:[#allocation91_spill] sm:$0xff] }
 0x2c0   : > { %15516 = vmatmul.mubr.msk.f32.gmra.mxu0 %vm5440_vm2, %v5566_v35  ;;  %v15375_v14 = vpop.f32.mrf.mxu0  ;;  %15439 = vmatmul.mubr.msk.f32.gmra.mxu1 %vm5440_vm2, %v5616_v46  ;;  %v5569_v34 = vld [vmem:[#allocation2 + $0xf0] sm:$0xff]  ;;  %v2370_v4 = vadd.f32 %v22511_v2, %v22510_v32  ;;  %v3953_v11 = vadd.f32 %v22512_v5, %v3424_v9  ;;  %v3426_v27 = vadd.f32 %v22513_v47, %v2897_v15  ;;  %v22515_v8 = vld [vmem:[#allocation90_spill] sm:$0xff]  ;;  %v22521_v9 = vld [vmem:[#allocation93_spill] sm:$0xff]  ;;  %v5357_v15 = vpop.permute.xlu0 %5356 }
 0x2c1   : > { %15518 = vmatprep.mubr.msk.f32.mxu0 %vm5440_vm2, %v5567_v23  ;;  %5524 = vst.msk [vmem:[#allocation2 + $0x110] sm:$0xff] %vm5440_vm2, %v5425_v63  ;;  %v5424_v31 = vmul.f32 %v19246_v62, %v5102_v51  ;;  %v5105_v41 = vmax.f32 %v5059_v28, 0.0  ;;  %v5058_v18 = vadd.f32 %v18976_v38, %v5005_v57  ;;  %v5008_v53 = vadd.f32 %v15375_v14, %v4479_v1  ;;  %v22516_v57 = vld [vmem:[#allocation18_spill] sm:$0xff]  ;;  %v22517_v23 = vld [vmem:[#allocation32_spill] sm:$0xff] }
 0x2c2   : > { %v4914_v60 = vpop.f32.mrf.mxu0  ;;  %v5617_v10 = vld [vmem:[#allocation2 + $0xe1] sm:$0xff]  ;;  %v5618_v13 = vld [vmem:[#allocation2 + $0xe9] sm:$0xff]  ;;  %v2899_v49 = vadd.f32 %v22514_v24, %v2370_v4  ;;  %v4483_v59 = vadd.f32 %v19259_v30, %v22515_v8  ;;  %v2372_v30 = vadd.f32 %v22517_v23, %v22516_v57  ;;  %v4482_v44 = vadd.f32 %v19283_v0, %v3953_v11  ;;  %v19389_v2 = vld [vmem:[%s22178_s2] ss:$0 sm:$0xff] }
 0x2c3   : > { %v5568_v29 = vld [vmem:[#allocation2 + $0xe8] sm:$0xff]  ;;  %5523 = vst.msk [vmem:[#allocation2 + $0x108] sm:$0xff] %vm5440_vm2, %v5424_v31  ;;  %v5427_v62 = vmul.f32 %v19268_v45, %v5105_v41  ;;  %v5104_v22 = vmax.f32 %v5058_v18, 0.0  ;;  %v5061_v12 = vadd.f32 %v18976_v38, %v5008_v53  ;;  %v5007_v33 = vadd.f32 %v4914_v60, %v4478_v21  ;;  %15441 = vmatprep.mubr.msk.f32.mxu1 %vm5440_vm2, %v5617_v10  ;;  %v19349_v45 = vpop.f32.mrf.mxu1  ;;  %v5362_v21 = vpop.permute.xlu1 %5361  ;;  %v22519_v18 = vld [vmem:[#allocation56_spill] sm:$0xff] }
 0x2c4   : > { %15519 = vmatmul.mubr.msk.f32.gmra.mxu0 %vm5440_vm2, %v5568_v29  ;;  %v15378_v54 = vpop.f32.mrf.mxu0  ;;  %15442 = vmatmul.mubr.msk.f32.gmra.mxu1 %vm5440_vm2, %v5618_v13  ;;  %v5571_v28 = vld [vmem:[#allocation2 + $0x100] sm:$0xff]  ;;  %v3955_v6 = vadd.f32 %v22518_v19, %v3426_v27  ;;  %v3428_v53 = vadd.f32 %v22519_v18, %v2899_v49  ;;  %v22520_v0 = vld [vmem:[#allocation60_spill] sm:$0xff]  ;;  %v4485_v39 = vadd.f32 %v19305_v16, %v22521_v9 }
 0x2c5   : > { %15521 = vmatprep.mubr.msk.f32.mxu0 %vm5440_vm2, %v5569_v34  ;;  %5526 = vst.msk [vmem:[#allocation2 + $0x120] sm:$0xff] %vm5440_vm2, %v5427_v62  ;;  %v5426_v42 = vmul.f32 %v19279_v25, %v5104_v22  ;;  %v5107_v58 = vmax.f32 %v5061_v12, 0.0  ;;  %v5060_v50 = vadd.f32 %v18976_v38, %v5007_v33  ;;  %v5010_v43 = vadd.f32 %v15378_v54, %v4481_v3  ;;  %v22522_v12 = vld [vmem:[#allocation97_spill] sm:$0xff]  ;;  %v22524_v11 = vld [vmem:[#allocation96_spill] sm:$0xff] }
 0x2c6   : > { %v4924_v1 = vpop.f32.mrf.mxu0  ;;  %v5619_v17 = vld [vmem:[#allocation2 + $0xf1] sm:$0xff]  ;;  %v5620_v35 = vld [vmem:[#allocation2 + $0xf9] sm:$0xff]  ;;  %v2901_v37 = vadd.f32 %v22520_v0, %v2372_v30  ;;  %v4484_v16 = vadd.f32 %v19327_v52, %v3955_v6  ;;  %v3957_v33 = vadd.f32 %v22522_v12, %v3428_v53  ;;  %v4487_v54 = vadd.f32 %v19349_v45, %v22524_v11  ;;  %v22525_v45 = vld [vmem:[#allocation99_spill] sm:$0xff] }
 0x2c7   : > { %v5570_v26 = vld [vmem:[#allocation2 + $0xf8] sm:$0xff]  ;;  %5525 = vst.msk [vmem:[#allocation2 + $0x118] sm:$0xff] %vm5440_vm2, %v5426_v42  ;;  %v5429_v46 = vmul.f32 %v19301_v61, %v5107_v58  ;;  %v5106_v25 = vmax.f32 %v5060_v50, 0.0  ;;  %v5063_v63 = vadd.f32 %v18976_v38, %v5010_v43  ;;  %v5009_v51 = vadd.f32 %v4924_v1, %v4480_v20  ;;  %15444 = vmatprep.mubr.msk.f32.mxu1 %vm5440_vm2, %v5619_v17  ;;  %v4425_v61 = vpop.f32.mrf.mxu1  ;;  %v22523_v20 = vld [vmem:[#allocation58_spill] sm:$0xff]  ;;  %v5372_v42 = vpop.permute.xlu1 %5371 }
 0x2c8   : > { %15522 = vmatmul.mubr.msk.f32.gmra.mxu0 %vm5440_vm2, %v5570_v26  ;;  %v15381_v36 = vpop.f32.mrf.mxu0  ;;  %15445 = vmatmul.mubr.msk.f32.gmra.mxu1 %vm5440_vm2, %v5620_v35  ;;  %v5573_v22 = vld [vmem:[#allocation2 + $0x110] sm:$0xff]  ;;  %v3430_v5 = vadd.f32 %v22523_v20, %v2901_v37  ;;  %v5367_v1 = vpop.permute.xlu0 %5366 }
 0x2c9   : > { %15524 = vmatprep.mubr.msk.f32.mxu0 %vm5440_vm2, %v5571_v28  ;;  %5528 = vst.msk [vmem:[#allocation2 + $0x130] sm:$0xff] %vm5440_vm2, %v5429_v46  ;;  %v5428_v40 = vmul.f32 %v19314_v48, %v5106_v25  ;;  %v5109_v14 = vmax.f32 %v5063_v63, 0.0  ;;  %v5062_v31 = vadd.f32 %v18976_v38, %v5009_v51  ;;  %v5012_v41 = vadd.f32 %v15381_v36, %v4483_v59  ;;  %v15319_v32 = vpop.f32.mrf.mxu1  ;;  %v22526_v28 = vld [vmem:[#allocation98_spill] sm:$0xff] }
 0x2ca   : > { %v4934_v56 = vpop.f32.mrf.mxu0  ;;  %v5621_v3 = vld [vmem:[#allocation2 + $0x101] sm:$0xff]  ;;  %v5622_v10 = vld [vmem:[#allocation2 + $0x109] sm:$0xff]  ;;  %v4486_v59 = vadd.f32 %v4425_v61, %v3957_v33  ;;  %v3959_v17 = vadd.f32 %v22525_v45, %v3430_v5  ;;  %v4489_v57 = vadd.f32 %v15319_v32, %v22526_v28  ;;  %v6507_v45 = vld [vmem:[#allocation2 + $0x12] sm:$0xff] }
 0x2cb   : > { %v5572_v60 = vld [vmem:[#allocation2 + $0x108] sm:$0xff]  ;;  %5527 = vst.msk [vmem:[#allocation2 + $0x128] sm:$0xff] %vm5440_vm2, %v5428_v40  ;;  %v5431_v48 = vmul.f32 %v19336_v7, %v5109_v14  ;;  %v5108_v29 = vmax.f32 %v5062_v31, 0.0  ;;  %v5065_v13 = vadd.f32 %v18976_v38, %v5012_v41  ;;  %v5011_v62 = vadd.f32 %v4934_v56, %v4482_v44  ;;  %15447 = vmatprep.mubr.msk.f32.mxu1 %vm5440_vm2, %v5621_v3  ;;  %v4435_v35 = vpop.f32.mrf.mxu1  ;;  %v5382_v31 = vpop.permute.xlu1 %5381 }
 0x2cc   : > { %15525 = vmatmul.mubr.msk.f32.gmra.mxu0 %vm5440_vm2, %v5572_v60  ;;  %v15384_v34 = vpop.f32.mrf.mxu0  ;;  %15448 = vmatmul.mubr.msk.f32.gmra.mxu1 %vm5440_vm2, %v5622_v10  ;;  %v5575_v8 = vld [vmem:[#allocation2 + $0x120] sm:$0xff]  ;;  %v4488_v14 = vadd.f32 %v4435_v35, %v3959_v17  ;;  %v5377_v9 = vpop.permute.xlu0 %5376  ;;  %v16538_v17 = vld [vmem:[%s22179_s3 + $0x98] sm:$0xff] }
 0x2cd   : > { %15527 = vmatprep.mubr.msk.f32.mxu0 %vm5440_vm2, %v5573_v22  ;;  %5530 = vst.msk [vmem:[#allocation2 + $0x140] sm:$0xff] %vm5440_vm2, %v5431_v48  ;;  %v5430_v7 = vmul.f32 %v5347_v55, %v5108_v29  ;;  %v5111_v38 = vmax.f32 %v5065_v13, 0.0  ;;  %v5064_v4 = vadd.f32 %v19389_v2, %v5011_v62  ;;  %v5014_v52 = vadd.f32 %v15384_v34, %v4485_v39  ;;  %v15401_v62 = vpop.f32.mrf.mxu1  ;;  %v16539_v35 = vld [vmem:[%s22179_s3 + $0xb8] sm:$0xff]  ;;  %v6509_v28 = vld [vmem:[#allocation2 + $0x22] sm:$0xff] }
 0x2ce   : > { %v4944_v58 = vpop.f32.mrf.mxu0  ;;  %v5623_v50 = vld [vmem:[#allocation2 + $0x111] sm:$0xff]  ;;  %v5624_v47 = vld [vmem:[#allocation2 + $0x119] sm:$0xff] }
 0x2cf   : > { %v5574_v43 = vld [vmem:[#allocation2 + $0x118] sm:$0xff]  ;;  %5529 = vst.msk [vmem:[#allocation2 + $0x138] sm:$0xff] %vm5440_vm2, %v5430_v7  ;;  %v5433_v55 = vmul.f32 %v5362_v21, %v5111_v38  ;;  %v5110_v27 = vmax.f32 %v5064_v4, 0.0  ;;  %v5067_v24 = vadd.f32 %v19389_v2, %v5014_v52  ;;  %v5013_v49 = vadd.f32 %v4944_v58, %v4484_v16  ;;  %15450 = vmatprep.mubr.msk.f32.mxu1 %vm5440_vm2, %v5623_v50  ;;  %v5392_v32 = vpop.permute.xlu1 %5391 }
 0x2d0   : > { %15528 = vmatmul.mubr.msk.f32.gmra.mxu0 %vm5440_vm2, %v5574_v43  ;;  %v15387_v26 = vpop.f32.mrf.mxu0  ;;  %15451 = vmatmul.mubr.msk.f32.gmra.mxu1 %vm5440_vm2, %v5624_v47  ;;  %v5577_v40 = vld [vmem:[#allocation2 + $0x130] sm:$0xff]  ;;  %v5387_v5 = vpop.permute.xlu0 %5386  ;;  %v6505_v43 = vld [vmem:[#allocation2 + $0x2] sm:$0xff] }
 0x2d1   : > { %15530 = vmatprep.mubr.msk.f32.mxu0 %vm5440_vm2, %v5575_v8  ;;  %5532 = vst.msk [vmem:[#allocation2 + $0x150] sm:$0xff] %vm5440_vm2, %v5433_v55  ;;  %v5432_v46 = vmul.f32 %v5357_v15, %v5110_v27  ;;  %v5113_v25 = vmax.f32 %v5067_v24, 0.0  ;;  %v5066_v63 = vadd.f32 %v19389_v2, %v5013_v49  ;;  %v5016_v51 = vadd.f32 %v15387_v26, %v4487_v54  ;;  %v7034_v24 = vld [vmem:[#allocation2 + $0x17] sm:$0xff]  ;;  %v6506_v49 = vld [vmem:[#allocation2 + $0xa] sm:$0xff]  ;;  %v7035_v8 = vld [vmem:[#allocation2 + $0x1f] sm:$0xff] }
 0x2d2   : > { %v4954_v23 = vpop.f32.mrf.mxu0  ;;  %v19405_v30 = vld [vmem:[#allocation2 + $0x121] sm:$0xff]  ;;  %v5626_v19 = vld [vmem:[#allocation2 + $0x129] sm:$0xff] }
 0x2d3   : > { %v5576_v44 = vld [vmem:[#allocation2 + $0x128] sm:$0xff]  ;;  %5531 = vst.msk [vmem:[#allocation2 + $0x148] sm:$0xff] %vm5440_vm2, %v5432_v46  ;;  %v5435_v6 = vmul.f32 %v5372_v42, %v5113_v25  ;;  %v5112_v21 = vmax.f32 %v5066_v63, 0.0  ;;  %v5069_v36 = vadd.f32 %v19389_v2, %v5016_v51  ;;  %v5015_v61 = vadd.f32 %v4954_v23, %v4486_v59  ;;  %15453 = vmatprep.mubr.msk.f32.mxu1 %vm5440_vm2, %v19405_v30  ;;  %v8140_v46 = vld [vmem:[%s22179_s3 + $0xb0] sm:$0xff]  ;;  %v6508_v25 = vld [vmem:[#allocation2 + $0x1a] sm:$0xff] }
 0x2d4   : > { %15531 = vmatmul.mubr.msk.f32.gmra.mxu0 %vm5440_vm2, %v5576_v44  ;;  %v15390_v41 = vpop.f32.mrf.mxu0  ;;  %15454 = vmatmul.mubr.msk.f32.gmra.mxu1 %vm5440_vm2, %v5626_v19  ;;  %v19428_v13 = vld [vmem:[#allocation2 + $0x140] sm:$0xff]  ;;  %v7037_v26 = vld [vmem:[#allocation2 + $0x2f] sm:$0xff]  ;;  %v7038_v63 = vld [vmem:[#allocation2 + $0x37] sm:$0xff] }
 0x2d5   : > { %15533 = vmatprep.mubr.msk.f32.mxu0 %vm5440_vm2, %v5577_v40  ;;  %5534 = vst.msk [vmem:[#allocation2 + $0x160] sm:$0xff] %vm5440_vm2, %v5435_v6  ;;  %v5434_v18 = vmul.f32 %v5367_v1, %v5112_v21  ;;  %v5115_v53 = vmax.f32 %v5069_v36, 0.0  ;;  %v5068_v0 = vadd.f32 %v19389_v2, %v5015_v61  ;;  %v5018_v37 = vadd.f32 %v15390_v41, %v4489_v57  ;;  %v7036_v59 = vld [vmem:[#allocation2 + $0x27] sm:$0xff]  ;;  %v7611_v1 = vld [vmem:[%s22179_s3 + $0x90] sm:$0xff]  ;;  %v7039_v57 = vld [vmem:[#allocation2 + $0x3f] sm:$0xff] }
 0x2d6   : > { %v4964_v39 = vpop.f32.mrf.mxu0  ;;  %v19416_v15 = vld [vmem:[#allocation2 + $0x131] sm:$0xff]  ;;  %v19420_v3 = vld [vmem:[#allocation2 + $0x139] sm:$0xff]  ;;  %v7610_v51 = vld [vmem:[%s22179_s3 + $0x88] sm:$0xff] }
 0x2d7   : > { %v19418_v56 = vld [vmem:[#allocation2 + $0x138] sm:$0xff]  ;;  %5533 = vst.msk [vmem:[#allocation2 + $0x158] sm:$0xff] %vm5440_vm2, %v5434_v18  ;;  %v5437_v60 = vmul.f32 %v5382_v31, %v5115_v53  ;;  %v5114_v10 = vmax.f32 %v5068_v0, 0.0  ;;  %v5071_v48 = vadd.f32 %v19389_v2, %v5018_v37  ;;  %v5017_v29 = vadd.f32 %v4964_v39, %v4488_v14  ;;  %15456 = vmatprep.mubr.msk.f32.mxu1 %vm5440_vm2, %v19416_v15  ;;  %v8139_v23 = vld [vmem:[%s22179_s3 + $0xa8] sm:$0xff]  ;;  %v7609_v6 = vld [vmem:[%s22179_s3 + $0x80] sm:$0xff] }
 0x2d8   : > { %15534 = vmatmul.mubr.msk.f32.gmra.mxu0 %vm5440_vm2, %v19418_v56  ;;  %15457 = vmatmul.mubr.msk.f32.gmra.mxu1 %vm5440_vm2, %v19420_v3  ;;  %v15478_v22 = vpop.f32.mrf.mxu0  ;;  %v6510_v44 = vld [vmem:[#allocation2 + $0x2a] sm:$0xff]  ;;  %v6511_v21 = vld [vmem:[#allocation2 + $0x32] sm:$0xff]  ;;  %v8138_v36 = vld [vmem:[%s22179_s3 + $0xa0] sm:$0xff] }
 0x2d9   : > { %15536 = vmatprep.mubr.msk.f32.mxu0 %vm5440_vm2, %v19428_v13  ;;  %5536 = vst.msk [vmem:[#allocation2 + $0x170] sm:$0xff] %vm5440_vm2, %v5437_v60  ;;  %v5436_v16 = vmul.f32 %v5377_v9, %v5114_v10  ;;  %v5117_v12 = vmax.f32 %v5071_v48, 0.0  ;;  %v5070_v33 = vadd.f32 %v19389_v2, %v5017_v29  ;;  %v19436_v34 = vadd.f32 %v15478_v22, %v15401_v62  ;;  %v19449_v2 = vld [vmem:[#allocation2 + $0x150] sm:$0xff]  ;;  %v7040_v19 = vld [vmem:[#allocation2 + $0x47] sm:$0xff]  ;;  %v6512_v40 = vld [vmem:[#allocation2 + $0x3a] sm:$0xff] }
 0x2da   : > { %v19438_v7 = vld [vmem:[#allocation2 + $0x141] sm:$0xff]  ;;  %v19442_v4 = vld [vmem:[#allocation2 + $0x149] sm:$0xff]  ;;  %v7042_v14 = vld [vmem:[#allocation2 + $0x57] sm:$0xff] }
 0x2db   : > { %v19440_v38 = vld [vmem:[#allocation2 + $0x148] sm:$0xff]  ;;  %5535 = vst.msk [vmem:[#allocation2 + $0x168] sm:$0xff] %vm5440_vm2, %v5436_v16  ;;  %v5439_v52 = vmul.f32 %v5392_v32, %v5117_v12  ;;  %v5116_v20 = vmax.f32 %v5070_v33, 0.0  ;;  %15459 = vmatprep.mubr.msk.f32.mxu1 %vm5440_vm2, %v19438_v7  ;;  %v19518_v31 = vld [vmem:[%s22179_s3 + $0xf8] sm:$0xff] }
 0x2dc   : > { %15537 = vmatmul.mubr.msk.f32.gmra.mxu0 %vm5440_vm2, %v19440_v38  ;;  %15460 = vmatmul.mubr.msk.f32.gmra.mxu1 %vm5440_vm2, %v19442_v4  ;;  %v5583_v50 = vld [vmem:[#allocation2 + $0x160] sm:$0xff]  ;;  %v7041_v61 = vld [vmem:[#allocation2 + $0x4f] sm:$0xff]  ;;  %v19525_v18 = vld [vmem:[%s22179_s3 + $0xd8] sm:$0xff] }
 0x2dd   : > { %15539 = vmatprep.mubr.msk.f32.mxu0 %vm5440_vm2, %v19449_v2  ;;  %5538 = vst.msk [vmem:[#allocation2 + $0x180] sm:$0xff] %vm5440_vm2, %v5439_v52  ;;  %v5438_v11 = vmul.f32 %v5387_v5, %v5116_v20  ;;  %v6513_v41 = vld [vmem:[#allocation2 + $0x42] sm:$0xff]  ;;  %v6514_v0 = vld [vmem:[#allocation2 + $0x4a] sm:$0xff]  ;;  %v6515_v9 = vld [vmem:[#allocation2 + $0x52] sm:$0xff] }
 0x2de   : > { %v19456_v54 = vld [vmem:[#allocation2 + $0x151] sm:$0xff]  ;;  %v19460_v58 = vld [vmem:[#allocation2 + $0x159] sm:$0xff]  ;;  %v7044_v37 = vld [vmem:[#allocation2 + $0x67] sm:$0xff] }
 0x2df   : > { %v19458_v42 = vld [vmem:[#allocation2 + $0x158] sm:$0xff]  ;;  %5537 = vst.msk [vmem:[#allocation2 + $0x178] sm:$0xff] %vm5440_vm2, %v5438_v11  ;;  %15462 = vmatprep.mubr.msk.f32.mxu1 %vm5440_vm2, %v19456_v54  ;;  %v7045_v39 = vld [vmem:[#allocation2 + $0x6f] sm:$0xff]  ;;  %v6517_v48 = vld [vmem:[#allocation2 + $0x62] sm:$0xff] }
 0x2e0   : > { %15540 = vmatmul.mubr.msk.f32.gmra.mxu0 %vm5440_vm2, %v19458_v42  ;;  %15463 = vmatmul.mubr.msk.f32.gmra.mxu1 %vm5440_vm2, %v19460_v58  ;;  %v7043_v53 = vld [vmem:[#allocation2 + $0x5f] sm:$0xff]  ;;  %v7046_v10 = vld [vmem:[#allocation2 + $0x77] sm:$0xff]  ;;  %v6518_v62 = vld [vmem:[#allocation2 + $0x6a] sm:$0xff] }
 0x2e1   : > { %15542 = vmatprep.mubr.msk.f32.mxu0 %vm5440_vm2, %v5583_v50  ;;  %v6516_v60 = vld [vmem:[#allocation2 + $0x5a] sm:$0xff]  ;;  %v7048_v22 = vld [vmem:[#allocation2 + $0x87] sm:$0xff]  ;;  %v6519_v16 = vld [vmem:[#allocation2 + $0x72] sm:$0xff] }
 0x2e2   : > { %v19470_v47 = vld [vmem:[#allocation2 + $0x161] sm:$0xff]  ;;  %v5634_v27 = vld [vmem:[#allocation2 + $0x169] sm:$0xff]  ;;  %v7050_v32 = vld [vmem:[#allocation2 + $0x97] sm:$0xff] }
 0x2e3   : > { %v5584_v55 = vld [vmem:[#allocation2 + $0x168] sm:$0xff]  ;;  %15465 = vmatprep.mubr.msk.f32.mxu1 %vm5440_vm2, %v19470_v47  ;;  %v7047_v29 = vld [vmem:[#allocation2 + $0x7f] sm:$0xff]  ;;  %v6523_v50 = vld [vmem:[#allocation2 + $0x92] sm:$0xff] }
 0x2e4   : > { %15543 = vmatmul.mubr.msk.f32.gmra.mxu0 %vm5440_vm2, %v5584_v55  ;;  %15466 = vmatmul.mubr.msk.f32.gmra.mxu1 %vm5440_vm2, %v5634_v27  ;;  %v7049_v12 = vld [vmem:[#allocation2 + $0x8f] sm:$0xff]  ;;  %v6520_v33 = vld [vmem:[#allocation2 + $0x7a] sm:$0xff]  ;;  %v6521_v52 = vld [vmem:[#allocation2 + $0x82] sm:$0xff] }
 0x2e5   : > { %15630 = vmatprep.mubr.msk.f32.mxu0 %vm5440_vm2, %v7034_v24  ;;  %15553 = vmatprep.mubr.msk.f32.mxu1 %vm5440_vm2, %v6505_v43  ;;  %v7051_v20 = vld [vmem:[#allocation2 + $0x9f] sm:$0xff]  ;;  %v6522_v5 = vld [vmem:[#allocation2 + $0x8a] sm:$0xff]  ;;  %v7054_v27 = vld [vmem:[#allocation2 + $0xb7] sm:$0xff] }
 0x2e6   : > { %v7052_v11 = vld [vmem:[#allocation2 + $0xa7] sm:$0xff]  ;;  %v7053_v43 = vld [vmem:[#allocation2 + $0xaf] sm:$0xff]  ;;  %v6524_v55 = vld [vmem:[#allocation2 + $0x9a] sm:$0xff] }
 0x2e7   : > { %v6525_v24 = vld [vmem:[#allocation2 + $0xa2] sm:$0xff] }
 0x2e8   : > { %15631 = vmatmul.mubr.msk.f32.vlgmr.msra.gmra.mxu0 %vm5440_vm2, %v7035_v8  ;;  %15554 = vmatmul.mubr.msk.f32.vlgmr.msra.gmra.mxu1 %vm5440_vm2, %v6506_v49  ;;  %v7055_v49 = vld [vmem:[#allocation2 + $0xbf] sm:$0xff]  ;;  %v6526_v8 = vld [vmem:[#allocation2 + $0xaa] sm:$0xff] }
 0x2e9   : > { %15633 = vmatprep.mubr.msk.f32.mxu0 %vm5440_vm2, %v7036_v59  ;;  %15556 = vmatprep.mubr.msk.f32.mxu1 %vm5440_vm2, %v6507_v45  ;;  %v7056_v59 = vld [vmem:[#allocation2 + $0xc7] sm:$0xff]  ;;  %v7057_v45 = vld [vmem:[#allocation2 + $0xcf] sm:$0xff] }
 0x2ea   : > { %15700 = vmatpush3.msra.mxu1 %v16538_v17  ;;  %15777 = vmatpush3.msra.mxu0 %v16539_v35  ;;  %v6528_v17 = vld [vmem:[#allocation2 + $0xba] sm:$0xff]  ;;  %v6529_v35 = vld [vmem:[#allocation2 + $0xc2] sm:$0xff] }
 0x2eb   : > { %15701 = vmatprep.subr.mxu1 %v7611_v1  ;;  %15778 = vmatprep.subr.mxu0 %v8140_v46 }
 0x2ec   : > { %15634 = vmatmul.mubr.msk.f32.gmra.mxu0 %vm5440_vm2, %v7037_v26  ;;  %15702 = vmatpush3.msra.mxu1 %v7611_v1  ;;  %v6527_v1 = vld [vmem:[#allocation2 + $0xb2] sm:$0xff] }
 0x2ed   : > { %15557 = vmatmul.mubr.msk.f32.gmra.mxu1 %vm5440_vm2, %v6508_v25  ;;  %15636 = vmatprep.mubr.msk.f32.mxu0 %vm5440_vm2, %v7038_v63  ;;  %v7058_v26 = vld [vmem:[#allocation2 + $0xd7] sm:$0xff]  ;;  %v6530_v25 = vld [vmem:[#allocation2 + $0xca] sm:$0xff] }
 0x2ee   : > { %15559 = vmatprep.mubr.msk.f32.mxu1 %vm5440_vm2, %v6509_v28  ;;  %15779 = vmatpush3.msra.mxu0 %v8140_v46  ;;  %v7059_v46 = vld [vmem:[#allocation2 + $0xdf] sm:$0xff]  ;;  %v7060_v63 = vld [vmem:[#allocation2 + $0xe7] sm:$0xff]  ;;  %v7061_v28 = vld [vmem:[#allocation2 + $0xef] sm:$0xff] }
 0x2ef   : > { %15703 = vmatprep.subr.mxu1 %v7610_v51  ;;  %15780 = vmatprep.subr.mxu0 %v8139_v23 }
 0x2f0   : > { %15637 = vmatmul.mubr.msk.f32.gmra.mxu0 %vm5440_vm2, %v7039_v57  ;;  %15704 = vmatpush3.msra.mxu1 %v7610_v51  ;;  %v6531_v51 = vld [vmem:[#allocation2 + $0xd2] sm:$0xff]  ;;  %v6532_v57 = vld [vmem:[#allocation2 + $0xda] sm:$0xff] }
 0x2f1   : > { %15560 = vmatmul.mubr.msk.f32.gmra.mxu1 %vm5440_vm2, %v6510_v44  ;;  %15639 = vmatprep.mubr.msk.f32.mxu0 %vm5440_vm2, %v7040_v19  ;;  %v6533_v44 = vld [vmem:[#allocation2 + $0xe2] sm:$0xff] }
 0x2f2   : > { %15562 = vmatprep.mubr.msk.f32.mxu1 %vm5440_vm2, %v6511_v21  ;;  %15781 = vmatpush3.msra.mxu0 %v8139_v23  ;;  %v7062_v23 = vld [vmem:[#allocation2 + $0xf7] sm:$0xff]  ;;  %v7063_v19 = vld [vmem:[#allocation2 + $0xff] sm:$0xff]  ;;  %v7064_v21 = vld [vmem:[#allocation2 + $0x107] sm:$0xff] }
 0x2f3   : > { %15705 = vmatprep.subr.mxu1 %v7609_v6  ;;  %15782 = vmatprep.subr.mxu0 %v8138_v36 }
 0x2f4   : > { %15640 = vmatmul.mubr.msk.f32.gmra.mxu0 %vm5440_vm2, %v7041_v61  ;;  %15706 = vmatpush3.msra.mxu1 %v7609_v6  ;;  %v6534_v6 = vld [vmem:[#allocation2 + $0xea] sm:$0xff] }
 0x2f5   : > { %15563 = vmatmul.mubr.msk.f32.gmra.mxu1 %vm5440_vm2, %v6512_v40  ;;  %15642 = vmatprep.mubr.msk.f32.mxu0 %vm5440_vm2, %v7042_v14  ;;  %v7065_v61 = vld [vmem:[#allocation2 + $0x10f] sm:$0xff]  ;;  %v6536_v40 = vld [vmem:[#allocation2 + $0xfa] sm:$0xff] }
 0x2f6   : > { %15565 = vmatprep.mubr.msk.f32.mxu1 %vm5440_vm2, %v6513_v41  ;;  %15783 = vmatpush3.msra.mxu0 %v8138_v36  ;;  %v6535_v36 = vld [vmem:[#allocation2 + $0xf2] sm:$0xff]  ;;  %v6537_v41 = vld [vmem:[#allocation2 + $0x102] sm:$0xff] }
 0x2f7   : > { %15930 = vmatprep.subr.mxu0 %v19518_v31  ;;  %15853 = vmatprep.subr.mxu1 %v19525_v18  ;;  %v7066_v14 = vld [vmem:[#allocation2 + $0x117] sm:$0xff] }
 0x2f8   : > { %15643 = vmatmul.mubr.msk.f32.gmra.mxu0 %vm5440_vm2, %v7043_v53  ;;  %v7067_v53 = vld [vmem:[#allocation2 + $0x11f] sm:$0xff] }
 0x2f9   : > { %15566 = vmatmul.mubr.msk.f32.gmra.mxu1 %vm5440_vm2, %v6514_v0  ;;  %15645 = vmatprep.mubr.msk.f32.mxu0 %vm5440_vm2, %v7044_v37  ;;  %v6538_v0 = vld [vmem:[#allocation2 + $0x10a] sm:$0xff] }
 0x2fa   : > { %15568 = vmatprep.mubr.msk.f32.mxu1 %vm5440_vm2, %v6515_v9  ;;  %v7068_v37 = vld [vmem:[#allocation2 + $0x127] sm:$0xff]  ;;  %v6539_v9 = vld [vmem:[#allocation2 + $0x112] sm:$0xff] }
 0x2fc   : > { %15646 = vmatmul.mubr.msk.f32.gmra.mxu0 %vm5440_vm2, %v7045_v39  ;;  %v7069_v39 = vld [vmem:[#allocation2 + $0x12f] sm:$0xff] }
 0x2fd   : > { %15569 = vmatmul.mubr.msk.f32.gmra.mxu1 %vm5440_vm2, %v6516_v60  ;;  %15648 = vmatprep.mubr.msk.f32.mxu0 %vm5440_vm2, %v7046_v10  ;;  %v6540_v60 = vld [vmem:[#allocation2 + $0x11a] sm:$0xff] }
 0x2fe   : > { %15571 = vmatprep.mubr.msk.f32.mxu1 %vm5440_vm2, %v6517_v48  ;;  %v7070_v10 = vld [vmem:[#allocation2 + $0x137] sm:$0xff]  ;;  %v6541_v48 = vld [vmem:[#allocation2 + $0x122] sm:$0xff] }
 0x300   : > { %15649 = vmatmul.mubr.msk.f32.gmra.mxu0 %vm5440_vm2, %v7047_v29  ;;  %v7071_v29 = vld [vmem:[#allocation2 + $0x13f] sm:$0xff] }
 0x301   : > { %15572 = vmatmul.mubr.msk.f32.gmra.mxu1 %vm5440_vm2, %v6518_v62  ;;  %15651 = vmatprep.mubr.msk.f32.mxu0 %vm5440_vm2, %v7048_v22  ;;  %v6542_v62 = vld [vmem:[#allocation2 + $0x12a] sm:$0xff] }
 0x302   : > { %15574 = vmatprep.mubr.msk.f32.mxu1 %vm5440_vm2, %v6519_v16  ;;  %v7072_v22 = vld [vmem:[#allocation2 + $0x147] sm:$0xff]  ;;  %v6543_v16 = vld [vmem:[#allocation2 + $0x132] sm:$0xff] }
 0x304   : > { %15652 = vmatmul.mubr.msk.f32.gmra.mxu0 %vm5440_vm2, %v7049_v12  ;;  %v7073_v12 = vld [vmem:[#allocation2 + $0x14f] sm:$0xff] }
 0x305   : > { %15575 = vmatmul.mubr.msk.f32.gmra.mxu1 %vm5440_vm2, %v6520_v33  ;;  %15654 = vmatprep.mubr.msk.f32.mxu0 %vm5440_vm2, %v7050_v32  ;;  %v6544_v33 = vld [vmem:[#allocation2 + $0x13a] sm:$0xff] }
 0x306   : > { %15577 = vmatprep.mubr.msk.f32.mxu1 %vm5440_vm2, %v6521_v52  ;;  %v7074_v32 = vld [vmem:[#allocation2 + $0x157] sm:$0xff]  ;;  %v6545_v52 = vld [vmem:[#allocation2 + $0x142] sm:$0xff] }
 0x308   : > { %15655 = vmatmul.mubr.msk.f32.gmra.mxu0 %vm5440_vm2, %v7051_v20  ;;  %v7075_v20 = vld [vmem:[#allocation2 + $0x15f] sm:$0xff] }
 0x309   : > { %15578 = vmatmul.mubr.msk.f32.gmra.mxu1 %vm5440_vm2, %v6522_v5  ;;  %15657 = vmatprep.mubr.msk.f32.mxu0 %vm5440_vm2, %v7052_v11  ;;  %v6546_v5 = vld [vmem:[#allocation2 + $0x14a] sm:$0xff] }
 0x30a   : > { %15580 = vmatprep.mubr.msk.f32.mxu1 %vm5440_vm2, %v6523_v50  ;;  %v7076_v11 = vld [vmem:[#allocation2 + $0x167] sm:$0xff]  ;;  %v6547_v50 = vld [vmem:[#allocation2 + $0x152] sm:$0xff] }
 0x30c   : > { %15658 = vmatmul.mubr.msk.f32.gmra.mxu0 %vm5440_vm2, %v7053_v43  ;;  %v7077_v43 = vld [vmem:[#allocation2 + $0x16f] sm:$0xff] }
 0x30d   : > { %15581 = vmatmul.mubr.msk.f32.gmra.mxu1 %vm5440_vm2, %v6524_v55  ;;  %15660 = vmatprep.mubr.msk.f32.mxu0 %vm5440_vm2, %v7054_v27  ;;  %v6548_v55 = vld [vmem:[#allocation2 + $0x15a] sm:$0xff] }
 0x30e   : > { %15583 = vmatprep.mubr.msk.f32.mxu1 %vm5440_vm2, %v6525_v24  ;;  %v7078_v27 = vld [vmem:[#allocation2 + $0x177] sm:$0xff]  ;;  %v6549_v24 = vld [vmem:[#allocation2 + $0x162] sm:$0xff] }
 0x310   : > { %15661 = vmatmul.mubr.msk.f32.gmra.mxu0 %vm5440_vm2, %v7055_v49  ;;  %v7079_v49 = vld [vmem:[#allocation2 + $0x17f] sm:$0xff] }
 0x311   : > { %15584 = vmatmul.mubr.msk.f32.gmra.mxu1 %vm5440_vm2, %v6526_v8  ;;  %15663 = vmatprep.mubr.msk.f32.mxu0 %vm5440_vm2, %v7056_v59  ;;  %v6550_v8 = vld [vmem:[#allocation2 + $0x16a] sm:$0xff]  ;;  %v8092_v59 = vld [vmem:[#allocation2 + $0x19] sm:$0xff] }
 0x312   : > { %15586 = vmatprep.mubr.msk.f32.mxu1 %vm5440_vm2, %v6527_v1  ;;  %v7563_v1 = vld [vmem:[#allocation2 + $0x18] sm:$0xff] }
 0x314   : > { %15664 = vmatmul.mubr.msk.f32.gmra.mxu0 %vm5440_vm2, %v7057_v45  ;;  %v8093_v45 = vld [vmem:[#allocation2 + $0x21] sm:$0xff] }
 0x315   : > { %15587 = vmatmul.mubr.msk.f32.gmra.mxu1 %vm5440_vm2, %v6528_v17  ;;  %15666 = vmatprep.mubr.msk.f32.mxu0 %vm5440_vm2, %v7058_v26  ;;  %v7564_v17 = vld [vmem:[#allocation2 + $0x20] sm:$0xff]  ;;  %v8094_v26 = vld [vmem:[#allocation2 + $0x29] sm:$0xff] }
 0x316   : > { %15589 = vmatprep.mubr.msk.f32.mxu1 %vm5440_vm2, %v6529_v35  ;;  %v8669_v35 = vld [vmem:[%s22179_s3 + $0xd0] sm:$0xff] }
 0x318   : > { %15667 = vmatmul.mubr.msk.f32.gmra.mxu0 %vm5440_vm2, %v7059_v46  ;;  %v7565_v46 = vld [vmem:[#allocation2 + $0x28] sm:$0xff] }
 0x319   : > { %15590 = vmatmul.mubr.msk.f32.gmra.mxu1 %vm5440_vm2, %v6530_v25  ;;  %15669 = vmatprep.mubr.msk.f32.mxu0 %vm5440_vm2, %v7060_v63  ;;  %v8095_v25 = vld [vmem:[#allocation2 + $0x31] sm:$0xff] }
 0x31a   : > { %15592 = vmatprep.mubr.msk.f32.mxu1 %vm5440_vm2, %v6531_v51  ;;  %v9198_v63 = vld [vmem:[%s22179_s3 + $0xf0] sm:$0xff] }
 0x31b   : > { %v7566_v51 = vld [vmem:[#allocation2 + $0x30] sm:$0xff] }
 0x31c   : > { %15670 = vmatmul.mubr.msk.f32.gmra.mxu0 %vm5440_vm2, %v7061_v28  ;;  %v8096_v28 = vld [vmem:[#allocation2 + $0x39] sm:$0xff] }
 0x31d   : > { %15593 = vmatmul.mubr.msk.f32.gmra.mxu1 %vm5440_vm2, %v6532_v57  ;;  %15672 = vmatprep.mubr.msk.f32.mxu0 %vm5440_vm2, %v7062_v23  ;;  %v8668_v57 = vld [vmem:[%s22179_s3 + $0xc8] sm:$0xff] }
 0x31e   : > { %15595 = vmatprep.mubr.msk.f32.mxu1 %vm5440_vm2, %v6533_v44  ;;  %v9197_v23 = vld [vmem:[%s22179_s3 + $0xe8] sm:$0xff]  ;;  %v19629_v44 = vpop.f32.mrf.mxu0 }
 0x320   : > { %15673 = vmatmul.mubr.msk.f32.gmra.mxu0 %vm5440_vm2, %v7063_v19  ;;  %v7568_v19 = vld [vmem:[#allocation2 + $0x40] sm:$0xff] }
 0x321   : > { %15596 = vmatmul.mubr.msk.f32.gmra.mxu1 %vm5440_vm2, %v6534_v6  ;;  %15675 = vmatprep.mubr.msk.f32.mxu0 %vm5440_vm2, %v7064_v21  ;;  %v8098_v6 = vld [vmem:[#allocation2 + $0x49] sm:$0xff]  ;;  %v8667_v21 = vld [vmem:[%s22179_s3 + $0xc0] sm:$0xff] }
 0x322   : > { %15598 = vmatprep.mubr.msk.f32.mxu1 %vm5440_vm2, %v6535_v36  ;;  %v7569_v36 = vld [vmem:[#allocation2 + $0x48] sm:$0xff] }
 0x324   : > { %15676 = vmatmul.mubr.msk.f32.gmra.mxu0 %vm5440_vm2, %v7065_v61  ;;  %v9196_v61 = vld [vmem:[%s22179_s3 + $0xe0] sm:$0xff] }
 0x325   : > { %15599 = vmatmul.mubr.msk.f32.gmra.mxu1 %vm5440_vm2, %v6536_v40  ;;  %15678 = vmatprep.mubr.msk.f32.mxu0 %vm5440_vm2, %v7066_v14  ;;  %v19640_v40 = vpop.f32.mrf.mxu1  ;;  %v8099_v14 = vld [vmem:[#allocation2 + $0x51] sm:$0xff] }
 0x326   : > { %15601 = vmatprep.mubr.msk.f32.mxu1 %vm5440_vm2, %v6537_v41 }
 0x328   : > { %15679 = vmatmul.mubr.msk.f32.gmra.mxu0 %vm5440_vm2, %v7067_v53  ;;  %v7570_v53 = vld [vmem:[#allocation2 + $0x50] sm:$0xff] }
 0x329   : > { %15602 = vmatmul.mubr.msk.f32.gmra.mxu1 %vm5440_vm2, %v6538_v0  ;;  %15681 = vmatprep.mubr.msk.f32.mxu0 %vm5440_vm2, %v7068_v37  ;;  %v8100_v0 = vld [vmem:[#allocation2 + $0x59] sm:$0xff] }
 0x32a   : > { %15604 = vmatprep.mubr.msk.f32.mxu1 %vm5440_vm2, %v6539_v9  ;;  %v19646_v37 = vld [vmem:[%s22181_s5] sm:$0x3] }
 0x32c   : > { %15682 = vmatmul.mubr.msk.f32.gmra.mxu0 %vm5440_vm2, %v7069_v39  ;;  %v7571_v39 = vld [vmem:[#allocation2 + $0x58] sm:$0xff] }
 0x32d   : > { %15605 = vmatmul.mubr.msk.f32.gmra.mxu1 %vm5440_vm2, %v6540_v60  ;;  %15684 = vmatprep.mubr.msk.f32.mxu0 %vm5440_vm2, %v7070_v10  ;;  %v19653_v60 = vld [vmem:[%s22179_s3 + $0x118] sm:$0xff] }
 0x32e   : > { %15607 = vmatprep.mubr.msk.f32.mxu1 %vm5440_vm2, %v6541_v48 }
 0x330   : > { %15685 = vmatmul.mubr.msk.f32.gmra.mxu0 %vm5440_vm2, %v7071_v29 }
 0x331   : > { %15608 = vmatmul.mubr.msk.f32.gmra.mxu1 %vm5440_vm2, %v6542_v62  ;;  %15687 = vmatprep.mubr.msk.f32.mxu0 %vm5440_vm2, %v7072_v22  ;;  %v8101_v62 = vld [vmem:[#allocation2 + $0x61] sm:$0xff] }
 0x332   : > { %15610 = vmatprep.mubr.msk.f32.mxu1 %vm5440_vm2, %v6543_v16 }
 0x334   : > { %15688 = vmatmul.mubr.msk.f32.gmra.mxu0 %vm5440_vm2, %v7073_v12  ;;  %v7572_v12 = vld [vmem:[#allocation2 + $0x60] sm:$0xff] }
 0x335   : > { %15611 = vmatmul.mubr.msk.f32.gmra.mxu1 %vm5440_vm2, %v6544_v33  ;;  %15690 = vmatprep.mubr.msk.f32.mxu0 %vm5440_vm2, %v7074_v32  ;;  %v8102_v33 = vld [vmem:[#allocation2 + $0x69] sm:$0xff] }
 0x336   : > { %15613 = vmatprep.mubr.msk.f32.mxu1 %vm5440_vm2, %v6545_v52  ;;  %v7573_v52 = vld [vmem:[#allocation2 + $0x68] sm:$0xff] }
 0x338   : > { %15691 = vmatmul.mubr.msk.f32.gmra.mxu0 %vm5440_vm2, %v7075_v20 }
 0x339   : > { %15614 = vmatmul.mubr.msk.f32.gmra.mxu1 %vm5440_vm2, %v6546_v5  ;;  %15693 = vmatprep.mubr.msk.f32.mxu0 %vm5440_vm2, %v7076_v11 }
 0x33a   : > { %15616 = vmatprep.mubr.msk.f32.mxu1 %vm5440_vm2, %v6547_v50  ;;  %v8103_v50 = vld [vmem:[#allocation2 + $0x71] sm:$0xff] }
 0x33c   : > { %15694 = vmatmul.mubr.msk.f32.gmra.mxu0 %vm5440_vm2, %v7077_v43 }
 0x33d   : > { %15617 = vmatmul.mubr.msk.f32.gmra.mxu1 %vm5440_vm2, %v6548_v55  ;;  %15696 = vmatprep.mubr.msk.f32.mxu0 %vm5440_vm2, %v7078_v27  ;;  %v7574_v27 = vld [vmem:[#allocation2 + $0x70] sm:$0xff] }
 0x33e   : > { %15619 = vmatprep.mubr.msk.f32.mxu1 %vm5440_vm2, %v6549_v24  ;;  %v8104_v24 = vld [vmem:[#allocation2 + $0x79] sm:$0xff] }
 0x340   : > { %15697 = vmatmul.mubr.msk.f32.gmra.mxu0 %vm5440_vm2, %v7079_v49 }
 0x341   : > { %15620 = vmatmul.mubr.msk.f32.gmra.mxu1 %vm5440_vm2, %v6550_v8  ;;  %15784 = vmatprep.mubr.msk.f32.mxu0 %vm5440_vm2, %v8092_v59  ;;  %v7575_v8 = vld [vmem:[#allocation2 + $0x78] sm:$0xff] }
 0x342   : > { %15707 = vmatprep.mubr.msk.f32.mxu1 %vm5440_vm2, %v7563_v1 }
 0x344   : > { %15785 = vmatmul.mubr.msk.f32.vlgmr.msra.gmra.mxu0 %vm5440_vm2, %v8093_v45 }
 0x345   : > { %15708 = vmatmul.mubr.msk.f32.vlgmr.msra.gmra.mxu1 %vm5440_vm2, %v7564_v17  ;;  %15787 = vmatprep.mubr.msk.f32.mxu0 %vm5440_vm2, %v8094_v26  ;;  %v8105_v17 = vld [vmem:[#allocation2 + $0x81] sm:$0xff] }
 0x346   : > { %15710 = vmatprep.mubr.msk.f32.mxu1 %vm5440_vm2, %v7565_v46  ;;  %15854 = vmatpush3.msra.mxu1 %v19525_v18  ;;  %v7567_v18 = vld [vmem:[#allocation2 + $0x38] sm:$0xff]  ;;  %v7576_v46 = vld [vmem:[#allocation2 + $0x80] sm:$0xff] }
 0x347   : > { %15931 = vmatpush3.msra.mxu0 %v19518_v31  ;;  %15855 = vmatprep.subr.mxu1 %v8669_v35  ;;  %v8097_v31 = vld [vmem:[#allocation2 + $0x41] sm:$0xff] }
 0x348   : > { %15788 = vmatmul.mubr.msk.f32.gmra.mxu0 %vm5440_vm2, %v8095_v25  ;;  %15856 = vmatpush3.msra.mxu1 %v8669_v35  ;;  %v8106_v25 = vld [vmem:[#allocation2 + $0x89] sm:$0xff] }
 0x349   : > { %15711 = vmatmul.mubr.msk.f32.gmra.mxu1 %vm5440_vm2, %v7566_v51  ;;  %15790 = vmatprep.mubr.msk.f32.mxu0 %vm5440_vm2, %v8096_v28  ;;  %v7577_v51 = vld [vmem:[#allocation2 + $0x88] sm:$0xff] }
 0x34a   : > { %15713 = vmatprep.mubr.msk.f32.mxu1 %vm5440_vm2, %v7567_v18  ;;  %15932 = vmatprep.subr.mxu0 %v9198_v63 }
 0x34b   : > { %15933 = vmatpush3.msra.mxu0 %v9198_v63  ;;  %15857 = vmatprep.subr.mxu1 %v8668_v57 }
 0x34c   : > { %15791 = vmatmul.mubr.msk.f32.gmra.mxu0 %vm5440_vm2, %v8097_v31  ;;  %15858 = vmatpush3.msra.mxu1 %v8668_v57  ;;  %v8107_v31 = vld [vmem:[#allocation2 + $0x91] sm:$0xff] }
 0x34d   : > { %15714 = vmatmul.mubr.msk.f32.gmra.mxu1 %vm5440_vm2, %v7568_v19  ;;  %15793 = vmatprep.mubr.msk.f32.mxu0 %vm5440_vm2, %v8098_v6  ;;  %v7578_v6 = vld [vmem:[#allocation2 + $0x90] sm:$0xff] }
 0x34e   : > { %15716 = vmatprep.mubr.msk.f32.mxu1 %vm5440_vm2, %v7569_v36  ;;  %15934 = vmatprep.subr.mxu0 %v9197_v23 }
 0x34f   : > { %15935 = vmatpush3.msra.mxu0 %v9197_v23  ;;  %15859 = vmatprep.subr.mxu1 %v8667_v21 }
 0x350   : > { %v15481_v41 = vpop.f32.mrf.mxu0  ;;  %15794 = vmatmul.mubr.msk.f32.gmra.mxu0 %vm5440_vm2, %v8099_v14  ;;  %15936 = vmatprep.subr.mxu0 %v9196_v61  ;;  %v15404_v9 = vpop.f32.mrf.mxu1 }
 0x351   : > { %15717 = vmatmul.mubr.msk.f32.gmra.mxu1 %vm5440_vm2, %v7570_v53  ;;  %15796 = vmatprep.mubr.msk.f32.mxu0 %vm5440_vm2, %v8100_v0  ;;  %v19655_v10 = vadd.f32 %v15481_v41, %v15404_v9  ;;  %v8109_v0 = vld [vmem:[#allocation2 + $0xa1] sm:$0xff] }
 0x352   : > { %v6286_v48 = vpop.f32.mrf.mxu0  ;;  %15719 = vmatprep.mubr.msk.f32.mxu1 %vm5440_vm2, %v7571_v39  ;;  %15937 = vmatpush3.msra.mxu0 %v9196_v61  ;;  %v5853_v29 = vpop.f32.mrf.mxu1  ;;  %v7579_v61 = vld [vmem:[#allocation2 + $0x98] sm:$0xff] }
 0x353   : > { %15860 = vmatpush3.msra.mxu1 %v8667_v21  ;;  %16084 = vmatprep.subr.msk.mxu0 %vm581_vm0, %v19646_v37  ;;  %v19660_v22 = vadd.f32 %v6286_v48, %v5853_v29  ;;  %v8108_v21 = vld [vmem:[#allocation2 + $0x99] sm:$0xff]  ;;  %v8110_v29 = vld [vmem:[#allocation2 + $0xa9] sm:$0xff] }
 0x354   : > { %v15484_v16 = vpop.f32.mrf.mxu0  ;;  %15797 = vmatmul.mubr.msk.f32.gmra.mxu0 %vm5440_vm2, %v8101_v62  ;;  %16007 = vmatprep.subr.mxu1 %v19653_v60  ;;  %v15407_v32 = vpop.f32.mrf.mxu1  ;;  %v7580_v48 = vld [vmem:[#allocation2 + $0xa0] sm:$0xff] }
 0x355   : > { %15720 = vmatmul.mubr.msk.f32.gmra.mxu1 %vm5440_vm2, %v7572_v12  ;;  %15799 = vmatprep.mubr.msk.f32.mxu0 %vm5440_vm2, %v8102_v33  ;;  %v19666_v20 = vadd.f32 %v15484_v16, %v15407_v32  ;;  %v7581_v16 = vld [vmem:[#allocation2 + $0xa8] sm:$0xff] }
 0x356   : > { %v6296_v5 = vpop.f32.mrf.mxu0  ;;  %15722 = vmatprep.mubr.msk.f32.mxu1 %vm5440_vm2, %v7573_v52  ;;  %v5863_v11 = vpop.f32.mrf.mxu1  ;;  %v8111_v52 = vld [vmem:[#allocation2 + $0xb1] sm:$0xff] }
 0x357   : > { %v19669_v43 = vadd.f32 %v6296_v5, %v5863_v11 }
 0x358   : > { %v15487_v55 = vpop.f32.mrf.mxu0  ;;  %15800 = vmatmul.mubr.msk.f32.gmra.mxu0 %vm5440_vm2, %v8103_v50  ;;  %v15410_v49 = vpop.f32.mrf.mxu1  ;;  %v7582_v50 = vld [vmem:[#allocation2 + $0xb0] sm:$0xff] }
 0x359   : > { %15723 = vmatmul.mubr.msk.f32.gmra.mxu1 %vm5440_vm2, %v7574_v27  ;;  %15802 = vmatprep.mubr.msk.f32.mxu0 %vm5440_vm2, %v8104_v24  ;;  %v19674_v59 = vadd.f32 %v15487_v55, %v15410_v49  ;;  %v8112_v55 = vld [vmem:[#allocation2 + $0xb9] sm:$0xff] }
 0x35a   : > { %v6306_v1 = vpop.f32.mrf.mxu0  ;;  %15725 = vmatprep.mubr.msk.f32.mxu1 %vm5440_vm2, %v7575_v8  ;;  %v5873_v45 = vpop.f32.mrf.mxu1  ;;  %v7583_v24 = vld [vmem:[#allocation2 + $0xb8] sm:$0xff] }
 0x35b   : > { %v19677_v26 = vadd.f32 %v6306_v1, %v5873_v45  ;;  %v8113_v45 = vld [vmem:[#allocation2 + $0xc1] sm:$0xff] }
 0x35c   : > { %v15490_v35 = vpop.f32.mrf.mxu0  ;;  %15803 = vmatmul.mubr.msk.f32.gmra.mxu0 %vm5440_vm2, %v8105_v17  ;;  %v15413_v63 = vpop.f32.mrf.mxu1 }
 0x35d   : > { %15726 = vmatmul.mubr.msk.f32.gmra.mxu1 %vm5440_vm2, %v7576_v46  ;;  %15805 = vmatprep.mubr.msk.f32.mxu0 %vm5440_vm2, %v8106_v25  ;;  %v19682_v28 = vadd.f32 %v15490_v35, %v15413_v63  ;;  %v7584_v46 = vld [vmem:[#allocation2 + $0xc0] sm:$0xff]  ;;  %v8114_v25 = vld [vmem:[#allocation2 + $0xc9] sm:$0xff] }
 0x35e   : > { %v6316_v57 = vpop.f32.mrf.mxu0  ;;  %15728 = vmatprep.mubr.msk.f32.mxu1 %vm5440_vm2, %v7577_v51  ;;  %v5883_v18 = vpop.f32.mrf.mxu1  ;;  %v7585_v51 = vld [vmem:[#allocation2 + $0xc8] sm:$0xff] }
 0x35f   : > { %v19685_v23 = vadd.f32 %v6316_v57, %v5883_v18 }
 0x360   : > { %v15493_v19 = vpop.f32.mrf.mxu0  ;;  %15806 = vmatmul.mubr.msk.f32.gmra.mxu0 %vm5440_vm2, %v8107_v31  ;;  %v15416_v36 = vpop.f32.mrf.mxu1 }
 0x361   : > { %15729 = vmatmul.mubr.msk.f32.gmra.mxu1 %vm5440_vm2, %v7578_v6  ;;  %15808 = vmatprep.mubr.msk.f32.mxu0 %vm5440_vm2, %v8108_v21  ;;  %v19690_v14 = vadd.f32 %v15493_v19, %v15416_v36  ;;  %v8115_v19 = vld [vmem:[#allocation2 + $0xd1] sm:$0xff] }
 0x362   : > { %v6326_v41 = vpop.f32.mrf.mxu0  ;;  %15731 = vmatprep.mubr.msk.f32.mxu1 %vm5440_vm2, %v7579_v61  ;;  %v5893_v53 = vpop.f32.mrf.mxu1  ;;  %v7586_v36 = vld [vmem:[#allocation2 + $0xd0] sm:$0xff]  ;;  %v8116_v61 = vld [vmem:[#allocation2 + $0xd9] sm:$0xff] }
 0x363   : > { %v19693_v9 = vadd.f32 %v6326_v41, %v5893_v53  ;;  %v7587_v53 = vld [vmem:[#allocation2 + $0xd8] sm:$0xff] }
 0x364   : > { %v15496_v39 = vpop.f32.mrf.mxu0  ;;  %15809 = vmatmul.mubr.msk.f32.gmra.mxu0 %vm5440_vm2, %v8109_v0  ;;  %v15419_v62 = vpop.f32.mrf.mxu1 }
 0x365   : > { %15732 = vmatmul.mubr.msk.f32.gmra.mxu1 %vm5440_vm2, %v7580_v48  ;;  %15811 = vmatprep.mubr.msk.f32.mxu0 %vm5440_vm2, %v8110_v29  ;;  %v19698_v12 = vadd.f32 %v15496_v39, %v15419_v62  ;;  %v8117_v29 = vld [vmem:[#allocation2 + $0xe1] sm:$0xff] }
 0x366   : > { %v6336_v33 = vpop.f32.mrf.mxu0  ;;  %15734 = vmatprep.mubr.msk.f32.mxu1 %vm5440_vm2, %v7581_v16  ;;  %v5903_v32 = vpop.f32.mrf.mxu1 }
 0x367   : > { %v19701_v5 = vadd.f32 %v6336_v33, %v5903_v32  ;;  %v7588_v33 = vld [vmem:[#allocation2 + $0xe0] sm:$0xff]  ;;  %v8118_v32 = vld [vmem:[#allocation2 + $0xe9] sm:$0xff] }
 0x368   : > { %v15499_v11 = vpop.f32.mrf.mxu0  ;;  %15812 = vmatmul.mubr.msk.f32.gmra.mxu0 %vm5440_vm2, %v8111_v52  ;;  %v15422_v27 = vpop.f32.mrf.mxu1 }
 0x369   : > { %15735 = vmatmul.mubr.msk.f32.gmra.mxu1 %vm5440_vm2, %v7582_v50  ;;  %15814 = vmatprep.mubr.msk.f32.mxu0 %vm5440_vm2, %v8112_v55  ;;  %v19706_v49 = vadd.f32 %v15499_v11, %v15422_v27  ;;  %v7589_v11 = vld [vmem:[#allocation2 + $0xe8] sm:$0xff] }
 0x36a   : > { %v6346_v8 = vpop.f32.mrf.mxu0  ;;  %15737 = vmatprep.mubr.msk.f32.mxu1 %vm5440_vm2, %v7583_v24  ;;  %v5913_v1 = vpop.f32.mrf.mxu1 }
 0x36b   : > { %v19709_v17 = vadd.f32 %v6346_v8, %v5913_v1  ;;  %v16540_v1 = vld [vmem:[#allocation2 + $0xf1] sm:$0xff] }
 0x36c   : > { %v15502_v35 = vpop.f32.mrf.mxu0  ;;  %15815 = vmatmul.mubr.msk.f32.gmra.mxu0 %vm5440_vm2, %v8113_v45  ;;  %v15425_v63 = vpop.f32.mrf.mxu1  ;;  %v7590_v45 = vld [vmem:[#allocation2 + $0xf0] sm:$0xff] }
 0x36d   : > { %15738 = vmatmul.mubr.msk.f32.gmra.mxu1 %vm5440_vm2, %v7584_v46  ;;  %15817 = vmatprep.mubr.msk.f32.mxu0 %vm5440_vm2, %v8114_v25  ;;  %v19714_v57 = vadd.f32 %v15502_v35, %v15425_v63  ;;  %v16541_v46 = vld [vmem:[#allocation2 + $0xf9] sm:$0xff] }
 0x36e   : > { %v6356_v18 = vpop.f32.mrf.mxu0  ;;  %15740 = vmatprep.mubr.msk.f32.mxu1 %vm5440_vm2, %v7585_v51  ;;  %v5923_v31 = vpop.f32.mrf.mxu1  ;;  %v7591_v25 = vld [vmem:[#allocation2 + $0xf8] sm:$0xff] }
 0x36f   : > { %v19717_v6 = vadd.f32 %v6356_v18, %v5923_v31 }
 0x370   : > { %v15505_v21 = vpop.f32.mrf.mxu0  ;;  %15818 = vmatmul.mubr.msk.f32.gmra.mxu0 %vm5440_vm2, %v8115_v19  ;;  %v15428_v41 = vpop.f32.mrf.mxu1 }
 0x371   : > { %15741 = vmatmul.mubr.msk.f32.gmra.mxu1 %vm5440_vm2, %v7586_v36  ;;  %15820 = vmatprep.mubr.msk.f32.mxu0 %vm5440_vm2, %v8116_v61  ;;  %v19722_v0 = vadd.f32 %v15505_v21, %v15428_v41  ;;  %v16542_v21 = vld [vmem:[#allocation2 + $0x101] sm:$0xff]  ;;  %v16543_v41 = vld [vmem:[#allocation2 + $0x109] sm:$0xff] }
 0x372   : > { %v6366_v39 = vpop.f32.mrf.mxu0  ;;  %15743 = vmatprep.mubr.msk.f32.mxu1 %vm5440_vm2, %v7587_v53  ;;  %v5933_v48 = vpop.f32.mrf.mxu1  ;;  %v7592_v36 = vld [vmem:[#allocation2 + $0x100] sm:$0xff]  ;;  %v7593_v53 = vld [vmem:[#allocation2 + $0x108] sm:$0xff] }
 0x373   : > { %v19725_v62 = vadd.f32 %v6366_v39, %v5933_v48 }
 0x374   : > { %v15508_v16 = vpop.f32.mrf.mxu0  ;;  %15821 = vmatmul.mubr.msk.f32.gmra.mxu0 %vm5440_vm2, %v8117_v29  ;;  %v15431_v52 = vpop.f32.mrf.mxu1 }
 0x375   : > { %15744 = vmatmul.mubr.msk.f32.gmra.mxu1 %vm5440_vm2, %v7588_v33  ;;  %15823 = vmatprep.mubr.msk.f32.mxu0 %vm5440_vm2, %v8118_v32  ;;  %v19730_v50 = vadd.f32 %v15508_v16, %v15431_v52  ;;  %v16544_v32 = vld [vmem:[#allocation2 + $0x111] sm:$0xff] }
 0x376   : > { %v6376_v55 = vpop.f32.mrf.mxu0  ;;  %15746 = vmatprep.mubr.msk.f32.mxu1 %vm5440_vm2, %v7589_v11  ;;  %v5943_v27 = vpop.f32.mrf.mxu1  ;;  %v7594_v52 = vld [vmem:[#allocation2 + $0x110] sm:$0xff] }
 0x377   : > { %v19733_v24 = vadd.f32 %v6376_v55, %v5943_v27  ;;  %v16545_v55 = vld [vmem:[#allocation2 + $0x119] sm:$0xff] }
 0x378   : > { %v15511_v8 = vpop.f32.mrf.mxu0  ;;  %15824 = vmatmul.mubr.msk.f32.gmra.mxu0 %vm5440_vm2, %v16540_v1  ;;  %v15434_v35 = vpop.f32.mrf.mxu1  ;;  %v16546_v1 = vld [vmem:[#allocation2 + $0x118] sm:$0xff] }
 0x379   : > { %15747 = vmatmul.mubr.msk.f32.gmra.mxu1 %vm5440_vm2, %v7590_v45  ;;  %15826 = vmatprep.mubr.msk.f32.mxu0 %vm5440_vm2, %v16541_v46  ;;  %v19738_v63 = vadd.f32 %v15511_v8, %v15434_v35 }
 0x37a   : > { %v6386_v51 = vpop.f32.mrf.mxu0  ;;  %15749 = vmatprep.mubr.msk.f32.mxu1 %vm5440_vm2, %v7591_v25  ;;  %v5953_v18 = vpop.f32.mrf.mxu1 }
 0x37b   : > { %v19741_v31 = vadd.f32 %v6386_v51, %v5953_v18  ;;  %v16547_v51 = vld [vmem:[#allocation2 + $0x120] sm:$0xff]  ;;  %v16548_v18 = vld [vmem:[#allocation2 + $0x129] sm:$0xff] }
 0x37c   : > { %v15514_v19 = vpop.f32.mrf.mxu0  ;;  %15827 = vmatmul.mubr.msk.f32.gmra.mxu0 %vm5440_vm2, %v16542_v21  ;;  %v15437_v61 = vpop.f32.mrf.mxu1 }
 0x37d   : > { %15750 = vmatmul.mubr.msk.f32.gmra.mxu1 %vm5440_vm2, %v7592_v36  ;;  %15829 = vmatprep.mubr.msk.f32.mxu0 %vm5440_vm2, %v16543_v41  ;;  %v19746_v39 = vadd.f32 %v15514_v19, %v15437_v61  ;;  %v16549_v36 = vld [vmem:[#allocation2 + $0x128] sm:$0xff] }
 0x37e   : > { %v6396_v48 = vpop.f32.mrf.mxu0  ;;  %15752 = vmatprep.mubr.msk.f32.mxu1 %vm5440_vm2, %v7593_v53  ;;  %v5963_v29 = vpop.f32.mrf.mxu1 }
 0x37f   : > { %v19749_v16 = vadd.f32 %v6396_v48, %v5963_v29  ;;  %v16550_v48 = vld [vmem:[#allocation2 + $0x130] sm:$0xff] }
 0x380   : > { %v15517_v33 = vpop.f32.mrf.mxu0  ;;  %15830 = vmatmul.mubr.msk.f32.gmra.mxu0 %vm5440_vm2, %v16544_v32  ;;  %v15440_v11 = vpop.f32.mrf.mxu1 }
 0x381   : > { %15753 = vmatmul.mubr.msk.f32.gmra.mxu1 %vm5440_vm2, %v7594_v52  ;;  %15832 = vmatprep.mubr.msk.f32.mxu0 %vm5440_vm2, %v16545_v55  ;;  %v19754_v27 = vadd.f32 %v15517_v33, %v15440_v11 }
 0x382   : > { %v6406_v8 = vpop.f32.mrf.mxu0  ;;  %15755 = vmatprep.mubr.msk.f32.mxu1 %vm5440_vm2, %v16546_v1  ;;  %v5973_v45 = vpop.f32.mrf.mxu1 }
 0x383   : > { %v19757_v35 = vadd.f32 %v6406_v8, %v5973_v45 }
 0x384   : > { %v15520_v46 = vpop.f32.mrf.mxu0  ;;  %15833 = vmatmul.mubr.msk.f32.gmra.mxu0 %vm5440_vm2, %v19405_v30  ;;  %v15443_v25 = vpop.f32.mrf.mxu1 }
 0x385   : > { %15756 = vmatmul.mubr.msk.f32.gmra.mxu1 %vm5440_vm2, %v16547_v51  ;;  %15835 = vmatprep.mubr.msk.f32.mxu0 %vm5440_vm2, %v16548_v18  ;;  %v19763_v19 = vadd.f32 %v15520_v46, %v15443_v25  ;;  %v8134_v25 = vld [vmem:[#allocation2 + $0x169] sm:$0xff] }
 0x386   : > { %v6416_v21 = vpop.f32.mrf.mxu0  ;;  %15758 = vmatprep.mubr.msk.f32.mxu1 %vm5440_vm2, %v16549_v36  ;;  %v5983_v61 = vpop.f32.mrf.mxu1 }
 0x387   : > { %v19766_v41 = vadd.f32 %v6416_v21, %v5983_v61  ;;  %v8135_v21 = vld [vmem:[#allocation2 + $0x171] sm:$0xff] }
 0x388   : > { %v15523_v53 = vpop.f32.mrf.mxu0  ;;  %15836 = vmatmul.mubr.msk.f32.gmra.mxu0 %vm5440_vm2, %v19416_v15  ;;  %v15446_v30 = vpop.f32.mrf.mxu1 }
 0x389   : > { %15759 = vmatmul.mubr.msk.f32.gmra.mxu1 %vm5440_vm2, %v16550_v48  ;;  %15838 = vmatprep.mubr.msk.f32.mxu0 %vm5440_vm2, %v19420_v3  ;;  %v19773_v29 = vadd.f32 %v15523_v53, %v15446_v30  ;;  %v8136_v53 = vld [vmem:[#allocation2 + $0x179] sm:$0xff] }
 0x38a   : > { %v6426_v33 = vpop.f32.mrf.mxu0  ;;  %15761 = vmatprep.mubr.msk.f32.mxu1 %vm5440_vm2, %v19418_v56  ;;  %v5993_v32 = vpop.f32.mrf.mxu1  ;;  %v7607_v48 = vld [vmem:[#allocation2 + $0x178] sm:$0xff] }
 0x38b   : > { %v19777_v52 = vadd.f32 %v6426_v33, %v5993_v32 }
 0x38c   : > { %v15526_v11 = vpop.f32.mrf.mxu0  ;;  %15839 = vmatmul.mubr.msk.f32.gmra.mxu0 %vm5440_vm2, %v19438_v7  ;;  %v15449_v15 = vpop.f32.mrf.mxu1 }
 0x38d   : > { %15762 = vmatmul.mubr.msk.f32.gmra.mxu1 %vm5440_vm2, %v19428_v13  ;;  %15841 = vmatprep.mubr.msk.f32.mxu0 %vm5440_vm2, %v19442_v4  ;;  %v19785_v3 = vadd.f32 %v15526_v11, %v15449_v15  ;;  %v8137_v15 = vld [vmem:[#allocation2 + $0x181] sm:$0xff] }
 0x38e   : > { %v6436_v55 = vpop.f32.mrf.mxu0  ;;  %15764 = vmatprep.mubr.msk.f32.mxu1 %vm5440_vm2, %v19440_v38  ;;  %v6003_v56 = vpop.f32.mrf.mxu1 }
 0x38f   : > { %v19789_v8 = vadd.f32 %v6436_v55, %v6003_v56 }
 0x390   : > { %v15529_v1 = vpop.f32.mrf.mxu0  ;;  %15842 = vmatmul.mubr.msk.f32.gmra.mxu0 %vm5440_vm2, %v19456_v54  ;;  %v15452_v7 = vpop.f32.mrf.mxu1  ;;  %v7604_v54 = vld [vmem:[#allocation2 + $0x160] sm:$0xff] }
 0x391   : > { %15765 = vmatmul.mubr.msk.f32.gmra.mxu1 %vm5440_vm2, %v19449_v2  ;;  %15844 = vmatprep.mubr.msk.f32.mxu0 %vm5440_vm2, %v19460_v58  ;;  %v19797_v13 = vadd.f32 %v15529_v1, %v15452_v7  ;;  %v7605_v2 = vld [vmem:[#allocation2 + $0x168] sm:$0xff]  ;;  %v7608_v1 = vld [vmem:[#allocation2 + $0x180] sm:$0xff] }
 0x392   : > { %v6446_v4 = vpop.f32.mrf.mxu0  ;;  %15767 = vmatprep.mubr.msk.f32.mxu1 %vm5440_vm2, %v19458_v42  ;;  %v6013_v38 = vpop.f32.mrf.mxu1  ;;  %v9150_v7 = vld [vmem:[#allocation2 + $0x2f] sm:$0xff] }
 0x393   : > { %v19801_v45 = vadd.f32 %v6446_v4, %v6013_v38  ;;  %v8621_v38 = vld [vmem:[#allocation2 + $0x2e] sm:$0xff] }
 0x394   : > { %v15532_v46 = vpop.f32.mrf.mxu0  ;;  %15845 = vmatmul.mubr.msk.f32.gmra.mxu0 %vm5440_vm2, %v19470_v47  ;;  %v15455_v51 = vpop.f32.mrf.mxu1  ;;  %v7606_v47 = vld [vmem:[#allocation2 + $0x170] sm:$0xff] }
 0x395   : > { %15768 = vmatmul.mubr.msk.f32.gmra.mxu1 %vm5440_vm2, %v7604_v54  ;;  %15847 = vmatprep.mubr.msk.f32.mxu0 %vm5440_vm2, %v8134_v25  ;;  %v19807_v58 = vadd.f32 %v15532_v46, %v15455_v51  ;;  %v9151_v51 = vld [vmem:[#allocation2 + $0x37] sm:$0xff] }
 0x396   : > { %v6456_v18 = vpop.f32.mrf.mxu0  ;;  %15770 = vmatprep.mubr.msk.f32.mxu1 %vm5440_vm2, %v7605_v2  ;;  %v6023_v42 = vpop.f32.mrf.mxu1 }
 0x397   : > { %v19810_v36 = vadd.f32 %v6456_v18, %v6023_v42  ;;  %v8622_v42 = vld [vmem:[#allocation2 + $0x36] sm:$0xff] }
 0x398   : > { %v15535_v61 = vpop.f32.mrf.mxu0  ;;  %15848 = vmatmul.mubr.msk.f32.gmra.mxu0 %vm5440_vm2, %v8135_v21  ;;  %v15458_v30 = vpop.f32.mrf.mxu1  ;;  %v9152_v21 = vld [vmem:[#allocation2 + $0x3f] sm:$0xff] }
 0x399   : > { %15771 = vmatmul.mubr.msk.f32.gmra.mxu1 %vm5440_vm2, %v7606_v47  ;;  %15850 = vmatprep.mubr.msk.f32.mxu0 %vm5440_vm2, %v8136_v53  ;;  %v19815_v33 = vadd.f32 %v15535_v61, %v15458_v30  ;;  %v9727_v61 = vld [vmem:[%s22179_s3 + $0x110] sm:$0xff]  ;;  %v8623_v53 = vld [vmem:[#allocation2 + $0x3e] sm:$0xff] }
 0x39a   : > { %v6466_v32 = vpop.f32.mrf.mxu0  ;;  %15773 = vmatprep.mubr.msk.f32.mxu1 %vm5440_vm2, %v7607_v48  ;;  %v6033_v11 = vpop.f32.mrf.mxu1 }
 0x39b   : > { %v19818_v55 = vadd.f32 %v6466_v32, %v6033_v11  ;;  %v9153_v11 = vld [vmem:[#allocation2 + $0x47] sm:$0xff] }
 0x39c   : > { %v15538_v56 = vpop.f32.mrf.mxu0  ;;  %15851 = vmatmul.mubr.msk.f32.gmra.mxu0 %vm5440_vm2, %v8137_v15  ;;  %v15461_v4 = vpop.f32.mrf.mxu1  ;;  %v9726_v15 = vld [vmem:[%s22179_s3 + $0x108] sm:$0xff] }
 0x39d   : > { %15774 = vmatmul.mubr.msk.f32.gmra.mxu1 %vm5440_vm2, %v7608_v1  ;;  %15938 = vmatprep.mubr.msk.f32.mxu0 %vm5440_vm2, %v9150_v7  ;;  %v19823_v46 = vadd.f32 %v15538_v56, %v15461_v4  ;;  %v8624_v7 = vld [vmem:[#allocation2 + $0x46] sm:$0xff]  ;;  %v9154_v4 = vld [vmem:[#allocation2 + $0x4f] sm:$0xff] }
 0x39e   : > { %v6476_v54 = vpop.f32.mrf.mxu0  ;;  %15861 = vmatprep.mubr.msk.f32.mxu1 %vm5440_vm2, %v8621_v38  ;;  %v6043_v25 = vpop.f32.mrf.mxu1 }
 0x39f   : > { %v19826_v2 = vadd.f32 %v6476_v54, %v6043_v25 }
 0x3a0   : > { %v15541_v18 = vpop.f32.mrf.mxu0  ;;  %15939 = vmatmul.mubr.msk.f32.vlgmr.msra.gmra.mxu0 %vm5440_vm2, %v9151_v51  ;;  %v15464_v47 = vpop.f32.mrf.mxu1 }
 0x3a1   : > { %15862 = vmatmul.mubr.msk.f32.vlgmr.msra.gmra.mxu1 %vm5440_vm2, %v8622_v42  ;;  %15941 = vmatprep.mubr.msk.f32.mxu0 %vm5440_vm2, %v9152_v21  ;;  %v19834_v30 = vadd.f32 %v15541_v18, %v15464_v47  ;;  %v9155_v18 = vld [vmem:[#allocation2 + $0x57] sm:$0xff]  ;;  %v22527_v42 = vmov 0.0  }
 0x3a2   : > { %v6486_v48 = vpop.f32.mrf.mxu0  ;;  %15864 = vmatprep.mubr.msk.f32.mxu1 %vm5440_vm2, %v8623_v53  ;;  %16008 = vmatpush3.msra.mxu1 %v19653_v60  ;;  %v6053_v32 = vpop.f32.mrf.mxu1  ;;  %v8625_v60 = vld [vmem:[#allocation2 + $0x4e] sm:$0xff]  ;;  %v8626_v47 = vld [vmem:[#allocation2 + $0x56] sm:$0xff]  ;;  %v9156_v53 = vld [vmem:[#allocation2 + $0x5f] sm:$0xff] }
 0x3a3   : > { %16085 = vmatpush3.msk.msra.mxu0 %vm581_vm0, %v19646_v37  ;;  %16009 = vmatprep.subr.mxu1 %v9727_v61  ;;  %v19843_v56 = vadd.f32 %v6486_v48, %v6053_v32  ;;  %v9725_v37 = vld [vmem:[%s22179_s3 + $0x100] sm:$0xff] }
 0x3a4   : > { %v15544_v1 = vpop.f32.mrf.mxu0  ;;  %15942 = vmatmul.mubr.msk.f32.gmra.mxu0 %vm5440_vm2, %v9153_v11  ;;  %16010 = vmatpush3.msra.mxu1 %v9727_v61  ;;  %v15467_v38 = vpop.f32.mrf.mxu1  ;;  %v8627_v32 = vld [vmem:[#allocation2 + $0x5e] sm:$0xff]  ;;  %v6277_v11 = vadd.f32 %v19629_v44, %v19640_v40 }
 0x3a5   : > { %15865 = vmatmul.mubr.msk.f32.gmra.mxu1 %vm5440_vm2, %v8624_v7  ;;  %15944 = vmatprep.mubr.msk.f32.mxu0 %vm5440_vm2, %v9154_v4  ;;  %v19851_v54 = vadd.f32 %v15544_v1, %v15467_v38  ;;  %v9157_v4 = vld [vmem:[#allocation2 + $0x67] sm:$0xff] }
 0x3a6   : > { %v6496_v25 = vpop.f32.mrf.mxu0  ;;  %15867 = vmatprep.mubr.msk.f32.mxu1 %vm5440_vm2, %v8625_v60  ;;  %16011 = vmatprep.subr.mxu1 %v9726_v15  ;;  %v6063_v51 = vpop.f32.mrf.mxu1 }
 0x3a7   : > { %16012 = vmatpush3.msra.mxu1 %v9726_v15  ;;  %11393 = vmatprep.subr.mxu0 %v22527_v42  ;;  %v19855_v21 = vadd.f32 %v6496_v25, %v6063_v51  ;;  %v8628_v25 = vld [vmem:[#allocation2 + $0x66] sm:$0xff]  ;;  %v9158_v51 = vld [vmem:[#allocation2 + $0x6f] sm:$0xff] }
 0x3a8   : > { %v15632_v61 = vpop.f32.mrf.mxu0  ;;  %15945 = vmatmul.mubr.msk.f32.gmra.mxu0 %vm5440_vm2, %v9155_v18  ;;  %16013 = vmatprep.subr.mxu1 %v9725_v37  ;;  %v15555_v48 = vpop.f32.mrf.mxu1 }
 0x3a9   : > { %15868 = vmatmul.mubr.msk.f32.gmra.mxu1 %vm5440_vm2, %v8626_v47  ;;  %15947 = vmatprep.mubr.msk.f32.mxu0 %vm5440_vm2, %v9156_v53  ;;  %v6989_v15 = vadd.f32 %v15555_v48, %v19436_v34  ;;  %v8629_v34 = vld [vmem:[#allocation2 + $0x6e] sm:$0xff]  ;;  %v9159_v48 = vld [vmem:[#allocation2 + $0x77] sm:$0xff] }
 0x3aa   : > { %v7288_v1 = vpop.f32.mrf.mxu0  ;;  %15870 = vmatprep.mubr.msk.f32.mxu1 %vm5440_vm2, %v8627_v32  ;;  %16014 = vmatpush3.msra.mxu1 %v9725_v37  ;;  %v6759_v7 = vpop.f32.mrf.mxu1 }
 0x3ab   : > { %10958 = vmatprep.subr.mxu1 %v22527_v42  ;;  %v6988_v38 = vadd.f32 %v6759_v7, %v6277_v11  ;;  %v19866_v18 = vadd.f32 %v15632_v61, %v6989_v15  ;;  %v8630_v61 = vld [vmem:[#allocation2 + $0x76] sm:$0xff]  ;;  %v9160_v15 = vld [vmem:[#allocation2 + $0x7f] sm:$0xff] }
 0x3ac   : > { %v15635_v60 = vpop.f32.mrf.mxu0  ;;  %15948 = vmatmul.mubr.msk.f32.gmra.mxu0 %vm5440_vm2, %v9157_v4 }
 0x3ad   : > { %v15558_v47 = vpop.f32.mrf.mxu1  ;;  %15871 = vmatmul.mubr.msk.f32.gmra.mxu1 %vm5440_vm2, %v8628_v25  ;;  %15950 = vmatprep.mubr.msk.f32.mxu0 %vm5440_vm2, %v9158_v51  ;;  %v19872_v37 = vadd.f32 %v7288_v1, %v6988_v38  ;;  %v9161_v51 = vld [vmem:[#allocation2 + $0x87] sm:$0xff] }
 0x3ae   : > { %v6991_v44 = vadd.f32 %v15558_v47, %v19655_v10  ;;  %v7298_v40 = vpop.f32.mrf.mxu0  ;;  %15873 = vmatprep.mubr.msk.f32.mxu1 %vm5440_vm2, %v8629_v34  ;;  %v8631_v10 = vld [vmem:[#allocation2 + $0x7e] sm:$0xff] }
 0x3af   : > { %v6769_v53 = vpop.f32.mrf.mxu1 }
 0x3b0   : > { %v6990_v32 = vadd.f32 %v6769_v53, %v19660_v22  ;;  %v15638_v11 = vpop.f32.mrf.mxu0  ;;  %15951 = vmatmul.mubr.msk.f32.gmra.mxu0 %vm5440_vm2, %v9159_v48  ;;  %v19876_v7 = vadd.f32 %v15635_v60, %v6991_v44  ;;  %v8632_v60 = vld [vmem:[#allocation2 + $0x86] sm:$0xff]  ;;  %v9162_v44 = vld [vmem:[#allocation2 + $0x8f] sm:$0xff] }
 0x3b1   : > { %v15561_v4 = vpop.f32.mrf.mxu1  ;;  %15874 = vmatmul.mubr.msk.f32.gmra.mxu1 %vm5440_vm2, %v8630_v61  ;;  %15953 = vmatprep.mubr.msk.f32.mxu0 %vm5440_vm2, %v9160_v15  ;;  %v9163_v15 = vld [vmem:[#allocation2 + $0x97] sm:$0xff] }
 0x3b2   : > { %v6993_v1 = vadd.f32 %v15561_v4, %v19666_v20  ;;  %v7308_v38 = vpop.f32.mrf.mxu0  ;;  %15876 = vmatprep.mubr.msk.f32.mxu1 %vm5440_vm2, %v8631_v10  ;;  %v19882_v25 = vadd.f32 %v7298_v40, %v6990_v32  ;;  %v8633_v20 = vld [vmem:[#allocation2 + $0x8e] sm:$0xff] }
 0x3b3   : > { %v6779_v22 = vpop.f32.mrf.mxu1 }
 0x3b4   : > { %v6992_v47 = vadd.f32 %v6779_v22, %v19669_v43  ;;  %v15641_v34 = vpop.f32.mrf.mxu0  ;;  %15954 = vmatmul.mubr.msk.f32.gmra.mxu0 %vm5440_vm2, %v9161_v51  ;;  %v19886_v53 = vadd.f32 %v15638_v11, %v6993_v1  ;;  %v8634_v11 = vld [vmem:[#allocation2 + $0x96] sm:$0xff]  ;;  %v9164_v1 = vld [vmem:[#allocation2 + $0x9f] sm:$0xff] }
 0x3b5   : > { %v15564_v48 = vpop.f32.mrf.mxu1  ;;  %15877 = vmatmul.mubr.msk.f32.gmra.mxu1 %vm5440_vm2, %v8632_v60  ;;  %15956 = vmatprep.mubr.msk.f32.mxu0 %vm5440_vm2, %v9162_v44  ;;  %v9165_v44 = vld [vmem:[#allocation2 + $0xa7] sm:$0xff] }
 0x3b6   : > { %v6995_v40 = vadd.f32 %v15564_v48, %v19674_v59  ;;  %v7318_v32 = vpop.f32.mrf.mxu0  ;;  %15879 = vmatprep.mubr.msk.f32.mxu1 %vm5440_vm2, %v8633_v20  ;;  %v19892_v61 = vadd.f32 %v7308_v38, %v6992_v47  ;;  %v8635_v59 = vld [vmem:[#allocation2 + $0x9e] sm:$0xff] }
 0x3b7   : > { %v6789_v43 = vpop.f32.mrf.mxu1 }
 0x3b8   : > { %v6994_v4 = vadd.f32 %v6789_v43, %v19677_v26  ;;  %v15644_v10 = vpop.f32.mrf.mxu0  ;;  %15957 = vmatmul.mubr.msk.f32.gmra.mxu0 %vm5440_vm2, %v9163_v15  ;;  %v19896_v22 = vadd.f32 %v15641_v34, %v6995_v40  ;;  %v8636_v34 = vld [vmem:[#allocation2 + $0xa6] sm:$0xff]  ;;  %v9166_v40 = vld [vmem:[#allocation2 + $0xaf] sm:$0xff] }
 0x3b9   : > { %v15567_v51 = vpop.f32.mrf.mxu1  ;;  %15880 = vmatmul.mubr.msk.f32.gmra.mxu1 %vm5440_vm2, %v8634_v11  ;;  %15959 = vmatprep.mubr.msk.f32.mxu0 %vm5440_vm2, %v9164_v1  ;;  %v9167_v1 = vld [vmem:[#allocation2 + $0xb7] sm:$0xff] }
 0x3ba   : > { %v6997_v38 = vadd.f32 %v15567_v51, %v19682_v28  ;;  %v7328_v47 = vpop.f32.mrf.mxu0  ;;  %15882 = vmatprep.mubr.msk.f32.mxu1 %vm5440_vm2, %v8635_v59  ;;  %v19902_v60 = vadd.f32 %v7318_v32, %v6994_v4  ;;  %v8637_v28 = vld [vmem:[#allocation2 + $0xae] sm:$0xff] }
 0x3bb   : > { %v6799_v26 = vpop.f32.mrf.mxu1 }
 0x3bc   : > { %v6996_v48 = vadd.f32 %v6799_v26, %v19685_v23  ;;  %v15647_v20 = vpop.f32.mrf.mxu0  ;;  %15960 = vmatmul.mubr.msk.f32.gmra.mxu0 %vm5440_vm2, %v9165_v44  ;;  %v19906_v43 = vadd.f32 %v15644_v10, %v6997_v38  ;;  %v8638_v10 = vld [vmem:[#allocation2 + $0xb6] sm:$0xff]  ;;  %v9168_v38 = vld [vmem:[#allocation2 + $0xbf] sm:$0xff] }
 0x3bd   : > { %v15570_v15 = vpop.f32.mrf.mxu1  ;;  %15883 = vmatmul.mubr.msk.f32.gmra.mxu1 %vm5440_vm2, %v8636_v34  ;;  %15962 = vmatprep.mubr.msk.f32.mxu0 %vm5440_vm2, %v9166_v40  ;;  %v9169_v40 = vld [vmem:[#allocation2 + $0xc7] sm:$0xff] }
 0x3be   : > { %v6999_v32 = vadd.f32 %v15570_v15, %v19690_v14  ;;  %v7338_v4 = vpop.f32.mrf.mxu0  ;;  %15885 = vmatprep.mubr.msk.f32.mxu1 %vm5440_vm2, %v8637_v28  ;;  %v19912_v11 = vadd.f32 %v7328_v47, %v6996_v48  ;;  %v8639_v14 = vld [vmem:[#allocation2 + $0xbe] sm:$0xff] }
 0x3bf   : > { %v6809_v23 = vpop.f32.mrf.mxu1 }
 0x3c0   : > { %v6998_v51 = vadd.f32 %v6809_v23, %v19693_v9  ;;  %v15650_v59 = vpop.f32.mrf.mxu0  ;;  %15963 = vmatmul.mubr.msk.f32.gmra.mxu0 %vm5440_vm2, %v9167_v1  ;;  %v19916_v26 = vadd.f32 %v15647_v20, %v6999_v32  ;;  %v8640_v20 = vld [vmem:[#allocation2 + $0xc6] sm:$0xff]  ;;  %v9170_v32 = vld [vmem:[#allocation2 + $0xcf] sm:$0xff] }
 0x3c1   : > { %v15573_v44 = vpop.f32.mrf.mxu1  ;;  %15886 = vmatmul.mubr.msk.f32.gmra.mxu1 %vm5440_vm2, %v8638_v10  ;;  %15965 = vmatprep.mubr.msk.f32.mxu0 %vm5440_vm2, %v9168_v38  ;;  %v9171_v38 = vld [vmem:[#allocation2 + $0xd7] sm:$0xff] }
 0x3c2   : > { %v7001_v47 = vadd.f32 %v15573_v44, %v19698_v12  ;;  %v7348_v48 = vpop.f32.mrf.mxu0  ;;  %15888 = vmatprep.mubr.msk.f32.mxu1 %vm5440_vm2, %v8639_v14  ;;  %v19922_v34 = vadd.f32 %v7338_v4, %v6998_v51  ;;  %v8641_v12 = vld [vmem:[#allocation2 + $0xce] sm:$0xff] }
 0x3c3   : > { %v6819_v9 = vpop.f32.mrf.mxu1 }
 0x3c4   : > { %v7000_v15 = vadd.f32 %v6819_v9, %v19701_v5  ;;  %v15653_v28 = vpop.f32.mrf.mxu0  ;;  %15966 = vmatmul.mubr.msk.f32.gmra.mxu0 %vm5440_vm2, %v9169_v40  ;;  %v19926_v23 = vadd.f32 %v15650_v59, %v7001_v47  ;;  %v8642_v59 = vld [vmem:[#allocation2 + $0xd6] sm:$0xff]  ;;  %v9172_v47 = vld [vmem:[#allocation2 + $0xdf] sm:$0xff] }
 0x3c5   : > { %v15576_v1 = vpop.f32.mrf.mxu1  ;;  %15889 = vmatmul.mubr.msk.f32.gmra.mxu1 %vm5440_vm2, %v8640_v20  ;;  %15968 = vmatprep.mubr.msk.f32.mxu0 %vm5440_vm2, %v9170_v32  ;;  %v9173_v32 = vld [vmem:[#allocation2 + $0xe7] sm:$0xff] }
 0x3c6   : > { %v7003_v4 = vadd.f32 %v15576_v1, %v19706_v49  ;;  %v7358_v51 = vpop.f32.mrf.mxu0  ;;  %15891 = vmatprep.mubr.msk.f32.mxu1 %vm5440_vm2, %v8641_v12  ;;  %v19932_v10 = vadd.f32 %v7348_v48, %v7000_v15  ;;  %v8643_v49 = vld [vmem:[#allocation2 + $0xde] sm:$0xff] }
 0x3c7   : > { %v6829_v5 = vpop.f32.mrf.mxu1 }
 0x3c8   : > { %v7002_v44 = vadd.f32 %v6829_v5, %v19709_v17  ;;  %v15656_v14 = vpop.f32.mrf.mxu0  ;;  %15969 = vmatmul.mubr.msk.f32.gmra.mxu0 %vm5440_vm2, %v9171_v38  ;;  %v19936_v9 = vadd.f32 %v15653_v28, %v7003_v4  ;;  %v8644_v28 = vld [vmem:[#allocation2 + $0xe6] sm:$0xff]  ;;  %v9174_v4 = vld [vmem:[#allocation2 + $0xef] sm:$0xff] }
 0x3c9   : > { %v15579_v40 = vpop.f32.mrf.mxu1  ;;  %15892 = vmatmul.mubr.msk.f32.gmra.mxu1 %vm5440_vm2, %v8642_v59  ;;  %15971 = vmatprep.mubr.msk.f32.mxu0 %vm5440_vm2, %v9172_v47  ;;  %v9175_v47 = vld [vmem:[#allocation2 + $0xf7] sm:$0xff] }
 0x3ca   : > { %v7005_v48 = vadd.f32 %v15579_v40, %v19714_v57  ;;  %v7368_v15 = vpop.f32.mrf.mxu0  ;;  %15894 = vmatprep.mubr.msk.f32.mxu1 %vm5440_vm2, %v8643_v49  ;;  %v19942_v20 = vadd.f32 %v7358_v51, %v7002_v44  ;;  %v8645_v57 = vld [vmem:[#allocation2 + $0xee] sm:$0xff] }
 0x3cb   : > { %v6839_v17 = vpop.f32.mrf.mxu1 }
 0x3cc   : > { %v7004_v1 = vadd.f32 %v6839_v17, %v19717_v6  ;;  %v15659_v12 = vpop.f32.mrf.mxu0  ;;  %15972 = vmatmul.mubr.msk.f32.gmra.mxu0 %vm5440_vm2, %v9173_v32  ;;  %v19946_v5 = vadd.f32 %v15656_v14, %v7005_v48  ;;  %v8646_v14 = vld [vmem:[#allocation2 + $0xf6] sm:$0xff]  ;;  %v9176_v48 = vld [vmem:[#allocation2 + $0xff] sm:$0xff] }
 0x3cd   : > { %v15582_v38 = vpop.f32.mrf.mxu1  ;;  %15895 = vmatmul.mubr.msk.f32.gmra.mxu1 %vm5440_vm2, %v8644_v28  ;;  %15974 = vmatprep.mubr.msk.f32.mxu0 %vm5440_vm2, %v9174_v4  ;;  %v9177_v4 = vld [vmem:[#allocation2 + $0x107] sm:$0xff] }
 0x3ce   : > { %v7007_v51 = vadd.f32 %v15582_v38, %v19722_v0  ;;  %v7378_v44 = vpop.f32.mrf.mxu0  ;;  %15897 = vmatprep.mubr.msk.f32.mxu1 %vm5440_vm2, %v8645_v57  ;;  %v19952_v59 = vadd.f32 %v7368_v15, %v7004_v1  ;;  %v8647_v0 = vld [vmem:[#allocation2 + $0xfe] sm:$0xff] }
 0x3cf   : > { %v6849_v6 = vpop.f32.mrf.mxu1 }
 0x3d0   : > { %v7006_v40 = vadd.f32 %v6849_v6, %v19725_v62  ;;  %v15662_v49 = vpop.f32.mrf.mxu0  ;;  %15975 = vmatmul.mubr.msk.f32.gmra.mxu0 %vm5440_vm2, %v9175_v47  ;;  %v19956_v17 = vadd.f32 %v15659_v12, %v7007_v51  ;;  %v8648_v12 = vld [vmem:[#allocation2 + $0x106] sm:$0xff]  ;;  %v9178_v51 = vld [vmem:[#allocation2 + $0x10f] sm:$0xff] }
 0x3d1   : > { %v15585_v32 = vpop.f32.mrf.mxu1  ;;  %15898 = vmatmul.mubr.msk.f32.gmra.mxu1 %vm5440_vm2, %v8646_v14  ;;  %15977 = vmatprep.mubr.msk.f32.mxu0 %vm5440_vm2, %v9176_v48  ;;  %v9179_v48 = vld [vmem:[#allocation2 + $0x117] sm:$0xff] }
 0x3d2   : > { %v7009_v15 = vadd.f32 %v15585_v32, %v19730_v50  ;;  %v7388_v1 = vpop.f32.mrf.mxu0  ;;  %15900 = vmatprep.mubr.msk.f32.mxu1 %vm5440_vm2, %v8647_v0  ;;  %v19962_v28 = vadd.f32 %v7378_v44, %v7006_v40  ;;  %v8649_v50 = vld [vmem:[#allocation2 + $0x10e] sm:$0xff] }
 0x3d3   : > { %v6859_v62 = vpop.f32.mrf.mxu1 }
 0x3d4   : > { %v7008_v38 = vadd.f32 %v6859_v62, %v19733_v24  ;;  %v15665_v57 = vpop.f32.mrf.mxu0  ;;  %15978 = vmatmul.mubr.msk.f32.gmra.mxu0 %vm5440_vm2, %v9177_v4  ;;  %v19966_v6 = vadd.f32 %v15662_v49, %v7009_v15  ;;  %v8650_v49 = vld [vmem:[#allocation2 + $0x116] sm:$0xff]  ;;  %v9180_v15 = vld [vmem:[#allocation2 + $0x11f] sm:$0xff] }
 0x3d5   : > { %v15588_v47 = vpop.f32.mrf.mxu1  ;;  %15901 = vmatmul.mubr.msk.f32.gmra.mxu1 %vm5440_vm2, %v8648_v12  ;;  %15980 = vmatprep.mubr.msk.f32.mxu0 %vm5440_vm2, %v9178_v51  ;;  %v9181_v51 = vld [vmem:[#allocation2 + $0x127] sm:$0xff] }
 0x3d6   : > { %v7011_v44 = vadd.f32 %v15588_v47, %v19738_v63  ;;  %v7398_v40 = vpop.f32.mrf.mxu0  ;;  %15903 = vmatprep.mubr.msk.f32.mxu1 %vm5440_vm2, %v8649_v50  ;;  %v19972_v14 = vadd.f32 %v7388_v1, %v7008_v38  ;;  %v8651_v63 = vld [vmem:[#allocation2 + $0x11e] sm:$0xff] }
 0x3d7   : > { %v6869_v24 = vpop.f32.mrf.mxu1 }
 0x3d8   : > { %v7010_v32 = vadd.f32 %v6869_v24, %v19741_v31  ;;  %v15668_v0 = vpop.f32.mrf.mxu0  ;;  %15981 = vmatmul.mubr.msk.f32.gmra.mxu0 %vm5440_vm2, %v9179_v48  ;;  %v19976_v62 = vadd.f32 %v15665_v57, %v7011_v44  ;;  %v8652_v57 = vld [vmem:[#allocation2 + $0x126] sm:$0xff]  ;;  %v9182_v44 = vld [vmem:[#allocation2 + $0x12f] sm:$0xff] }
 0x3d9   : > { %v15591_v4 = vpop.f32.mrf.mxu1  ;;  %15904 = vmatmul.mubr.msk.f32.gmra.mxu1 %vm5440_vm2, %v8650_v49  ;;  %15983 = vmatprep.mubr.msk.f32.mxu0 %vm5440_vm2, %v9180_v15  ;;  %v9183_v15 = vld [vmem:[#allocation2 + $0x137] sm:$0xff] }
 0x3da   : > { %v7013_v1 = vadd.f32 %v15591_v4, %v19746_v39  ;;  %v7408_v38 = vpop.f32.mrf.mxu0  ;;  %15906 = vmatprep.mubr.msk.f32.mxu1 %vm5440_vm2, %v8651_v63  ;;  %v19982_v12 = vadd.f32 %v7398_v40, %v7010_v32  ;;  %v8653_v39 = vld [vmem:[#allocation2 + $0x12e] sm:$0xff] }
 0x3db   : > { %v6879_v31 = vpop.f32.mrf.mxu1 }
 0x3dc   : > { %v7012_v47 = vadd.f32 %v6879_v31, %v19749_v16  ;;  %v15671_v50 = vpop.f32.mrf.mxu0  ;;  %15984 = vmatmul.mubr.msk.f32.gmra.mxu0 %vm5440_vm2, %v9181_v51  ;;  %v19986_v24 = vadd.f32 %v15668_v0, %v7013_v1  ;;  %v8654_v0 = vld [vmem:[#allocation2 + $0x136] sm:$0xff]  ;;  %v9184_v1 = vld [vmem:[#allocation2 + $0x13f] sm:$0xff] }
 0x3dd   : > { %v15594_v48 = vpop.f32.mrf.mxu1  ;;  %15907 = vmatmul.mubr.msk.f32.gmra.mxu1 %vm5440_vm2, %v8652_v57  ;;  %15986 = vmatprep.mubr.msk.f32.mxu0 %vm5440_vm2, %v9182_v44  ;;  %v9185_v44 = vld [vmem:[#allocation2 + $0x147] sm:$0xff] }
 0x3de   : > { %v7015_v40 = vadd.f32 %v15594_v48, %v19754_v27  ;;  %v7418_v32 = vpop.f32.mrf.mxu0  ;;  %15909 = vmatprep.mubr.msk.f32.mxu1 %vm5440_vm2, %v8653_v39  ;;  %v19992_v49 = vadd.f32 %v7408_v38, %v7012_v47  ;;  %v8655_v27 = vld [vmem:[#allocation2 + $0x13e] sm:$0xff] }
 0x3df   : > { %v6889_v16 = vpop.f32.mrf.mxu1 }
 0x3e0   : > { %v7014_v4 = vadd.f32 %v6889_v16, %v19757_v35  ;;  %v15674_v63 = vpop.f32.mrf.mxu0  ;;  %15987 = vmatmul.mubr.msk.f32.gmra.mxu0 %vm5440_vm2, %v9183_v15  ;;  %v19996_v31 = vadd.f32 %v15671_v50, %v7015_v40  ;;  %v8656_v50 = vld [vmem:[#allocation2 + $0x146] sm:$0xff]  ;;  %v9186_v40 = vld [vmem:[#allocation2 + $0x14f] sm:$0xff] }
 0x3e1   : > { %v15597_v51 = vpop.f32.mrf.mxu1  ;;  %15910 = vmatmul.mubr.msk.f32.gmra.mxu1 %vm5440_vm2, %v8654_v0  ;;  %15989 = vmatprep.mubr.msk.f32.mxu0 %vm5440_vm2, %v9184_v1  ;;  %v9187_v1 = vld [vmem:[#allocation2 + $0x157] sm:$0xff] }
 0x3e2   : > { %v7017_v38 = vadd.f32 %v15597_v51, %v19763_v19  ;;  %v7428_v47 = vpop.f32.mrf.mxu0  ;;  %15912 = vmatprep.mubr.msk.f32.mxu1 %vm5440_vm2, %v8655_v27  ;;  %v20002_v57 = vadd.f32 %v7418_v32, %v7014_v4  ;;  %v8657_v19 = vld [vmem:[#allocation2 + $0x14e] sm:$0xff] }
 0x3e3   : > { %v6899_v35 = vpop.f32.mrf.mxu1 }
 0x3e4   : > { %22528 = vst [vmem:[#allocation23_spill] sm:$0xff] %v20002_v57  ;;  %v7016_v48 = vadd.f32 %v6899_v35, %v19766_v41  ;;  %v15677_v39 = vpop.f32.mrf.mxu0  ;;  %15990 = vmatmul.mubr.msk.f32.gmra.mxu0 %vm5440_vm2, %v9185_v44  ;;  %v20006_v16 = vadd.f32 %v15674_v63, %v7017_v38  ;;  %v8658_v63 = vld [vmem:[#allocation2 + $0x156] sm:$0xff]  ;;  %v9188_v38 = vld [vmem:[#allocation2 + $0x15f] sm:$0xff] }
 0x3e5   : > { %v15600_v15 = vpop.f32.mrf.mxu1  ;;  %15913 = vmatmul.mubr.msk.f32.gmra.mxu1 %vm5440_vm2, %v8656_v50  ;;  %15992 = vmatprep.mubr.msk.f32.mxu0 %vm5440_vm2, %v9186_v40  ;;  %v9189_v40 = vld [vmem:[#allocation2 + $0x167] sm:$0xff] }
 0x3e6   : > { %v7019_v32 = vadd.f32 %v15600_v15, %v19773_v29  ;;  %v7438_v4 = vpop.f32.mrf.mxu0  ;;  %15915 = vmatprep.mubr.msk.f32.mxu1 %vm5440_vm2, %v8657_v19  ;;  %v20012_v0 = vadd.f32 %v7428_v47, %v7016_v48  ;;  %v8659_v29 = vld [vmem:[#allocation2 + $0x15e] sm:$0xff] }
 0x3e7   : > { %v6909_v41 = vpop.f32.mrf.mxu1 }
 0x3e8   : > { %v7018_v51 = vadd.f32 %v6909_v41, %v19777_v52  ;;  %v15680_v27 = vpop.f32.mrf.mxu0  ;;  %15993 = vmatmul.mubr.msk.f32.gmra.mxu0 %vm5440_vm2, %v9187_v1  ;;  %v20016_v35 = vadd.f32 %v15677_v39, %v7019_v32  ;;  %v8660_v39 = vld [vmem:[#allocation2 + $0x166] sm:$0xff]  ;;  %v9190_v32 = vld [vmem:[#allocation2 + $0x16f] sm:$0xff] }
 0x3e9   : > { %v15603_v44 = vpop.f32.mrf.mxu1  ;;  %15916 = vmatmul.mubr.msk.f32.gmra.mxu1 %vm5440_vm2, %v8658_v63  ;;  %15995 = vmatprep.mubr.msk.f32.mxu0 %vm5440_vm2, %v9188_v38  ;;  %v9191_v38 = vld [vmem:[#allocation2 + $0x177] sm:$0xff] }
 0x3ea   : > { %v7021_v47 = vadd.f32 %v15603_v44, %v19785_v3  ;;  %v7448_v48 = vpop.f32.mrf.mxu0  ;;  %15918 = vmatprep.mubr.msk.f32.mxu1 %vm5440_vm2, %v8659_v29  ;;  %v20022_v50 = vadd.f32 %v7438_v4, %v7018_v51  ;;  %v8661_v3 = vld [vmem:[#allocation2 + $0x16e] sm:$0xff] }
 0x3eb   : > { %v6919_v52 = vpop.f32.mrf.mxu1 }
 0x3ec   : > { %v7020_v15 = vadd.f32 %v6919_v52, %v19789_v8  ;;  %v15683_v19 = vpop.f32.mrf.mxu0  ;;  %15996 = vmatmul.mubr.msk.f32.gmra.mxu0 %vm5440_vm2, %v9189_v40  ;;  %v20026_v41 = vadd.f32 %v15680_v27, %v7021_v47  ;;  %v8662_v27 = vld [vmem:[#allocation2 + $0x176] sm:$0xff]  ;;  %v9192_v47 = vld [vmem:[#allocation2 + $0x17f] sm:$0xff] }
 0x3ed   : > { %v15606_v1 = vpop.f32.mrf.mxu1  ;;  %15919 = vmatmul.mubr.msk.f32.gmra.mxu1 %vm5440_vm2, %v8660_v39  ;;  %15998 = vmatprep.mubr.msk.f32.mxu0 %vm5440_vm2, %v9190_v32  ;;  %v9194_v39 = vld [vmem:[#allocation2 + $0x18f] sm:$0xff] }
 0x3ee   : > { %v7023_v4 = vadd.f32 %v15606_v1, %v19797_v13  ;;  %v7458_v51 = vpop.f32.mrf.mxu0  ;;  %15921 = vmatprep.mubr.msk.f32.mxu1 %vm5440_vm2, %v8661_v3  ;;  %v20032_v63 = vadd.f32 %v7448_v48, %v7020_v15  ;;  %v8663_v13 = vld [vmem:[#allocation2 + $0x17e] sm:$0xff]  ;;  %v9193_v1 = vld [vmem:[#allocation2 + $0x187] sm:$0xff] }
 0x3ef   : > { %v6929_v8 = vpop.f32.mrf.mxu1  ;;  %v8665_v3 = vld [vmem:[#allocation2 + $0x18e] sm:$0xff] }
 0x3f0   : > { %22529 = vst [vmem:[#allocation34_spill] sm:$0xff] %v20032_v63  ;;  %v7022_v44 = vadd.f32 %v6929_v8, %v19801_v45  ;;  %v15686_v29 = vpop.f32.mrf.mxu0  ;;  %15999 = vmatmul.mubr.msk.f32.gmra.mxu0 %vm5440_vm2, %v9191_v38  ;;  %v20036_v52 = vadd.f32 %v15683_v19, %v7023_v4  ;;  %v8664_v8 = vld [vmem:[#allocation2 + $0x186] sm:$0xff]  ;;  %v10301_v63 = vld [vmem:[%s16675_s22 + $0x158] sm:$0xff] }
 0x3f1   : > { %v15609_v40 = vpop.f32.mrf.mxu1  ;;  %15922 = vmatmul.mubr.msk.f32.gmra.mxu1 %vm5440_vm2, %v8662_v27  ;;  %16001 = vmatprep.mubr.msk.f32.mxu0 %vm5440_vm2, %v9192_v47  ;;  %v8666_v47 = vld [vmem:[#allocation2 + $0x196] sm:$0xff] }
 0x3f2   : > { %v7025_v48 = vadd.f32 %v15609_v40, %v19807_v58  ;;  %v7468_v15 = vpop.f32.mrf.mxu0  ;;  %15924 = vmatprep.mubr.msk.f32.mxu1 %vm5440_vm2, %v8663_v13  ;;  %v20042_v45 = vadd.f32 %v7458_v51, %v7022_v44  ;;  %v9195_v58 = vld [vmem:[#allocation2 + $0x197] sm:$0xff] }
 0x3f3   : > { %v6939_v32 = vpop.f32.mrf.mxu1 }
 0x3f4   : > { %22530 = vst [vmem:[#allocation35_spill] sm:$0xff] %v20042_v45  ;;  %v7024_v19 = vadd.f32 %v6939_v32, %v19810_v36  ;;  %v15689_v4 = vpop.f32.mrf.mxu0  ;;  %16002 = vmatmul.mubr.msk.f32.gmra.mxu0 %vm5440_vm2, %v9193_v1  ;;  %v20046_v38 = vadd.f32 %v15686_v29, %v7025_v48  ;;  %v10261_v36 = vld [vmem:[%s16675_s22 + $0x18] sm:$0xff]  ;;  %v10262_v1 = vld [vmem:[%s16675_s22 + $0x20] sm:$0xff] }
 0x3f5   : > { %v15612_v27 = vpop.f32.mrf.mxu1  ;;  %15925 = vmatmul.mubr.msk.f32.gmra.mxu1 %vm5440_vm2, %v8664_v8  ;;  %16004 = vmatprep.mubr.msk.f32.mxu0 %vm5440_vm2, %v9194_v39 }
 0x3f6   : > { %v7027_v51 = vadd.f32 %v15612_v27, %v19815_v33  ;;  %v7478_v44 = vpop.f32.mrf.mxu0  ;;  %15927 = vmatprep.mubr.msk.f32.mxu1 %vm5440_vm2, %v8665_v3  ;;  %v20053_v40 = vadd.f32 %v7468_v15, %v7024_v19  ;;  %v9679_v33 = vld [vmem:[#allocation2 + $0x30] sm:$0xff]  ;;  %v10263_v19 = vld [vmem:[%s16675_s22 + $0x28] sm:$0xff] }
 0x3f7   : > { %v6949_v13 = vpop.f32.mrf.mxu1 }
 0x3f8   : > { %22531 = vst [vmem:[#allocation36_spill] sm:$0xff] %v20053_v40  ;;  %v7026_v29 = vadd.f32 %v6949_v13, %v19818_v55  ;;  %v15692_v48 = vpop.f32.mrf.mxu0  ;;  %16005 = vmatmul.mubr.msk.f32.gmra.mxu0 %vm5440_vm2, %v9195_v58  ;;  %v20057_v32 = vadd.f32 %v15689_v4, %v7027_v51  ;;  %v9680_v58 = vld [vmem:[#allocation2 + $0x38] sm:$0xff] }
 0x3f9   : > { %v15615_v39 = vpop.f32.mrf.mxu1  ;;  %15928 = vmatmul.mubr.msk.f32.gmra.mxu1 %vm5440_vm2, %v8666_v47  ;;  %16086 = vmatprep.mubr.msk.f32.mxu0 %vm442_vm1, %v10261_v36  ;;  %v10264_v36 = vld [vmem:[%s16675_s22 + $0x30] sm:$0xff] }
 0x3fa   : > { %v7029_v3 = vadd.f32 %v15615_v39, %v19823_v46  ;;  %v7488_v15 = vpop.f32.mrf.mxu0  ;;  %16015 = vmatprep.mubr.msk.f32.mxu1 %vm5440_vm2, %v9679_v33  ;;  %v20065_v55 = vadd.f32 %v7478_v44, %v7026_v29  ;;  %v9681_v46 = vld [vmem:[#allocation2 + $0x40] sm:$0xff] }
 0x3fb   : > { %v6959_v8 = vpop.f32.mrf.mxu1 }
 0x3fc   : > { %22532 = vst [vmem:[#allocation37_spill] sm:$0xff] %v20065_v55  ;;  %v7028_v4 = vadd.f32 %v6959_v8, %v19826_v2  ;;  %v15695_v27 = vpop.f32.mrf.mxu0  ;;  %16087 = vmatmul.mubr.msk.f32.vlgmr.msra.gmra.mxu0 %vm442_vm1, %v10262_v1  ;;  %v20069_v51 = vadd.f32 %v15692_v48, %v7029_v3  ;;  %v10265_v2 = vld [vmem:[%s16675_s22 + $0x38] sm:$0xff]  ;;  %v9682_v1 = vld [vmem:[#allocation2 + $0x48] sm:$0xff]  ;;  %v10266_v8 = vld [vmem:[%s16675_s22 + $0x40] sm:$0xff] }
 0x3fd   : > { %v15618_v47 = vpop.f32.mrf.mxu1  ;;  %16016 = vmatmul.mubr.msk.f32.vlgmr.msra.gmra.mxu1 %vm5440_vm2, %v9680_v58  ;;  %16089 = vmatprep.mubr.msk.f32.mxu0 %vm442_vm1, %v10263_v19 }
 0x3fe   : > { %v7031_v44 = vadd.f32 %v15618_v47, %v19834_v30  ;;  %v7498_v13 = vpop.f32.mrf.mxu0  ;;  %16018 = vmatprep.mubr.msk.f32.mxu1 %vm5440_vm2, %v9681_v46  ;;  %v20077_v29 = vadd.f32 %v7488_v15, %v7028_v4  ;;  %v9683_v30 = vld [vmem:[#allocation2 + $0x50] sm:$0xff] }
 0x3ff   : > { %v6969_v39 = vpop.f32.mrf.mxu1 }
 0x400   : > { %22533 = vst [vmem:[#allocation38_spill] sm:$0xff] %v20077_v29  ;;  %v7030_v48 = vadd.f32 %v6969_v39, %v19843_v56  ;;  %v15698_v33 = vpop.f32.mrf.mxu0  ;;  %16090 = vmatmul.mubr.msk.f32.gmra.mxu0 %vm442_vm1, %v10264_v36  ;;  %v20081_v3 = vadd.f32 %v15695_v27, %v7031_v44  ;;  %v10267_v56 = vld [vmem:[%s16675_s22 + $0x48] sm:$0xff]  ;;  %v9684_v36 = vld [vmem:[#allocation2 + $0x58] sm:$0xff]  ;;  %v10268_v39 = vld [vmem:[%s16675_s22 + $0x50] sm:$0xff] }
 0x401   : > { %v15621_v19 = vpop.f32.mrf.mxu1  ;;  %16019 = vmatmul.mubr.msk.f32.gmra.mxu1 %vm5440_vm2, %v9682_v1  ;;  %16092 = vmatprep.mubr.msk.f32.mxu0 %vm442_vm1, %v10265_v2 }
 0x402   : > { %v7033_v15 = vadd.f32 %v15621_v19, %v19851_v54  ;;  %v7508_v4 = vpop.f32.mrf.mxu0  ;;  %16021 = vmatprep.mubr.msk.f32.mxu1 %vm5440_vm2, %v9683_v30  ;;  %v20089_v58 = vadd.f32 %v7498_v13, %v7030_v48  ;;  %v9685_v54 = vld [vmem:[#allocation2 + $0x60] sm:$0xff] }
 0x403   : > { %v6979_v47 = vpop.f32.mrf.mxu1 }
 0x404   : > { %22534 = vst [vmem:[#allocation6_spill] sm:$0xff] %v20089_v58  ;;  %v7032_v27 = vadd.f32 %v6979_v47, %v19855_v21  ;;  %v15786_v46 = vpop.f32.mrf.mxu0  ;;  %16093 = vmatmul.mubr.msk.f32.gmra.mxu0 %vm442_vm1, %v10266_v8  ;;  %v20093_v44 = vadd.f32 %v15698_v33, %v7033_v15  ;;  %v10269_v21 = vld [vmem:[%s16675_s22 + $0x58] sm:$0xff]  ;;  %v9686_v8 = vld [vmem:[#allocation2 + $0x68] sm:$0xff]  ;;  %v10270_v47 = vld [vmem:[%s16675_s22 + $0x60] sm:$0xff] }
 0x405   : > { %v15709_v2 = vpop.f32.mrf.mxu1  ;;  %16022 = vmatmul.mubr.msk.f32.gmra.mxu1 %vm5440_vm2, %v9684_v36  ;;  %16095 = vmatprep.mubr.msk.f32.mxu0 %vm442_vm1, %v10267_v56 }
 0x406   : > { %v8047_v13 = vadd.f32 %v15709_v2, %v19866_v18  ;;  %v8346_v48 = vpop.f32.mrf.mxu0  ;;  %16024 = vmatprep.mubr.msk.f32.mxu1 %vm5440_vm2, %v9685_v54  ;;  %v20101_v1 = vadd.f32 %v7508_v4, %v7032_v27  ;;  %v9687_v18 = vld [vmem:[#allocation2 + $0x70] sm:$0xff] }
 0x407   : > { %v7817_v19 = vpop.f32.mrf.mxu1 }
 0x408   : > { %22535 = vst [vmem:[#allocation71_spill] sm:$0xff] %v20101_v1  ;;  %v8046_v33 = vadd.f32 %v7817_v19, %v19872_v37  ;;  %v15789_v30 = vpop.f32.mrf.mxu0  ;;  %16096 = vmatmul.mubr.msk.f32.gmra.mxu0 %vm442_vm1, %v10268_v39  ;;  %v20105_v15 = vadd.f32 %v15786_v46, %v8047_v13  ;;  %v10271_v37 = vld [vmem:[%s16675_s22 + $0x68] sm:$0xff]  ;;  %v9688_v39 = vld [vmem:[#allocation2 + $0x78] sm:$0xff]  ;;  %v10272_v19 = vld [vmem:[%s16675_s22 + $0x70] sm:$0xff] }
 0x409   : > { %v15712_v56 = vpop.f32.mrf.mxu1  ;;  %16025 = vmatmul.mubr.msk.f32.gmra.mxu1 %vm5440_vm2, %v9686_v8  ;;  %16098 = vmatprep.mubr.msk.f32.mxu0 %vm442_vm1, %v10269_v21 }
 0x40a   : > { %v8049_v4 = vadd.f32 %v15712_v56, %v19876_v7  ;;  %v8356_v27 = vpop.f32.mrf.mxu0  ;;  %16027 = vmatprep.mubr.msk.f32.mxu1 %vm5440_vm2, %v9687_v18  ;;  %v20113_v36 = vadd.f32 %v8346_v48, %v8046_v33  ;;  %v9689_v7 = vld [vmem:[#allocation2 + $0x80] sm:$0xff] }
 0x40b   : > { %v7827_v2 = vpop.f32.mrf.mxu1 }
 0x40c   : > { %v8048_v46 = vadd.f32 %v7827_v2, %v19882_v25  ;;  %v15792_v54 = vpop.f32.mrf.mxu0  ;;  %16099 = vmatmul.mubr.msk.f32.gmra.mxu0 %vm442_vm1, %v10270_v47  ;;  %v20117_v13 = vadd.f32 %v15789_v30, %v8049_v4  ;;  %v10273_v25 = vld [vmem:[%s16675_s22 + $0x78] sm:$0xff]  ;;  %v9690_v47 = vld [vmem:[#allocation2 + $0x88] sm:$0xff]  ;;  %v10274_v2 = vld [vmem:[%s16675_s22 + $0x80] sm:$0xff] }
 0x40d   : > { %v15715_v21 = vpop.f32.mrf.mxu1  ;;  %16028 = vmatmul.mubr.msk.f32.gmra.mxu1 %vm5440_vm2, %v9688_v39  ;;  %16101 = vmatprep.mubr.msk.f32.mxu0 %vm442_vm1, %v10271_v37 }
 0x40e   : > { %v8051_v48 = vadd.f32 %v15715_v21, %v19886_v53  ;;  %v8366_v33 = vpop.f32.mrf.mxu0  ;;  %16030 = vmatprep.mubr.msk.f32.mxu1 %vm5440_vm2, %v9689_v7  ;;  %v20125_v8 = vadd.f32 %v8356_v27, %v8048_v46  ;;  %v9691_v53 = vld [vmem:[#allocation2 + $0x90] sm:$0xff] }
 0x40f   : > { %v7837_v56 = vpop.f32.mrf.mxu1 }
 0x410   : > { %v8050_v30 = vadd.f32 %v7837_v56, %v19892_v61  ;;  %v15795_v18 = vpop.f32.mrf.mxu0  ;;  %16102 = vmatmul.mubr.msk.f32.gmra.mxu0 %vm442_vm1, %v10272_v19  ;;  %v20129_v4 = vadd.f32 %v15792_v54, %v8051_v48  ;;  %v10275_v61 = vld [vmem:[%s16675_s22 + $0x88] sm:$0xff]  ;;  %v9692_v19 = vld [vmem:[#allocation2 + $0x98] sm:$0xff]  ;;  %v10276_v56 = vld [vmem:[%s16675_s22 + $0x90] sm:$0xff] }
 0x411   : > { %v15718_v37 = vpop.f32.mrf.mxu1  ;;  %16031 = vmatmul.mubr.msk.f32.gmra.mxu1 %vm5440_vm2, %v9690_v47  ;;  %16104 = vmatprep.mubr.msk.f32.mxu0 %vm442_vm1, %v10273_v25 }
 0x412   : > { %v8053_v27 = vadd.f32 %v15718_v37, %v19896_v22  ;;  %v8376_v46 = vpop.f32.mrf.mxu0  ;;  %16033 = vmatprep.mubr.msk.f32.mxu1 %vm5440_vm2, %v9691_v53  ;;  %v20137_v39 = vadd.f32 %v8366_v33, %v8050_v30  ;;  %v9693_v22 = vld [vmem:[#allocation2 + $0xa0] sm:$0xff] }
 0x413   : > { %v7847_v21 = vpop.f32.mrf.mxu1 }
 0x414   : > { %v8052_v54 = vadd.f32 %v7847_v21, %v19902_v60  ;;  %v15798_v7 = vpop.f32.mrf.mxu0  ;;  %16105 = vmatmul.mubr.msk.f32.gmra.mxu0 %vm442_vm1, %v10274_v2  ;;  %v20141_v48 = vadd.f32 %v15795_v18, %v8053_v27  ;;  %v10277_v60 = vld [vmem:[%s16675_s22 + $0x98] sm:$0xff]  ;;  %v9694_v2 = vld [vmem:[#allocation2 + $0xa8] sm:$0xff]  ;;  %v10278_v21 = vld [vmem:[%s16675_s22 + $0xa0] sm:$0xff] }
 0x415   : > { %v15721_v25 = vpop.f32.mrf.mxu1  ;;  %16034 = vmatmul.mubr.msk.f32.gmra.mxu1 %vm5440_vm2, %v9692_v19  ;;  %16107 = vmatprep.mubr.msk.f32.mxu0 %vm442_vm1, %v10275_v61 }
 0x416   : > { %v8055_v33 = vadd.f32 %v15721_v25, %v19906_v43  ;;  %v8386_v30 = vpop.f32.mrf.mxu0  ;;  %16036 = vmatprep.mubr.msk.f32.mxu1 %vm5440_vm2, %v9693_v22  ;;  %v20149_v47 = vadd.f32 %v8376_v46, %v8052_v54  ;;  %v9695_v43 = vld [vmem:[#allocation2 + $0xb0] sm:$0xff] }
 0x417   : > { %v7857_v37 = vpop.f32.mrf.mxu1 }
 0x418   : > { %v8054_v18 = vadd.f32 %v7857_v37, %v19912_v11  ;;  %v15801_v53 = vpop.f32.mrf.mxu0  ;;  %16108 = vmatmul.mubr.msk.f32.gmra.mxu0 %vm442_vm1, %v10276_v56  ;;  %v20153_v27 = vadd.f32 %v15798_v7, %v8055_v33  ;;  %v10279_v11 = vld [vmem:[%s16675_s22 + $0xa8] sm:$0xff]  ;;  %v9696_v56 = vld [vmem:[#allocation2 + $0xb8] sm:$0xff]  ;;  %v10280_v37 = vld [vmem:[%s16675_s22 + $0xb0] sm:$0xff] }
 0x419   : > { %v15724_v61 = vpop.f32.mrf.mxu1  ;;  %16037 = vmatmul.mubr.msk.f32.gmra.mxu1 %vm5440_vm2, %v9694_v2  ;;  %16110 = vmatprep.mubr.msk.f32.mxu0 %vm442_vm1, %v10277_v60 }
 0x41a   : > { %v8057_v46 = vadd.f32 %v15724_v61, %v19916_v26  ;;  %v8396_v54 = vpop.f32.mrf.mxu0  ;;  %16039 = vmatprep.mubr.msk.f32.mxu1 %vm5440_vm2, %v9695_v43  ;;  %v20161_v19 = vadd.f32 %v8386_v30, %v8054_v18  ;;  %v9697_v26 = vld [vmem:[#allocation2 + $0xc0] sm:$0xff] }
 0x41b   : > { %v7867_v25 = vpop.f32.mrf.mxu1 }
 0x41c   : > { %v8056_v7 = vadd.f32 %v7867_v25, %v19922_v34  ;;  %v15804_v22 = vpop.f32.mrf.mxu0  ;;  %16111 = vmatmul.mubr.msk.f32.gmra.mxu0 %vm442_vm1, %v10278_v21  ;;  %v20165_v33 = vadd.f32 %v15801_v53, %v8057_v46  ;;  %v10281_v34 = vld [vmem:[%s16675_s22 + $0xb8] sm:$0xff]  ;;  %v9698_v21 = vld [vmem:[#allocation2 + $0xc8] sm:$0xff]  ;;  %v10282_v25 = vld [vmem:[%s16675_s22 + $0xc0] sm:$0xff] }
 0x41d   : > { %v15727_v60 = vpop.f32.mrf.mxu1  ;;  %16040 = vmatmul.mubr.msk.f32.gmra.mxu1 %vm5440_vm2, %v9696_v56  ;;  %16113 = vmatprep.mubr.msk.f32.mxu0 %vm442_vm1, %v10279_v11 }
 0x41e   : > { %v8059_v30 = vadd.f32 %v15727_v60, %v19926_v23  ;;  %v8406_v18 = vpop.f32.mrf.mxu0  ;;  %16042 = vmatprep.mubr.msk.f32.mxu1 %vm5440_vm2, %v9697_v26  ;;  %v20173_v2 = vadd.f32 %v8396_v54, %v8056_v7  ;;  %v9699_v23 = vld [vmem:[#allocation2 + $0xd0] sm:$0xff] }
 0x41f   : > { %v7877_v61 = vpop.f32.mrf.mxu1 }
 0x420   : > { %v8058_v53 = vadd.f32 %v7877_v61, %v19932_v10  ;;  %v15807_v43 = vpop.f32.mrf.mxu0  ;;  %16114 = vmatmul.mubr.msk.f32.gmra.mxu0 %vm442_vm1, %v10280_v37  ;;  %v20177_v46 = vadd.f32 %v15804_v22, %v8059_v30  ;;  %v10283_v10 = vld [vmem:[%s16675_s22 + $0xc8] sm:$0xff]  ;;  %v9700_v37 = vld [vmem:[#allocation2 + $0xd8] sm:$0xff]  ;;  %v10284_v61 = vld [vmem:[%s16675_s22 + $0xd0] sm:$0xff] }
 0x421   : > { %v15730_v11 = vpop.f32.mrf.mxu1  ;;  %16043 = vmatmul.mubr.msk.f32.gmra.mxu1 %vm5440_vm2, %v9698_v21  ;;  %16116 = vmatprep.mubr.msk.f32.mxu0 %vm442_vm1, %v10281_v34 }
 0x422   : > { %v8061_v54 = vadd.f32 %v15730_v11, %v19936_v9  ;;  %v8416_v7 = vpop.f32.mrf.mxu0  ;;  %16045 = vmatprep.mubr.msk.f32.mxu1 %vm5440_vm2, %v9699_v23  ;;  %v20185_v56 = vadd.f32 %v8406_v18, %v8058_v53  ;;  %v9701_v9 = vld [vmem:[#allocation2 + $0xe0] sm:$0xff] }
 0x423   : > { %v7887_v60 = vpop.f32.mrf.mxu1 }
 0x424   : > { %v8060_v22 = vadd.f32 %v7887_v60, %v19942_v20  ;;  %v15810_v26 = vpop.f32.mrf.mxu0  ;;  %16117 = vmatmul.mubr.msk.f32.gmra.mxu0 %vm442_vm1, %v10282_v25  ;;  %v20189_v30 = vadd.f32 %v15807_v43, %v8061_v54  ;;  %v10285_v20 = vld [vmem:[%s16675_s22 + $0xd8] sm:$0xff]  ;;  %v9702_v25 = vld [vmem:[#allocation2 + $0xe8] sm:$0xff]  ;;  %v10286_v60 = vld [vmem:[%s16675_s22 + $0xe0] sm:$0xff] }
 0x425   : > { %v15733_v34 = vpop.f32.mrf.mxu1  ;;  %16046 = vmatmul.mubr.msk.f32.gmra.mxu1 %vm5440_vm2, %v9700_v37  ;;  %16119 = vmatprep.mubr.msk.f32.mxu0 %vm442_vm1, %v10283_v10 }
 0x426   : > { %v8063_v18 = vadd.f32 %v15733_v34, %v19946_v5  ;;  %v8426_v53 = vpop.f32.mrf.mxu0  ;;  %16048 = vmatprep.mubr.msk.f32.mxu1 %vm5440_vm2, %v9701_v9  ;;  %v20197_v21 = vadd.f32 %v8416_v7, %v8060_v22  ;;  %v9703_v5 = vld [vmem:[#allocation2 + $0xf0] sm:$0xff] }
 0x427   : > { %v7897_v11 = vpop.f32.mrf.mxu1 }
 0x428   : > { %v8062_v43 = vadd.f32 %v7897_v11, %v19952_v59  ;;  %v15813_v23 = vpop.f32.mrf.mxu0  ;;  %16120 = vmatmul.mubr.msk.f32.gmra.mxu0 %vm442_vm1, %v10284_v61  ;;  %v20201_v54 = vadd.f32 %v15810_v26, %v8063_v18  ;;  %v10287_v59 = vld [vmem:[%s16675_s22 + $0xe8] sm:$0xff]  ;;  %v9704_v61 = vld [vmem:[#allocation2 + $0xf8] sm:$0xff]  ;;  %v10288_v11 = vld [vmem:[%s16675_s22 + $0xf0] sm:$0xff] }
 0x429   : > { %v15736_v10 = vpop.f32.mrf.mxu1  ;;  %16049 = vmatmul.mubr.msk.f32.gmra.mxu1 %vm5440_vm2, %v9702_v25  ;;  %16122 = vmatprep.mubr.msk.f32.mxu0 %vm442_vm1, %v10285_v20 }
 0x42a   : > { %v8065_v7 = vadd.f32 %v15736_v10, %v19956_v17  ;;  %v8436_v22 = vpop.f32.mrf.mxu0  ;;  %16051 = vmatprep.mubr.msk.f32.mxu1 %vm5440_vm2, %v9703_v5  ;;  %v20209_v37 = vadd.f32 %v8426_v53, %v8062_v43  ;;  %v9705_v17 = vld [vmem:[#allocation2 + $0x100] sm:$0xff] }
 0x42b   : > { %v7907_v34 = vpop.f32.mrf.mxu1 }
 0x42c   : > { %22536 = vst [vmem:[#allocation74_spill] sm:$0xff] %v20209_v37  ;;  %v8064_v26 = vadd.f32 %v7907_v34, %v19962_v28  ;;  %v15816_v9 = vpop.f32.mrf.mxu0  ;;  %16123 = vmatmul.mubr.msk.f32.gmra.mxu0 %vm442_vm1, %v10286_v60  ;;  %v20213_v18 = vadd.f32 %v15813_v23, %v8065_v7  ;;  %v10289_v28 = vld [vmem:[%s16675_s22 + $0xf8] sm:$0xff]  ;;  %v9706_v60 = vld [vmem:[#allocation2 + $0x108] sm:$0xff]  ;;  %v10290_v34 = vld [vmem:[%s16675_s22 + $0x100] sm:$0xff] }
 0x42d   : > { %v15739_v20 = vpop.f32.mrf.mxu1  ;;  %16052 = vmatmul.mubr.msk.f32.gmra.mxu1 %vm5440_vm2, %v9704_v61  ;;  %16125 = vmatprep.mubr.msk.f32.mxu0 %vm442_vm1, %v10287_v59 }
 0x42e   : > { %v8067_v53 = vadd.f32 %v15739_v20, %v19966_v6  ;;  %v8446_v43 = vpop.f32.mrf.mxu0  ;;  %16054 = vmatprep.mubr.msk.f32.mxu1 %vm5440_vm2, %v9705_v17  ;;  %v20221_v25 = vadd.f32 %v8436_v22, %v8064_v26  ;;  %v9707_v6 = vld [vmem:[#allocation2 + $0x110] sm:$0xff] }
 0x42f   : > { %v7917_v10 = vpop.f32.mrf.mxu1 }
 0x430   : > { %22537 = vst [vmem:[#allocation62_spill] sm:$0xff] %v20221_v25  ;;  %v8066_v23 = vadd.f32 %v7917_v10, %v19972_v14  ;;  %v15819_v5 = vpop.f32.mrf.mxu0  ;;  %16126 = vmatmul.mubr.msk.f32.gmra.mxu0 %vm442_vm1, %v10288_v11  ;;  %v20225_v7 = vadd.f32 %v15816_v9, %v8067_v53  ;;  %v10291_v14 = vld [vmem:[%s16675_s22 + $0x108] sm:$0xff]  ;;  %v9708_v11 = vld [vmem:[#allocation2 + $0x118] sm:$0xff]  ;;  %v10292_v10 = vld [vmem:[%s16675_s22 + $0x110] sm:$0xff] }
 0x431   : > { %v15742_v59 = vpop.f32.mrf.mxu1  ;;  %16055 = vmatmul.mubr.msk.f32.gmra.mxu1 %vm5440_vm2, %v9706_v60  ;;  %16128 = vmatprep.mubr.msk.f32.mxu0 %vm442_vm1, %v10289_v28 }
 0x432   : > { %v8069_v22 = vadd.f32 %v15742_v59, %v19976_v62  ;;  %v8456_v26 = vpop.f32.mrf.mxu0  ;;  %16057 = vmatprep.mubr.msk.f32.mxu1 %vm5440_vm2, %v9707_v6  ;;  %v20233_v61 = vadd.f32 %v8446_v43, %v8066_v23  ;;  %v9709_v62 = vld [vmem:[#allocation2 + $0x120] sm:$0xff] }
 0x433   : > { %v7927_v20 = vpop.f32.mrf.mxu1 }
 0x434   : > { %22538 = vst [vmem:[#allocation14_spill] sm:$0xff] %v20233_v61  ;;  %v8068_v9 = vadd.f32 %v7927_v20, %v19982_v12  ;;  %v15822_v17 = vpop.f32.mrf.mxu0  ;;  %16129 = vmatmul.mubr.msk.f32.gmra.mxu0 %vm442_vm1, %v10290_v34  ;;  %v20237_v53 = vadd.f32 %v15819_v5, %v8069_v22  ;;  %v10293_v12 = vld [vmem:[%s16675_s22 + $0x118] sm:$0xff]  ;;  %v9710_v34 = vld [vmem:[#allocation2 + $0x128] sm:$0xff]  ;;  %v10294_v20 = vld [vmem:[%s16675_s22 + $0x120] sm:$0xff] }
 0x435   : > { %v15745_v28 = vpop.f32.mrf.mxu1  ;;  %16058 = vmatmul.mubr.msk.f32.gmra.mxu1 %vm5440_vm2, %v9708_v11  ;;  %16131 = vmatprep.mubr.msk.f32.mxu0 %vm442_vm1, %v10291_v14 }
 0x436   : > { %v8071_v43 = vadd.f32 %v15745_v28, %v19986_v24  ;;  %v8466_v23 = vpop.f32.mrf.mxu0  ;;  %16060 = vmatprep.mubr.msk.f32.mxu1 %vm5440_vm2, %v9709_v62  ;;  %v20245_v60 = vadd.f32 %v8456_v26, %v8068_v9  ;;  %v9711_v24 = vld [vmem:[#allocation2 + $0x130] sm:$0xff]  ;;  %v9712_v62 = vld [vmem:[#allocation2 + $0x138] sm:$0xff] }
 0x437   : > { %v7937_v59 = vpop.f32.mrf.mxu1 }
 0x438   : > { %22539 = vst [vmem:[#allocation7_spill] sm:$0xff] %v20245_v60  ;;  %v8070_v5 = vadd.f32 %v7937_v59, %v19992_v49  ;;  %v15825_v6 = vpop.f32.mrf.mxu0  ;;  %16132 = vmatmul.mubr.msk.f32.gmra.mxu0 %vm442_vm1, %v10292_v10  ;;  %v20249_v22 = vadd.f32 %v15822_v17, %v8071_v43  ;;  %v10295_v49 = vld [vmem:[%s16675_s22 + $0x128] sm:$0xff] }
 0x439   : > { %v15748_v14 = vpop.f32.mrf.mxu1  ;;  %16061 = vmatmul.mubr.msk.f32.gmra.mxu1 %vm5440_vm2, %v9710_v34  ;;  %16134 = vmatprep.mubr.msk.f32.mxu0 %vm442_vm1, %v10293_v12  ;;  %v10296_v12 = vld [vmem:[%s16675_s22 + $0x130] sm:$0xff] }
 0x43a   : > { %v8073_v26 = vadd.f32 %v15748_v14, %v19996_v31  ;;  %v20255_v9 = vpop.f32.mrf.mxu0  ;;  %16063 = vmatprep.mubr.msk.f32.mxu1 %vm5440_vm2, %v9711_v24  ;;  %v20259_v11 = vadd.f32 %v8466_v23, %v8070_v5  ;;  %v9713_v31 = vld [vmem:[#allocation2 + $0x140] sm:$0xff]  ;;  %v10297_v5 = vld [vmem:[%s16675_s22 + $0x138] sm:$0xff]  ;;  %v9714_v14 = vld [vmem:[#allocation2 + $0x148] sm:$0xff] }
 0x43b   : > { %22540 = vst [vmem:[#allocation61_spill] sm:$0xff] %v20255_v9  ;;  %v20261_v17 = vpop.f32.mrf.mxu1 }
 0x43c   : > { %22541 = vst [vmem:[#allocation77_spill] sm:$0xff] %v20259_v11  ;;  %22542 = vst [vmem:[#allocation80_spill] sm:$0xff] %v20261_v17  ;;  %v15828_v28 = vpop.f32.mrf.mxu0  ;;  %16135 = vmatmul.mubr.msk.f32.gmra.mxu0 %vm442_vm1, %v10294_v20  ;;  %v20264_v10 = vadd.f32 %v15825_v6, %v8073_v26  ;;  %v9715_v26 = vld [vmem:[#allocation2 + $0x150] sm:$0xff] }
 0x43d   : > { %v15751_v43 = vpop.f32.mrf.mxu1  ;;  %16064 = vmatmul.mubr.msk.f32.gmra.mxu1 %vm5440_vm2, %v9712_v62  ;;  %16137 = vmatprep.mubr.msk.f32.mxu0 %vm442_vm1, %v10295_v49 }
 0x43e   : > { %v8075_v59 = vadd.f32 %v15751_v43, %v20006_v16  ;;  %v20270_v23 = vpop.f32.mrf.mxu0  ;;  %16066 = vmatprep.mubr.msk.f32.mxu1 %vm5440_vm2, %v9713_v31  ;;  %v10298_v16 = vld [vmem:[%s16675_s22 + $0x140] sm:$0xff]  ;;  %v10299_v43 = vld [vmem:[%s16675_s22 + $0x148] sm:$0xff] }
 0x43f   : > { %22543 = vst [vmem:[#allocation64_spill] sm:$0xff] %v20270_v23  ;;  %v20274_v34 = vpop.f32.mrf.mxu1 }
 0x440   : > { %v15831_v6 = vpop.f32.mrf.mxu0  ;;  %16138 = vmatmul.mubr.msk.f32.gmra.mxu0 %vm442_vm1, %v10296_v12  ;;  %v20277_v24 = vadd.f32 %v15828_v28, %v8075_v59  ;;  %v9716_v12 = vld [vmem:[#allocation2 + $0x158] sm:$0xff] }
 0x441   : > { %v15754_v20 = vpop.f32.mrf.mxu1  ;;  %16067 = vmatmul.mubr.msk.f32.gmra.mxu1 %vm5440_vm2, %v9714_v14  ;;  %16140 = vmatprep.mubr.msk.f32.mxu0 %vm442_vm1, %v10297_v5  ;;  %v9717_v5 = vld [vmem:[#allocation2 + $0x160] sm:$0xff] }
 0x442   : > { %v8077_v49 = vadd.f32 %v15754_v20, %v20016_v35  ;;  %v20283_v62 = vpop.f32.mrf.mxu0  ;;  %16069 = vmatprep.mubr.msk.f32.mxu1 %vm5440_vm2, %v9715_v26  ;;  %v10300_v35 = vld [vmem:[%s16675_s22 + $0x150] sm:$0xff] }
 0x443   : > { %22544 = vst [vmem:[#allocation33_spill] sm:$0xff] %v20283_v62  ;;  %v20287_v31 = vpop.f32.mrf.mxu1 }
 0x444   : > { %v15834_v28 = vpop.f32.mrf.mxu0  ;;  %16141 = vmatmul.mubr.msk.f32.gmra.mxu0 %vm442_vm1, %v10298_v16  ;;  %v20290_v59 = vadd.f32 %v15831_v6, %v8077_v49  ;;  %v9718_v16 = vld [vmem:[#allocation2 + $0x168] sm:$0xff] }
 0x445   : > { %v15757_v14 = vpop.f32.mrf.mxu1  ;;  %16070 = vmatmul.mubr.msk.f32.gmra.mxu1 %vm5440_vm2, %v9716_v12  ;;  %16143 = vmatprep.mubr.msk.f32.mxu0 %vm442_vm1, %v10299_v43  ;;  %v9719_v43 = vld [vmem:[#allocation2 + $0x170] sm:$0xff] }
 0x446   : > { %v8079_v20 = vadd.f32 %v15757_v14, %v20026_v41  ;;  %v20296_v26 = vpop.f32.mrf.mxu0  ;;  %16072 = vmatprep.mubr.msk.f32.mxu1 %vm5440_vm2, %v9717_v5  ;;  %v10302_v41 = vld [vmem:[%s16675_s22 + $0x160] sm:$0xff] }
 0x447   : > { %22545 = vst [vmem:[#allocation21_spill] sm:$0xff] %v20296_v26  ;;  %v20300_v45 = vpop.f32.mrf.mxu1  ;;  %v10303_v26 = vld [vmem:[%s16675_s22 + $0x168] sm:$0xff] }
 0x448   : > { %22546 = vst [vmem:[#allocation9_spill] sm:$0xff] %v20300_v45  ;;  %v15837_v6 = vpop.f32.mrf.mxu0  ;;  %16144 = vmatmul.mubr.msk.f32.gmra.mxu0 %vm442_vm1, %v10300_v35  ;;  %v20303_v49 = vadd.f32 %v15834_v28, %v8079_v20  ;;  %v9720_v35 = vld [vmem:[#allocation2 + $0x178] sm:$0xff] }
 0x449   : > { %v15760_v12 = vpop.f32.mrf.mxu1  ;;  %16073 = vmatmul.mubr.msk.f32.gmra.mxu1 %vm5440_vm2, %v9718_v16  ;;  %16146 = vmatprep.mubr.msk.f32.mxu0 %vm442_vm1, %v10301_v63  ;;  %v9721_v63 = vld [vmem:[#allocation2 + $0x180] sm:$0xff] }
 0x44a   : > { %v8081_v14 = vadd.f32 %v15760_v12, %v20036_v52  ;;  %v20309_v5 = vpop.f32.mrf.mxu0  ;;  %16075 = vmatprep.mubr.msk.f32.mxu1 %vm5440_vm2, %v9719_v43  ;;  %v10304_v52 = vld [vmem:[%s16675_s22 + $0x170] sm:$0xff] }
 0x44b   : > { %22547 = vst [vmem:[#allocation63_spill] sm:$0xff] %v20309_v5  ;;  %v20313_v45 = vpop.f32.mrf.mxu1  ;;  %v9722_v5 = vld [vmem:[#allocation2 + $0x188] sm:$0xff] }
 0x44c   : > { %22548 = vst [vmem:[#allocation83_spill] sm:$0xff] %v20313_v45  ;;  %v15840_v28 = vpop.f32.mrf.mxu0  ;;  %16147 = vmatmul.mubr.msk.f32.gmra.mxu0 %vm442_vm1, %v10302_v41  ;;  %v20316_v20 = vadd.f32 %v15837_v6, %v8081_v14  ;;  %v10305_v45 = vld [vmem:[%s16675_s22 + $0x178] sm:$0xff]  ;;  %v9723_v6 = vld [vmem:[#allocation2 + $0x190] sm:$0xff] }
 0x44d   : > { %v15763_v16 = vpop.f32.mrf.mxu1  ;;  %16076 = vmatmul.mubr.msk.f32.gmra.mxu1 %vm5440_vm2, %v9720_v35  ;;  %16149 = vmatprep.mubr.msk.f32.mxu0 %vm442_vm1, %v10303_v26 }
 0x44e   : > { %v8083_v12 = vadd.f32 %v15763_v16, %v20046_v38  ;;  %v20322_v43 = vpop.f32.mrf.mxu0  ;;  %16078 = vmatprep.mubr.msk.f32.mxu1 %vm5440_vm2, %v9721_v63  ;;  %v10306_v38 = vld [vmem:[%s16675_s22 + $0x180] sm:$0xff]  ;;  %v9724_v63 = vld [vmem:[#allocation2 + $0x198] sm:$0xff] }
 0x44f   : > { %22549 = vst [vmem:[#allocation86_spill] sm:$0xff] %v20322_v43  ;;  %v20326_v40 = vpop.f32.mrf.mxu1 }
 0x450   : > { %22550 = vst [vmem:[#allocation66_spill] sm:$0xff] %v20326_v40  ;;  %v15843_v41 = vpop.f32.mrf.mxu0  ;;  %16150 = vmatmul.mubr.msk.f32.gmra.mxu0 %vm442_vm1, %v10304_v52  ;;  %v20329_v14 = vadd.f32 %v15840_v28, %v8083_v12 }
 0x451   : > { %v15766_v35 = vpop.f32.mrf.mxu1  ;;  %16079 = vmatmul.mubr.msk.f32.gmra.mxu1 %vm5440_vm2, %v9722_v5  ;;  %16152 = vmatprep.mubr.msk.f32.mxu0 %vm442_vm1, %v10305_v45 }
 0x452   : > { %v8085_v26 = vadd.f32 %v15766_v35, %v20057_v32  ;;  %v20335_v16 = vpop.f32.mrf.mxu0  ;;  %16081 = vmatprep.mubr.msk.f32.mxu1 %vm5440_vm2, %v9723_v6 }
 0x453   : > { %22551 = vst [vmem:[#allocation29_spill] sm:$0xff] %v20335_v16  ;;  %v20338_v43 = vpop.f32.mrf.mxu1 }
 0x454   : > { %22552 = vst [vmem:[#allocation17_spill] sm:$0xff] %v20338_v43  ;;  %v15846_v40 = vpop.f32.mrf.mxu0  ;;  %16153 = vmatmul.mubr.msk.f32.gmra.mxu0 %vm442_vm1, %v10306_v38  ;;  %v20341_v28 = vadd.f32 %v15843_v41, %v8085_v26 }
 0x455   : > { %v15769_v52 = vpop.f32.mrf.mxu1  ;;  %16082 = vmatmul.mubr.msk.f32.gmra.mxu1 %vm5440_vm2, %v9724_v63 }
 0x456   : > { %v8087_v45 = vadd.f32 %v15769_v52, %v20069_v51  ;;  %v20345_v5 = vpop.f32.mrf.mxu0 }
 0x457   : > { %22553 = vst [vmem:[#allocation65_spill] sm:$0xff] %v20345_v5  ;;  %v20347_v32 = vpop.f32.mrf.mxu1 }
 0x458   : > { %22554 = vst [vmem:[#allocation89_spill] sm:$0xff] %v20347_v32  ;;  %v15849_v12 = vpop.f32.mrf.mxu0  ;;  %v20349_v35 = vadd.f32 %v15846_v40, %v8087_v45 }
 0x459   : > { %v15772_v6 = vpop.f32.mrf.mxu1 }
 0x45a   : > { %v8089_v16 = vadd.f32 %v15772_v6, %v20081_v3  ;;  %v20352_v43 = vpop.f32.mrf.mxu0 }
 0x45b   : > { %22555 = vst [vmem:[#allocation92_spill] sm:$0xff] %v20352_v43  ;;  %v20354_v38 = vpop.f32.mrf.mxu1 }
 0x45c   : > { %22556 = vst [vmem:[#allocation68_spill] sm:$0xff] %v20354_v38  ;;  %v15852_v41 = vpop.f32.mrf.mxu0  ;;  %v20356_v26 = vadd.f32 %v15849_v12, %v8089_v16 }
 0x45d   : > { %v15775_v63 = vpop.f32.mrf.mxu1 }
 0x45e   : > { %v8091_v51 = vadd.f32 %v15775_v63, %v20093_v44  ;;  %v20359_v52 = vpop.f32.mrf.mxu0 }
 0x45f   : > { %22557 = vst [vmem:[#allocation30_spill] sm:$0xff] %v20359_v52  ;;  %v20361_v55 = vpop.f32.mrf.mxu1 }
 0x460   : > { %22558 = vst [vmem:[#allocation11_spill] sm:$0xff] %v20361_v55  ;;  %v15940_v5 = vpop.f32.mrf.mxu0  ;;  %v20363_v40 = vadd.f32 %v15852_v41, %v8091_v51 }
 0x461   : > { %v15863_v45 = vpop.f32.mrf.mxu1 }
 0x462   : > { %v9105_v3 = vadd.f32 %v15863_v45, %v20105_v15  ;;  %v20366_v6 = vpop.f32.mrf.mxu0 }
 0x463   : > { %22559 = vst [vmem:[#allocation67_spill] sm:$0xff] %v20366_v6  ;;  %v20368_v32 = vpop.f32.mrf.mxu1 }
 0x464   : > { %v15943_v29 = vpop.f32.mrf.mxu0  ;;  %v20370_v16 = vadd.f32 %v15940_v5, %v9105_v3 }
 0x465   : > { %v15866_v12 = vpop.f32.mrf.mxu1 }
 0x466   : > { %22560 = vst [vmem:[#allocation95_spill] sm:$0xff] %v20370_v16  ;;  %v9107_v44 = vadd.f32 %v15866_v12, %v20117_v13  ;;  %v20373_v63 = vpop.f32.mrf.mxu0 }
 0x467   : > { %v20375_v43 = vpop.f32.mrf.mxu1 }
 0x468   : > { %v15946_v52 = vpop.f32.mrf.mxu0  ;;  %v20377_v41 = vadd.f32 %v15943_v29, %v9107_v44 }
 0x469   : > { %v15869_v51 = vpop.f32.mrf.mxu1 }
 0x46a   : > { %v9109_v15 = vadd.f32 %v15869_v51, %v20129_v4  ;;  %v20380_v45 = vpop.f32.mrf.mxu0 }
 0x46b   : > { %v20382_v38 = vpop.f32.mrf.mxu1 }
 0x46c   : > { %v15949_v58 = vpop.f32.mrf.mxu0  ;;  %v20384_v5 = vadd.f32 %v15946_v52, %v9109_v15 }
 0x46d   : > { %v15872_v3 = vpop.f32.mrf.mxu1 }
 0x46e   : > { %v9111_v13 = vadd.f32 %v15872_v3, %v20141_v48  ;;  %v20387_v12 = vpop.f32.mrf.mxu0 }
 0x46f   : > { %v20389_v37 = vpop.f32.mrf.mxu1 }
 0x470   : > { %v15952_v55 = vpop.f32.mrf.mxu0  ;;  %v20391_v29 = vadd.f32 %v15949_v58, %v9111_v13 }
 0x471   : > { %v15875_v44 = vpop.f32.mrf.mxu1 }
 0x472   : > { %v9113_v4 = vadd.f32 %v15875_v44, %v20153_v27  ;;  %v20394_v51 = vpop.f32.mrf.mxu0 }
 0x473   : > { %v20396_v1 = vpop.f32.mrf.mxu1 }
 0x474   : > { %v15955_v25 = vpop.f32.mrf.mxu0  ;;  %v20398_v52 = vadd.f32 %v15952_v55, %v9113_v4 }
 0x475   : > { %v15878_v15 = vpop.f32.mrf.mxu1 }
 0x476   : > { %v9115_v48 = vadd.f32 %v15878_v15, %v20165_v33  ;;  %v20401_v3 = vpop.f32.mrf.mxu0 }
 0x477   : > { %v20403_v61 = vpop.f32.mrf.mxu1 }
 0x478   : > { %v15958_v11 = vpop.f32.mrf.mxu0  ;;  %v20405_v58 = vadd.f32 %v15955_v25, %v9115_v48 }
 0x479   : > { %v15881_v13 = vpop.f32.mrf.mxu1 }
 0x47a   : > { %v9117_v27 = vadd.f32 %v15881_v13, %v20177_v46  ;;  %v20408_v44 = vpop.f32.mrf.mxu0 }
 0x47b   : > { %v20410_v60 = vpop.f32.mrf.mxu1 }
 0x47c   : > { %v15961_v9 = vpop.f32.mrf.mxu0  ;;  %v20412_v55 = vadd.f32 %v15958_v11, %v9117_v27 }
 0x47d   : > { %v15884_v4 = vpop.f32.mrf.mxu1 }
 0x47e   : > { %v9119_v33 = vadd.f32 %v15884_v4, %v20189_v30  ;;  %v20415_v15 = vpop.f32.mrf.mxu0 }
 0x47f   : > { %v20417_v62 = vpop.f32.mrf.mxu1 }
 0x480   : > { %v15964_v23 = vpop.f32.mrf.mxu0  ;;  %v20419_v25 = vadd.f32 %v15961_v9, %v9119_v33 }
 0x481   : > { %v15887_v48 = vpop.f32.mrf.mxu1 }
 0x482   : > { %v9121_v46 = vadd.f32 %v15887_v48, %v20201_v54  ;;  %v20422_v13 = vpop.f32.mrf.mxu0 }
 0x483   : > { %22561 = vst [vmem:[#allocation24_spill] sm:$0xff] %v20422_v13  ;;  %v20424_v17 = vpop.f32.mrf.mxu1 }
 0x484   : > { %22562 = vst [vmem:[#allocation40_spill] sm:$0xff] %v20424_v17  ;;  %v15967_v57 = vpop.f32.mrf.mxu0  ;;  %v20426_v11 = vadd.f32 %v15964_v23, %v9121_v46 }
 0x485   : > { %v15890_v27 = vpop.f32.mrf.mxu1 }
 0x486   : > { %22563 = vst [vmem:[#allocation22_spill] sm:$0xff] %v20426_v11  ;;  %v9123_v30 = vadd.f32 %v15890_v27, %v20213_v18  ;;  %v20429_v4 = vpop.f32.mrf.mxu0 }
 0x487   : > { %22564 = vst [vmem:[#allocation70_spill] sm:$0xff] %v20429_v4  ;;  %v20431_v6 = vpop.f32.mrf.mxu1 }
 0x488   : > { %22565 = vst [vmem:[#allocation48_spill] sm:$0xff] %v20431_v6  ;;  %v15970_v16 = vpop.f32.mrf.mxu0  ;;  %v20433_v9 = vadd.f32 %v15967_v57, %v9123_v30 }
 0x489   : > { %v15893_v33 = vpop.f32.mrf.mxu1 }
 0x48a   : > { %22566 = vst [vmem:[#allocation12_spill] sm:$0xff] %v20433_v9  ;;  %v9125_v54 = vadd.f32 %v15893_v33, %v20225_v7  ;;  %v20436_v48 = vpop.f32.mrf.mxu0 }
 0x48b   : > { %22567 = vst [vmem:[#allocation49_spill] sm:$0xff] %v20436_v48  ;;  %v20438_v13 = vpop.f32.mrf.mxu1 }
 0x48c   : > { %22568 = vst [vmem:[#allocation69_spill] sm:$0xff] %v20438_v13  ;;  %v15973_v17 = vpop.f32.mrf.mxu0  ;;  %v20440_v23 = vadd.f32 %v15970_v16, %v9125_v54 }
 0x48d   : > { %v15896_v46 = vpop.f32.mrf.mxu1 }
 0x48e   : > { %22569 = vst [vmem:[#allocation25_spill] sm:$0xff] %v20440_v23  ;;  %v9127_v18 = vadd.f32 %v15896_v46, %v20237_v53  ;;  %v20443_v27 = vpop.f32.mrf.mxu0 }
 0x48f   : > { %22570 = vst [vmem:[#allocation41_spill] sm:$0xff] %v20443_v27  ;;  %v20445_v11 = vpop.f32.mrf.mxu1 }
 0x490   : > { %22571 = vst [vmem:[#allocation73_spill] sm:$0xff] %v20445_v11  ;;  %v15976_v4 = vpop.f32.mrf.mxu0  ;;  %v20447_v57 = vadd.f32 %v15973_v17, %v9127_v18  ;;  %v9118_v11 = vadd.f32 %v20417_v62, %v20197_v21 }
 0x491   : > { %v15899_v30 = vpop.f32.mrf.mxu1 }
 0x492   : > { %22572 = vst [vmem:[#allocation19_spill] sm:$0xff] %v20447_v57  ;;  %v9129_v7 = vadd.f32 %v15899_v30, %v20249_v22  ;;  %v20450_v33 = vpop.f32.mrf.mxu0  ;;  %v9647_v62 = vadd.f32 %v20415_v15, %v9118_v11 }
 0x493   : > { %22573 = vst [vmem:[#allocation51_spill] sm:$0xff] %v20450_v33  ;;  %v20452_v9 = vpop.f32.mrf.mxu1  ;;  %v11280_v33 = vld [vmem:[#allocation3 + $0x1d0] sm:$0xff] }
 0x494   : > { %22574 = vst [vmem:[#allocation72_spill] sm:$0xff] %v20452_v9  ;;  %v15979_v48 = vpop.f32.mrf.mxu0  ;;  %v20454_v16 = vadd.f32 %v15976_v4, %v9129_v7  ;;  %11457 = vmatprep.mubr.f32.mxu0 %v11280_v33 }
 0x495   : > { %v15902_v54 = vpop.f32.mrf.mxu1 }
 0x496   : > { %22575 = vst [vmem:[#allocation26_spill] sm:$0xff] %v20454_v16  ;;  %v9131_v53 = vadd.f32 %v15902_v54, %v20264_v10  ;;  %v20457_v46 = vpop.f32.mrf.mxu0 }
 0x497   : > { %22576 = vst [vmem:[#allocation42_spill] sm:$0xff] %v20457_v46  ;;  %v20459_v23 = vpop.f32.mrf.mxu1 }
 0x498   : > { %22577 = vst [vmem:[#allocation76_spill] sm:$0xff] %v20459_v23  ;;  %v15982_v6 = vpop.f32.mrf.mxu0  ;;  %v20461_v17 = vadd.f32 %v15979_v48, %v9131_v53  ;;  %v10844_v53 = vld [vmem:[#allocation3 + $0x8] sm:$0xff] }
 0x499   : > { %v15905_v18 = vpop.f32.mrf.mxu1  ;;  %11022 = vmatprep.mubr.f32.mxu1 %v10844_v53 }
 0x49a   : > { %22578 = vst [vmem:[#allocation20_spill] sm:$0xff] %v20461_v17  ;;  %v9133_v22 = vadd.f32 %v15905_v18, %v20277_v24  ;;  %v20464_v30 = vpop.f32.mrf.mxu0 }
 0x49b   : > { %22579 = vst [vmem:[#allocation52_spill] sm:$0xff] %v20464_v30  ;;  %v20466_v27 = vpop.f32.mrf.mxu1 }
 0x49c   : > { %22580 = vst [vmem:[#allocation75_spill] sm:$0xff] %v20466_v27  ;;  %v15985_v57 = vpop.f32.mrf.mxu0  ;;  %v20468_v4 = vadd.f32 %v15982_v6, %v9133_v22 }
 0x49d   : > { %v15908_v7 = vpop.f32.mrf.mxu1 }
 0x49e   : > { %22581 = vst [vmem:[#allocation27_spill] sm:$0xff] %v20468_v4  ;;  %v9135_v10 = vadd.f32 %v15908_v7, %v20290_v59  ;;  %v20471_v54 = vpop.f32.mrf.mxu0 }
 0x49f   : > { %22582 = vst [vmem:[#allocation43_spill] sm:$0xff] %v20471_v54  ;;  %v20473_v13 = vpop.f32.mrf.mxu1 }
 0x4a0   : > { %22583 = vst [vmem:[#allocation79_spill] sm:$0xff] %v20473_v13  ;;  %v15988_v16 = vpop.f32.mrf.mxu0  ;;  %v20475_v48 = vadd.f32 %v15985_v57, %v9135_v10 }
 0x4a1   : > { %v15911_v24 = vpop.f32.mrf.mxu1 }
 0x4a2   : > { %22584 = vst [vmem:[#allocation13_spill] sm:$0xff] %v20475_v48  ;;  %v9137_v18 = vadd.f32 %v15911_v24, %v20303_v49  ;;  %v20478_v46 = vpop.f32.mrf.mxu0 }
 0x4a3   : > { %22585 = vst [vmem:[#allocation54_spill] sm:$0xff] %v20478_v46  ;;  %v20480_v6 = vpop.f32.mrf.mxu1 }
 0x4a4   : > { %22586 = vst [vmem:[#allocation78_spill] sm:$0xff] %v20480_v6  ;;  %v15991_v22 = vpop.f32.mrf.mxu0  ;;  %v20482_v59 = vadd.f32 %v15988_v16, %v9137_v18 }
 0x4a5   : > { %v15914_v7 = vpop.f32.mrf.mxu1 }
 0x4a6   : > { %22587 = vst [vmem:[#allocation28_spill] sm:$0xff] %v20482_v59  ;;  %v9139_v17 = vadd.f32 %v15914_v7, %v20316_v20  ;;  %v20485_v54 = vpop.f32.mrf.mxu0 }
 0x4a7   : > { %22588 = vst [vmem:[#allocation44_spill] sm:$0xff] %v20485_v54  ;;  %v20487_v57 = vpop.f32.mrf.mxu1 }
 0x4a8   : > { %22589 = vst [vmem:[#allocation82_spill] sm:$0xff] %v20487_v57  ;;  %v15994_v10 = vpop.f32.mrf.mxu0  ;;  %v20489_v48 = vadd.f32 %v15991_v22, %v9139_v17 }
 0x4a9   : > { %v15917_v33 = vpop.f32.mrf.mxu1 }
 0x4aa   : > { %22590 = vst [vmem:[#allocation15_spill] sm:$0xff] %v20489_v48  ;;  %v9141_v49 = vadd.f32 %v15917_v33, %v20329_v14  ;;  %v20492_v53 = vpop.f32.mrf.mxu0 }
 0x4ab   : > { %22591 = vst [vmem:[#allocation55_spill] sm:$0xff] %v20492_v53  ;;  %v20494_v24 = vpop.f32.mrf.mxu1 }
 0x4ac   : > { %22592 = vst [vmem:[#allocation81_spill] sm:$0xff] %v20494_v24  ;;  %v15997_v46 = vpop.f32.mrf.mxu0  ;;  %v20496_v16 = vadd.f32 %v15994_v10, %v9141_v49 }
 0x4ad   : > { %v15920_v18 = vpop.f32.mrf.mxu1 }
 0x4ae   : > { %22593 = vst [vmem:[#allocation39_spill] sm:$0xff] %v20496_v16  ;;  %v9143_v20 = vadd.f32 %v15920_v18, %v20341_v28  ;;  %v20499_v7 = vpop.f32.mrf.mxu0 }
 0x4af   : > { %22594 = vst [vmem:[#allocation45_spill] sm:$0xff] %v20499_v7  ;;  %v20501_v59 = vpop.f32.mrf.mxu1 }
 0x4b0   : > { %22595 = vst [vmem:[#allocation85_spill] sm:$0xff] %v20501_v59  ;;  %v16000_v6 = vpop.f32.mrf.mxu0  ;;  %v20503_v17 = vadd.f32 %v15997_v46, %v9143_v20 }
 0x4b1   : > { %v15923_v22 = vpop.f32.mrf.mxu1 }
 0x4b2   : > { %22596 = vst [vmem:[#allocation31_spill] sm:$0xff] %v20503_v17  ;;  %v9145_v14 = vadd.f32 %v15923_v22, %v20349_v35  ;;  %v20506_v33 = vpop.f32.mrf.mxu0 }
 0x4b3   : > { %22597 = vst [vmem:[#allocation57_spill] sm:$0xff] %v20506_v33  ;;  %v20508_v48 = vpop.f32.mrf.mxu1 }
 0x4b4   : > { %22598 = vst [vmem:[#allocation84_spill] sm:$0xff] %v20508_v48  ;;  %v16003_v54 = vpop.f32.mrf.mxu0  ;;  %v20510_v10 = vadd.f32 %v16000_v6, %v9145_v14 }
 0x4b5   : > { %v15926_v49 = vpop.f32.mrf.mxu1 }
 0x4b6   : > { %22599 = vst [vmem:[#allocation8_spill] sm:$0xff] %v20510_v10  ;;  %v9147_v28 = vadd.f32 %v15926_v49, %v20356_v26  ;;  %v20513_v18 = vpop.f32.mrf.mxu0 }
 0x4b7   : > { %22600 = vst [vmem:[#allocation46_spill] sm:$0xff] %v20513_v18  ;;  %v20515_v57 = vpop.f32.mrf.mxu1 }
 0x4b8   : > { %22601 = vst [vmem:[#allocation88_spill] sm:$0xff] %v20515_v57  ;;  %v16006_v16 = vpop.f32.mrf.mxu0  ;;  %v20517_v46 = vadd.f32 %v16003_v54, %v9147_v28 }
 0x4b9   : > { %v15929_v20 = vpop.f32.mrf.mxu1 }
 0x4ba   : > { %22602 = vst [vmem:[#allocation50_spill] sm:$0xff] %v20517_v46  ;;  %v9149_v35 = vadd.f32 %v15929_v20, %v20363_v40  ;;  %v20520_v22 = vpop.f32.mrf.mxu0 }
 0x4bb   : > { %22603 = vst [vmem:[#allocation16_spill] sm:$0xff] %v20520_v22  ;;  %v20522_v53 = vpop.f32.mrf.mxu1 }
 0x4bc   : > { %22604 = vst [vmem:[#allocation87_spill] sm:$0xff] %v20522_v53  ;;  %v20524_v24 = vadd.f32 %v16006_v16, %v9149_v35  ;;  %v20526_v6 = vpop.f32.mrf.mxu0 }
 0x4bd   : > { %22606 = vst [vmem:[#allocation47_spill] sm:$0xff] %v20526_v6  ;;  %v20528_v14 = vpop.f32.mrf.mxu1 }
 0x4be   : > { %22605 = vst [vmem:[#allocation10_spill] sm:$0xff] %v20524_v24  ;;  %22607 = vst [vmem:[#allocation91_spill] sm:$0xff] %v20528_v14  ;;  %v20530_v26 = vpop.f32.mrf.mxu0 }
 0x4bf   : > { %22608 = vst [vmem:[#allocation53_spill] sm:$0xff] %v20530_v26  ;;  %v20532_v49 = vpop.f32.mrf.mxu1  ;;  %v9116_v26 = vadd.f32 %v20410_v60, %v20185_v56 }
 0x4c0   : > { %22609 = vst [vmem:[#allocation59_spill] sm:$0xff] %v20532_v49  ;;  %v20534_v17 = vpop.f32.mrf.mxu0 }
 0x4c1   : > { %22610 = vst [vmem:[#allocation90_spill] sm:$0xff] %v20534_v17  ;;  %v20536_v54 = vpop.f32.mrf.mxu1  ;;  %v9645_v49 = vadd.f32 %v20408_v44, %v9116_v26  ;;  %v20575_v17 = vld [vmem:[%s22182_s6] ss:$0 sm:$0xff] }
 0x4c2   : > { %v20538_v28 = vpop.f32.mrf.mxu0  ;;  %v20585_v44 = vld [vmem:[%s22180_s4] ss:$0 sm:$0xff] }
 0x4c3   : > { %22611 = vst [vmem:[#allocation18_spill] sm:$0xff] %v20538_v28  ;;  %v20540_v40 = vpop.f32.mrf.mxu1  ;;  %v9114_v28 = vadd.f32 %v20403_v61, %v20173_v2  ;;  %v9112_v61 = vadd.f32 %v20396_v1, %v20161_v19  ;;  %v9110_v1 = vadd.f32 %v20389_v37, %v20149_v47 }
 0x4c4   : > { %v20542_v20 = vpop.f32.mrf.mxu0 }
 0x4c5   : > { %v20544_v16 = vpop.f32.mrf.mxu1 }
 0x4c6   : > { %v20546_v35 = vpop.f32.mrf.mxu0 }
 0x4c7   : > { %22612 = vst [vmem:[#allocation32_spill] sm:$0xff] %v20546_v35  ;;  %v20548_v7 = vpop.f32.mrf.mxu1 }
 0x4c8   : > { %v20550_v59 = vpop.f32.mrf.mxu0 }
 0x4c9   : > { %v20552_v10 = vpop.f32.mrf.mxu1 }
 0x4ca   : > { %v20554_v33 = vpop.f32.mrf.mxu0 }
 0x4cb   : > { %v20556_v48 = vpop.f32.mrf.mxu1 }
 0x4cc   : > { %v20558_v46 = vpop.f32.mrf.mxu0 }
 0x4cd   : > { %v16029_v18 = vpop.f32.mrf.mxu1 }
 0x4ce   : > { %v20560_v24 = vpop.f32.mrf.mxu0 }
 0x4cf   : > { %v9973_v22 = vpop.f32.mrf.mxu1 }
 0x4d0   : > { %v16103_v57 = vpop.f32.mrf.mxu0 }
 0x4d1   : > { %v16032_v53 = vpop.f32.mrf.mxu1  ;;  %v10578_v47 = vadd.f32 %v16103_v57, %v20575_v17 }
 0x4d2   : > { %v20562_v9 = vpop.f32.mrf.mxu0 }
 0x4d3   : > { %v9983_v4 = vpop.f32.mrf.mxu1 }
 0x4d4   : > { %v16106_v30 = vpop.f32.mrf.mxu0 }
 0x4d5   : > { %v16035_v23 = vpop.f32.mrf.mxu1  ;;  %v10588_v26 = vadd.f32 %v16106_v30, %v20575_v17  ;;  %v10171_v30 = vadd.f32 %v16029_v18, %v20398_v52 }
 0x4d6   : > { %v10582_v13 = vpop.f32.mrf.mxu0  ;;  %v10175_v27 = vadd.f32 %v16035_v23, %v20412_v55  ;;  %v10173_v55 = vadd.f32 %v16032_v53, %v20405_v58  ;;  %v9643_v23 = vadd.f32 %v20401_v3, %v9114_v28 }
 0x4d7   : > { %v9993_v6 = vpop.f32.mrf.mxu1 }
 0x4d8   : > { %v16109_v35 = vpop.f32.mrf.mxu0  ;;  %v10174_v60 = vadd.f32 %v9993_v6, %v9645_v49  ;;  %v10172_v19 = vadd.f32 %v9983_v4, %v9643_v23 }
 0x4d9   : > { %v16038_v56 = vpop.f32.mrf.mxu1  ;;  %v10598_v21 = vadd.f32 %v16109_v35, %v20575_v17 }
 0x4da   : > { %v10177_v14 = vadd.f32 %v16038_v56, %v20419_v25  ;;  %v10592_v2 = vpop.f32.mrf.mxu0  ;;  %v10228_v25 = vadd.f32 %v20585_v44, %v10175_v27  ;;  %v10227_v58 = vadd.f32 %v20585_v44, %v10174_v60  ;;  %v10226_v56 = vadd.f32 %v20585_v44, %v10173_v55 }
 0x4db   : > { %v10003_v6 = vpop.f32.mrf.mxu1  ;;  %v10593_v27 = vadd.f32 %v20575_v17, %v10592_v2  ;;  %v10583_v60 = vadd.f32 %v20575_v17, %v10582_v13  ;;  %v9108_v2 = vadd.f32 %v20382_v38, %v20137_v39  ;;  %v10225_v18 = vadd.f32 %v20585_v44, %v10172_v19 }
 0x4dc   : > { %v10230_v15 = vadd.f32 %v20585_v44, %v10177_v14  ;;  %v10176_v11 = vadd.f32 %v10003_v6, %v9647_v62  ;;  %v20592_v49 = vpop.f32.mrf.mxu0  ;;  %v9641_v14 = vadd.f32 %v20394_v51, %v9112_v61  ;;  %v10764_v4 = vadd.f32 %v10588_v26, %v10228_v25 }
 0x4dd   : > { %v20596_v35 = vpop.f32.mrf.mxu1  ;;  %v10763_v61 = vadd.f32 %v10583_v60, %v10227_v58  ;;  %v10169_v55 = vadd.f32 %v20552_v10, %v20391_v29  ;;  %v9639_v6 = vadd.f32 %v20387_v12, %v9110_v1  ;;  %v10568_v39 = vadd.f32 %v20558_v46, %v20575_v17 }
 0x4de   : > { %v10766_v53 = vadd.f32 %v10598_v21, %v10230_v15  ;;  %v10229_v3 = vadd.f32 %v20585_v44, %v10176_v11  ;;  %v20601_v28 = vpop.f32.mrf.mxu0  ;;  %v10170_v51 = vadd.f32 %v9973_v22, %v9641_v14  ;;  %v10224_v22 = vadd.f32 %v20585_v44, %v10171_v30 }
 0x4df   : > { %v20607_v37 = vpop.f32.mrf.mxu1  ;;  %v10762_v25 = vadd.f32 %v10578_v47, %v10226_v56  ;;  %v10573_v26 = vadd.f32 %v20575_v17, %v20562_v9  ;;  %v20637_v15 = vmax.f32 %v10764_v4, 0.0  ;;  %v9106_v29 = vadd.f32 %v20375_v43, %v20125_v8 }
 0x4e0   : > { %v20610_v21 = vmax.f32 %v10766_v53, 0.0  ;;  %v10765_v62 = vadd.f32 %v10593_v27, %v10229_v3  ;;  %v20612_v23 = vpop.f32.mrf.mxu0  ;;  %v10168_v46 = vadd.f32 %v20556_v48, %v9639_v6  ;;  %v10223_v9 = vadd.f32 %v20585_v44, %v10170_v51  ;;  %v22615_v6 = vld [vmem:[#allocation67_spill] sm:$0xff] }
 0x4e1   : > { %v20616_v52 = vpop.f32.mrf.mxu1  ;;  %v10761_v11 = vadd.f32 %v10573_v26, %v10225_v18  ;;  %v20651_v1 = vmax.f32 %v10763_v61, 0.0  ;;  %v10167_v8 = vadd.f32 %v20544_v16, %v20384_v5  ;;  %v9637_v43 = vadd.f32 %v20380_v45, %v9108_v2 }
 0x4e2   : > { %v20619_v57 = vmax.f32 %v10765_v62, 0.0  ;;  %10959 = vmatpush1.msra.mxu1 %v20610_v21  ;;  %11394 = vmatpush1.msra.mxu0 %v20610_v21  ;;  %v20623_v13 = vpop.f32.mrf.mxu0  ;;  %v10558_v58 = vadd.f32 %v20550_v59, %v20575_v17  ;;  %v10222_v53 = vadd.f32 %v20585_v44, %v10169_v55  ;;  %v10760_v3 = vadd.f32 %v10568_v39, %v10224_v22  ;;  %v22616_v22 = vld [vmem:[#allocation90_spill] sm:$0xff] }
 0x4e3   : > { %v20630_v38 = vpop.f32.mrf.mxu1  ;;  %10960 = vmatprep.subr.mxu1 %v22527_v42  ;;  %11395 = vmatprep.subr.mxu0 %v22527_v42  ;;  %v10563_v27 = vadd.f32 %v20575_v17, %v20560_v24  ;;  %v20669_v30 = vmax.f32 %v10762_v25, 0.0  ;;  %v9104_v5 = vadd.f32 %v20368_v32, %v20113_v36  ;;  %v10166_v16 = vadd.f32 %v20548_v7, %v9637_v43  ;;  %v22619_v43 = vld [vmem:[#allocation23_spill] sm:$0xff] }
 0x4e4   : > { %10961 = vmatpush1.msra.mxu1 %v20619_v57  ;;  %11396 = vmatpush1.msra.mxu0 %v20619_v57  ;;  %v20641_v12 = vpop.f32.mrf.mxu0  ;;  %v10221_v24 = vadd.f32 %v20585_v44, %v10168_v46  ;;  %v20683_v56 = vmax.f32 %v10761_v11, 0.0  ;;  %v10165_v36 = vadd.f32 %v20536_v54, %v20377_v41  ;;  %v9635_v32 = vadd.f32 %v20373_v63, %v9106_v29  ;;  %v22617_v46 = vld [vmem:[#allocation32_spill] sm:$0xff] }
 0x4e5   : > { %v20645_v10 = vpop.f32.mrf.mxu1  ;;  %10962 = vmatprep.subr.mxu1 %v22527_v42  ;;  %11397 = vmatprep.subr.mxu0 %v22527_v42  ;;  %v10759_v14 = vadd.f32 %v10563_v27, %v10223_v9  ;;  %v10548_v4 = vadd.f32 %v20542_v20, %v20575_v17  ;;  %v10220_v60 = vadd.f32 %v20585_v44, %v10167_v8  ;;  %v20701_v51 = vmax.f32 %v10760_v3, 0.0  ;;  %v22621_v3 = vld [vmem:[#allocation64_spill] sm:$0xff] }
 0x4e6   : > { %10963 = vmatpush1.msra.mxu1 %v20637_v15  ;;  %11398 = vmatpush1.msra.mxu0 %v20637_v15  ;;  %v20655_v19 = vpop.f32.mrf.mxu0  ;;  %v10758_v62 = vadd.f32 %v10558_v58, %v10222_v53  ;;  %v10553_v2 = vadd.f32 %v20575_v17, %v20554_v33  ;;  %v8074_v41 = vadd.f32 %v20274_v34, %v20012_v0  ;;  %v22614_v34 = vld [vmem:[#allocation91_spill] sm:$0xff]  ;;  %v22620_v58 = vld [vmem:[#allocation80_spill] sm:$0xff] }
 0x4e7   : > { %v20662_v48 = vpop.f32.mrf.mxu1  ;;  %10964 = vmatprep.subr.mxu1 %v22527_v42  ;;  %11399 = vmatprep.subr.mxu0 %v22527_v42  ;;  %v8076_v54 = vadd.f32 %v20287_v31, %v20022_v50  ;;  %v10164_v33 = vadd.f32 %v20540_v40, %v9635_v32  ;;  %v10219_v18 = vadd.f32 %v20585_v44, %v10166_v16  ;;  %v20717_v55 = vmax.f32 %v10759_v14, 0.0  ;;  %v22613_v50 = vld [vmem:[#allocation95_spill] sm:$0xff] }
 0x4e8   : > { %10965 = vmatpush1.msra.mxu1 %v20651_v1  ;;  %11400 = vmatpush1.msra.mxu0 %v20651_v1  ;;  %v20673_v45 = vpop.f32.mrf.mxu0  ;;  %v10757_v61 = vadd.f32 %v10553_v2, %v10221_v24  ;;  %v10163_v31 = vadd.f32 %v22614_v34, %v22613_v50  ;;  %v9633_v39 = vadd.f32 %v22615_v6, %v9104_v5  ;;  %v20735_v11 = vmax.f32 %v10758_v62, 0.0  ;;  %v22622_v16 = vld [vmem:[#allocation59_spill] sm:$0xff]  ;;  %v22625_v2 = vld [vmem:[#allocation33_spill] sm:$0xff] }
 0x4e9   : > { %v20677_v59 = vpop.f32.mrf.mxu1  ;;  %10966 = vmatprep.subr.mxu1 %v22527_v42  ;;  %11401 = vmatprep.subr.mxu0 %v22527_v42  ;;  %v10538_v25 = vadd.f32 %v22616_v22, %v20575_v17  ;;  %v10218_v26 = vadd.f32 %v20585_v44, %v10165_v36  ;;  %v10756_v29 = vadd.f32 %v10548_v4, %v10220_v60  ;;  %v22624_v60 = vld [vmem:[#allocation75_spill] sm:$0xff] }
 0x4ea   : > { %10967 = vmatpush1.msra.mxu1 %v20669_v30  ;;  %11402 = vmatpush1.msra.mxu0 %v20669_v30  ;;  %v20687_v47 = vpop.f32.mrf.mxu0  ;;  %v10543_v9 = vadd.f32 %v20575_v17, %v22617_v46  ;;  %22618 = vst [vmem:[#allocation94_spill] sm:$0xff] %v20735_v11  ;;  %v8072_v53 = vadd.f32 %v22620_v58, %v22619_v43  ;;  %v20748_v32 = vmax.f32 %v10757_v61, 0.0  ;;  %v22626_v50 = vld [vmem:[#allocation47_spill] sm:$0xff]  ;;  %v22627_v61 = vld [vmem:[#allocation18_spill] sm:$0xff]  ;;  %v22629_v46 = vld [vmem:[#allocation61_spill] sm:$0xff] }
 0x4eb   : > { %v20694_v7 = vpop.f32.mrf.mxu1  ;;  %10968 = vmatprep.subr.mxu1 %v22527_v42  ;;  %11403 = vmatprep.subr.mxu0 %v22527_v42  ;;  %v8603_v27 = vadd.f32 %v22621_v3, %v8074_v41  ;;  %v10162_v24 = vadd.f32 %v22622_v16, %v9633_v39  ;;  %v10217_v14 = vadd.f32 %v20585_v44, %v10164_v33  ;;  %v20763_v22 = vmax.f32 %v10756_v29, 0.0  ;;  %v22630_v43 = vld [vmem:[#allocation79_spill] sm:$0xff]  ;;  %v22633_v16 = vld [vmem:[#allocation73_spill] sm:$0xff] }
 0x4ec   : > { %10969 = vmatpush1.msra.mxu1 %v20683_v56  ;;  %11404 = vmatpush1.msra.mxu0 %v20683_v56  ;;  %v20705_v63 = vpop.f32.mrf.mxu0  ;;  %v10755_v36 = vadd.f32 %v10543_v9, %v10219_v18  ;;  %22623 = vst [vmem:[#allocation56_spill] sm:$0xff] %v20748_v32  ;;  %v8605_v41 = vadd.f32 %v22625_v2, %v8076_v54 }
 0x4ed   : > { %v20711_v20 = vpop.f32.mrf.mxu1  ;;  %10970 = vmatprep.subr.mxu1 %v22527_v42  ;;  %11405 = vmatprep.subr.mxu0 %v22527_v42  ;;  %v9132_v62 = vadd.f32 %v22624_v60, %v8603_v27  ;;  %v10528_v34 = vadd.f32 %v22626_v50, %v20575_v17  ;;  %v10216_v33 = vadd.f32 %v20585_v44, %v10163_v31  ;;  %v22632_v27 = vld [vmem:[#allocation7_spill] sm:$0xff]  ;;  %v22634_v60 = vld [vmem:[#allocation76_spill] sm:$0xff] }
 0x4ee   : > { %10971 = vmatpush1.msra.mxu1 %v20701_v51  ;;  %11406 = vmatpush1.msra.mxu0 %v20701_v51  ;;  %v20721_v0 = vpop.f32.mrf.mxu0  ;;  %v10754_v18 = vadd.f32 %v10538_v25, %v10218_v26  ;;  %v10533_v39 = vadd.f32 %v20575_v17, %v22627_v61  ;;  %22628 = vst [vmem:[#allocation60_spill] sm:$0xff] %v20763_v22  ;;  %v20772_v26 = vmax.f32 %v10755_v36, 0.0 }
 0x4ef   : > { %v20728_v40 = vpop.f32.mrf.mxu1  ;;  %10972 = vmatprep.subr.mxu1 %v22527_v42  ;;  %11407 = vmatprep.subr.mxu0 %v22527_v42  ;;  %v8601_v9 = vadd.f32 %v22629_v46, %v8072_v53  ;;  %v9134_v58 = vadd.f32 %v22630_v43, %v8605_v41  ;;  %v10215_v31 = vadd.f32 %v20585_v44, %v10162_v24  ;;  %v22635_v41 = vld [vmem:[#allocation52_spill] sm:$0xff]  ;;  %v22637_v46 = vld [vmem:[#allocation27_spill] sm:$0xff] }
 0x4f0   : > { %10973 = vmatpush1.msra.mxu1 %v20717_v55  ;;  %11408 = vmatpush1.msra.mxu0 %v20717_v55  ;;  %v20739_v8 = vpop.f32.mrf.mxu0  ;;  %v10753_v25 = vadd.f32 %v10533_v39, %v10217_v14  ;;  %22631 = vst [vmem:[#allocation93_spill] sm:$0xff] %v20772_v26  ;;  %v20778_v53 = vadd.f32 %v22633_v16, %v22632_v27  ;;  %v22636_v14 = vld [vmem:[#allocation53_spill] sm:$0xff]  ;;  %v20786_v39 = vmax.f32 %v10754_v18, 0.0 }
 0x4f1   : > { %v16056_v5 = vpop.f32.mrf.mxu1  ;;  %10974 = vmatprep.subr.mxu1 %v22527_v42  ;;  %11409 = vmatprep.subr.mxu0 %v22527_v42  ;;  %v9130_v2 = vadd.f32 %v22634_v60, %v8601_v9  ;;  %v9661_v50 = vadd.f32 %v22635_v41, %v9132_v62  ;;  %v10752_v24 = vadd.f32 %v10528_v34, %v10216_v33  ;;  %v22638_v27 = vld [vmem:[#allocation77_spill] sm:$0xff]  ;;  %v22639_v62 = vld [vmem:[#allocation72_spill] sm:$0xff]  ;;  %v22640_v34 = vld [vmem:[#allocation43_spill] sm:$0xff] }
 0x4f2   : > { %10975 = vmatpush1.msra.mxu1 %v20735_v11  ;;  %11410 = vmatpush1.msra.mxu0 %v20735_v11  ;;  %v20752_v4 = vpop.f32.mrf.mxu0  ;;  %v10523_v36 = vadd.f32 %v20575_v17, %v22636_v14  ;;  %v9128_v16 = vadd.f32 %v22639_v62, %v22638_v27  ;;  %v9663_v33 = vadd.f32 %v22640_v34, %v9134_v58  ;;  %v20796_v14 = vmax.f32 %v10753_v25, 0.0  ;;  %v22643_v62 = vld [vmem:[#allocation42_spill] sm:$0xff] }
 0x4f3   : > { %v10063_v6 = vpop.f32.mrf.mxu1  ;;  %10976 = vmatprep.subr.mxu1 %v22527_v42  ;;  %11411 = vmatprep.subr.mxu0 %v22527_v42  ;;  %v20807_v58 = vmax.f32 %v10752_v24, 0.0 }
 0x4f4   : > { %10977 = vmatpush1.msra.mxu1 %v20748_v32  ;;  %11412 = vmatpush1.msra.mxu0 %v20748_v32  ;;  %v16130_v54 = vpop.f32.mrf.mxu0  ;;  %v10751_v18 = vadd.f32 %v10523_v36, %v10215_v31 }
 0x4f5   : > { %v16059_v3 = vpop.f32.mrf.mxu1  ;;  %10978 = vmatprep.subr.mxu1 %v22527_v42  ;;  %11413 = vmatprep.subr.mxu0 %v22527_v42  ;;  %v10668_v32 = vadd.f32 %v16130_v54, %v20575_v17 }
 0x4f6   : > { %10979 = vmatpush1.msra.mxu1 %v20763_v22  ;;  %11414 = vmatpush1.msra.mxu0 %v20763_v22  ;;  %v10662_v29 = vpop.f32.mrf.mxu0  ;;  %v10191_v43 = vadd.f32 %v16059_v3, %v22637_v46  ;;  %v22641_v3 = vld [vmem:[#allocation13_spill] sm:$0xff]  ;;  %v9659_v22 = vadd.f32 %v22643_v62, %v9130_v2  ;;  %v22644_v2 = vld [vmem:[#allocation51_spill] sm:$0xff]  ;;  %v20821_v24 = vmax.f32 %v10751_v18, 0.0  ;;  %v10658_v18 = vadd.f32 %v20739_v8, %v20575_v17 }
 0x4f7   : > { %v10073_v61 = vpop.f32.mrf.mxu1  ;;  %10980 = vmatprep.subr.mxu1 %v22527_v42  ;;  %11415 = vmatprep.subr.mxu0 %v22527_v42  ;;  %v9657_v54 = vadd.f32 %v22644_v2, %v9128_v16  ;;  %v22649_v8 = vld [vmem:[#allocation69_spill] sm:$0xff] }
 0x4f8   : > { %10981 = vmatpush1.msra.mxu1 %v20772_v26  ;;  %11416 = vmatpush1.msra.mxu0 %v20772_v26  ;;  %v16133_v9 = vpop.f32.mrf.mxu0  ;;  %v10190_v60 = vadd.f32 %v10073_v61, %v9661_v50  ;;  %v22642_v50 = vld [vmem:[#allocation20_spill] sm:$0xff]  ;;  %v10244_v31 = vadd.f32 %v20585_v44, %v10191_v43  ;;  %22645 = vst [vmem:[#allocation97_spill] sm:$0xff] %v20821_v24 }
 0x4f9   : > { %v16062_v41 = vpop.f32.mrf.mxu1  ;;  %10982 = vmatprep.subr.mxu1 %v22527_v42  ;;  %11417 = vmatprep.subr.mxu0 %v22527_v42  ;;  %v10678_v26 = vadd.f32 %v16133_v9, %v20575_v17  ;;  %v10189_v61 = vadd.f32 %v16056_v5, %v22642_v50  ;;  %v10188_v9 = vadd.f32 %v10063_v6, %v9659_v22  ;;  %v22646_v22 = vld [vmem:[#allocation26_spill] sm:$0xff] }
 0x4fa   : > { %v10193_v46 = vadd.f32 %v16062_v41, %v22641_v3  ;;  %10983 = vmatpush1.msra.mxu1 %v20786_v39  ;;  %11418 = vmatpush1.msra.mxu0 %v20786_v39  ;;  %v10672_v27 = vpop.f32.mrf.mxu0  ;;  %v10243_v41 = vadd.f32 %v20585_v44, %v10190_v60  ;;  %v10187_v16 = vadd.f32 %v20711_v20, %v22646_v22 }
 0x4fb   : > { %v10083_v11 = vpop.f32.mrf.mxu1  ;;  %10984 = vmatprep.subr.mxu1 %v22527_v42  ;;  %11419 = vmatprep.subr.mxu0 %v22527_v42  ;;  %v10242_v60 = vadd.f32 %v20585_v44, %v10189_v61  ;;  %v22648_v61 = vld [vmem:[#allocation14_spill] sm:$0xff] }
 0x4fc   : > { %v10246_v25 = vadd.f32 %v20585_v44, %v10193_v46  ;;  %v10192_v36 = vadd.f32 %v10083_v11, %v9663_v33  ;;  %10985 = vmatpush1.msra.mxu1 %v20796_v14  ;;  %11420 = vmatpush1.msra.mxu0 %v20796_v14  ;;  %v20813_v5 = vpop.f32.mrf.mxu0  ;;  %v10673_v33 = vadd.f32 %v20575_v17, %v10672_v27 }
 0x4fd   : > { %v20817_v34 = vpop.f32.mrf.mxu1  ;;  %10986 = vmatprep.subr.mxu1 %v22527_v42  ;;  %11421 = vmatprep.subr.mxu0 %v22527_v42  ;;  %v10663_v46 = vadd.f32 %v20575_v17, %v10662_v29  ;;  %v9124_v62 = vadd.f32 %v22649_v8, %v22648_v61  ;;  %v10241_v29 = vadd.f32 %v20585_v44, %v10188_v9 }
 0x4fe   : > { %v10245_v11 = vadd.f32 %v20585_v44, %v10192_v36  ;;  %v10782_v43 = vadd.f32 %v10678_v26, %v10246_v25  ;;  %10987 = vmatpush1.msra.mxu1 %v20807_v58  ;;  %11422 = vmatpush1.msra.mxu0 %v20807_v58  ;;  %v20827_v6 = vpop.f32.mrf.mxu0  ;;  %v10780_v26 = vadd.f32 %v10668_v32, %v10244_v31 }
 0x4ff   : > { %v20834_v3 = vpop.f32.mrf.mxu1  ;;  %10988 = vmatprep.subr.mxu1 %v22527_v42  ;;  %11423 = vmatprep.subr.mxu0 %v22527_v42  ;;  %v10186_v32 = vadd.f32 %v20728_v40, %v9657_v54  ;;  %v10779_v31 = vadd.f32 %v10663_v46, %v10243_v41  ;;  %v10648_v40 = vadd.f32 %v20705_v63, %v20575_v17  ;;  %v22654_v63 = vld [vmem:[#allocation62_spill] sm:$0xff] }
 0x500   : > { %v20839_v27 = vmax.f32 %v10782_v43, 0.0  ;;  %v10781_v50 = vadd.f32 %v10673_v33, %v10245_v11  ;;  %10989 = vmatpush1.msra.mxu1 %v20821_v24  ;;  %11424 = vmatpush1.msra.mxu0 %v20821_v24  ;;  %v20843_v20 = vpop.f32.mrf.mxu0  ;;  %v22651_v11 = vld [vmem:[#allocation19_spill] sm:$0xff]  ;;  %v22652_v33 = vld [vmem:[#allocation41_spill] sm:$0xff]  ;;  %v10240_v9 = vadd.f32 %v20585_v44, %v10187_v16  ;;  %v10778_v41 = vadd.f32 %v10658_v18, %v10242_v60 }
 0x501   : > { %v20847_v25 = vpop.f32.mrf.mxu1  ;;  %10990 = vmatprep.subr.mxu1 %v22527_v42  ;;  %11425 = vmatprep.subr.mxu0 %v22527_v42  ;;  %v10185_v43 = vadd.f32 %v20677_v59, %v22651_v11  ;;  %v9655_v22 = vadd.f32 %v22652_v33, %v20778_v53  ;;  %v10653_v46 = vadd.f32 %v20575_v17, %v20752_v4  ;;  %v22655_v53 = vld [vmem:[#allocation48_spill] sm:$0xff]  ;;  %v20886_v18 = vmax.f32 %v10779_v31, 0.0  ;;  %v22657_v11 = vld [vmem:[#allocation25_spill] sm:$0xff] }
 0x502   : > { %22647 = vst [vmem:[#allocation58_spill] sm:$0xff] %v20839_v27  ;;  %v20853_v36 = vmax.f32 %v10781_v50, 0.0  ;;  %10991 = vmatpush2.msra.mxu1 %v20839_v27  ;;  %11426 = vmatpush2.msra.mxu0 %v20839_v27  ;;  %v20857_v2 = vpop.f32.mrf.mxu0  ;;  %v20872_v50 = vmax.f32 %v10780_v26, 0.0  ;;  %v9122_v61 = vadd.f32 %v22655_v53, %v22654_v63  ;;  %v10239_v4 = vadd.f32 %v20585_v44, %v10186_v32  ;;  %v22658_v63 = vld [vmem:[#allocation49_spill] sm:$0xff] }
 0x503   : > { %v20865_v54 = vpop.f32.mrf.mxu1  ;;  %10992 = vmatprep.subr.mxu1 %v22527_v42  ;;  %11427 = vmatprep.subr.mxu0 %v22527_v42  ;;  %v10184_v16 = vadd.f32 %v20694_v7, %v9655_v22  ;;  %v10777_v60 = vadd.f32 %v10653_v46, %v10241_v29  ;;  %22656 = vst [vmem:[#allocation98_spill] sm:$0xff] %v20886_v18  ;;  %v20904_v22 = vmax.f32 %v10778_v41, 0.0 }
 0x504   : > { %22650 = vst [vmem:[#allocation96_spill] sm:$0xff] %v20853_v36  ;;  %22653 = vst [vmem:[#allocation99_spill] sm:$0xff] %v20872_v50  ;;  %10993 = vmatpush2.msra.mxu1 %v20853_v36  ;;  %11428 = vmatpush2.msra.mxu0 %v20853_v36  ;;  %v20876_v59 = vpop.f32.mrf.mxu0  ;;  %v10183_v33 = vadd.f32 %v20645_v10, %v22657_v11  ;;  %v9653_v53 = vadd.f32 %v22658_v63, %v9124_v62  ;;  %v22661_v62 = vld [vmem:[#allocation11_spill] sm:$0xff]  ;;  %v22662_v11 = vld [vmem:[#allocation74_spill] sm:$0xff] }
 0x505   : > { %v20880_v8 = vpop.f32.mrf.mxu1  ;;  %10994 = vmatprep.subr.mxu1 %v22527_v42  ;;  %11429 = vmatprep.subr.mxu0 %v22527_v42  ;;  %v10638_v36 = vadd.f32 %v20673_v45, %v20575_v17  ;;  %v10238_v32 = vadd.f32 %v20585_v44, %v10185_v43  ;;  %v10776_v29 = vadd.f32 %v10648_v40, %v10240_v9  ;;  %v22660_v45 = vld [vmem:[#allocation71_spill] sm:$0xff]  ;;  %v22663_v63 = vld [vmem:[#allocation40_spill] sm:$0xff]  ;;  %v20920_v9 = vmax.f32 %v10777_v60, 0.0 }
 0x506   : > { %10995 = vmatpush2.msra.mxu1 %v20872_v50  ;;  %11430 = vmatpush2.msra.mxu0 %v20872_v50  ;;  %v20890_v26 = vpop.f32.mrf.mxu0  ;;  %v10643_v31 = vadd.f32 %v20575_v17, %v20721_v0  ;;  %22659 = vst [vmem:[#allocation95_spill] sm:$0xff] %v20904_v22  ;;  %v8090_v46 = vadd.f32 %v22661_v62, %v22660_v45  ;;  %v22665_v45 = vld [vmem:[#allocation12_spill] sm:$0xff] }
 0x507   : > { %v20897_v7 = vpop.f32.mrf.mxu1  ;;  %10996 = vmatprep.subr.mxu1 %v22527_v42  ;;  %11431 = vmatprep.subr.mxu0 %v22527_v42  ;;  %v9120_v50 = vadd.f32 %v22663_v63, %v22662_v11  ;;  %v10182_v0 = vadd.f32 %v20662_v48, %v9653_v53  ;;  %v10237_v43 = vadd.f32 %v20585_v44, %v10184_v16  ;;  %v22666_v11 = vld [vmem:[#allocation70_spill] sm:$0xff]  ;;  %v20938_v53 = vmax.f32 %v10776_v29, 0.0 }
 0x508   : > { %10997 = vmatpush2.msra.mxu1 %v20886_v18  ;;  %11432 = vmatpush2.msra.mxu0 %v20886_v18  ;;  %v20908_v10 = vpop.f32.mrf.mxu0  ;;  %v10775_v40 = vadd.f32 %v10643_v31, %v10239_v4  ;;  %22664 = vst [vmem:[#allocation91_spill] sm:$0xff] %v20920_v9  ;;  %v10181_v62 = vadd.f32 %v20616_v52, %v22665_v45  ;;  %v22670_v45 = vld [vmem:[#allocation30_spill] sm:$0xff] }
 0x509   : > { %v20914_v27 = vpop.f32.mrf.mxu1  ;;  %10998 = vmatprep.subr.mxu1 %v22527_v42  ;;  %11433 = vmatprep.subr.mxu0 %v22527_v42  ;;  %v9651_v63 = vadd.f32 %v22666_v11, %v9122_v61  ;;  %v10628_v18 = vadd.f32 %v20641_v12, %v20575_v17  ;;  %v10236_v16 = vadd.f32 %v20585_v44, %v10183_v33  ;;  %v22668_v12 = vld [vmem:[#allocation6_spill] sm:$0xff]  ;;  %v22669_v61 = vld [vmem:[#allocation68_spill] sm:$0xff] }
 0x50a   : > { %10999 = vmatpush2.msra.mxu1 %v20904_v22  ;;  %11434 = vmatpush2.msra.mxu0 %v20904_v22  ;;  %v20924_v41 = vpop.f32.mrf.mxu0  ;;  %v10774_v4 = vadd.f32 %v10638_v36, %v10238_v32  ;;  %v10633_v60 = vadd.f32 %v20575_v17, %v20687_v47  ;;  %22667 = vst [vmem:[#allocation67_spill] sm:$0xff] %v20938_v53  ;;  %v20953_v32 = vmax.f32 %v10775_v40, 0.0 }
 0x50b   : > { %v20931_v48 = vpop.f32.mrf.mxu1  ;;  %11000 = vmatprep.subr.mxu1 %v22527_v42  ;;  %11435 = vmatprep.subr.mxu0 %v22527_v42  ;;  %v8088_v31 = vadd.f32 %v22669_v61, %v22668_v12  ;;  %v8619_v11 = vadd.f32 %v22670_v45, %v8090_v46  ;;  %v10180_v47 = vadd.f32 %v20630_v38, %v9651_v63  ;;  %v22672_v46 = vld [vmem:[#allocation22_spill] sm:$0xff]  ;;  %v22673_v61 = vld [vmem:[#allocation24_spill] sm:$0xff] }
 0x50c   : > { %11001 = vmatpush2.msra.mxu1 %v20920_v9  ;;  %11436 = vmatpush2.msra.mxu0 %v20920_v9  ;;  %v20942_v52 = vpop.f32.mrf.mxu0  ;;  %v10235_v36 = vadd.f32 %v20585_v44, %v10182_v0  ;;  %v10773_v33 = vadd.f32 %v10633_v60, %v10237_v43  ;;  %22671 = vst [vmem:[#allocation90_spill] sm:$0xff] %v20953_v32  ;;  %v20971_v63 = vmax.f32 %v10774_v4, 0.0 }
 0x50d   : > { %v20947_v22 = vpop.f32.mrf.mxu1  ;;  %11002 = vmatprep.subr.mxu1 %v22527_v42  ;;  %11437 = vmatprep.subr.mxu0 %v22527_v42  ;;  %v10179_v12 = vadd.f32 %v20596_v35, %v22672_v46  ;;  %v9649_v45 = vadd.f32 %v22673_v61, %v9120_v50  ;;  %v10618_v9 = vadd.f32 %v20612_v23, %v20575_v17  ;;  %v22675_v23 = vld [vmem:[#allocation87_spill] sm:$0xff]  ;;  %v22676_v46 = vld [vmem:[#allocation92_spill] sm:$0xff] }
 0x50e   : > { %11003 = vmatpush2.msra.mxu1 %v20938_v53  ;;  %11438 = vmatpush2.msra.mxu0 %v20938_v53  ;;  %v20957_v29 = vpop.f32.mrf.mxu0  ;;  %v10234_v0 = vadd.f32 %v20585_v44, %v10181_v62  ;;  %v10772_v43 = vadd.f32 %v10628_v18, %v10236_v16  ;;  %v10623_v40 = vadd.f32 %v20575_v17, %v20655_v19  ;;  %v20982_v16 = vmax.f32 %v10773_v33, 0.0 }
 0x50f   : > { %v20964_v38 = vpop.f32.mrf.mxu1  ;;  %11004 = vmatprep.subr.mxu1 %v22527_v42  ;;  %11439 = vmatprep.subr.mxu0 %v22527_v42  ;;  %22674 = vst [vmem:[#allocation32_spill] sm:$0xff] %v20971_v63  ;;  %v9148_v50 = vadd.f32 %v22675_v23, %v8619_v11  ;;  %v10178_v18 = vadd.f32 %v20607_v37, %v9649_v45  ;;  %v22677_v45 = vld [vmem:[#allocation38_spill] sm:$0xff] }
 0x510   : > { %11005 = vmatpush2.msra.mxu1 %v20953_v32  ;;  %11440 = vmatpush2.msra.mxu0 %v20953_v32  ;;  %v20975_v35 = vpop.f32.mrf.mxu0  ;;  %v10233_v62 = vadd.f32 %v20585_v44, %v10180_v47  ;;  %v10771_v19 = vadd.f32 %v10623_v40, %v10235_v36  ;;  %v8617_v11 = vadd.f32 %v22676_v46, %v8088_v31  ;;  %v20996_v33 = vmax.f32 %v10772_v43, 0.0  ;;  %v22679_v46 = vld [vmem:[#allocation88_spill] sm:$0xff] }
 0x511   : > { %v16080_v60 = vpop.f32.mrf.mxu1  ;;  %11006 = vmatprep.subr.mxu1 %v22527_v42  ;;  %11441 = vmatprep.subr.mxu0 %v22527_v42  ;;  %v10608_v61 = vadd.f32 %v20592_v49, %v20575_v17  ;;  %v10232_v37 = vadd.f32 %v20585_v44, %v10179_v12  ;;  %v10770_v47 = vadd.f32 %v10618_v9, %v10234_v0  ;;  %v22678_v49 = vld [vmem:[#allocation89_spill] sm:$0xff]  ;;  %v22680_v32 = vld [vmem:[#allocation16_spill] sm:$0xff]  ;;  %v22681_v0 = vld [vmem:[#allocation10_spill] sm:$0xff] }
 0x512   : > { %11007 = vmatpush2.msra.mxu1 %v20971_v63  ;;  %11442 = vmatpush2.msra.mxu0 %v20971_v63  ;;  %v20986_v4 = vpop.f32.mrf.mxu0  ;;  %v10613_v36 = vadd.f32 %v20575_v17, %v20623_v13  ;;  %v8086_v40 = vadd.f32 %v22678_v49, %v22677_v45  ;;  %v9146_v63 = vadd.f32 %v22679_v46, %v8617_v11  ;;  %v21007_v12 = vmax.f32 %v10771_v19, 0.0  ;;  %v22684_v49 = vld [vmem:[#allocation50_spill] sm:$0xff] }
 0x513   : > { %v10143_v23 = vpop.f32.mrf.mxu1  ;;  %11008 = vmatprep.subr.mxu1 %v22527_v42  ;;  %11443 = vmatprep.subr.mxu0 %v22527_v42  ;;  %v9677_v53 = vadd.f32 %v22680_v32, %v9148_v50  ;;  %v10231_v13 = vadd.f32 %v20585_v44, %v10178_v18  ;;  %v10768_v32 = vadd.f32 %v10608_v61, %v10232_v37  ;;  %v21016_v11 = vmax.f32 %v10770_v47, 0.0  ;;  %v22682_v61 = vld [vmem:[#allocation65_spill] sm:$0xff]  ;;  %v22683_v47 = vld [vmem:[#allocation46_spill] sm:$0xff] }
 0x514   : > { %11009 = vmatpush2.msra.mxu1 %v20982_v16  ;;  %11444 = vmatpush2.msra.mxu0 %v20982_v16  ;;  %v16154_v31 = vpop.f32.mrf.mxu0  ;;  %v10769_v9 = vadd.f32 %v10613_v36, %v10233_v62  ;;  %v10603_v50 = vadd.f32 %v20575_v17, %v20601_v28  ;;  %v8615_v37 = vadd.f32 %v22682_v61, %v8086_v40  ;;  %v22685_v40 = vld [vmem:[#allocation37_spill] sm:$0xff] }
 0x515   : > { %v16083_v24 = vpop.f32.mrf.mxu1  ;;  %11010 = vmatprep.subr.mxu1 %v22527_v42  ;;  %11445 = vmatprep.subr.mxu0 %v22527_v42  ;;  %v10748_v19 = vadd.f32 %v16154_v31, %v20575_v17  ;;  %v10205_v46 = vadd.f32 %v16080_v60, %v22684_v49  ;;  %v10738_v61 = vadd.f32 %v20975_v35, %v20575_v17 }
 0x516   : > { %v10207_v43 = vadd.f32 %v16083_v24, %v22681_v0  ;;  %11011 = vmatpush2.msra.mxu1 %v20996_v33  ;;  %11446 = vmatpush2.msra.mxu0 %v20996_v33  ;;  %v10742_v24 = vpop.f32.mrf.mxu0  ;;  %v10767_v36 = vadd.f32 %v10603_v50, %v10231_v13  ;;  %v21025_v28 = vmax.f32 %v10769_v9, 0.0  ;;  %v22686_v13 = vld [vmem:[#allocation17_spill] sm:$0xff]  ;;  %v10733_v35 = vadd.f32 %v20575_v17, %v20986_v4  ;;  %v11283_v4 = vld [vmem:[#allocation3 + $0x1e8] sm:$0xff] }
 0x517   : > { %v10153_v45 = vpop.f32.mrf.mxu1  ;;  %11012 = vmatprep.subr.mxu1 %v22527_v42  ;;  %11447 = vmatprep.subr.mxu0 %v22527_v42  ;;  %v10743_v31 = vadd.f32 %v20575_v17, %v10742_v24  ;;  %v8084_v9 = vadd.f32 %v22686_v13, %v22685_v40  ;;  %v10843_v24 = vld [vmem:[#allocation3] sm:$0xff] }
 0x518   : > { %v10206_v18 = vadd.f32 %v10153_v45, %v9677_v53  ;;  %11013 = vmatpush2.msra.mxu1 %v21007_v12  ;;  %11448 = vmatpush2.msra.mxu0 %v21007_v12  ;;  %v10260_v62 = vadd.f32 %v20585_v44, %v10207_v43  ;;  %v9675_v53 = vadd.f32 %v22683_v47, %v9146_v63  ;;  %v22687_v43 = vld [vmem:[#allocation84_spill] sm:$0xff]  ;;  %v21038_v63 = vmax.f32 %v10768_v32, 0.0  ;;  %v22692_v40 = vld [vmem:[#allocation66_spill] sm:$0xff] }
 0x519   : > { %11014 = vmatprep.subr.mxu1 %v22527_v42  ;;  %11449 = vmatprep.subr.mxu0 %v22527_v42  ;;  %v9144_v45 = vadd.f32 %v22687_v43, %v8615_v37  ;;  %v10258_v32 = vadd.f32 %v20585_v44, %v10205_v46 }
 0x51a   : > { %11015 = vmatpush2.msra.mxu1 %v21016_v11  ;;  %11450 = vmatpush2.msra.mxu0 %v21016_v11  ;;  %v10259_v0 = vadd.f32 %v20585_v44, %v10206_v18  ;;  %v10204_v60 = vadd.f32 %v10143_v23, %v9675_v53  ;;  %v10796_v50 = vadd.f32 %v10748_v19, %v10260_v62  ;;  %v21044_v18 = vmax.f32 %v10767_v36, 0.0  ;;  %v11279_v23 = vld [vmem:[#allocation3 + $0x1c8] sm:$0xff]  ;;  %v22688_v62 = vld [vmem:[#allocation29_spill] sm:$0xff]  ;;  %v22690_v53 = vld [vmem:[#allocation8_spill] sm:$0xff] }
 0x51b   : > { %11016 = vmatprep.subr.mxu1 %v22527_v42  ;;  %11451 = vmatprep.subr.mxu0 %v22527_v42  ;;  %v8613_v19 = vadd.f32 %v22688_v62, %v8084_v9  ;;  %v22689_v36 = vld [vmem:[#allocation57_spill] sm:$0xff]  ;;  %v10203_v49 = vadd.f32 %v20947_v22, %v22690_v53 }
 0x51c   : > { %11017 = vmatpush2.msra.mxu1 %v21025_v28  ;;  %11452 = vmatpush2.msra.mxu0 %v21025_v28  ;;  %v10795_v37 = vadd.f32 %v10743_v31, %v10259_v0  ;;  %v9673_v47 = vadd.f32 %v22689_v36, %v9144_v45  ;;  %v10257_v46 = vadd.f32 %v20585_v44, %v10204_v60  ;;  %v21062_v0 = vmax.f32 %v10796_v50, 0.0  ;;  %v22691_v31 = vld [vmem:[#allocation36_spill] sm:$0xff]  ;;  %v22693_v9 = vld [vmem:[#allocation85_spill] sm:$0xff]  ;;  %v10847_v45 = vld [vmem:[#allocation3 + $0x20] sm:$0xff] }
 0x51d   : > { %11018 = vmatprep.subr.mxu1 %v22527_v42  ;;  %11453 = vmatprep.subr.mxu0 %v22527_v42  ;;  %v8082_v13 = vadd.f32 %v22692_v40, %v22691_v31  ;;  %v9142_v43 = vadd.f32 %v22693_v9, %v8613_v19  ;;  %v10794_v60 = vadd.f32 %v10738_v61, %v10258_v32  ;;  %v10846_v50 = vld [vmem:[#allocation3 + $0x18] sm:$0xff]  ;;  %v22694_v32 = vld [vmem:[#allocation86_spill] sm:$0xff]  ;;  %v22698_v31 = vld [vmem:[#allocation83_spill] sm:$0xff] }
 0x51e   : > { %11019 = vmatpush2.msra.mxu1 %v21038_v63  ;;  %11454 = vmatpush2.msra.mxu0 %v21038_v63  ;;  %v10202_v22 = vadd.f32 %v20964_v38, %v9673_v47  ;;  %v21070_v62 = vmax.f32 %v10795_v37, 0.0  ;;  %v10793_v19 = vadd.f32 %v10733_v35, %v10257_v46  ;;  %v11282_v38 = vld [vmem:[#allocation3 + $0x1e0] sm:$0xff]  ;;  %v22695_v37 = vld [vmem:[#allocation45_spill] sm:$0xff]  ;;  %v22696_v47 = vld [vmem:[#allocation31_spill] sm:$0xff] }
 0x51f   : > { %11020 = vmatprep.subr.mxu1 %v22527_v42  ;;  %11455 = vmatprep.subr.mxu0 %v22527_v42  ;;  %v8611_v61 = vadd.f32 %v22694_v32, %v8082_v13  ;;  %v9671_v36 = vadd.f32 %v22695_v37, %v9142_v43  ;;  %v10201_v53 = vadd.f32 %v20914_v27, %v22696_v47  ;;  %v21088_v46 = vmax.f32 %v10794_v60, 0.0  ;;  %v22697_v35 = vld [vmem:[#allocation35_spill] sm:$0xff]  ;;  %v22699_v13 = vld [vmem:[#allocation81_spill] sm:$0xff]  ;;  %v10849_v60 = vld [vmem:[#allocation3 + $0x30] sm:$0xff] }
 0x520   : > { %11021 = vmatpush2.msra.mxu1 %v21044_v18  ;;  %11456 = vmatpush2.msra.mxu0 %v21044_v18  ;;  %v8080_v40 = vadd.f32 %v22698_v31, %v22697_v35  ;;  %v10850_v43 = vld [vmem:[#allocation3 + $0x38] sm:$0xff]  ;;  %v22705_v35 = vld [vmem:[#allocation82_spill] sm:$0xff] }
 0x521   : > { %11023 = vmatmul.mubr.f32.vlgmr.msra.gmra.mxu1 %v10843_v24  ;;  %16155 = vmatprep.subr.mxu1 %v22527_v42  ;;  %v10256_v24 = vadd.f32 %v20585_v44, %v10203_v49  ;;  %v10255_v49 = vadd.f32 %v20585_v44, %v10202_v22  ;;  %v9140_v9 = vadd.f32 %v22699_v13, %v8611_v61  ;;  %v21096_v22 = vmax.f32 %v10793_v19, 0.0  ;;  %v22701_v19 = vld [vmem:[#allocation55_spill] sm:$0xff] }
 0x522   : > { %11458 = vmatmul.mubr.f32.vlgmr.msra.gmra.mxu0 %v11279_v23  ;;  %11847 = vmatprep.subr.mxu0 %v22527_v42  ;;  %v10728_v23 = vadd.f32 %v20942_v52, %v20575_v17  ;;  %v10723_v52 = vadd.f32 %v20575_v17, %v20957_v29  ;;  %v10200_v27 = vadd.f32 %v20931_v48, %v9671_v36  ;;  %v11286_v29 = vld [vmem:[#allocation3 + $0x200] sm:$0xff]  ;;  %v11285_v48 = vld [vmem:[#allocation3 + $0x1f8] sm:$0xff]  ;;  %v22702_v61 = vld [vmem:[#allocation39_spill] sm:$0xff] }
 0x523   : > { %16156 = vmatpush3.msra.mxu1 %v21062_v0  ;;  %11848 = vmatpush1.msra.mxu0 %v20610_v21  ;;  %v9669_v32 = vadd.f32 %v22701_v19, %v9140_v9  ;;  %v10199_v37 = vadd.f32 %v20880_v8, %v22702_v61 }
 0x524   : > { %16157 = vmatprep.subr.mxu1 %v22527_v42  ;;  %11849 = vmatprep.subr.mxu0 %v22527_v42  ;;  %v10253_v36 = vadd.f32 %v20585_v44, %v10200_v27 }
 0x525   : > { %11027 = vmatprep.mubr.f32.mxu1 %v10847_v45  ;;  %16158 = vmatpush3.msra.mxu1 %v21070_v62  ;;  %v10792_v45 = vadd.f32 %v10728_v23, %v10256_v24  ;;  %v22700_v24 = vld [vmem:[#allocation63_spill] sm:$0xff]  ;;  %v10198_v8 = vadd.f32 %v20897_v7, %v9669_v32  ;;  %v10252_v27 = vadd.f32 %v20585_v44, %v10199_v37  ;;  %v11288_v7 = vld [vmem:[#allocation3 + $0x210] sm:$0xff]  ;;  %v22709_v32 = vld [vmem:[#allocation78_spill] sm:$0xff] }
 0x526   : > { %11462 = vmatprep.mubr.f32.mxu0 %v11283_v4  ;;  %11850 = vmatpush1.msra.mxu0 %v20619_v57  ;;  %v10254_v4 = vadd.f32 %v20585_v44, %v10201_v53  ;;  %v8609_v23 = vadd.f32 %v22700_v24, %v8080_v40  ;;  %v22703_v53 = vld [vmem:[#allocation34_spill] sm:$0xff]  ;;  %v10853_v40 = vld [vmem:[#allocation3 + $0x50] sm:$0xff]  ;;  %v10856_v37 = vld [vmem:[#allocation3 + $0x68] sm:$0xff] }
 0x527   : > { %11028 = vmatmul.mubr.f32.gmra.mxu1 %v10846_v50  ;;  %16159 = vmatprep.subr.mxu1 %v22527_v42  ;;  %v10718_v50 = vadd.f32 %v20908_v10, %v20575_v17  ;;  %v10713_v10 = vadd.f32 %v20575_v17, %v20924_v41  ;;  %v21114_v47 = vmax.f32 %v10792_v45, 0.0  ;;  %v11289_v41 = vld [vmem:[#allocation3 + $0x218] sm:$0xff]  ;;  %v10708_v45 = vadd.f32 %v20876_v59, %v20575_v17 }
 0x528   : > { %11463 = vmatmul.mubr.f32.gmra.mxu0 %v11282_v38  ;;  %11851 = vmatprep.subr.mxu0 %v22527_v42  ;;  %v10791_v38 = vadd.f32 %v10723_v52, %v10255_v49  ;;  %v22704_v49 = vld [vmem:[#allocation9_spill] sm:$0xff]  ;;  %v9138_v31 = vadd.f32 %v22705_v35, %v8609_v23  ;;  %v10251_v23 = vadd.f32 %v20585_v44, %v10198_v8  ;;  %v10855_v44 = vld [vmem:[#allocation3 + $0x60] sm:$0xff]  ;;  %v11291_v35 = vld [vmem:[#allocation3 + $0x228] sm:$0xff] }
 0x529   : > { %16160 = vmatpush3.msra.mxu1 %v21088_v46  ;;  %11852 = vmatpush1.msra.mxu0 %v20637_v15  ;;  %v8078_v52 = vadd.f32 %v22704_v49, %v22703_v53  ;;  %v10790_v13 = vadd.f32 %v10718_v50, %v10254_v4  ;;  %v22707_v50 = vld [vmem:[#allocation44_spill] sm:$0xff]  ;;  %v10703_v59 = vadd.f32 %v20575_v17, %v20890_v26  ;;  %v16551_v26 = vld [vmem:[%s22180_s4] ss:$0 sm:$0xff] }
 0x52a   : > { %16161 = vmatprep.subr.mxu1 %v22527_v42  ;;  %11853 = vmatprep.subr.mxu0 %v22527_v42  ;;  %v21122_v9 = vmax.f32 %v10791_v38, 0.0  ;;  %v9667_v38 = vadd.f32 %v22707_v50, %v9138_v31  ;;  %v11292_v17 = vld [vmem:[#allocation3 + $0x230] sm:$0xff]  ;;  %v22710_v31 = vld [vmem:[#allocation54_spill] sm:$0xff] }
 0x52b   : > { %11032 = vmatprep.mubr.f32.mxu1 %v10850_v43  ;;  %16162 = vmatpush3.msra.mxu1 %v21096_v22  ;;  %v10852_v43 = vld [vmem:[#allocation3 + $0x48] sm:$0xff]  ;;  %v21140_v19 = vmax.f32 %v10790_v13, 0.0  ;;  %v22711_v8 = vld [vmem:[#allocation28_spill] sm:$0xff] }
 0x52c   : > { %11467 = vmatprep.mubr.f32.mxu0 %v11286_v29  ;;  %11854 = vmatpush1.msra.mxu0 %v20651_v1  ;;  %v10789_v29 = vadd.f32 %v10713_v10, %v10253_v36  ;;  %v10196_v36 = vadd.f32 %v20865_v54, %v9667_v38  ;;  %v10788_v10 = vadd.f32 %v10708_v45, %v10252_v27  ;;  %v16552_v54 = vld [vmem:[%s22182_s6] ss:$0 sm:$0xff] }
 0x52d   : > { %11033 = vmatmul.mubr.f32.gmra.mxu1 %v10849_v60  ;;  %16163 = vmatprep.subr.mxu1 %v22527_v42  ;;  %v22706_v60 = vld [vmem:[#allocation21_spill] sm:$0xff]  ;;  %v10698_v49 = vadd.f32 %v16552_v54, %v20843_v20  ;;  %v10195_v13 = vadd.f32 %v20817_v34, %v22711_v8  ;;  %v10859_v20 = vld [vmem:[#allocation3 + $0x80] sm:$0xff]  ;;  %v10688_v50 = vadd.f32 %v16552_v54, %v20813_v5 }
 0x52e   : > { %11468 = vmatmul.mubr.f32.gmra.mxu0 %v11285_v48  ;;  %11855 = vmatprep.subr.mxu0 %v22527_v42  ;;  %v8607_v4 = vadd.f32 %v22706_v60, %v8078_v52  ;;  %v22708_v48 = vld [vmem:[#allocation15_spill] sm:$0xff]  ;;  %v10787_v52 = vadd.f32 %v10703_v59, %v10251_v23  ;;  %v21165_v27 = vmax.f32 %v10788_v10, 0.0  ;;  %v22712_v34 = vld [vmem:[#allocation94_spill] sm:$0xff]  ;;  %v10683_v23 = vadd.f32 %v16552_v54, %v20827_v6  ;;  %v10862_v5 = vld [vmem:[#allocation3 + $0x98] sm:$0xff] }
 0x52f   : > { %16164 = vmatpush3.msra.mxu1 %v21114_v47  ;;  %11856 = vmatpush1.msra.mxu0 %v20669_v30  ;;  %v10197_v24 = vadd.f32 %v20847_v25, %v22708_v48  ;;  %v21146_v25 = vmax.f32 %v10789_v29, 0.0  ;;  %v11295_v60 = vld [vmem:[#allocation3 + $0x248] sm:$0xff]  ;;  %v22713_v48 = vld [vmem:[#allocation56_spill] sm:$0xff]  ;;  %v10867_v8 = vld [vmem:[#allocation3 + $0xc0] sm:$0xff] }
 0x530   : > { %16165 = vmatprep.subr.mxu1 %v22527_v42  ;;  %11857 = vmatprep.subr.mxu0 %v22527_v42  ;;  %v9136_v61 = vadd.f32 %v22709_v32, %v8607_v4  ;;  %v10248_v4 = vadd.f32 %v16551_v26, %v10195_v13  ;;  %v10861_v6 = vld [vmem:[#allocation3 + $0x90] sm:$0xff]  ;;  %v11303_v13 = vld [vmem:[#allocation3 + $0x288] sm:$0xff] }
 0x531   : > { %11037 = vmatprep.mubr.f32.mxu1 %v10853_v40  ;;  %16166 = vmatpush3.msra.mxu1 %v21122_v9  ;;  %v10250_v53 = vadd.f32 %v16551_v26, %v10197_v24 }
 0x532   : > { %11472 = vmatprep.mubr.f32.mxu0 %v11289_v41  ;;  %11858 = vmatpush1.msra.mxu0 %v20683_v56  ;;  %v9665_v40 = vadd.f32 %v22710_v31, %v9136_v61  ;;  %v10249_v41 = vadd.f32 %v16551_v26, %v10196_v36  ;;  %v10784_v32 = vadd.f32 %v10688_v50, %v10248_v4  ;;  %v11298_v36 = vld [vmem:[#allocation3 + $0x260] sm:$0xff]  ;;  %v10868_v31 = vld [vmem:[#allocation3 + $0xc8] sm:$0xff]  ;;  %v22718_v4 = vld [vmem:[#allocation96_spill] sm:$0xff] }
 0x533   : > { %11038 = vmatmul.mubr.f32.gmra.mxu1 %v10852_v43  ;;  %16167 = vmatprep.subr.mxu1 %v22527_v42  ;;  %v10693_v43 = vadd.f32 %v16552_v54, %v20857_v2  ;;  %v10786_v29 = vadd.f32 %v10698_v49, %v10250_v53  ;;  %v10858_v2 = vld [vmem:[#allocation3 + $0x78] sm:$0xff]  ;;  %v10865_v53 = vld [vmem:[#allocation3 + $0xb0] sm:$0xff]  ;;  %v11310_v50 = vld [vmem:[#allocation3 + $0x2c0] sm:$0xff] }
 0x534   : > { %11473 = vmatmul.mubr.f32.gmra.mxu0 %v11288_v7  ;;  %11859 = vmatprep.subr.mxu0 %v22527_v42  ;;  %v10194_v45 = vadd.f32 %v20834_v3, %v9665_v40  ;;  %v21170_v7 = vmax.f32 %v10787_v52, 0.0  ;;  %v11294_v3 = vld [vmem:[#allocation3 + $0x240] sm:$0xff]  ;;  %v11301_v49 = vld [vmem:[#allocation3 + $0x278] sm:$0xff]  ;;  %v10864_v52 = vld [vmem:[#allocation3 + $0xa8] sm:$0xff] }
 0x535   : > { %16168 = vmatpush3.msra.mxu1 %v21140_v19  ;;  %11860 = vmatpush1.msra.mxu0 %v20701_v51  ;;  %v10785_v38 = vadd.f32 %v10693_v43, %v10249_v41  ;;  %v21180_v59 = vmax.f32 %v10786_v29, 0.0  ;;  %v11304_v40 = vld [vmem:[#allocation3 + $0x290] sm:$0xff]  ;;  %v10871_v41 = vld [vmem:[#allocation3 + $0xe0] sm:$0xff]  ;;  %v22716_v43 = vld [vmem:[#allocation97_spill] sm:$0xff] }
 0x536   : > { %16169 = vmatprep.subr.mxu1 %v22527_v42  ;;  %11861 = vmatprep.subr.mxu0 %v22527_v42  ;;  %v10247_v24 = vadd.f32 %v16551_v26, %v10194_v45  ;;  %v21192_v26 = vmax.f32 %v10784_v32, 0.0  ;;  %v10870_v45 = vld [vmem:[#allocation3 + $0xd8] sm:$0xff]  ;;  %v22717_v29 = vld [vmem:[#allocation58_spill] sm:$0xff] }
 0x537   : > { %11042 = vmatprep.mubr.f32.mxu1 %v10856_v37  ;;  %16170 = vmatpush3.msra.mxu1 %v21146_v25  ;;  %v21184_v61 = vmax.f32 %v10785_v38, 0.0  ;;  %v22714_v37 = vld [vmem:[#allocation60_spill] sm:$0xff]  ;;  %v11313_v32 = vld [vmem:[#allocation3 + $0x2d8] sm:$0xff] }
 0x538   : > { %11477 = vmatprep.mubr.f32.mxu0 %v11292_v17  ;;  %11862 = vmatpush1.msra.mxu0 %v20717_v55  ;;  %v10783_v10 = vadd.f32 %v10683_v23, %v10247_v24  ;;  %v11297_v17 = vld [vmem:[#allocation3 + $0x258] sm:$0xff]  ;;  %v10873_v38 = vld [vmem:[#allocation3 + $0xf0] sm:$0xff] }
 0x539   : > { %11043 = vmatmul.mubr.f32.gmra.mxu1 %v10855_v44  ;;  %16171 = vmatprep.subr.mxu1 %v22527_v42  ;;  %v22715_v44 = vld [vmem:[#allocation93_spill] sm:$0xff]  ;;  %v10877_v23 = vld [vmem:[#allocation3 + $0x110] sm:$0xff] }
 0x53a   : > { %11478 = vmatmul.mubr.f32.gmra.mxu0 %v11291_v35  ;;  %11863 = vmatprep.subr.mxu0 %v22527_v42  ;;  %v21196_v54 = vmax.f32 %v10783_v10, 0.0  ;;  %v11300_v35 = vld [vmem:[#allocation3 + $0x270] sm:$0xff]  ;;  %v11309_v24 = vld [vmem:[#allocation3 + $0x2b8] sm:$0xff] }
 0x53b   : > { %16172 = vmatpush3.msra.mxu1 %v21165_v27  ;;  %11864 = vmatpush1.msra.mxu0 %v22712_v34  ;;  %v11312_v10 = vld [vmem:[#allocation3 + $0x2d0] sm:$0xff] }
 0x53c   : > { %16173 = vmatprep.subr.mxu1 %v22527_v42  ;;  %11865 = vmatprep.subr.mxu0 %v22527_v42 }
 0x53d   : > { %11047 = vmatprep.mubr.f32.mxu1 %v10859_v20  ;;  %16174 = vmatpush3.msra.mxu1 %v21170_v7  ;;  %v11307_v20 = vld [vmem:[#allocation3 + $0x2a8] sm:$0xff] }
 0x53e   : > { %11482 = vmatprep.mubr.f32.mxu0 %v11295_v60  ;;  %11866 = vmatpush1.msra.mxu0 %v22713_v48  ;;  %v11306_v60 = vld [vmem:[#allocation3 + $0x2a0] sm:$0xff] }
 0x53f   : > { %11048 = vmatmul.mubr.f32.gmra.mxu1 %v10858_v2  ;;  %16175 = vmatprep.subr.mxu1 %v22527_v42  ;;  %v10874_v2 = vld [vmem:[#allocation3 + $0xf8] sm:$0xff] }
 0x540   : > { %11483 = vmatmul.mubr.f32.gmra.mxu0 %v11294_v3  ;;  %11867 = vmatprep.subr.mxu0 %v22527_v42  ;;  %v22719_v3 = vld [vmem:[#allocation99_spill] sm:$0xff] }
 0x541   : > { %16176 = vmatpush3.msra.mxu1 %v21180_v59  ;;  %11868 = vmatpush1.msra.mxu0 %v22714_v37 }
 0x542   : > { %16177 = vmatprep.subr.mxu1 %v22527_v42  ;;  %11869 = vmatprep.subr.mxu0 %v22527_v42 }
 0x543   : > { %11052 = vmatprep.mubr.f32.mxu1 %v10862_v5  ;;  %16178 = vmatpush3.msra.mxu1 %v21184_v61  ;;  %v22720_v5 = vld [vmem:[#allocation98_spill] sm:$0xff] }
 0x544   : > { %11487 = vmatprep.mubr.f32.mxu0 %v11298_v36  ;;  %11870 = vmatpush1.msra.mxu0 %v22715_v44  ;;  %v10876_v36 = vld [vmem:[#allocation3 + $0x108] sm:$0xff] }
 0x545   : > { %11053 = vmatmul.mubr.f32.gmra.mxu1 %v10861_v6  ;;  %16179 = vmatprep.subr.mxu1 %v22527_v42  ;;  %v22721_v6 = vld [vmem:[#allocation95_spill] sm:$0xff] }
 0x546   : > { %11488 = vmatmul.mubr.f32.gmra.mxu0 %v11297_v17  ;;  %11871 = vmatprep.subr.mxu0 %v22527_v42  ;;  %v10880_v17 = vld [vmem:[#allocation3 + $0x128] sm:$0xff] }
 0x547   : > { %16180 = vmatpush3.msra.mxu1 %v21192_v26  ;;  %11872 = vmatpush1.msra.mxu0 %v20786_v39 }
 0x548   : > { %16181 = vmatprep.subr.mxu1 %v22527_v42  ;;  %11873 = vmatprep.subr.mxu0 %v22527_v42 }
 0x549   : > { %11057 = vmatprep.mubr.f32.mxu1 %v10865_v53  ;;  %16182 = vmatpush3.msra.mxu1 %v21196_v54  ;;  %v22722_v53 = vld [vmem:[#allocation91_spill] sm:$0xff] }
 0x54a   : > { %11492 = vmatprep.mubr.f32.mxu0 %v11301_v49  ;;  %11874 = vmatpush1.msra.mxu0 %v20796_v14  ;;  %v11316_v49 = vld [vmem:[#allocation3 + $0x2f0] sm:$0xff] }
 0x54b   : > { %11058 = vmatmul.mubr.f32.gmra.mxu1 %v10864_v52  ;;  %11493 = vmatmul.mubr.f32.gmra.mxu0 %v11300_v35  ;;  %v10879_v52 = vld [vmem:[#allocation3 + $0x120] sm:$0xff]  ;;  %v22723_v35 = vld [vmem:[#allocation67_spill] sm:$0xff] }
 0x54c   : > { %11875 = vmatprep.subr.mxu0 %v22527_v42  ;;  %11062 = vmatprep.mubr.f32.mxu1 %v10868_v31  ;;  %v11315_v31 = vld [vmem:[#allocation3 + $0x2e8] sm:$0xff] }
 0x54d   : > { %11876 = vmatpush1.msra.mxu0 %v20807_v58  ;;  %11497 = vmatprep.mubr.f32.mxu0 %v11304_v40  ;;  %v10883_v40 = vld [vmem:[#allocation3 + $0x140] sm:$0xff] }
 0x54e   : > { %11877 = vmatprep.subr.mxu0 %v22527_v42  ;;  %16240 = vmatprep.subr.mxu1 %v22527_v42 }
 0x54f   : > { %11878 = vmatpush1.msra.mxu0 %v22716_v43  ;;  %11063 = vmatmul.mubr.f32.gmra.mxu1 %v10867_v8  ;;  %v22724_v8 = vld [vmem:[#allocation90_spill] sm:$0xff] }
 0x550   : > { %11498 = vmatmul.mubr.f32.gmra.mxu0 %v11303_v13  ;;  %11879 = vmatprep.subr.mxu0 %v22527_v42  ;;  %v11319_v13 = vld [vmem:[#allocation3 + $0x308] sm:$0xff] }
 0x551   : > { %11880 = vmatpush2.msra.mxu0 %v22717_v29  ;;  %11067 = vmatprep.mubr.f32.mxu1 %v10871_v41  ;;  %v10882_v41 = vld [vmem:[#allocation3 + $0x138] sm:$0xff] }
 0x552   : > { %11881 = vmatprep.subr.mxu0 %v22527_v42  ;;  %11502 = vmatprep.mubr.f32.mxu0 %v11307_v20  ;;  %v22725_v20 = vld [vmem:[#allocation32_spill] sm:$0xff] }
 0x553   : > { %11882 = vmatpush2.msra.mxu0 %v22718_v4  ;;  %11068 = vmatmul.mubr.f32.gmra.mxu1 %v10870_v45  ;;  %v11318_v45 = vld [vmem:[#allocation3 + $0x300] sm:$0xff] }
 0x554   : > { %11503 = vmatmul.mubr.f32.gmra.mxu0 %v11306_v60  ;;  %11883 = vmatprep.subr.mxu0 %v22527_v42  ;;  %v10886_v60 = vld [vmem:[#allocation3 + $0x158] sm:$0xff] }
 0x555   : > { %11884 = vmatpush2.msra.mxu0 %v22719_v3  ;;  %11072 = vmatprep.mubr.f32.mxu1 %v10874_v2  ;;  %v11322_v2 = vld [vmem:[#allocation3 + $0x320] sm:$0xff] }
 0x556   : > { %11885 = vmatprep.subr.mxu0 %v22527_v42  ;;  %11507 = vmatprep.mubr.f32.mxu0 %v11310_v50  ;;  %v10885_v50 = vld [vmem:[#allocation3 + $0x150] sm:$0xff] }
 0x557   : > { %11886 = vmatpush2.msra.mxu0 %v22720_v5  ;;  %11073 = vmatmul.mubr.f32.gmra.mxu1 %v10873_v38  ;;  %v11321_v38 = vld [vmem:[#allocation3 + $0x318] sm:$0xff] }
 0x558   : > { %11508 = vmatmul.mubr.f32.gmra.mxu0 %v11309_v24  ;;  %11887 = vmatprep.subr.mxu0 %v22527_v42  ;;  %v10889_v24 = vld [vmem:[#allocation3 + $0x170] sm:$0xff] }
 0x559   : > { %11888 = vmatpush2.msra.mxu0 %v22721_v6  ;;  %11077 = vmatprep.mubr.f32.mxu1 %v10877_v23  ;;  %v11325_v23 = vld [vmem:[#allocation3 + $0x338] sm:$0xff] }
 0x55a   : > { %11889 = vmatprep.subr.mxu0 %v22527_v42  ;;  %11512 = vmatprep.mubr.f32.mxu0 %v11313_v32  ;;  %v10888_v32 = vld [vmem:[#allocation3 + $0x168] sm:$0xff] }
 0x55b   : > { %11890 = vmatpush2.msra.mxu0 %v22722_v53  ;;  %11078 = vmatmul.mubr.f32.gmra.mxu1 %v10876_v36  ;;  %v11324_v36 = vld [vmem:[#allocation3 + $0x330] sm:$0xff] }
 0x55c   : > { %11513 = vmatmul.mubr.f32.gmra.mxu0 %v11312_v10  ;;  %11891 = vmatprep.subr.mxu0 %v22527_v42  ;;  %v10892_v10 = vld [vmem:[#allocation3 + $0x188] sm:$0xff] }
 0x55d   : > { %11892 = vmatpush2.msra.mxu0 %v22723_v35  ;;  %11082 = vmatprep.mubr.f32.mxu1 %v10880_v17  ;;  %v11328_v17 = vld [vmem:[#allocation3 + $0x350] sm:$0xff] }
 0x55e   : > { %11893 = vmatprep.subr.mxu0 %v22527_v42  ;;  %11517 = vmatprep.mubr.f32.mxu0 %v11316_v49  ;;  %v10891_v49 = vld [vmem:[#allocation3 + $0x180] sm:$0xff] }
 0x55f   : > { %11894 = vmatpush2.msra.mxu0 %v22724_v8  ;;  %11083 = vmatmul.mubr.f32.gmra.mxu1 %v10879_v52  ;;  %v11327_v52 = vld [vmem:[#allocation3 + $0x348] sm:$0xff] }
 0x560   : > { %11518 = vmatmul.mubr.f32.gmra.mxu0 %v11315_v31  ;;  %11895 = vmatprep.subr.mxu0 %v22527_v42  ;;  %v10895_v31 = vld [vmem:[#allocation3 + $0x1a0] sm:$0xff] }
 0x561   : > { %11896 = vmatpush2.msra.mxu0 %v22725_v20  ;;  %11087 = vmatprep.mubr.f32.mxu1 %v10883_v40  ;;  %v11331_v40 = vld [vmem:[#allocation3 + $0x368] sm:$0xff] }
 0x562   : > { %11897 = vmatprep.subr.mxu0 %v22527_v42  ;;  %11522 = vmatprep.mubr.f32.mxu0 %v11319_v13  ;;  %v10894_v13 = vld [vmem:[#allocation3 + $0x198] sm:$0xff] }
 0x563   : > { %11898 = vmatpush2.msra.mxu0 %v20982_v16  ;;  %11088 = vmatmul.mubr.f32.gmra.mxu1 %v10882_v41  ;;  %v11330_v41 = vld [vmem:[#allocation3 + $0x360] sm:$0xff] }
 0x564   : > { %11523 = vmatmul.mubr.f32.gmra.mxu0 %v11318_v45  ;;  %11899 = vmatprep.subr.mxu0 %v22527_v42  ;;  %v10898_v45 = vld [vmem:[#allocation3 + $0x1b8] sm:$0xff] }
 0x565   : > { %11900 = vmatpush2.msra.mxu0 %v20996_v33  ;;  %11092 = vmatprep.mubr.f32.mxu1 %v10886_v60  ;;  %v11334_v60 = vld [vmem:[#allocation3 + $0x380] sm:$0xff] }
 0x566   : > { %11901 = vmatprep.subr.mxu0 %v22527_v42  ;;  %11527 = vmatprep.mubr.f32.mxu0 %v11322_v2  ;;  %v10897_v2 = vld [vmem:[#allocation3 + $0x1b0] sm:$0xff] }
 0x567   : > { %11902 = vmatpush2.msra.mxu0 %v21007_v12  ;;  %11093 = vmatmul.mubr.f32.gmra.mxu1 %v10885_v50  ;;  %v11333_v50 = vld [vmem:[#allocation3 + $0x378] sm:$0xff] }
 0x568   : > { %11528 = vmatmul.mubr.f32.gmra.mxu0 %v11321_v38  ;;  %11903 = vmatprep.subr.mxu0 %v22527_v42  ;;  %v11734_v38 = vld [vmem:[#allocation3 + $0x398] sm:$0xff] }
 0x569   : > { %11904 = vmatpush2.msra.mxu0 %v21016_v11  ;;  %11097 = vmatprep.mubr.f32.mxu1 %v10889_v24  ;;  %v10845_v24 = vld [vmem:[#allocation3 + $0x10] sm:$0xff] }
 0x56a   : > { %11905 = vmatprep.subr.mxu0 %v22527_v42  ;;  %11532 = vmatprep.mubr.f32.mxu0 %v11325_v23  ;;  %v11733_v23 = vld [vmem:[#allocation3 + $0x390] sm:$0xff] }
 0x56b   : > { %11906 = vmatpush2.msra.mxu0 %v21025_v28  ;;  %11098 = vmatmul.mubr.f32.gmra.mxu1 %v10888_v32  ;;  %v10848_v32 = vld [vmem:[#allocation3 + $0x28] sm:$0xff] }
 0x56c   : > { %11533 = vmatmul.mubr.f32.gmra.mxu0 %v11324_v36  ;;  %11907 = vmatprep.subr.mxu0 %v22527_v42  ;;  %v11755_v36 = vld [vmem:[#allocation3 + $0x440] sm:$0xff] }
 0x56d   : > { %11908 = vmatpush2.msra.mxu0 %v21038_v63  ;;  %11102 = vmatprep.mubr.f32.mxu1 %v10892_v10  ;;  %v11758_v10 = vld [vmem:[#allocation3 + $0x458] sm:$0xff] }
 0x56e   : > { %11909 = vmatprep.subr.mxu0 %v22527_v42  ;;  %11537 = vmatprep.mubr.f32.mxu0 %v11328_v17  ;;  %v11761_v17 = vld [vmem:[#allocation3 + $0x470] sm:$0xff] }
 0x56f   : > { %11910 = vmatpush2.msra.mxu0 %v21044_v18  ;;  %11103 = vmatmul.mubr.f32.gmra.mxu1 %v10891_v49  ;;  %v11764_v49 = vld [vmem:[#allocation3 + $0x488] sm:$0xff] }
 0x570   : > { %11538 = vmatmul.mubr.f32.gmra.mxu0 %v11327_v52  ;;  %11107 = vmatprep.mubr.f32.mxu1 %v10895_v31  ;;  %v10896_v52 = vld [vmem:[#allocation3 + $0x1a8] sm:$0xff]  ;;  %v11767_v31 = vld [vmem:[#allocation3 + $0x4a0] sm:$0xff] }
 0x571   : > { %11542 = vmatprep.mubr.f32.mxu0 %v11331_v40  ;;  %12301 = vmatprep.subr.mxu0 %v22527_v42  ;;  %v10899_v40 = vld [vmem:[#allocation3 + $0x1c0] sm:$0xff] }
 0x573   : > { %11108 = vmatmul.mubr.f32.gmra.mxu1 %v10894_v13  ;;  %v11770_v13 = vld [vmem:[#allocation3 + $0x4b8] sm:$0xff] }
 0x574   : > { %11543 = vmatmul.mubr.f32.gmra.mxu0 %v11330_v41  ;;  %11112 = vmatprep.mubr.f32.mxu1 %v10898_v45  ;;  %v11281_v41 = vld [vmem:[#allocation3 + $0x1d8] sm:$0xff]  ;;  %v11769_v45 = vld [vmem:[#allocation3 + $0x4b0] sm:$0xff] }
 0x575   : > { %11547 = vmatprep.mubr.f32.mxu0 %v11334_v60  ;;  %v11773_v60 = vld [vmem:[#allocation3 + $0x4d0] sm:$0xff] }
 0x577   : > { %11113 = vmatmul.mubr.f32.gmra.mxu1 %v10897_v2  ;;  %v11284_v2 = vld [vmem:[#allocation3 + $0x1f0] sm:$0xff] }
 0x578   : > { %11548 = vmatmul.mubr.f32.gmra.mxu0 %v11333_v50  ;;  %16183 = vmatprep.mubr.msk.f32.mxu1 %vm16596_vm3, %v22527_v42  ;;  %v11772_v50 = vld [vmem:[#allocation3 + $0x4c8] sm:$0xff] }
 0x579   : > { %11911 = vmatprep.mubr.f32.mxu0 %v11734_v38  ;;  %v11776_v38 = vld [vmem:[#allocation3 + $0x4e8] sm:$0xff] }
 0x57b   : > { %16184 = vmatmul.mubr.msk.f32.vlgmr.msra.gmra.mxu1 %vm10900_vm4, %v10845_v24  ;;  %v11287_v24 = vld [vmem:[#allocation3 + $0x208] sm:$0xff] }
 0x57c   : > { %16241 = vmatpush3.msra.mxu1 %v21062_v0  ;;  %11912 = vmatmul.mubr.f32.vlgmr.msra.gmra.mxu0 %v11733_v23  ;;  %v11775_v23 = vld [vmem:[#allocation3 + $0x4e0] sm:$0xff] }
 0x57d   : > { %12302 = vmatpush1.msra.mxu0 %v20610_v21  ;;  %16242 = vmatprep.subr.mxu1 %v22527_v42  ;;  %v10851_v21 = vld [vmem:[#allocation3 + $0x40] sm:$0xff] }
 0x57e   : > { %12303 = vmatprep.subr.mxu0 %v22527_v42  ;;  %16243 = vmatpush3.msra.mxu1 %v21070_v62 }
 0x57f   : > { %12304 = vmatpush1.msra.mxu0 %v20619_v57  ;;  %16186 = vmatprep.mubr.msk.f32.mxu1 %vm16596_vm3, %v22527_v42  ;;  %v10854_v57 = vld [vmem:[#allocation3 + $0x58] sm:$0xff] }
 0x580   : > { %16244 = vmatprep.subr.mxu1 %v22527_v42  ;;  %12305 = vmatprep.subr.mxu0 %v22527_v42 }
 0x581   : > { %16187 = vmatmul.mubr.msk.f32.gmra.mxu1 %vm10900_vm4, %v10848_v32  ;;  %12306 = vmatpush1.msra.mxu0 %v20637_v15  ;;  %v10857_v15 = vld [vmem:[#allocation3 + $0x70] sm:$0xff]  ;;  %v11779_v32 = vld [vmem:[#allocation3 + $0x500] sm:$0xff] }
 0x582   : > { %16245 = vmatpush3.msra.mxu1 %v21088_v46  ;;  %12307 = vmatprep.subr.mxu0 %v22527_v42 }
 0x583   : > { %16246 = vmatprep.subr.mxu1 %v22527_v42  ;;  %12308 = vmatpush1.msra.mxu0 %v20651_v1  ;;  %v10860_v1 = vld [vmem:[#allocation3 + $0x88] sm:$0xff] }
 0x584   : > { %16247 = vmatpush3.msra.mxu1 %v21096_v22  ;;  %16189 = vmatprep.mubr.msk.f32.mxu1 %vm16596_vm3, %v22527_v42 }
 0x585   : > { %16248 = vmatprep.subr.mxu1 %v22527_v42  ;;  %12309 = vmatprep.subr.mxu0 %v22527_v42 }
 0x586   : > { %16190 = vmatmul.mubr.msk.f32.gmra.mxu1 %vm10900_vm4, %v10851_v21  ;;  %12310 = vmatpush1.msra.mxu0 %v20669_v30  ;;  %v10863_v30 = vld [vmem:[#allocation3 + $0xa0] sm:$0xff] }
 0x587   : > { %16249 = vmatpush3.msra.mxu1 %v21114_v47  ;;  %12311 = vmatprep.subr.mxu0 %v22527_v42  ;;  %v11290_v21 = vld [vmem:[#allocation3 + $0x220] sm:$0xff] }
 0x588   : > { %16250 = vmatprep.subr.mxu1 %v22527_v42  ;;  %12312 = vmatpush1.msra.mxu0 %v20683_v56  ;;  %v10866_v56 = vld [vmem:[#allocation3 + $0xb8] sm:$0xff] }
 0x589   : > { %16251 = vmatpush3.msra.mxu1 %v21122_v9  ;;  %16192 = vmatprep.mubr.msk.f32.mxu1 %vm16596_vm3, %v22527_v42 }
 0x58a   : > { %16252 = vmatprep.subr.mxu1 %v22527_v42  ;;  %12313 = vmatprep.subr.mxu0 %v22527_v42 }
 0x58b   : > { %16193 = vmatmul.mubr.msk.f32.gmra.mxu1 %vm10900_vm4, %v10854_v57  ;;  %12314 = vmatpush1.msra.mxu0 %v20701_v51  ;;  %v11737_v51 = vld [vmem:[#allocation3 + $0x3b0] sm:$0xff]  ;;  %v11778_v57 = vld [vmem:[#allocation3 + $0x4f8] sm:$0xff] }
 0x58c   : > { %16253 = vmatpush3.msra.mxu1 %v21140_v19  ;;  %12315 = vmatprep.subr.mxu0 %v22527_v42 }
 0x58d   : > { %16254 = vmatprep.subr.mxu1 %v22527_v42  ;;  %12316 = vmatpush1.msra.mxu0 %v20717_v55  ;;  %v10869_v55 = vld [vmem:[#allocation3 + $0xd0] sm:$0xff] }
 0x58e   : > { %16255 = vmatpush3.msra.mxu1 %v21146_v25  ;;  %16195 = vmatprep.mubr.msk.f32.mxu1 %vm16596_vm3, %v22527_v42 }
 0x58f   : > { %16256 = vmatprep.subr.mxu1 %v22527_v42  ;;  %12317 = vmatprep.subr.mxu0 %v22527_v42 }
 0x590   : > { %16196 = vmatmul.mubr.msk.f32.gmra.mxu1 %vm10900_vm4, %v10857_v15  ;;  %12318 = vmatpush1.msra.mxu0 %v22712_v34  ;;  %v11739_v34 = vld [vmem:[#allocation3 + $0x3c0] sm:$0xff]  ;;  %v11782_v15 = vld [vmem:[#allocation3 + $0x518] sm:$0xff] }
 0x591   : > { %16257 = vmatpush3.msra.mxu1 %v21165_v27  ;;  %12319 = vmatprep.subr.mxu0 %v22527_v42 }
 0x592   : > { %16258 = vmatprep.subr.mxu1 %v22527_v42  ;;  %12320 = vmatpush1.msra.mxu0 %v22713_v48  ;;  %v11743_v48 = vld [vmem:[#allocation3 + $0x3e0] sm:$0xff] }
 0x593   : > { %16259 = vmatpush3.msra.mxu1 %v21170_v7  ;;  %16198 = vmatprep.mubr.msk.f32.mxu1 %vm16596_vm3, %v22527_v42 }
 0x594   : > { %16260 = vmatprep.subr.mxu1 %v22527_v42  ;;  %12321 = vmatprep.subr.mxu0 %v22527_v42 }
 0x595   : > { %16199 = vmatmul.mubr.msk.f32.gmra.mxu1 %vm10900_vm4, %v10860_v1  ;;  %12322 = vmatpush1.msra.mxu0 %v22714_v37  ;;  %v10875_v37 = vld [vmem:[#allocation3 + $0x100] sm:$0xff]  ;;  %v11293_v1 = vld [vmem:[#allocation3 + $0x238] sm:$0xff] }
 0x596   : > { %16261 = vmatpush3.msra.mxu1 %v21180_v59  ;;  %12323 = vmatprep.subr.mxu0 %v22527_v42 }
 0x597   : > { %16262 = vmatprep.subr.mxu1 %v22527_v42  ;;  %12324 = vmatpush1.msra.mxu0 %v22715_v44  ;;  %v11742_v44 = vld [vmem:[#allocation3 + $0x3d8] sm:$0xff] }
 0x598   : > { %16263 = vmatpush3.msra.mxu1 %v21184_v61  ;;  %16201 = vmatprep.mubr.msk.f32.mxu1 %vm16596_vm3, %v22527_v42 }
 0x599   : > { %16264 = vmatprep.subr.mxu1 %v22527_v42  ;;  %12325 = vmatprep.subr.mxu0 %v22527_v42 }
 0x59a   : > { %16202 = vmatmul.mubr.msk.f32.gmra.mxu1 %vm10900_vm4, %v10863_v30  ;;  %12326 = vmatpush1.msra.mxu0 %v20786_v39  ;;  %v11736_v39 = vld [vmem:[#allocation3 + $0x3a8] sm:$0xff]  ;;  %v11781_v30 = vld [vmem:[#allocation3 + $0x510] sm:$0xff] }
 0x59b   : > { %16265 = vmatpush3.msra.mxu1 %v21192_v26  ;;  %12327 = vmatprep.subr.mxu0 %v22527_v42 }
 0x59c   : > { %16266 = vmatprep.subr.mxu1 %v22527_v42  ;;  %12328 = vmatpush1.msra.mxu0 %v20796_v14  ;;  %v11740_v14 = vld [vmem:[#allocation3 + $0x3c8] sm:$0xff] }
 0x59d   : > { %16267 = vmatpush3.msra.mxu1 %v21196_v54  ;;  %16204 = vmatprep.mubr.msk.f32.mxu1 %vm16596_vm3, %v22527_v42 }
 0x59e   : > { %12329 = vmatprep.subr.mxu0 %v22527_v42  ;;  %16205 = vmatmul.mubr.msk.f32.gmra.mxu1 %vm10900_vm4, %v10866_v56  ;;  %v11785_v56 = vld [vmem:[#allocation3 + $0x530] sm:$0xff] }
 0x59f   : > { %12330 = vmatpush1.msra.mxu0 %v20807_v58  ;;  %16207 = vmatprep.mubr.msk.f32.mxu1 %vm16596_vm3, %v22527_v42  ;;  %v10872_v58 = vld [vmem:[#allocation3 + $0xe8] sm:$0xff] }
 0x5a0   : > { %12331 = vmatprep.subr.mxu0 %v22527_v42  ;;  %16325 = vmatprep.subr.mxu1 %v22527_v42 }
 0x5a1   : > { %12332 = vmatpush1.msra.mxu0 %v22716_v43  ;;  %11916 = vmatprep.mubr.f32.mxu0 %v11737_v51  ;;  %v11746_v43 = vld [vmem:[#allocation3 + $0x3f8] sm:$0xff]  ;;  %v11296_v51 = vld [vmem:[#allocation3 + $0x250] sm:$0xff] }
 0x5a2   : > { %12333 = vmatprep.subr.mxu0 %v22527_v42  ;;  %16208 = vmatmul.mubr.msk.f32.gmra.mxu1 %vm10900_vm4, %v10869_v55 }
 0x5a3   : > { %12334 = vmatpush2.msra.mxu0 %v22717_v29  ;;  %16210 = vmatprep.mubr.msk.f32.mxu1 %vm16596_vm3, %v22527_v42  ;;  %v10878_v29 = vld [vmem:[#allocation3 + $0x118] sm:$0xff] }
 0x5a4   : > { %12335 = vmatprep.subr.mxu0 %v22527_v42  ;;  %11917 = vmatmul.mubr.f32.gmra.mxu0 %v11736_v39  ;;  %v11784_v39 = vld [vmem:[#allocation3 + $0x528] sm:$0xff] }
 0x5a5   : > { %12336 = vmatpush2.msra.mxu0 %v22718_v4  ;;  %11921 = vmatprep.mubr.f32.mxu0 %v11740_v14  ;;  %v11745_v4 = vld [vmem:[#allocation3 + $0x3f0] sm:$0xff]  ;;  %v11788_v14 = vld [vmem:[#allocation3 + $0x548] sm:$0xff] }
 0x5a6   : > { %12337 = vmatprep.subr.mxu0 %v22527_v42  ;;  %16211 = vmatmul.mubr.msk.f32.gmra.mxu1 %vm10900_vm4, %v10872_v58  ;;  %v11299_v58 = vld [vmem:[#allocation3 + $0x268] sm:$0xff] }
 0x5a7   : > { %12338 = vmatpush2.msra.mxu0 %v22719_v3  ;;  %16213 = vmatprep.mubr.msk.f32.mxu1 %vm16596_vm3, %v22527_v42  ;;  %v11749_v3 = vld [vmem:[#allocation3 + $0x410] sm:$0xff] }
 0x5a8   : > { %12339 = vmatprep.subr.mxu0 %v22527_v42  ;;  %11922 = vmatmul.mubr.f32.gmra.mxu0 %v11739_v34 }
 0x5a9   : > { %12340 = vmatpush2.msra.mxu0 %v22720_v5  ;;  %11926 = vmatprep.mubr.f32.mxu0 %v11743_v48  ;;  %v10881_v5 = vld [vmem:[#allocation3 + $0x130] sm:$0xff]  ;;  %v11787_v48 = vld [vmem:[#allocation3 + $0x540] sm:$0xff] }
 0x5aa   : > { %12341 = vmatprep.subr.mxu0 %v22527_v42  ;;  %16214 = vmatmul.mubr.msk.f32.gmra.mxu1 %vm10900_vm4, %v10875_v37  ;;  %v12188_v37 = vld [vmem:[#allocation3 + $0x560] sm:$0xff] }
 0x5ab   : > { %12342 = vmatpush2.msra.mxu0 %v22721_v6  ;;  %16216 = vmatprep.mubr.msk.f32.mxu1 %vm16596_vm3, %v22527_v42  ;;  %v11748_v6 = vld [vmem:[#allocation3 + $0x408] sm:$0xff] }
 0x5ac   : > { %12343 = vmatprep.subr.mxu0 %v22527_v42  ;;  %11927 = vmatmul.mubr.f32.gmra.mxu0 %v11742_v44  ;;  %v11302_v44 = vld [vmem:[#allocation3 + $0x280] sm:$0xff] }
 0x5ad   : > { %12344 = vmatpush2.msra.mxu0 %v22722_v53  ;;  %11931 = vmatprep.mubr.f32.mxu0 %v11746_v43  ;;  %v11752_v53 = vld [vmem:[#allocation3 + $0x428] sm:$0xff] }
 0x5ae   : > { %12345 = vmatprep.subr.mxu0 %v22527_v42  ;;  %16217 = vmatmul.mubr.msk.f32.gmra.mxu1 %vm10900_vm4, %v10878_v29 }
 0x5af   : > { %12346 = vmatpush2.msra.mxu0 %v22723_v35  ;;  %16219 = vmatprep.mubr.msk.f32.mxu1 %vm16596_vm3, %v22527_v42  ;;  %v10884_v35 = vld [vmem:[#allocation3 + $0x148] sm:$0xff] }
 0x5b0   : > { %12347 = vmatprep.subr.mxu0 %v22527_v42  ;;  %11932 = vmatmul.mubr.f32.gmra.mxu0 %v11745_v4  ;;  %v12187_v4 = vld [vmem:[#allocation3 + $0x558] sm:$0xff] }
 0x5b1   : > { %12348 = vmatpush2.msra.mxu0 %v22724_v8  ;;  %11936 = vmatprep.mubr.f32.mxu0 %v11749_v3  ;;  %v11751_v8 = vld [vmem:[#allocation3 + $0x420] sm:$0xff]  ;;  %v12191_v3 = vld [vmem:[#allocation3 + $0x578] sm:$0xff] }
 0x5b2   : > { %12349 = vmatprep.subr.mxu0 %v22527_v42  ;;  %16220 = vmatmul.mubr.msk.f32.gmra.mxu1 %vm10900_vm4, %v10881_v5  ;;  %v11305_v5 = vld [vmem:[#allocation3 + $0x298] sm:$0xff] }
 0x5b3   : > { %12350 = vmatpush2.msra.mxu0 %v22725_v20  ;;  %16222 = vmatprep.mubr.msk.f32.mxu1 %vm16596_vm3, %v22527_v42  ;;  %v10887_v20 = vld [vmem:[#allocation3 + $0x160] sm:$0xff] }
 0x5b4   : > { %12351 = vmatprep.subr.mxu0 %v22527_v42  ;;  %11937 = vmatmul.mubr.f32.gmra.mxu0 %v11748_v6 }
 0x5b5   : > { %12352 = vmatpush2.msra.mxu0 %v20982_v16  ;;  %11941 = vmatprep.mubr.f32.mxu0 %v11752_v53  ;;  %v11754_v16 = vld [vmem:[#allocation3 + $0x438] sm:$0xff]  ;;  %v12190_v53 = vld [vmem:[#allocation3 + $0x570] sm:$0xff] }
 0x5b6   : > { %12353 = vmatprep.subr.mxu0 %v22527_v42  ;;  %16223 = vmatmul.mubr.msk.f32.gmra.mxu1 %vm10900_vm4, %v10884_v35  ;;  %v12194_v35 = vld [vmem:[#allocation3 + $0x590] sm:$0xff] }
 0x5b7   : > { %12354 = vmatpush2.msra.mxu0 %v20996_v33  ;;  %16225 = vmatprep.mubr.msk.f32.mxu1 %vm16596_vm3, %v22527_v42  ;;  %v10890_v33 = vld [vmem:[#allocation3 + $0x178] sm:$0xff] }
 0x5b8   : > { %12355 = vmatprep.subr.mxu0 %v22527_v42  ;;  %11942 = vmatmul.mubr.f32.gmra.mxu0 %v11751_v8  ;;  %v11308_v8 = vld [vmem:[#allocation3 + $0x2b0] sm:$0xff] }
 0x5b9   : > { %12356 = vmatpush2.msra.mxu0 %v21007_v12  ;;  %11946 = vmatprep.mubr.f32.mxu0 %v11755_v36  ;;  %v11757_v12 = vld [vmem:[#allocation3 + $0x450] sm:$0xff] }
 0x5ba   : > { %12357 = vmatprep.subr.mxu0 %v22527_v42  ;;  %16226 = vmatmul.mubr.msk.f32.gmra.mxu1 %vm10900_vm4, %v10887_v20  ;;  %v12193_v20 = vld [vmem:[#allocation3 + $0x588] sm:$0xff] }
 0x5bb   : > { %12358 = vmatpush2.msra.mxu0 %v21016_v11  ;;  %16228 = vmatprep.mubr.msk.f32.mxu1 %vm16596_vm3, %v22527_v42  ;;  %v10893_v11 = vld [vmem:[#allocation3 + $0x190] sm:$0xff] }
 0x5bc   : > { %12359 = vmatprep.subr.mxu0 %v22527_v42  ;;  %11947 = vmatmul.mubr.f32.gmra.mxu0 %v11754_v16  ;;  %v12197_v16 = vld [vmem:[#allocation3 + $0x5a8] sm:$0xff] }
 0x5bd   : > { %12360 = vmatpush2.msra.mxu0 %v21025_v28  ;;  %11951 = vmatprep.mubr.f32.mxu0 %v11758_v10  ;;  %v11760_v28 = vld [vmem:[#allocation3 + $0x468] sm:$0xff] }
 0x5be   : > { %12361 = vmatprep.subr.mxu0 %v22527_v42  ;;  %16229 = vmatmul.mubr.msk.f32.gmra.mxu1 %vm10900_vm4, %v10890_v33  ;;  %v11311_v10 = vld [vmem:[#allocation3 + $0x2c8] sm:$0xff] }
 0x5bf   : > { %12362 = vmatpush2.msra.mxu0 %v21038_v63  ;;  %16231 = vmatprep.mubr.msk.f32.mxu1 %vm16596_vm3, %v22527_v42  ;;  %v11763_v63 = vld [vmem:[#allocation3 + $0x480] sm:$0xff] }
 0x5c0   : > { %12363 = vmatprep.subr.mxu0 %v22527_v42  ;;  %11952 = vmatmul.mubr.f32.gmra.mxu0 %v11757_v12 }
 0x5c1   : > { %12364 = vmatpush2.msra.mxu0 %v21044_v18  ;;  %11956 = vmatprep.mubr.f32.mxu0 %v11761_v17  ;;  %v11766_v18 = vld [vmem:[#allocation3 + $0x498] sm:$0xff]  ;;  %v12196_v17 = vld [vmem:[#allocation3 + $0x5a0] sm:$0xff] }
 0x5c2   : > { %16232 = vmatmul.mubr.msk.f32.gmra.mxu1 %vm10900_vm4, %v10893_v11  ;;  %v12200_v11 = vld [vmem:[#allocation3 + $0x5c0] sm:$0xff] }
 0x5c3   : > { %16234 = vmatprep.mubr.msk.f32.mxu1 %vm16596_vm3, %v22527_v42 }
 0x5c4   : > { %11957 = vmatmul.mubr.f32.gmra.mxu0 %v11760_v28  ;;  %v11314_v28 = vld [vmem:[#allocation3 + $0x2e0] sm:$0xff] }
 0x5c5   : > { %11961 = vmatprep.mubr.f32.mxu0 %v11764_v49 }
 0x5c6   : > { %16235 = vmatmul.mubr.msk.f32.gmra.mxu1 %vm10900_vm4, %v10896_v52  ;;  %v12199_v52 = vld [vmem:[#allocation3 + $0x5b8] sm:$0xff] }
 0x5c7   : > { %16237 = vmatprep.mubr.msk.f32.mxu1 %vm16596_vm3, %v22527_v42 }
 0x5c8   : > { %11962 = vmatmul.mubr.f32.gmra.mxu0 %v11763_v63  ;;  %v12203_v63 = vld [vmem:[#allocation3 + $0x5d8] sm:$0xff] }
 0x5c9   : > { %11966 = vmatprep.mubr.f32.mxu0 %v11767_v31  ;;  %v11317_v31 = vld [vmem:[#allocation3 + $0x2f8] sm:$0xff] }
 0x5ca   : > { %16238 = vmatmul.mubr.msk.f32.gmra.mxu1 %vm10900_vm4, %v10899_v40 }
 0x5cb   : > { %16268 = vmatprep.mubr.msk.f32.mxu1 %vm16596_vm3, %v22527_v42 }
 0x5cc   : > { %11967 = vmatmul.mubr.f32.gmra.mxu0 %v11766_v18  ;;  %v12202_v18 = vld [vmem:[#allocation3 + $0x5d0] sm:$0xff] }
 0x5cd   : > { %11971 = vmatprep.mubr.f32.mxu0 %v11770_v13  ;;  %v12206_v13 = vld [vmem:[#allocation3 + $0x5f0] sm:$0xff] }
 0x5ce   : > { %16269 = vmatmul.mubr.msk.f32.vlgmr.msra.gmra.mxu1 %vm10900_vm4, %v11281_v41  ;;  %v11320_v41 = vld [vmem:[#allocation3 + $0x310] sm:$0xff] }
 0x5cf   : > { %16326 = vmatpush3.msra.mxu1 %v21062_v0  ;;  %16271 = vmatprep.mubr.msk.f32.mxu1 %vm16596_vm3, %v22527_v42 }
 0x5d0   : > { %16327 = vmatprep.subr.mxu1 %v22527_v42  ;;  %11972 = vmatmul.mubr.f32.gmra.mxu0 %v11769_v45 }
 0x5d1   : > { %16328 = vmatpush3.msra.mxu1 %v21070_v62  ;;  %11976 = vmatprep.mubr.f32.mxu0 %v11773_v60 }
 0x5d2   : > { %16329 = vmatprep.subr.mxu1 %v22527_v42  ;;  %16272 = vmatmul.mubr.msk.f32.gmra.mxu1 %vm10900_vm4, %v11284_v2  ;;  %v12205_v2 = vld [vmem:[#allocation3 + $0x5e8] sm:$0xff] }
 0x5d3   : > { %16330 = vmatpush3.msra.mxu1 %v21088_v46  ;;  %16274 = vmatprep.mubr.msk.f32.mxu1 %vm16596_vm3, %v22527_v42 }
 0x5d4   : > { %16331 = vmatprep.subr.mxu1 %v22527_v42  ;;  %11977 = vmatmul.mubr.f32.gmra.mxu0 %v11772_v50  ;;  %v12209_v50 = vld [vmem:[#allocation3 + $0x608] sm:$0xff] }
 0x5d5   : > { %16332 = vmatpush3.msra.mxu1 %v21096_v22  ;;  %11981 = vmatprep.mubr.f32.mxu0 %v11776_v38  ;;  %v11323_v38 = vld [vmem:[#allocation3 + $0x328] sm:$0xff] }
 0x5d6   : > { %16333 = vmatprep.subr.mxu1 %v22527_v42  ;;  %16275 = vmatmul.mubr.msk.f32.gmra.mxu1 %vm10900_vm4, %v11287_v24 }
 0x5d7   : > { %16334 = vmatpush3.msra.mxu1 %v21114_v47  ;;  %16277 = vmatprep.mubr.msk.f32.mxu1 %vm16596_vm3, %v22527_v42 }
 0x5d8   : > { %16335 = vmatprep.subr.mxu1 %v22527_v42  ;;  %11982 = vmatmul.mubr.f32.gmra.mxu0 %v11775_v23  ;;  %v12208_v23 = vld [vmem:[#allocation3 + $0x600] sm:$0xff] }
 0x5d9   : > { %16336 = vmatpush3.msra.mxu1 %v21122_v9  ;;  %11986 = vmatprep.mubr.f32.mxu0 %v11779_v32  ;;  %v12212_v32 = vld [vmem:[#allocation3 + $0x620] sm:$0xff] }
 0x5da   : > { %16337 = vmatprep.subr.mxu1 %v22527_v42  ;;  %16278 = vmatmul.mubr.msk.f32.gmra.mxu1 %vm10900_vm4, %v11290_v21  ;;  %v11326_v21 = vld [vmem:[#allocation3 + $0x340] sm:$0xff] }
 0x5db   : > { %16338 = vmatpush3.msra.mxu1 %v21140_v19  ;;  %16280 = vmatprep.mubr.msk.f32.mxu1 %vm16596_vm3, %v22527_v42 }
 0x5dc   : > { %16339 = vmatprep.subr.mxu1 %v22527_v42  ;;  %11987 = vmatmul.mubr.f32.gmra.mxu0 %v11778_v57 }
 0x5dd   : > { %16340 = vmatpush3.msra.mxu1 %v21146_v25  ;;  %11991 = vmatprep.mubr.f32.mxu0 %v11782_v15  ;;  %v12211_v15 = vld [vmem:[#allocation3 + $0x618] sm:$0xff] }
 0x5de   : > { %16341 = vmatprep.subr.mxu1 %v22527_v42  ;;  %16281 = vmatmul.mubr.msk.f32.gmra.mxu1 %vm10900_vm4, %v11293_v1  ;;  %v12215_v1 = vld [vmem:[#allocation3 + $0x638] sm:$0xff] }
 0x5df   : > { %16342 = vmatpush3.msra.mxu1 %v21165_v27  ;;  %16283 = vmatprep.mubr.msk.f32.mxu1 %vm16596_vm3, %v22527_v42 }
 0x5e0   : > { %16343 = vmatprep.subr.mxu1 %v22527_v42  ;;  %11992 = vmatmul.mubr.f32.gmra.mxu0 %v11781_v30  ;;  %v11329_v30 = vld [vmem:[#allocation3 + $0x358] sm:$0xff] }
 0x5e1   : > { %16344 = vmatpush3.msra.mxu1 %v21170_v7  ;;  %v21426_v55 = vpop.f32.mrf.mxu1  ;;  %11996 = vmatprep.mubr.f32.mxu0 %v11785_v56 }
 0x5e2   : > { %16345 = vmatprep.subr.mxu1 %v22527_v42  ;;  %16284 = vmatmul.mubr.msk.f32.gmra.mxu1 %vm10900_vm4, %v11296_v51  ;;  %v21484_v51 = vpop.f32.mrf.mxu0 }
 0x5e3   : > { %16346 = vmatpush3.msra.mxu1 %v21180_v59  ;;  %16286 = vmatprep.mubr.msk.f32.mxu1 %vm16596_vm3, %v22527_v42  ;;  %v11026_v34 = vpop.f32.mrf.mxu1 }
 0x5e4   : > { %16347 = vmatprep.subr.mxu1 %v22527_v42  ;;  %11997 = vmatmul.mubr.f32.gmra.mxu0 %v11784_v39  ;;  %v11461_v34 = vpop.f32.mrf.mxu0 }
 0x5e5   : > { %16348 = vmatpush3.msra.mxu1 %v21184_v61  ;;  %12001 = vmatprep.mubr.f32.mxu0 %v11788_v14  ;;  %v12214_v14 = vld [vmem:[#allocation3 + $0x630] sm:$0xff]  ;;  %v12235_v34 = vld [vmem:[#allocation3 + $0x6d8] sm:$0xff] }
 0x5e6   : > { %16349 = vmatprep.subr.mxu1 %v22527_v42  ;;  %16287 = vmatmul.mubr.msk.f32.gmra.mxu1 %vm10900_vm4, %v11299_v58  ;;  %v12218_v58 = vld [vmem:[#allocation3 + $0x650] sm:$0xff] }
 0x5e7   : > { %16350 = vmatpush3.msra.mxu1 %v21192_v26  ;;  %16289 = vmatprep.mubr.msk.f32.mxu1 %vm16596_vm3, %v22527_v42  ;;  %v21440_v43 = vpop.f32.mrf.mxu1 }
 0x5e8   : > { %16351 = vmatprep.subr.mxu1 %v22527_v42  ;;  %12002 = vmatmul.mubr.f32.gmra.mxu0 %v11787_v48  ;;  %v11332_v48 = vld [vmem:[#allocation3 + $0x370] sm:$0xff] }
 0x5e9   : > { %16352 = vmatpush3.msra.mxu1 %v21196_v54  ;;  %v11031_v29 = vpop.f32.mrf.mxu1  ;;  %12365 = vmatprep.mubr.f32.mxu0 %v12188_v37 }
 0x5ea   : > { %16290 = vmatmul.mubr.msk.f32.gmra.mxu1 %vm10900_vm4, %v11302_v44  ;;  %16410 = vmatprep.subr.mxu1 %v22527_v42  ;;  %v12217_v29 = vld [vmem:[#allocation3 + $0x648] sm:$0xff] }
 0x5eb   : > { %16292 = vmatprep.mubr.msk.f32.mxu1 %vm16596_vm3, %v22527_v42 }
 0x5ec   : > { %12366 = vmatmul.mubr.f32.vlgmr.msra.gmra.mxu0 %v12187_v4  ;;  %v21491_v4 = vpop.f32.mrf.mxu0 }
 0x5ed   : > { %v21448_v6 = vpop.f32.mrf.mxu1  ;;  %12370 = vmatprep.mubr.f32.mxu0 %v12191_v3  ;;  %v12221_v3 = vld [vmem:[#allocation3 + $0x668] sm:$0xff] }
 0x5ee   : > { %16293 = vmatmul.mubr.msk.f32.gmra.mxu1 %vm10900_vm4, %v11305_v5  ;;  %v11335_v5 = vld [vmem:[#allocation3 + $0x388] sm:$0xff] }
 0x5ef   : > { %16295 = vmatprep.mubr.msk.f32.mxu1 %vm16596_vm3, %v22527_v42  ;;  %v11036_v36 = vpop.f32.mrf.mxu1 }
 0x5f0   : > { %12371 = vmatmul.mubr.f32.gmra.mxu0 %v12190_v53  ;;  %v12220_v36 = vld [vmem:[#allocation3 + $0x660] sm:$0xff] }
 0x5f1   : > { %12375 = vmatprep.mubr.f32.mxu0 %v12194_v35  ;;  %v11466_v35 = vpop.f32.mrf.mxu0 }
 0x5f2   : > { %16296 = vmatmul.mubr.msk.f32.gmra.mxu1 %vm10900_vm4, %v11308_v8 }
 0x5f3   : > { %16298 = vmatprep.mubr.msk.f32.mxu1 %vm16596_vm3, %v22527_v42  ;;  %v21456_v33 = vpop.f32.mrf.mxu1 }
 0x5f4   : > { %12376 = vmatmul.mubr.f32.gmra.mxu0 %v12193_v20  ;;  %v21498_v20 = vpop.f32.mrf.mxu0 }
 0x5f5   : > { %v11041_v12 = vpop.f32.mrf.mxu1  ;;  %12380 = vmatprep.mubr.f32.mxu0 %v12197_v16  ;;  %v12224_v16 = vld [vmem:[#allocation3 + $0x680] sm:$0xff] }
 0x5f6   : > { %16299 = vmatmul.mubr.msk.f32.gmra.mxu1 %vm10900_vm4, %v11311_v10  ;;  %v11735_v10 = vld [vmem:[#allocation3 + $0x3a0] sm:$0xff] }
 0x5f7   : > { %16301 = vmatprep.mubr.msk.f32.mxu1 %vm16596_vm3, %v22527_v42 }
 0x5f8   : > { %12381 = vmatmul.mubr.f32.gmra.mxu0 %v12196_v17  ;;  %v11471_v17 = vpop.f32.mrf.mxu0 }
 0x5f9   : > { %v21461_v49 = vpop.f32.mrf.mxu1  ;;  %12385 = vmatprep.mubr.f32.mxu0 %v12200_v11 }
 0x5fa   : > { %16302 = vmatmul.mubr.msk.f32.gmra.mxu1 %vm10900_vm4, %v11314_v28  ;;  %v12223_v28 = vld [vmem:[#allocation3 + $0x678] sm:$0xff] }
 0x5fb   : > { %16304 = vmatprep.mubr.msk.f32.mxu1 %vm16596_vm3, %v22527_v42  ;;  %v11046_v40 = vpop.f32.mrf.mxu1 }
 0x5fc   : > { %12386 = vmatmul.mubr.f32.gmra.mxu0 %v12199_v52  ;;  %v21505_v52 = vpop.f32.mrf.mxu0 }
 0x5fd   : > { %12390 = vmatprep.mubr.f32.mxu0 %v12203_v63  ;;  %v12227_v63 = vld [vmem:[#allocation3 + $0x698] sm:$0xff] }
 0x5fe   : > { %16305 = vmatmul.mubr.msk.f32.gmra.mxu1 %vm10900_vm4, %v11317_v31  ;;  %v11738_v31 = vld [vmem:[#allocation3 + $0x3b8] sm:$0xff] }
 0x5ff   : > { %16307 = vmatprep.mubr.msk.f32.mxu1 %vm16596_vm3, %v22527_v42  ;;  %v21469_v45 = vpop.f32.mrf.mxu1 }
 0x600   : > { %12391 = vmatmul.mubr.f32.gmra.mxu0 %v12202_v18  ;;  %v11476_v18 = vpop.f32.mrf.mxu0 }
 0x601   : > { %v11051_v60 = vpop.f32.mrf.mxu1  ;;  %12395 = vmatprep.mubr.f32.mxu0 %v12206_v13 }
 0x602   : > { %16308 = vmatmul.mubr.msk.f32.gmra.mxu1 %vm10900_vm4, %v11320_v41  ;;  %v12226_v41 = vld [vmem:[#allocation3 + $0x690] sm:$0xff]  ;;  %v21515_v60 = vpop.f32.mrf.mxu0 }
 0x603   : > { %16310 = vmatprep.mubr.msk.f32.mxu1 %vm16596_vm3, %v22527_v42 }
 0x604   : > { %12396 = vmatmul.mubr.f32.gmra.mxu0 %v12205_v2  ;;  %v11741_v2 = vld [vmem:[#allocation3 + $0x3d0] sm:$0xff] }
 0x605   : > { %v21474_v24 = vpop.f32.mrf.mxu1  ;;  %12400 = vmatprep.mubr.f32.mxu0 %v12209_v50 }
 0x606   : > { %16311 = vmatmul.mubr.msk.f32.gmra.mxu1 %vm10900_vm4, %v11323_v38  ;;  %v11481_v38 = vpop.f32.mrf.mxu0 }
 0x607   : > { %16313 = vmatprep.mubr.msk.f32.mxu1 %vm16596_vm3, %v22527_v42  ;;  %v11056_v57 = vpop.f32.mrf.mxu1 }
 0x608   : > { %12401 = vmatmul.mubr.f32.gmra.mxu0 %v12208_v23  ;;  %v12229_v23 = vld [vmem:[#allocation3 + $0x6a8] sm:$0xff] }
 0x609   : > { %12405 = vmatprep.mubr.f32.mxu0 %v12212_v32  ;;  %v21526_v32 = vpop.f32.mrf.mxu0 }
 0x60a   : > { %16314 = vmatmul.mubr.msk.f32.gmra.mxu1 %vm10900_vm4, %v11326_v21  ;;  %v11744_v21 = vld [vmem:[#allocation3 + $0x3e8] sm:$0xff] }
 0x60b   : > { %16316 = vmatprep.mubr.msk.f32.mxu1 %vm16596_vm3, %v22527_v42  ;;  %v21482_v56 = vpop.f32.mrf.mxu1 }
 0x60c   : > { %12406 = vmatmul.mubr.f32.gmra.mxu0 %v12211_v15  ;;  %v11486_v15 = vpop.f32.mrf.mxu0 }
 0x60d   : > { %v11061_v39 = vpop.f32.mrf.mxu1  ;;  %12410 = vmatprep.mubr.f32.mxu0 %v12215_v1  ;;  %v12232_v1 = vld [vmem:[#allocation3 + $0x6c0] sm:$0xff] }
 0x60e   : > { %16317 = vmatmul.mubr.msk.f32.gmra.mxu1 %vm10900_vm4, %v11329_v30  ;;  %v21537_v30 = vpop.f32.mrf.mxu0  ;;  %v11747_v39 = vld [vmem:[#allocation3 + $0x400] sm:$0xff] }
 0x60f   : > { %16319 = vmatprep.mubr.msk.f32.mxu1 %vm16596_vm3, %v22527_v42  ;;  %v21489_v37 = vpop.f32.mrf.mxu1 }
 0x610   : > { %12411 = vmatmul.mubr.f32.gmra.mxu0 %v12214_v14 }
 0x611   : > { %v11066_v44 = vpop.f32.mrf.mxu1  ;;  %12415 = vmatprep.mubr.f32.mxu0 %v12218_v58  ;;  %v11491_v58 = vpop.f32.mrf.mxu0 }
 0x612   : > { %16320 = vmatmul.mubr.msk.f32.gmra.mxu1 %vm10900_vm4, %v11332_v48  ;;  %v11750_v44 = vld [vmem:[#allocation3 + $0x418] sm:$0xff] }
 0x613   : > { %16322 = vmatprep.mubr.msk.f32.mxu1 %vm16596_vm3, %v22527_v42  ;;  %v21496_v53 = vpop.f32.mrf.mxu1  ;;  %v21548_v48 = vpop.f32.mrf.mxu0 }
 0x614   : > { %12416 = vmatmul.mubr.f32.gmra.mxu0 %v12217_v29 }
 0x615   : > { %v11071_v8 = vpop.f32.mrf.mxu1  ;;  %12420 = vmatprep.mubr.f32.mxu0 %v12221_v3  ;;  %v11496_v3 = vpop.f32.mrf.mxu0 }
 0x616   : > { %16323 = vmatmul.mubr.msk.f32.gmra.mxu1 %vm10900_vm4, %v11335_v5  ;;  %v12238_v5 = vld [vmem:[#allocation3 + $0x6f0] sm:$0xff] }
 0x617   : > { %16353 = vmatprep.mubr.msk.f32.mxu1 %vm16596_vm3, %v22527_v42  ;;  %v21503_v12 = vpop.f32.mrf.mxu1  ;;  %v21559_v35 = vpop.f32.mrf.mxu0  ;;  %v11753_v8 = vld [vmem:[#allocation3 + $0x430] sm:$0xff] }
 0x618   : > { %12421 = vmatmul.mubr.f32.gmra.mxu0 %v12220_v36 }
 0x619   : > { %v11076_v11 = vpop.f32.mrf.mxu1  ;;  %12425 = vmatprep.mubr.f32.mxu0 %v12224_v16  ;;  %v11501_v16 = vpop.f32.mrf.mxu0 }
 0x61a   : > { %16354 = vmatmul.mubr.msk.f32.vlgmr.msra.gmra.mxu1 %vm10900_vm4, %v11735_v10  ;;  %v12241_v10 = vld [vmem:[#allocation3 + $0x708] sm:$0xff]  ;;  %v11777_v16 = vld [vmem:[#allocation3 + $0x4f0] sm:$0xff] }
 0x61b   : > { %16411 = vmatpush3.msra.mxu1 %v21062_v0  ;;  %16356 = vmatprep.mubr.msk.f32.mxu1 %vm16596_vm3, %v22527_v42  ;;  %v21511_v40 = vpop.f32.mrf.mxu1  ;;  %v12230_v0 = vld [vmem:[#allocation3 + $0x6b0] sm:$0xff]  ;;  %v21570_v17 = vpop.f32.mrf.mxu0 }
 0x61c   : > { %16412 = vmatprep.subr.mxu1 %v22527_v42  ;;  %12426 = vmatmul.mubr.f32.gmra.mxu0 %v12223_v28 }
 0x61d   : > { %16413 = vmatpush3.msra.mxu1 %v21070_v62  ;;  %v11081_v13 = vpop.f32.mrf.mxu1  ;;  %12430 = vmatprep.mubr.f32.mxu0 %v12227_v63  ;;  %v11506_v28 = vpop.f32.mrf.mxu0 }
 0x61e   : > { %16414 = vmatprep.subr.mxu1 %v22527_v42  ;;  %16357 = vmatmul.mubr.msk.f32.gmra.mxu1 %vm10900_vm4, %v11738_v31 }
 0x61f   : > { %16415 = vmatpush3.msra.mxu1 %v21088_v46  ;;  %16359 = vmatprep.mubr.msk.f32.mxu1 %vm16596_vm3, %v22527_v42  ;;  %v21522_v50 = vpop.f32.mrf.mxu1  ;;  %v12233_v46 = vld [vmem:[#allocation3 + $0x6c8] sm:$0xff]  ;;  %v21581_v63 = vpop.f32.mrf.mxu0 }
 0x620   : > { %16416 = vmatprep.subr.mxu1 %v22527_v42  ;;  %12431 = vmatmul.mubr.f32.gmra.mxu0 %v12226_v41 }
 0x621   : > { %16417 = vmatpush3.msra.mxu1 %v21096_v22  ;;  %v11086_v62 = vpop.f32.mrf.mxu1  ;;  %12435 = vmatprep.mubr.f32.mxu0 %v12230_v0  ;;  %v11511_v18 = vpop.f32.mrf.mxu0 }
 0x622   : > { %16418 = vmatprep.subr.mxu1 %v22527_v42  ;;  %16360 = vmatmul.mubr.msk.f32.gmra.mxu1 %vm10900_vm4, %v11741_v2 }
 0x623   : > { %16419 = vmatpush3.msra.mxu1 %v21114_v47  ;;  %16362 = vmatprep.mubr.msk.f32.mxu1 %vm16596_vm3, %v22527_v42  ;;  %v21533_v57 = vpop.f32.mrf.mxu1  ;;  %v12236_v47 = vld [vmem:[#allocation3 + $0x6e0] sm:$0xff]  ;;  %v21588_v41 = vpop.f32.mrf.mxu0 }
 0x624   : > { %16420 = vmatprep.subr.mxu1 %v22527_v42  ;;  %12436 = vmatmul.mubr.f32.gmra.mxu0 %v12229_v23  ;;  %v11765_v23 = vld [vmem:[#allocation3 + $0x490] sm:$0xff] }
 0x625   : > { %16421 = vmatpush3.msra.mxu1 %v21122_v9  ;;  %v11091_v22 = vpop.f32.mrf.mxu1  ;;  %12440 = vmatprep.mubr.f32.mxu0 %v12233_v46  ;;  %v11516_v2 = vpop.f32.mrf.mxu0 }
 0x626   : > { %16422 = vmatprep.subr.mxu1 %v22527_v42  ;;  %16363 = vmatmul.mubr.msk.f32.gmra.mxu1 %vm10900_vm4, %v11744_v21  ;;  %v11768_v22 = vld [vmem:[#allocation3 + $0x4a8] sm:$0xff]  ;;  %v11783_v2 = vld [vmem:[#allocation3 + $0x520] sm:$0xff] }
 0x627   : > { %16423 = vmatpush3.msra.mxu1 %v21140_v19  ;;  %16365 = vmatprep.mubr.msk.f32.mxu1 %vm16596_vm3, %v22527_v42  ;;  %v21544_v14 = vpop.f32.mrf.mxu1  ;;  %v12239_v19 = vld [vmem:[#allocation3 + $0x6f8] sm:$0xff]  ;;  %v21595_v62 = vpop.f32.mrf.mxu0 }
 0x628   : > { %16424 = vmatprep.subr.mxu1 %v22527_v42  ;;  %12441 = vmatmul.mubr.f32.gmra.mxu0 %v12232_v1 }
 0x629   : > { %16425 = vmatpush3.msra.mxu1 %v21146_v25  ;;  %v11096_v9 = vpop.f32.mrf.mxu1  ;;  %12445 = vmatprep.mubr.f32.mxu0 %v12236_v47  ;;  %v11521_v46 = vpop.f32.mrf.mxu0 }
 0x62a   : > { %16426 = vmatprep.subr.mxu1 %v22527_v42  ;;  %16366 = vmatmul.mubr.msk.f32.gmra.mxu1 %vm10900_vm4, %v11747_v39  ;;  %v11771_v9 = vld [vmem:[#allocation3 + $0x4c0] sm:$0xff] }
 0x62b   : > { %16427 = vmatpush3.msra.mxu1 %v21165_v27  ;;  %16368 = vmatprep.mubr.msk.f32.mxu1 %vm16596_vm3, %v22527_v42  ;;  %v21555_v29 = vpop.f32.mrf.mxu1  ;;  %v12242_v27 = vld [vmem:[#allocation3 + $0x710] sm:$0xff]  ;;  %v21602_v15 = vpop.f32.mrf.mxu0 }
 0x62c   : > { %16428 = vmatprep.subr.mxu1 %v22527_v42  ;;  %12446 = vmatmul.mubr.f32.gmra.mxu0 %v12235_v34 }
 0x62d   : > { %16429 = vmatpush3.msra.mxu1 %v21170_v7  ;;  %v11101_v25 = vpop.f32.mrf.mxu1  ;;  %12450 = vmatprep.mubr.f32.mxu0 %v12239_v19  ;;  %v11526_v47 = vpop.f32.mrf.mxu0 }
 0x62e   : > { %16430 = vmatprep.subr.mxu1 %v22527_v42  ;;  %16369 = vmatmul.mubr.msk.f32.gmra.mxu1 %vm10900_vm4, %v11750_v44  ;;  %v11774_v25 = vld [vmem:[#allocation3 + $0x4d8] sm:$0xff] }
 0x62f   : > { %16431 = vmatpush3.msra.mxu1 %v21180_v59  ;;  %16371 = vmatprep.mubr.msk.f32.mxu1 %vm16596_vm3, %v22527_v42  ;;  %v21566_v36 = vpop.f32.mrf.mxu1  ;;  %v11756_v59 = vld [vmem:[#allocation3 + $0x448] sm:$0xff]  ;;  %v21607_v39 = vpop.f32.mrf.mxu0 }
 0x630   : > { %16432 = vmatprep.subr.mxu1 %v22527_v42  ;;  %12451 = vmatmul.mubr.f32.gmra.mxu0 %v12238_v5 }
 0x631   : > { %16433 = vmatpush3.msra.mxu1 %v21184_v61  ;;  %v11106_v7 = vpop.f32.mrf.mxu1  ;;  %12455 = vmatprep.mubr.f32.mxu0 %v12242_v27  ;;  %v11531_v34 = vpop.f32.mrf.mxu0 }
 0x632   : > { %16434 = vmatprep.subr.mxu1 %v22527_v42  ;;  %16372 = vmatmul.mubr.msk.f32.gmra.mxu1 %vm10900_vm4, %v11753_v8  ;;  %v11789_v34 = vld [vmem:[#allocation3 + $0x550] sm:$0xff] }
 0x633   : > { %16435 = vmatpush3.msra.mxu1 %v21192_v26  ;;  %16374 = vmatprep.mubr.msk.f32.mxu1 %vm16596_vm3, %v22527_v42  ;;  %v21577_v11 = vpop.f32.mrf.mxu1  ;;  %v11759_v26 = vld [vmem:[#allocation3 + $0x460] sm:$0xff]  ;;  %v21614_v44 = vpop.f32.mrf.mxu0 }
 0x634   : > { %16436 = vmatprep.subr.mxu1 %v22527_v42  ;;  %12456 = vmatmul.mubr.f32.gmra.mxu0 %v12241_v10 }
 0x635   : > { %16437 = vmatpush3.msra.mxu1 %v21196_v54  ;;  %v11111_v61 = vpop.f32.mrf.mxu1  ;;  %v11762_v54 = vld [vmem:[#allocation3 + $0x478] sm:$0xff]  ;;  %v11536_v5 = vpop.f32.mrf.mxu0 }
 0x636   : > { %16375 = vmatmul.mubr.msk.f32.gmra.mxu1 %vm10900_vm4, %v11756_v59  ;;  %v11780_v61 = vld [vmem:[#allocation3 + $0x508] sm:$0xff] }
 0x637   : > { %16377 = vmatprep.mubr.msk.f32.mxu1 %vm16596_vm3, %v22527_v42  ;;  %v21586_v31 = vpop.f32.mrf.mxu1  ;;  %v21621_v8 = vpop.f32.mrf.mxu0  ;;  %v12189_v5 = vld [vmem:[#allocation3 + $0x568] sm:$0xff] }
 0x638   : > { %22726 = vst [vmem:[#allocation23_spill] sm:$0xff] %v21586_v31 }
 0x639   : > { %v11116_v13 = vpop.f32.mrf.mxu1  ;;  %v11541_v7 = vpop.f32.mrf.mxu0 }
 0x63a   : > { %16378 = vmatmul.mubr.msk.f32.gmra.mxu1 %vm10900_vm4, %v11759_v26 }
 0x63b   : > { %16380 = vmatprep.mubr.msk.f32.mxu1 %vm16596_vm3, %v22527_v42  ;;  %v21593_v0 = vpop.f32.mrf.mxu1  ;;  %v21628_v59 = vpop.f32.mrf.mxu0 }
 0x63c   : > { %22727 = vst [vmem:[#allocation80_spill] sm:$0xff] %v21628_v59 }
 0x63d   : > { %v16185_v38 = vpop.f32.mrf.mxu1  ;;  %v11546_v26 = vpop.f32.mrf.mxu0 }
 0x63e   : > { %16381 = vmatmul.mubr.msk.f32.gmra.mxu1 %vm10900_vm4, %v11762_v54 }
 0x63f   : > { %16383 = vmatprep.mubr.msk.f32.mxu1 %vm16596_vm3, %v22527_v42  ;;  %v21635_v13 = vpop.f32.mrf.mxu0 }
 0x640   : > { %22728 = vst [vmem:[#allocation64_spill] sm:$0xff] %v21635_v13 }
 0x641   : > { %v21600_v21 = vpop.f32.mrf.mxu1  ;;  %v11551_v38 = vpop.f32.mrf.mxu0 }
 0x642   : > { %16384 = vmatmul.mubr.msk.f32.gmra.mxu1 %vm10900_vm4, %v11765_v23 }
 0x643   : > { %16386 = vmatprep.mubr.msk.f32.mxu1 %vm16596_vm3, %v22527_v42  ;;  %v16188_v1 = vpop.f32.mrf.mxu1  ;;  %v21640_v23 = vpop.f32.mrf.mxu0 }
 0x644   : > { %22729 = vst [vmem:[#allocation59_spill] sm:$0xff] %v21640_v23 }
 0x645   : > { %v11915_v1 = vpop.f32.mrf.mxu0 }
 0x646   : > { %16387 = vmatmul.mubr.msk.f32.gmra.mxu1 %vm10900_vm4, %v11768_v22  ;;  %v21610_v58 = vpop.f32.mrf.mxu1  ;;  %v11786_v22 = vld [vmem:[#allocation3 + $0x538] sm:$0xff] }
 0x647   : > { %16389 = vmatprep.mubr.msk.f32.mxu1 %vm16596_vm3, %v22527_v42 }
 0x648   : > { %v16191_v19 = vpop.f32.mrf.mxu1 }
 0x64a   : > { %16390 = vmatmul.mubr.msk.f32.gmra.mxu1 %vm10900_vm4, %v11771_v9 }
 0x64b   : > { %16392 = vmatprep.mubr.msk.f32.mxu1 %vm16596_vm3, %v22527_v42  ;;  %v21619_v3 = vpop.f32.mrf.mxu1 }
 0x64d   : > { %v16194_v27 = vpop.f32.mrf.mxu1 }
 0x64e   : > { %16393 = vmatmul.mubr.msk.f32.gmra.mxu1 %vm10900_vm4, %v11774_v25 }
 0x64f   : > { %16395 = vmatprep.mubr.msk.f32.mxu1 %vm16596_vm3, %v22527_v42 }
 0x650   : > { %v21626_v10 = vpop.f32.mrf.mxu1 }
 0x652   : > { %16396 = vmatmul.mubr.msk.f32.gmra.mxu1 %vm10900_vm4, %v11777_v16  ;;  %v16197_v28 = vpop.f32.mrf.mxu1 }
 0x653   : > { %16398 = vmatprep.mubr.msk.f32.mxu1 %vm16596_vm3, %v22527_v42 }
 0x655   : > { %v21633_v18 = vpop.f32.mrf.mxu1 }
 0x656   : > { %16399 = vmatmul.mubr.msk.f32.gmra.mxu1 %vm10900_vm4, %v11780_v61  ;;  %v12192_v61 = vld [vmem:[#allocation3 + $0x580] sm:$0xff] }
 0x657   : > { %v16200_v54 = vpop.f32.mrf.mxu1  ;;  %16401 = vmatprep.mubr.msk.f32.mxu1 %vm16596_vm3, %v22527_v42 }
 0x65a   : > { %v21642_v46 = vpop.f32.mrf.mxu1  ;;  %16402 = vmatmul.mubr.msk.f32.gmra.mxu1 %vm10900_vm4, %v11783_v2 }
 0x65b   : > { %16404 = vmatprep.mubr.msk.f32.mxu1 %vm16596_vm3, %v22527_v42 }
 0x65c   : > { %v16203_v47 = vpop.f32.mrf.mxu1 }
 0x65e   : > { %v21647_v9 = vpop.f32.mrf.mxu1  ;;  %16405 = vmatmul.mubr.msk.f32.gmra.mxu1 %vm10900_vm4, %v11786_v22  ;;  %v12195_v22 = vld [vmem:[#allocation3 + $0x598] sm:$0xff] }
 0x65f   : > { %16407 = vmatprep.mubr.msk.f32.mxu1 %vm16596_vm3, %v22527_v42 }
 0x660   : > { %v16206_v19 = vpop.f32.mrf.mxu1 }
 0x662   : > { %v21652_v25 = vpop.f32.mrf.mxu1  ;;  %16408 = vmatmul.mubr.msk.f32.gmra.mxu1 %vm10900_vm4, %v11789_v34 }
 0x663   : > { %16438 = vmatprep.mubr.msk.f32.mxu1 %vm16596_vm3, %v22527_v42 }
 0x664   : > { %v16209_v27 = vpop.f32.mrf.mxu1  ;;  %v21657_v16 = vpop.f32.mrf.mxu0 }
 0x665   : > { %22730 = vst [vmem:[#allocation75_spill] sm:$0xff] %v21657_v16 }
 0x666   : > { %v21659_v7 = vpop.f32.mrf.mxu1  ;;  %16439 = vmatmul.mubr.msk.f32.vlgmr.msra.gmra.mxu1 %vm10900_vm4, %v12189_v5  ;;  %v11920_v28 = vpop.f32.mrf.mxu0  ;;  %v12198_v5 = vld [vmem:[#allocation3 + $0x5b0] sm:$0xff] }
 0x667   : > { %16441 = vmatprep.mubr.msk.f32.mxu1 %vm16596_vm3, %v22527_v42 }
 0x668   : > { %v16212_v26 = vpop.f32.mrf.mxu1  ;;  %v21664_v54 = vpop.f32.mrf.mxu0 }
 0x669   : > { %22731 = vst [vmem:[#allocation33_spill] sm:$0xff] %v21664_v54 }
 0x66a   : > { %v21666_v2 = vpop.f32.mrf.mxu1  ;;  %16442 = vmatmul.mubr.msk.f32.gmra.mxu1 %vm10900_vm4, %v12192_v61  ;;  %v11925_v38 = vpop.f32.mrf.mxu0 }
 0x66b   : > { %16444 = vmatprep.mubr.msk.f32.mxu1 %vm16596_vm3, %v22527_v42  ;;  %v12201_v38 = vld [vmem:[#allocation3 + $0x5c8] sm:$0xff] }
 0x66c   : > { %v16215_v1 = vpop.f32.mrf.mxu1  ;;  %v21671_v47 = vpop.f32.mrf.mxu0 }
 0x66d   : > { %22732 = vst [vmem:[#allocation47_spill] sm:$0xff] %v21671_v47 }
 0x66e   : > { %v21673_v34 = vpop.f32.mrf.mxu1  ;;  %16445 = vmatmul.mubr.msk.f32.gmra.mxu1 %vm10900_vm4, %v12195_v22  ;;  %v11930_v19 = vpop.f32.mrf.mxu0 }
 0x66f   : > { %16447 = vmatprep.mubr.msk.f32.mxu1 %vm16596_vm3, %v22527_v42 }
 0x670   : > { %v16218_v27 = vpop.f32.mrf.mxu1  ;;  %v21678_v28 = vpop.f32.mrf.mxu0 }
 0x671   : > { %22733 = vst [vmem:[#allocation18_spill] sm:$0xff] %v21678_v28  ;;  %v12204_v27 = vld [vmem:[#allocation3 + $0x5e0] sm:$0xff] }
 0x672   : > { %v21680_v61 = vpop.f32.mrf.mxu1  ;;  %16448 = vmatmul.mubr.msk.f32.gmra.mxu1 %vm10900_vm4, %v12198_v5  ;;  %v11935_v26 = vpop.f32.mrf.mxu0 }
 0x673   : > { %16450 = vmatprep.mubr.msk.f32.mxu1 %vm16596_vm3, %v22527_v42 }
 0x674   : > { %v16221_v1 = vpop.f32.mrf.mxu1  ;;  %v21685_v47 = vpop.f32.mrf.mxu0 }
 0x675   : > { %22734 = vst [vmem:[#allocation61_spill] sm:$0xff] %v21685_v47  ;;  %v12207_v1 = vld [vmem:[#allocation3 + $0x5f8] sm:$0xff] }
 0x676   : > { %v21687_v22 = vpop.f32.mrf.mxu1  ;;  %16451 = vmatmul.mubr.msk.f32.gmra.mxu1 %vm10900_vm4, %v12201_v38  ;;  %v11940_v19 = vpop.f32.mrf.mxu0 }
 0x677   : > { %16453 = vmatprep.mubr.msk.f32.mxu1 %vm16596_vm3, %v22527_v42 }
 0x678   : > { %v16224_v28 = vpop.f32.mrf.mxu1  ;;  %v21692_v54 = vpop.f32.mrf.mxu0 }
 0x679   : > { %22735 = vst [vmem:[#allocation79_spill] sm:$0xff] %v21692_v54  ;;  %v12210_v28 = vld [vmem:[#allocation3 + $0x610] sm:$0xff] }
 0x67a   : > { %v21694_v5 = vpop.f32.mrf.mxu1  ;;  %16454 = vmatmul.mubr.msk.f32.gmra.mxu1 %vm10900_vm4, %v12204_v27  ;;  %v11945_v26 = vpop.f32.mrf.mxu0 }
 0x67b   : > { %16456 = vmatprep.mubr.msk.f32.mxu1 %vm16596_vm3, %v22527_v42 }
 0x67c   : > { %v16227_v47 = vpop.f32.mrf.mxu1  ;;  %v21699_v16 = vpop.f32.mrf.mxu0 }
 0x67d   : > { %22736 = vst [vmem:[#allocation7_spill] sm:$0xff] %v21699_v16  ;;  %v12213_v47 = vld [vmem:[#allocation3 + $0x628] sm:$0xff] }
 0x67e   : > { %v21701_v38 = vpop.f32.mrf.mxu1  ;;  %16457 = vmatmul.mubr.msk.f32.gmra.mxu1 %vm10900_vm4, %v12207_v1  ;;  %v11950_v19 = vpop.f32.mrf.mxu0 }
 0x67f   : > { %16459 = vmatprep.mubr.msk.f32.mxu1 %vm16596_vm3, %v22527_v42 }
 0x680   : > { %v16230_v54 = vpop.f32.mrf.mxu1  ;;  %v21706_v23 = vpop.f32.mrf.mxu0 }
 0x681   : > { %22737 = vst [vmem:[#allocation73_spill] sm:$0xff] %v21706_v23  ;;  %v12216_v54 = vld [vmem:[#allocation3 + $0x640] sm:$0xff] }
 0x682   : > { %v21708_v27 = vpop.f32.mrf.mxu1  ;;  %16460 = vmatmul.mubr.msk.f32.gmra.mxu1 %vm10900_vm4, %v12210_v28  ;;  %v11955_v26 = vpop.f32.mrf.mxu0 }
 0x683   : > { %16462 = vmatprep.mubr.msk.f32.mxu1 %vm16596_vm3, %v22527_v42 }
 0x684   : > { %v16233_v16 = vpop.f32.mrf.mxu1  ;;  %v21713_v13 = vpop.f32.mrf.mxu0 }
 0x685   : > { %22738 = vst [vmem:[#allocation76_spill] sm:$0xff] %v21713_v13  ;;  %v12219_v16 = vld [vmem:[#allocation3 + $0x658] sm:$0xff] }
 0x686   : > { %v21715_v1 = vpop.f32.mrf.mxu1  ;;  %16463 = vmatmul.mubr.msk.f32.gmra.mxu1 %vm10900_vm4, %v12213_v47  ;;  %v11960_v19 = vpop.f32.mrf.mxu0 }
 0x687   : > { %16465 = vmatprep.mubr.msk.f32.mxu1 %vm16596_vm3, %v22527_v42 }
 0x688   : > { %v16236_v23 = vpop.f32.mrf.mxu1  ;;  %v21720_v31 = vpop.f32.mrf.mxu0 }
 0x689   : > { %22739 = vst [vmem:[#allocation52_spill] sm:$0xff] %v21720_v31  ;;  %v21732_v23 = vadd.f32 %v21593_v0, %v21426_v55  ;;  %v21746_v55 = vadd.f32 %v21600_v21, %v21440_v43  ;;  %v12225_v0 = vld [vmem:[#allocation3 + $0x688] sm:$0xff]  ;;  %v21760_v43 = vadd.f32 %v21610_v58, %v21448_v6  ;;  %v12228_v21 = vld [vmem:[#allocation3 + $0x6a0] sm:$0xff]  ;;  %v21774_v6 = vadd.f32 %v21619_v3, %v21456_v33  ;;  %v12231_v58 = vld [vmem:[#allocation3 + $0x6b8] sm:$0xff] }
 0x68a   : > { %v21722_v28 = vpop.f32.mrf.mxu1  ;;  %16466 = vmatmul.mubr.msk.f32.gmra.mxu1 %vm10900_vm4, %v12216_v54  ;;  %v11965_v26 = vpop.f32.mrf.mxu0  ;;  %v12222_v54 = vld [vmem:[#allocation3 + $0x670] sm:$0xff]  ;;  %v21788_v33 = vadd.f32 %v21626_v10, %v21461_v49  ;;  %v21802_v49 = vadd.f32 %v21633_v18, %v21469_v45  ;;  %v12237_v10 = vld [vmem:[#allocation3 + $0x6e8] sm:$0xff]  ;;  %v21816_v45 = vadd.f32 %v21642_v46, %v21474_v24  ;;  %v12240_v18 = vld [vmem:[#allocation3 + $0x700] sm:$0xff]  ;;  %v21830_v24 = vadd.f32 %v21647_v9, %v21482_v56 }
 0x68b   : > { %22740 = vst [vmem:[#allocation53_spill] sm:$0xff] %v21722_v28  ;;  %16468 = vmatprep.mubr.msk.f32.mxu1 %vm16596_vm3, %v22527_v42  ;;  %v12234_v3 = vld [vmem:[#allocation3 + $0x6d0] sm:$0xff]  ;;  %v12243_v46 = vld [vmem:[#allocation3 + $0x718] sm:$0xff]  ;;  %v21844_v56 = vadd.f32 %v21652_v25, %v21489_v37 }
 0x68c   : > { %v16239_v13 = vpop.f32.mrf.mxu1  ;;  %v21727_v59 = vpop.f32.mrf.mxu0 }
 0x68d   : > { %22741 = vst [vmem:[#allocation27_spill] sm:$0xff] %v21727_v59 }
 0x68e   : > { %v11619_v47 = vpop.f32.mrf.mxu1  ;;  %16469 = vmatmul.mubr.msk.f32.gmra.mxu1 %vm10900_vm4, %v12219_v16  ;;  %v11970_v19 = vpop.f32.mrf.mxu0 }
 0x68f   : > { %v21735_v31 = vadd.f32 %v11619_v47, %v21484_v51  ;;  %16471 = vmatprep.mubr.msk.f32.mxu1 %vm16596_vm3, %v22527_v42 }
 0x690   : > { %v16270_v26 = vpop.f32.mrf.mxu1  ;;  %v21739_v28 = vpop.f32.mrf.mxu0 }
 0x692   : > { %v11624_v59 = vpop.f32.mrf.mxu1  ;;  %16472 = vmatmul.mubr.msk.f32.gmra.mxu1 %vm10900_vm4, %v12222_v54  ;;  %v11975_v16 = vpop.f32.mrf.mxu0 }
 0x693   : > { %v21749_v51 = vadd.f32 %v11624_v59, %v21491_v4  ;;  %16474 = vmatprep.mubr.msk.f32.mxu1 %vm16596_vm3, %v22527_v42 }
 0x694   : > { %v16273_v47 = vpop.f32.mrf.mxu1  ;;  %v21753_v19 = vpop.f32.mrf.mxu0 }
 0x696   : > { %v11629_v13 = vpop.f32.mrf.mxu1  ;;  %16475 = vmatmul.mubr.msk.f32.gmra.mxu1 %vm10900_vm4, %v12225_v0  ;;  %v11980_v54 = vpop.f32.mrf.mxu0 }
 0x697   : > { %v21763_v4 = vadd.f32 %v11629_v13, %v21498_v20  ;;  %16477 = vmatprep.mubr.msk.f32.mxu1 %vm16596_vm3, %v22527_v42 }
 0x698   : > { %v16276_v59 = vpop.f32.mrf.mxu1  ;;  %v21767_v16 = vpop.f32.mrf.mxu0 }
 0x69a   : > { %v11634_v26 = vpop.f32.mrf.mxu1  ;;  %16478 = vmatmul.mubr.msk.f32.gmra.mxu1 %vm10900_vm4, %v12228_v21  ;;  %v11985_v0 = vpop.f32.mrf.mxu0 }
 0x69b   : > { %v21777_v20 = vadd.f32 %v11634_v26, %v21505_v52  ;;  %16480 = vmatprep.mubr.msk.f32.mxu1 %vm16596_vm3, %v22527_v42 }
 0x69c   : > { %v16279_v13 = vpop.f32.mrf.mxu1  ;;  %v21781_v54 = vpop.f32.mrf.mxu0 }
 0x69e   : > { %v11639_v47 = vpop.f32.mrf.mxu1  ;;  %16481 = vmatmul.mubr.msk.f32.gmra.mxu1 %vm10900_vm4, %v12231_v58  ;;  %v11990_v21 = vpop.f32.mrf.mxu0 }
 0x69f   : > { %v21791_v52 = vadd.f32 %v11639_v47, %v21515_v60  ;;  %16483 = vmatprep.mubr.msk.f32.mxu1 %vm16596_vm3, %v22527_v42 }
 0x6a0   : > { %v16282_v26 = vpop.f32.mrf.mxu1  ;;  %v21795_v0 = vpop.f32.mrf.mxu0 }
 0x6a2   : > { %v11644_v59 = vpop.f32.mrf.mxu1  ;;  %16484 = vmatmul.mubr.msk.f32.gmra.mxu1 %vm10900_vm4, %v12234_v3  ;;  %v11995_v58 = vpop.f32.mrf.mxu0 }
 0x6a3   : > { %v21805_v60 = vadd.f32 %v11644_v59, %v21526_v32  ;;  %16486 = vmatprep.mubr.msk.f32.mxu1 %vm16596_vm3, %v22527_v42 }
 0x6a4   : > { %v16285_v47 = vpop.f32.mrf.mxu1  ;;  %v21809_v21 = vpop.f32.mrf.mxu0 }
 0x6a6   : > { %v11649_v13 = vpop.f32.mrf.mxu1  ;;  %16487 = vmatmul.mubr.msk.f32.gmra.mxu1 %vm10900_vm4, %v12237_v10  ;;  %v12000_v3 = vpop.f32.mrf.mxu0 }
 0x6a7   : > { %v21819_v32 = vadd.f32 %v11649_v13, %v21537_v30  ;;  %16489 = vmatprep.mubr.msk.f32.mxu1 %vm16596_vm3, %v22527_v42 }
 0x6a8   : > { %v16288_v59 = vpop.f32.mrf.mxu1  ;;  %v21823_v58 = vpop.f32.mrf.mxu0 }
 0x6a9   : > { %v21855_v59 = vadd.f32 %v21659_v7, %v21496_v53 }
 0x6aa   : > { %v11654_v26 = vpop.f32.mrf.mxu1  ;;  %16490 = vmatmul.mubr.msk.f32.gmra.mxu1 %vm10900_vm4, %v12240_v18  ;;  %v12005_v10 = vpop.f32.mrf.mxu0 }
 0x6ab   : > { %v21833_v30 = vadd.f32 %v11654_v26, %v21548_v48  ;;  %16492 = vmatprep.mubr.msk.f32.mxu1 %vm16596_vm3, %v22527_v42 }
 0x6ac   : > { %v16291_v13 = vpop.f32.mrf.mxu1  ;;  %v21837_v3 = vpop.f32.mrf.mxu0 }
 0x6ae   : > { %v11659_v47 = vpop.f32.mrf.mxu1  ;;  %16493 = vmatmul.mubr.msk.f32.gmra.mxu1 %vm10900_vm4, %v12243_v46  ;;  %v12369_v18 = vpop.f32.mrf.mxu0 }
 0x6af   : > { %v21847_v48 = vadd.f32 %v11659_v47, %v21559_v35  ;;  %v21877_v35 = vadd.f32 %v21673_v34, %v21511_v40 }
 0x6b0   : > { %v16294_v9 = vpop.f32.mrf.mxu1  ;;  %v21849_v42 = vpop.f32.mrf.mxu0 }
 0x6b1   : > { %v21866_v9 = vadd.f32 %v21666_v2, %v21503_v12 }
 0x6b2   : > { %v11664_v10 = vpop.f32.mrf.mxu1  ;;  %v12374_v13 = vpop.f32.mrf.mxu0 }
 0x6b3   : > { %v21858_v46 = vadd.f32 %v11664_v10, %v21570_v17  ;;  %v21888_v17 = vadd.f32 %v21680_v61, %v21522_v50 }
 0x6b4   : > { %v16297_v37 = vpop.f32.mrf.mxu1  ;;  %v21860_v25 = vpop.f32.mrf.mxu0 }
 0x6b6   : > { %v11669_v47 = vpop.f32.mrf.mxu1  ;;  %v12379_v18 = vpop.f32.mrf.mxu0 }
 0x6b7   : > { %v21869_v13 = vadd.f32 %v11669_v47, %v21581_v63  ;;  %v21899_v63 = vadd.f32 %v21687_v22, %v21533_v57 }
 0x6b8   : > { %v16300_v53 = vpop.f32.mrf.mxu1  ;;  %v21871_v7 = vpop.f32.mrf.mxu0 }
 0x6b9   : > { %22742 = vst [vmem:[#allocation77_spill] sm:$0xff] %v21871_v7 }
 0x6ba   : > { %v11674_v10 = vpop.f32.mrf.mxu1  ;;  %v12384_v37 = vpop.f32.mrf.mxu0 }
 0x6bb   : > { %v21880_v18 = vadd.f32 %v11674_v10, %v21588_v41  ;;  %v21910_v41 = vadd.f32 %v21694_v5, %v21544_v14 }
 0x6bc   : > { %v16303_v12 = vpop.f32.mrf.mxu1  ;;  %v21882_v2 = vpop.f32.mrf.mxu0 }
 0x6bd   : > { %22743 = vst [vmem:[#allocation72_spill] sm:$0xff] %v21882_v2 }
 0x6be   : > { %v11679_v47 = vpop.f32.mrf.mxu1  ;;  %v12389_v53 = vpop.f32.mrf.mxu0 }
 0x6bf   : > { %v21891_v37 = vadd.f32 %v11679_v47, %v21595_v62  ;;  %v21921_v62 = vadd.f32 %v21701_v38, %v21555_v29 }
 0x6c0   : > { %v16306_v40 = vpop.f32.mrf.mxu1  ;;  %v21893_v34 = vpop.f32.mrf.mxu0 }
 0x6c1   : > { %22744 = vst [vmem:[#allocation43_spill] sm:$0xff] %v21893_v34 }
 0x6c2   : > { %v11684_v10 = vpop.f32.mrf.mxu1  ;;  %v12394_v12 = vpop.f32.mrf.mxu0 }
 0x6c3   : > { %v21902_v53 = vadd.f32 %v11684_v10, %v21602_v15  ;;  %v21932_v15 = vadd.f32 %v21708_v27, %v21566_v36 }
 0x6c4   : > { %v16309_v50 = vpop.f32.mrf.mxu1  ;;  %v21904_v61 = vpop.f32.mrf.mxu0 }
 0x6c5   : > { %22745 = vst [vmem:[#allocation13_spill] sm:$0xff] %v21904_v61 }
 0x6c6   : > { %v11689_v47 = vpop.f32.mrf.mxu1  ;;  %v12399_v40 = vpop.f32.mrf.mxu0 }
 0x6c7   : > { %v21913_v12 = vadd.f32 %v11689_v47, %v21607_v39  ;;  %v21943_v39 = vadd.f32 %v21715_v1, %v21577_v11 }
 0x6c8   : > { %v16312_v57 = vpop.f32.mrf.mxu1  ;;  %v21915_v22 = vpop.f32.mrf.mxu0 }
 0x6c9   : > { %22746 = vst [vmem:[#allocation20_spill] sm:$0xff] %v21915_v22 }
 0x6ca   : > { %v11694_v10 = vpop.f32.mrf.mxu1  ;;  %v12404_v50 = vpop.f32.mrf.mxu0 }
 0x6cb   : > { %v21924_v40 = vadd.f32 %v11694_v10, %v21614_v44 }
 0x6cc   : > { %v16315_v14 = vpop.f32.mrf.mxu1  ;;  %v21926_v5 = vpop.f32.mrf.mxu0 }
 0x6cd   : > { %22747 = vst [vmem:[#allocation42_spill] sm:$0xff] %v21926_v5  ;;  %v22752_v5 = vld [vmem:[#allocation53_spill] sm:$0xff] }
 0x6ce   : > { %v11699_v47 = vpop.f32.mrf.mxu1  ;;  %v12409_v57 = vpop.f32.mrf.mxu0 }
 0x6cf   : > { %v21935_v50 = vadd.f32 %v11699_v47, %v21621_v8  ;;  %v22749_v57 = vld [vmem:[#allocation80_spill] sm:$0xff] }
 0x6d0   : > { %v16318_v29 = vpop.f32.mrf.mxu1  ;;  %v21937_v38 = vpop.f32.mrf.mxu0 }
 0x6d1   : > { %22748 = vst [vmem:[#allocation51_spill] sm:$0xff] %v21937_v38  ;;  %v22751_v38 = vld [vmem:[#allocation23_spill] sm:$0xff] }
 0x6d2   : > { %v11704_v10 = vpop.f32.mrf.mxu1  ;;  %v12414_v14 = vpop.f32.mrf.mxu0  ;;  %v21954_v44 = vadd.f32 %v22752_v5, %v22751_v38  ;;  %v22757_v5 = vmax.f32 %v21732_v23, %v21735_v31  ;;  %v22761_v23 = vmax.f32 %v21760_v43, %v21763_v4  ;;  %v22765_v4 = vmax.f32 %v21788_v33, %v21791_v52 }
 0x6d3   : > { %v21946_v26 = vadd.f32 %v11704_v10, %v22749_v57  ;;  %v22753_v14 = vld [vmem:[#allocation64_spill] sm:$0xff]  ;;  %v22769_v52 = vmax.f32 %v21816_v45, %v21819_v32 }
 0x6d4   : > { %v16321_v36 = vpop.f32.mrf.mxu1  ;;  %v21948_v27 = vpop.f32.mrf.mxu0 }
 0x6d5   : > { %22750 = vst [vmem:[#allocation26_spill] sm:$0xff] %v21948_v27  ;;  %v22755_v27 = vld [vmem:[#allocation59_spill] sm:$0xff] }
 0x6d6   : > { %v11709_v47 = vpop.f32.mrf.mxu1  ;;  %v12419_v29 = vpop.f32.mrf.mxu0 }
 0x6d7   : > { %v21957_v22 = vadd.f32 %v11709_v47, %v22753_v14  ;;  %v22758_v14 = vld [vmem:[#allocation75_spill] sm:$0xff] }
 0x6d8   : > { %v16324_v11 = vpop.f32.mrf.mxu1  ;;  %v21959_v1 = vpop.f32.mrf.mxu0 }
 0x6d9   : > { %22754 = vst [vmem:[#allocation14_spill] sm:$0xff] %v21959_v1 }
 0x6da   : > { %v12073_v57 = vpop.f32.mrf.mxu1  ;;  %v12424_v36 = vpop.f32.mrf.mxu0 }
 0x6db   : > { %v12074_v61 = vadd.f32 %v12073_v57, %v22755_v27  ;;  %v22759_v36 = vmax.f32 %v21746_v55, %v21749_v51  ;;  %v22760_v57 = vld [vmem:[#allocation33_spill] sm:$0xff]  ;;  %v22763_v51 = vmax.f32 %v21774_v6, %v21777_v20  ;;  %v22767_v20 = vmax.f32 %v21802_v49, %v21805_v60 }
 0x6dc   : > { %v16355_v8 = vpop.f32.mrf.mxu1  ;;  %v21964_v34 = vpop.f32.mrf.mxu0  ;;  %v22771_v49 = vmax.f32 %v21830_v24, %v21833_v30  ;;  %v22776_v30 = vld [vmem:[#allocation52_spill] sm:$0xff] }
 0x6dd   : > { %22756 = vst [vmem:[#allocation69_spill] sm:$0xff] %v21964_v34  ;;  %v21969_v38 = vmax.f32 %v22757_v5, %v12074_v61 }
 0x6de   : > { %v12078_v47 = vpop.f32.mrf.mxu1  ;;  %v12429_v29 = vpop.f32.mrf.mxu0 }
 0x6df   : > { %v12079_v11 = vadd.f32 %v12078_v47, %v22758_v14  ;;  %v22762_v47 = vld [vmem:[#allocation47_spill] sm:$0xff] }
 0x6e0   : > { %v16358_v1 = vpop.f32.mrf.mxu1  ;;  %v21972_v2 = vpop.f32.mrf.mxu0 }
 0x6e1   : > { %v21977_v10 = vmax.f32 %v22759_v36, %v12079_v11 }
 0x6e2   : > { %v12083_v27 = vpop.f32.mrf.mxu1  ;;  %v12434_v8 = vpop.f32.mrf.mxu0 }
 0x6e3   : > { %v12084_v34 = vadd.f32 %v12083_v27, %v22760_v57  ;;  %v22764_v27 = vld [vmem:[#allocation18_spill] sm:$0xff] }
 0x6e4   : > { %v16361_v7 = vpop.f32.mrf.mxu1  ;;  %v21980_v31 = vpop.f32.mrf.mxu0 }
 0x6e5   : > { %v21985_v61 = vmax.f32 %v22761_v23, %v12084_v34 }
 0x6e6   : > { %v12088_v1 = vpop.f32.mrf.mxu1  ;;  %v12439_v5 = vpop.f32.mrf.mxu0 }
 0x6e7   : > { %v12089_v29 = vadd.f32 %v12088_v1, %v22762_v47  ;;  %v22766_v5 = vld [vmem:[#allocation61_spill] sm:$0xff] }
 0x6e8   : > { %v16364_v14 = vpop.f32.mrf.mxu1  ;;  %v21988_v55 = vpop.f32.mrf.mxu0 }
 0x6e9   : > { %v21993_v11 = vmax.f32 %v22763_v51, %v12089_v29 }
 0x6ea   : > { %v12093_v7 = vpop.f32.mrf.mxu1  ;;  %v12444_v36 = vpop.f32.mrf.mxu0 }
 0x6eb   : > { %v12094_v8 = vadd.f32 %v12093_v7, %v22764_v27  ;;  %v22768_v36 = vld [vmem:[#allocation79_spill] sm:$0xff] }
 0x6ec   : > { %v16367_v57 = vpop.f32.mrf.mxu1  ;;  %v21996_v43 = vpop.f32.mrf.mxu0 }
 0x6ed   : > { %v22001_v34 = vmax.f32 %v22765_v4, %v12094_v8 }
 0x6ee   : > { %v12098_v23 = vpop.f32.mrf.mxu1  ;;  %v12449_v1 = vpop.f32.mrf.mxu0 }
 0x6ef   : > { %v12099_v47 = vadd.f32 %v12098_v23, %v22766_v5  ;;  %v22770_v1 = vld [vmem:[#allocation7_spill] sm:$0xff] }
 0x6f0   : > { %v16370_v14 = vpop.f32.mrf.mxu1  ;;  %v22004_v6 = vpop.f32.mrf.mxu0 }
 0x6f1   : > { %v22009_v29 = vmax.f32 %v22767_v20, %v12099_v47  ;;  %v22772_v20 = vld [vmem:[#allocation73_spill] sm:$0xff] }
 0x6f2   : > { %v12103_v51 = vpop.f32.mrf.mxu1  ;;  %v12454_v7 = vpop.f32.mrf.mxu0 }
 0x6f3   : > { %v12104_v27 = vadd.f32 %v12103_v51, %v22768_v36  ;;  %v22773_v36 = vmax.f32 %v21844_v56, %v21847_v48  ;;  %v22778_v48 = vld [vmem:[#allocation27_spill] sm:$0xff] }
 0x6f4   : > { %v16373_v57 = vpop.f32.mrf.mxu1  ;;  %v22012_v33 = vpop.f32.mrf.mxu0 }
 0x6f5   : > { %v22017_v8 = vmax.f32 %v22769_v52, %v12104_v27  ;;  %v22774_v27 = vld [vmem:[#allocation76_spill] sm:$0xff] }
 0x6f6   : > { %v12108_v4 = vpop.f32.mrf.mxu1  ;;  %v12459_v23 = vpop.f32.mrf.mxu0 }
 0x6f7   : > { %v12109_v5 = vadd.f32 %v12108_v4, %v22770_v1  ;;  %v22775_v4 = vmax.f32 %v21855_v59, %v21858_v46 }
 0x6f8   : > { %v16376_v14 = vpop.f32.mrf.mxu1 }
 0x6f9   : > { %v22023_v60 = vmax.f32 %v22771_v49, %v12109_v5  ;;  %v22777_v14 = vmax.f32 %v21866_v9, %v21869_v13 }
 0x6fa   : > { %v12113_v47 = vpop.f32.mrf.mxu1 }
 0x6fb   : > { %v12114_v51 = vadd.f32 %v12113_v47, %v22772_v20 }
 0x6fc   : > { %v16379_v7 = vpop.f32.mrf.mxu1 }
 0x6fd   : > { %v22029_v45 = vmax.f32 %v22773_v36, %v12114_v51  ;;  %v22779_v51 = vmax.f32 %v21877_v35, %v21880_v18 }
 0x6fe   : > { %v12118_v32 = vpop.f32.mrf.mxu1 }
 0x6ff   : > { %v12119_v57 = vadd.f32 %v12118_v32, %v22774_v27  ;;  %v22780_v32 = vmax.f32 %v21888_v17, %v21891_v37 }
 0x700   : > { %v16382_v52 = vpop.f32.mrf.mxu1 }
 0x701   : > { %v22035_v23 = vmax.f32 %v22775_v4, %v12119_v57  ;;  %v22781_v52 = vmax.f32 %v21899_v63, %v21902_v53 }
 0x702   : > { %v12123_v24 = vpop.f32.mrf.mxu1 }
 0x703   : > { %v12124_v1 = vadd.f32 %v12123_v24, %v22776_v30 }
 0x704   : > { %v16385_v5 = vpop.f32.mrf.mxu1 }
 0x705   : > { %v22041_v49 = vmax.f32 %v22777_v14, %v12124_v1  ;;  %v22783_v1 = vmax.f32 %v21921_v62, %v21924_v40  ;;  %v22784_v14 = vmax.f32 %v21932_v15, %v21935_v50 }
 0x706   : > { %v12128_v56 = vpop.f32.mrf.mxu1 }
 0x707   : > { %v12129_v47 = vadd.f32 %v12128_v56, %v22778_v48 }
 0x708   : > { %v16388_v20 = vpop.f32.mrf.mxu1 }
 0x709   : > { %v22047_v7 = vmax.f32 %v22779_v51, %v12129_v47 }
 0x70a   : > { %v12133_v59 = vpop.f32.mrf.mxu1 }
 0x70b   : > { %v12134_v46 = vadd.f32 %v12133_v59, %v21739_v28  ;;  %v22782_v28 = vmax.f32 %v21910_v41, %v21913_v12 }
 0x70c   : > { %v16391_v36 = vpop.f32.mrf.mxu1 }
 0x70d   : > { %v22053_v27 = vmax.f32 %v22780_v32, %v12134_v46 }
 0x70e   : > { %v12138_v9 = vpop.f32.mrf.mxu1 }
 0x70f   : > { %v12139_v13 = vadd.f32 %v12138_v9, %v21753_v19 }
 0x710   : > { %v16394_v57 = vpop.f32.mrf.mxu1 }
 0x711   : > { %v22059_v4 = vmax.f32 %v22781_v52, %v12139_v13 }
 0x712   : > { %v12143_v35 = vpop.f32.mrf.mxu1 }
 0x713   : > { %v12144_v18 = vadd.f32 %v12143_v35, %v21767_v16 }
 0x714   : > { %v16397_v24 = vpop.f32.mrf.mxu1 }
 0x715   : > { %v22065_v30 = vmax.f32 %v22782_v28, %v12144_v18 }
 0x716   : > { %v12148_v17 = vpop.f32.mrf.mxu1 }
 0x717   : > { %v12149_v37 = vadd.f32 %v12148_v17, %v21781_v54  ;;  %v22785_v54 = vmax.f32 %v21943_v39, %v21946_v26 }
 0x718   : > { %v16400_v19 = vpop.f32.mrf.mxu1 }
 0x719   : > { %v22071_v63 = vmax.f32 %v22783_v1, %v12149_v37 }
 0x71a   : > { %v12153_v53 = vpop.f32.mrf.mxu1 }
 0x71b   : > { %v12154_v5 = vadd.f32 %v12153_v53, %v21795_v0  ;;  %v22786_v0 = vmax.f32 %v21954_v44, %v21957_v22 }
 0x71c   : > { %v16403_v16 = vpop.f32.mrf.mxu1 }
 0x71d   : > { %v22077_v41 = vmax.f32 %v22784_v14, %v12154_v5 }
 0x71e   : > { %v12158_v12 = vpop.f32.mrf.mxu1 }
 0x71f   : > { %v12159_v56 = vadd.f32 %v12158_v12, %v21809_v21 }
 0x720   : > { %v16406_v48 = vpop.f32.mrf.mxu1 }
 0x721   : > { %v22083_v47 = vmax.f32 %v22785_v54, %v12159_v56 }
 0x722   : > { %v12163_v62 = vpop.f32.mrf.mxu1 }
 0x723   : > { %v12164_v40 = vadd.f32 %v12163_v62, %v21823_v58 }
 0x724   : > { %v16409_v20 = vpop.f32.mrf.mxu1 }
 0x725   : > { %v22090_v15 = vmax.f32 %v22786_v0, %v12164_v40 }
 0x726   : > { %v12527_v50 = vpop.f32.mrf.mxu1 }
 0x727   : > { %v12528_v51 = vadd.f32 %v12527_v50, %v21837_v3 }
 0x728   : > { %v16440_v21 = vpop.f32.mrf.mxu1 }
 0x729   : > { %v12621_v58 = vmax.f32 %v21969_v38, %v12528_v51  ;;  %v22787_v38 = vld [vmem:[#allocation77_spill] sm:$0xff] }
 0x72a   : > { %v12532_v26 = vpop.f32.mrf.mxu1 }
 0x72b   : > { %12640 = vst.msk [vmem:[%s22096_s27] sm:$0xff] %vm5440_vm2, %v12621_v58  ;;  %v12533_v22 = vadd.f32 %v12532_v26, %v21849_v42 }
 0x72c   : > { %v16443_v39 = vpop.f32.mrf.mxu1 }
 0x72d   : > { %v12622_v3 = vmax.f32 %v21977_v10, %v12533_v22  ;;  %v22788_v10 = vld [vmem:[#allocation72_spill] sm:$0xff] }
 0x72e   : > { %v12537_v44 = vpop.f32.mrf.mxu1 }
 0x72f   : > { %12641 = vst.msk [vmem:[%s22096_s27 + $0x8] sm:$0xff] %vm5440_vm2, %v12622_v3  ;;  %v12538_v59 = vadd.f32 %v12537_v44, %v21860_v25 }
 0x730   : > { %v16446_v46 = vpop.f32.mrf.mxu1 }
 0x731   : > { %v12623_v36 = vmax.f32 %v21985_v61, %v12538_v59  ;;  %v22789_v61 = vld [vmem:[#allocation43_spill] sm:$0xff] }
 0x732   : > { %v12542_v32 = vpop.f32.mrf.mxu1 }
 0x733   : > { %12642 = vst.msk [vmem:[%s22096_s27 + $0x10] sm:$0xff] %vm5440_vm2, %v12623_v36  ;;  %v12543_v9 = vadd.f32 %v12542_v32, %v22787_v38 }
 0x734   : > { %v16449_v13 = vpop.f32.mrf.mxu1 }
 0x735   : > { %v12624_v42 = vmax.f32 %v21993_v11, %v12543_v9  ;;  %v22790_v11 = vld [vmem:[#allocation13_spill] sm:$0xff] }
 0x736   : > { %v12547_v57 = vpop.f32.mrf.mxu1 }
 0x737   : > { %12643 = vst.msk [vmem:[%s22096_s27 + $0x18] sm:$0xff] %vm5440_vm2, %v12624_v42  ;;  %v12548_v52 = vadd.f32 %v12547_v57, %v22788_v10 }
 0x738   : > { %v16452_v35 = vpop.f32.mrf.mxu1 }
 0x739   : > { %v12625_v25 = vmax.f32 %v22001_v34, %v12548_v52  ;;  %v22791_v34 = vld [vmem:[#allocation20_spill] sm:$0xff] }
 0x73a   : > { %v12552_v18 = vpop.f32.mrf.mxu1 }
 0x73b   : > { %12644 = vst.msk [vmem:[%s22096_s27 + $0x20] sm:$0xff] %vm5440_vm2, %v12625_v25  ;;  %v12553_v24 = vadd.f32 %v12552_v18, %v22789_v61 }
 0x73c   : > { %v16455_v28 = vpop.f32.mrf.mxu1 }
 0x73d   : > { %v12626_v17 = vmax.f32 %v22009_v29, %v12553_v24  ;;  %v22792_v29 = vld [vmem:[#allocation42_spill] sm:$0xff] }
 0x73e   : > { %v12557_v37 = vpop.f32.mrf.mxu1 }
 0x73f   : > { %12645 = vst.msk [vmem:[%s22096_s27 + $0x28] sm:$0xff] %vm5440_vm2, %v12626_v17  ;;  %v12558_v19 = vadd.f32 %v12557_v37, %v22790_v11 }
 0x740   : > { %v16458_v1 = vpop.f32.mrf.mxu1 }
 0x741   : > { %v12627_v53 = vmax.f32 %v22017_v8, %v12558_v19  ;;  %v22793_v8 = vld [vmem:[#allocation51_spill] sm:$0xff] }
 0x742   : > { %v12562_v5 = vpop.f32.mrf.mxu1 }
 0x743   : > { %12646 = vst.msk [vmem:[%s22096_s27 + $0x30] sm:$0xff] %vm5440_vm2, %v12627_v53  ;;  %v12563_v16 = vadd.f32 %v12562_v5, %v22791_v34 }
 0x744   : > { %v16461_v14 = vpop.f32.mrf.mxu1 }
 0x745   : > { %v12628_v12 = vmax.f32 %v22023_v60, %v12563_v16  ;;  %v22794_v60 = vld [vmem:[#allocation26_spill] sm:$0xff] }
 0x746   : > { %v12567_v56 = vpop.f32.mrf.mxu1 }
 0x747   : > { %12647 = vst.msk [vmem:[%s22096_s27 + $0x38] sm:$0xff] %vm5440_vm2, %v12628_v12  ;;  %v12568_v48 = vadd.f32 %v12567_v56, %v22792_v29 }
 0x748   : > { %v16464_v54 = vpop.f32.mrf.mxu1 }
 0x749   : > { %v12629_v62 = vmax.f32 %v22029_v45, %v12568_v48  ;;  %v22795_v45 = vld [vmem:[#allocation14_spill] sm:$0xff] }
 0x74a   : > { %v12572_v40 = vpop.f32.mrf.mxu1 }
 0x74b   : > { %12648 = vst.msk [vmem:[%s22096_s27 + $0x40] sm:$0xff] %vm5440_vm2, %v12629_v62  ;;  %v12573_v20 = vadd.f32 %v12572_v40, %v22793_v8 }
 0x74c   : > { %v16467_v0 = vpop.f32.mrf.mxu1 }
 0x74d   : > { %v12630_v50 = vmax.f32 %v22035_v23, %v12573_v20  ;;  %v22796_v23 = vld [vmem:[#allocation69_spill] sm:$0xff] }
 0x74e   : > { %v12577_v51 = vpop.f32.mrf.mxu1 }
 0x74f   : > { %12649 = vst.msk [vmem:[%s22096_s27 + $0x48] sm:$0xff] %vm5440_vm2, %v12630_v50  ;;  %v12578_v21 = vadd.f32 %v12577_v51, %v22794_v60 }
 0x750   : > { %v16470_v58 = vpop.f32.mrf.mxu1 }
 0x751   : > { %v12631_v26 = vmax.f32 %v22041_v49, %v12578_v21 }
 0x752   : > { %v12582_v22 = vpop.f32.mrf.mxu1 }
 0x753   : > { %12650 = vst.msk [vmem:[%s22096_s27 + $0x50] sm:$0xff] %vm5440_vm2, %v12631_v26  ;;  %v12583_v39 = vadd.f32 %v12582_v22, %v22795_v45 }
 0x754   : > { %v16473_v3 = vpop.f32.mrf.mxu1 }
 0x755   : > { %v12632_v44 = vmax.f32 %v22047_v7, %v12583_v39 }
 0x756   : > { %v12587_v59 = vpop.f32.mrf.mxu1 }
 0x757   : > { %12651 = vst.msk [vmem:[%s22096_s27 + $0x58] sm:$0xff] %vm5440_vm2, %v12632_v44  ;;  %v12588_v46 = vadd.f32 %v12587_v59, %v22796_v23 }
 0x758   : > { %v16476_v36 = vpop.f32.mrf.mxu1 }
 0x759   : > { %v12633_v32 = vmax.f32 %v22053_v27, %v12588_v46 }
 0x75a   : > { %v12592_v38 = vpop.f32.mrf.mxu1 }
 0x75b   : > { %12652 = vst.msk [vmem:[%s22096_s27 + $0x60] sm:$0xff] %vm5440_vm2, %v12633_v32  ;;  %v12593_v49 = vadd.f32 %v12592_v38, %v21972_v2 }
 0x75c   : > { %v16479_v9 = vpop.f32.mrf.mxu1 }
 0x75d   : > { %v12634_v13 = vmax.f32 %v22059_v4, %v12593_v49 }
 0x75e   : > { %v12597_v42 = vpop.f32.mrf.mxu1 }
 0x75f   : > { %12653 = vst.msk [vmem:[%s22096_s27 + $0x68] sm:$0xff] %vm5440_vm2, %v12634_v13  ;;  %v12598_v7 = vadd.f32 %v12597_v42, %v21980_v31 }
 0x760   : > { %v16482_v57 = vpop.f32.mrf.mxu1 }
 0x761   : > { %v12635_v10 = vmax.f32 %v22065_v30, %v12598_v7 }
 0x762   : > { %v12602_v52 = vpop.f32.mrf.mxu1 }
 0x763   : > { %12654 = vst.msk [vmem:[%s22096_s27 + $0x70] sm:$0xff] %vm5440_vm2, %v12635_v10  ;;  %v12603_v27 = vadd.f32 %v12602_v52, %v21988_v55 }
 0x764   : > { %v16485_v35 = vpop.f32.mrf.mxu1 }
 0x765   : > { %v12636_v2 = vmax.f32 %v22071_v63, %v12603_v27 }
 0x766   : > { %v12607_v4 = vpop.f32.mrf.mxu1 }
 0x767   : > { %12655 = vst.msk [vmem:[%s22096_s27 + $0x78] sm:$0xff] %vm5440_vm2, %v12636_v2  ;;  %v12608_v25 = vadd.f32 %v12607_v4, %v21996_v43 }
 0x768   : > { %v16488_v18 = vpop.f32.mrf.mxu1 }
 0x769   : > { %v12637_v31 = vmax.f32 %v22077_v41, %v12608_v25 }
 0x76a   : > { %v12612_v61 = vpop.f32.mrf.mxu1 }
 0x76b   : > { %12656 = vst.msk [vmem:[%s22096_s27 + $0x80] sm:$0xff] %vm5440_vm2, %v12637_v31  ;;  %v12613_v30 = vadd.f32 %v12612_v61, %v22004_v6 }
 0x76c   : > { %v16491_v24 = vpop.f32.mrf.mxu1 }
 0x76d   : > { %v12638_v55 = vmax.f32 %v22083_v47, %v12613_v30 }
 0x76e   : > { %v12617_v28 = vpop.f32.mrf.mxu1 }
 0x76f   : > { %12657 = vst.msk [vmem:[%s22096_s27 + $0x88] sm:$0xff] %vm5440_vm2, %v12638_v55  ;;  %v12618_v63 = vadd.f32 %v12617_v28, %v22012_v33 }
 0x770   : > { %v16494_v17 = vpop.f32.mrf.mxu1 }
 0x771   : > { %v12639_v37 = vmax.f32 %v22090_v15, %v12618_v63 }
 0x773   : > { %12658 = vst.msk [vmem:[%s22096_s27 + $0x90] sm:$0xff] %vm5440_vm2, %v12639_v37 }
 0x774 PF: > { %s20_s30 = sadd.s32 1, %s16589_s30  }
 0x775   : > { %p17_p1 = scmp.ge.s32.totalorder %s20_s30, 4  }
 0x777   :  { %19 = sbr.rel (!%p17_p1) target bundleno = 1 (0x1), region = 94 }
 0x77c   :  { %12680 = vsyncpa [#allocation4], 1 }
 0x77d   :  { %12682 = vsyncpa [#allocation4 + $0x1], 1 }

</bundles_post_ra>
